<compile_context>
chip_gen: v6e
topology: v6e:2x2x1
jax: 0.10.0
libtpu: 0.0.40
codegen_flags: <defaults>
</compile_context>

<pallas_src>
import jax
import jax.numpy as jnp
from jax.experimental import pallas as pl
from jax.experimental.pallas import tpu as pltpu


def _rows_per_chunk(H, W):
    """Image rows per conv-matmul M-chunk (~256 rows of H*W per chunk)."""
    return min(H, max(1, 256 // W))


def _zero_halo(pad_ref):
    """Zero only the 1-wide halo of a (H+2, W+2, C) padded scratch buffer."""
    Hp, Wp, C = pad_ref.shape
    z_row = jnp.zeros((1, Wp, C), pad_ref.dtype)
    z_col = jnp.zeros((Hp, 1, C), pad_ref.dtype)
    pad_ref[0:1, :, :] = z_row
    pad_ref[Hp - 1:Hp, :, :] = z_row
    pad_ref[:, 0:1, :] = z_col
    pad_ref[:, Wp - 1:Wp, :] = z_col


def ibasicblock_kernel(x_ref, w1_ref, w2_ref,
                       s1_ref, b1_ref, s2_ref, b2_ref,
                       prelu_ref, s3_ref, b3_ref,
                       o_ref,
                       pad1_ref, pad2_ref, col1_ref, col2_ref):
    # x_ref:  (H, W, Cp)   one batch element per grid step (batch dim squeezed)
    # w1_ref: (9*Cp, Pp)   conv1 im2col weight matrix (bf16)
    # w2_ref: (9*Pp, Pp)   conv2 im2col weight matrix (bf16)
    # s*/b*:  (1, 1, C)    folded BN scale/bias (f32); prelu: per-channel slope
    # pad*:   (H+2, W+2, C) bf16 zero-halo scratch
    # col*:   (TMH, W, 9*C) bf16 im2col scratch for one M-chunk
    H, W, Cin = x_ref.shape
    P = o_ref.shape[-1]
    TMH = col1_ref.shape[0]

    s1 = s1_ref[...]; b1 = b1_ref[...]
    s2 = s2_ref[...]; b2 = b2_ref[...]
    s3 = s3_ref[...]; b3 = b3_ref[...]
    alpha = prelu_ref[...]

    _zero_halo(pad1_ref)
    _zero_halo(pad2_ref)

    # --- bn1 (folded affine, f32) -> pad1 interior (bf16 for the MXU) ---
    for r0 in range(0, H, TMH):
        rows = min(TMH, H - r0)
        xs = x_ref[r0:r0 + rows, :, :]
        pad1_ref[1 + r0:1 + r0 + rows, 1:W + 1, :] = (
            (xs * s1 + b1).astype(pad1_ref.dtype))

    # --- conv1: im2col + single K=9*Cin matmul per M-chunk, bn2 + PReLU ---
    for r0 in range(0, H, TMH):
        rows = min(TMH, H - r0)
        m = rows * W
        for t in range(9):
            ky, kx = divmod(t, 3)
            col1_ref[0:rows, :, t * Cin:(t + 1) * Cin] = (
                pad1_ref[r0 + ky:r0 + ky + rows, kx:kx + W, :])
        patches = col1_ref[0:rows, :, :].reshape(m, 9 * Cin)
        y = jnp.dot(patches, w1_ref[...],
                    preferred_element_type=jnp.float32).reshape(rows, W, P)
        y = y * s2 + b2
        y = jnp.where(y > 0, y, alpha * y)
        pad2_ref[1 + r0:1 + r0 + rows, 1:W + 1, :] = y.astype(pad2_ref.dtype)

    # --- conv2: im2col + single K=9*P matmul per M-chunk, bn3 + residual ---
    for r0 in range(0, H, TMH):
        rows = min(TMH, H - r0)
        m = rows * W
        for t in range(9):
            ky, kx = divmod(t, 3)
            col2_ref[0:rows, :, t * P:(t + 1) * P] = (
                pad2_ref[r0 + ky:r0 + ky + rows, kx:kx + W, :])
        patches = col2_ref[0:rows, :, :].reshape(m, 9 * P)
        z = jnp.dot(patches, w2_ref[...],
                    preferred_element_type=jnp.float32).reshape(rows, W, P)
        # downsample is None -> identity = x (original input, f32)
        o_ref[r0:r0 + rows, :, :] = z * s3 + b3 + x_ref[r0:r0 + rows, :, :]


def _fold_bn(gamma, beta, mean, var, cpad, eps=1e-5):
    scale = gamma / jnp.sqrt(var + eps)
    bias = beta - mean * scale
    extra = cpad - scale.shape[0]
    scale = jnp.pad(scale, (0, extra)).reshape(1, 1, cpad).astype(jnp.float32)
    bias = jnp.pad(bias, (0, extra)).reshape(1, 1, cpad).astype(jnp.float32)
    return scale, bias


def ibasicblock_forward(x_nchw, params):
    """x_nchw: (N, C, H, W) float32. Returns (N, C, H, W)."""
    x = jnp.transpose(x_nchw, (0, 2, 3, 1)).astype(jnp.float32)   # -> NHWC
    N, H, W, Cin = x.shape
    P = params["w1"].shape[0]
    assert params["w1"].shape[1] == Cin
    assert P == Cin, "stride=1 / downsample=None path needs inplanes == planes"

    LANE = 128
    Cp = -(-Cin // LANE) * LANE           # lane-dense channel padding
    Pp = -(-P // LANE) * LANE

    xp = jnp.pad(x, ((0, 0), (0, 0), (0, 0), (0, Cp - Cin)))

    # PyTorch conv weight (Cout, Cin, 3, 3) -> (3, 3, Cin, Cout) -> (9*Cinp, Coutp) bf16
    def prep_w(w, cin, cinp, cout, coutp):
        w = jnp.transpose(w, (2, 3, 1, 0))
        w = jnp.pad(w, ((0, 0), (0, 0), (0, cinp - cin), (0, coutp - cout)))
        return w.reshape(9 * cinp, coutp).astype(jnp.bfloat16)

    w1 = prep_w(params["w1"], Cin, Cp, P, Pp)
    w2 = prep_w(params["w2"], P, Pp, P, Pp)

    s1, b1 = _fold_bn(*params["bn1"], cpad=Cp)
    s2, b2 = _fold_bn(*params["bn2"], cpad=Pp)
    s3, b3 = _fold_bn(*params["bn3"], cpad=Pp)
    a = jnp.pad(params["prelu"].astype(jnp.float32), (0, Pp - P)).reshape(1, 1, Pp)

    TMH = _rows_per_chunk(H, W)

    const = lambda shape: pl.BlockSpec(shape, lambda n: (0,) * len(shape))

    out_nhwc = pl.pallas_call(
        ibasicblock_kernel,
        out_shape=jax.ShapeDtypeStruct((N, H, W, Pp), jnp.float32),
        grid_spec=pltpu.PrefetchScalarGridSpec(
            num_scalar_prefetch=0,
            grid=(N,),
            in_specs=[
                pl.BlockSpec((None, H, W, Cp), lambda n: (n, 0, 0, 0)),
                const((9 * Cp, Pp)),
                const((9 * Pp, Pp)),
                const((1, 1, Cp)), const((1, 1, Cp)),
                const((1, 1, Pp)), const((1, 1, Pp)),
                const((1, 1, Pp)),
                const((1, 1, Pp)), const((1, 1, Pp)),
            ],
            out_specs=pl.BlockSpec((None, H, W, Pp), lambda n: (n, 0, 0, 0)),
            scratch_shapes=[
                pltpu.VMEM((H + 2, W + 2, Cp), jnp.bfloat16),   # pad1
                pltpu.VMEM((H + 2, W + 2, Pp), jnp.bfloat16),   # pad2
                pltpu.VMEM((TMH, W, 9 * Cp), jnp.bfloat16),     # im2col chunk 1
                pltpu.VMEM((TMH, W, 9 * Pp), jnp.bfloat16),     # im2col chunk 2
            ],
        ),
        compiler_params=pltpu.CompilerParams(
            dimension_semantics=("parallel",),        # batch is independent
            vmem_limit_bytes=32 * 1024 * 1024,
        ),
    )(xp, w1, w2, s1, b1, s2, b2, a, s3, b3)

    out_nhwc = out_nhwc[..., :P]                      # drop channel padding
    return jnp.transpose(out_nhwc, (0, 3, 1, 2))      # -> NCHW


def ibasicblock_reference(x_nchw, params, eps=1e-5):
    """Plain-JAX f32 reference (NCHW, matches PyTorch eval-mode semantics)."""
    def bn(x, gb):
        g, b, m, v = gb
        g = g[None, :, None, None]; b = b[None, :, None, None]
        m = m[None, :, None, None]; v = v[None, :, None, None]
        return (x - m) / jnp.sqrt(v + eps) * g + b

    def conv(x, w):
        return jax.lax.conv_general_dilated(
            x, w, window_strides=(1, 1), padding=((1, 1), (1, 1)),
            dimension_numbers=("NCHW", "OIHW", "NCHW"))

    out = bn(x_nchw, params["bn1"])
    out = conv(out, params["w1"])
    out = bn(out, params["bn2"])
    a = params["prelu"][None, :, None, None]
    out = jnp.where(out > 0, out, a * out)
    out = conv(out, params["w2"])
    out = bn(out, params["bn3"])
    return out + x_nchw


def make_params(key, inplanes, planes):
    ks = jax.random.split(key, 16)

    def bn_params(k, c):
        k1, k2, k3, k4 = jax.random.split(k, 4)
        gamma = jax.random.uniform(k1, (c,), jnp.float32, 0.5, 1.5)
        beta = 0.1 * jax.random.normal(k2, (c,), jnp.float32)
        mean = 0.1 * jax.random.normal(k3, (c,), jnp.float32)
        var = jax.random.uniform(k4, (c,), jnp.float32, 0.5, 1.5)
        return (gamma, beta, mean, var)

    return {
        "bn1": bn_params(ks[0], inplanes),
        "w1": 0.1 * jax.random.normal(ks[1], (planes, inplanes, 3, 3), jnp.float32),
        "bn2": bn_params(ks[2], planes),
        "prelu": jax.random.uniform(ks[3], (planes,), jnp.float32, 0.1, 0.4),
        "w2": 0.1 * jax.random.normal(ks[4], (planes, planes, 3, 3), jnp.float32),
        "bn3": bn_params(ks[5], planes),
    }


if __name__ == "__main__":
    N, C, H, W = 2, 8, 16, 16            # inplanes == planes (expansion=1, stride=1)
    key = jax.random.PRNGKey(0)
    kx, kp = jax.random.split(key)

    x = jax.random.normal(kx, (N, C, H, W), jnp.float32)
    params = make_params(kp, C, C)

    out = jax.block_until_ready(ibasicblock_forward(x, params))
    ref = jax.block_until_ready(ibasicblock_reference(x, params))

    assert out.shape == ref.shape == (N, C, H, W)
    err = float(jnp.max(jnp.abs(out - ref)))
    mag = float(jnp.max(jnp.abs(ref)))
    # bf16 MXU operands with f32 accumulation -> ~1e-2 relative tolerance
    assert err <= 2e-2 * mag + 1e-3, f"max abs err {err} (ref magnitude {mag})"
    print("KERNEL_OK")
</pallas_src>

<mosaic_0001>
module attributes {stable_mosaic.version = 11 : i64} {
  func.func @ibasicblock_kernel(%arg0: i32, %arg1: memref<1x16x16x128xf32, #tpu.memory_space<vmem>>, %arg2: memref<1152x128xbf16, #tpu.memory_space<vmem>>, %arg3: memref<1152x128xbf16, #tpu.memory_space<vmem>>, %arg4: memref<1x1x128xf32, #tpu.memory_space<vmem>>, %arg5: memref<1x1x128xf32, #tpu.memory_space<vmem>>, %arg6: memref<1x1x128xf32, #tpu.memory_space<vmem>>, %arg7: memref<1x1x128xf32, #tpu.memory_space<vmem>>, %arg8: memref<1x1x128xf32, #tpu.memory_space<vmem>>, %arg9: memref<1x1x128xf32, #tpu.memory_space<vmem>>, %arg10: memref<1x1x128xf32, #tpu.memory_space<vmem>>, %arg11: memref<1x16x16x128xf32, #tpu.memory_space<vmem>>, %arg12: memref<18x18x128xbf16, #tpu.memory_space<vmem>>, %arg13: memref<18x18x128xbf16, #tpu.memory_space<vmem>>, %arg14: memref<16x16x1152xbf16, #tpu.memory_space<vmem>>, %arg15: memref<16x16x1152xbf16, #tpu.memory_space<vmem>>) attributes {dimension_semantics = [#tpu.dimension_semantics<parallel>], iteration_bounds = array<i64: 2>, scalar_prefetch = 0 : i64, scratch_operands = 4 : i64, tpu.core_type = #tpu.core_type<tc>, window_params = [{transform_indices = @transform_0, window_bounds = array<i64: 1, 16, 16, 128>}, {pipeline_mode = #tpu.pipeline_mode<synchronous>, transform_indices = @transform_1, window_bounds = array<i64: 1152, 128>}, {pipeline_mode = #tpu.pipeline_mode<synchronous>, transform_indices = @transform_2, window_bounds = array<i64: 1152, 128>}, {pipeline_mode = #tpu.pipeline_mode<synchronous>, transform_indices = @transform_3, window_bounds = array<i64: 1, 1, 128>}, {pipeline_mode = #tpu.pipeline_mode<synchronous>, transform_indices = @transform_4, window_bounds = array<i64: 1, 1, 128>}, {pipeline_mode = #tpu.pipeline_mode<synchronous>, transform_indices = @transform_5, window_bounds = array<i64: 1, 1, 128>}, {pipeline_mode = #tpu.pipeline_mode<synchronous>, transform_indices = @transform_6, window_bounds = array<i64: 1, 1, 128>}, {pipeline_mode = #tpu.pipeline_mode<synchronous>, transform_indices = @transform_7, window_bounds = array<i64: 1, 1, 128>}, {pipeline_mode = #tpu.pipeline_mode<synchronous>, transform_indices = @transform_8, window_bounds = array<i64: 1, 1, 128>}, {pipeline_mode = #tpu.pipeline_mode<synchronous>, transform_indices = @transform_9, window_bounds = array<i64: 1, 1, 128>}, {transform_indices = @transform_10, window_bounds = array<i64: 1, 16, 16, 128>}]} {
    %c0 = arith.constant 0 : index
    %c0_0 = arith.constant 0 : index
    %c0_1 = arith.constant 0 : index
    %0 = vector.load %arg4[%c0, %c0_0, %c0_1] : memref<1x1x128xf32, #tpu.memory_space<vmem>>, vector<1x1x128xf32>
    %c0_2 = arith.constant 0 : index
    %c0_3 = arith.constant 0 : index
    %c0_4 = arith.constant 0 : index
    %1 = vector.load %arg5[%c0_2, %c0_3, %c0_4] : memref<1x1x128xf32, #tpu.memory_space<vmem>>, vector<1x1x128xf32>
    %c0_5 = arith.constant 0 : index
    %c0_6 = arith.constant 0 : index
    %c0_7 = arith.constant 0 : index
    %2 = vector.load %arg6[%c0_5, %c0_6, %c0_7] : memref<1x1x128xf32, #tpu.memory_space<vmem>>, vector<1x1x128xf32>
    %c0_8 = arith.constant 0 : index
    %c0_9 = arith.constant 0 : index
    %c0_10 = arith.constant 0 : index
    %3 = vector.load %arg7[%c0_8, %c0_9, %c0_10] : memref<1x1x128xf32, #tpu.memory_space<vmem>>, vector<1x1x128xf32>
    %c0_11 = arith.constant 0 : index
    %c0_12 = arith.constant 0 : index
    %c0_13 = arith.constant 0 : index
    %4 = vector.load %arg9[%c0_11, %c0_12, %c0_13] : memref<1x1x128xf32, #tpu.memory_space<vmem>>, vector<1x1x128xf32>
    %c0_14 = arith.constant 0 : index
    %c0_15 = arith.constant 0 : index
    %c0_16 = arith.constant 0 : index
    %5 = vector.load %arg10[%c0_14, %c0_15, %c0_16] : memref<1x1x128xf32, #tpu.memory_space<vmem>>, vector<1x1x128xf32>
    %c0_17 = arith.constant 0 : index
    %c0_18 = arith.constant 0 : index
    %c0_19 = arith.constant 0 : index
    %6 = vector.load %arg8[%c0_17, %c0_18, %c0_19] : memref<1x1x128xf32, #tpu.memory_space<vmem>>, vector<1x1x128xf32>
    %cst = arith.constant 0.000000e+00 : bf16
    %7 = vector.broadcast %cst : bf16 to vector<1x18x128xbf16>
    %cst_20 = arith.constant 0.000000e+00 : bf16
    %8 = vector.broadcast %cst_20 : bf16 to vector<18x1x128xbf16>
    %c0_21 = arith.constant 0 : index
    %c0_22 = arith.constant 0 : index
    %c0_23 = arith.constant 0 : index
    %9 = vector.load %arg12[%c0_21, %c0_22, %c0_23] : memref<18x18x128xbf16, #tpu.memory_space<vmem>>, vector<1x18x128xbf16>
    tpu.vector_store %arg12[%c0_21, %c0_22, %c0_23], %7 {strides = array<i32>} : memref<18x18x128xbf16, #tpu.memory_space<vmem>>, vector<1x18x128xbf16>,
    %c17 = arith.constant 17 : index
    %c0_24 = arith.constant 0 : index
    %c0_25 = arith.constant 0 : index
    %10 = vector.load %arg12[%c17, %c0_24, %c0_25] : memref<18x18x128xbf16, #tpu.memory_space<vmem>>, vector<1x18x128xbf16>
    tpu.vector_store %arg12[%c17, %c0_24, %c0_25], %7 {strides = array<i32>} : memref<18x18x128xbf16, #tpu.memory_space<vmem>>, vector<1x18x128xbf16>,
    %c0_26 = arith.constant 0 : index
    %c0_27 = arith.constant 0 : index
    %c0_28 = arith.constant 0 : index
    %11 = vector.load %arg12[%c0_26, %c0_27, %c0_28] : memref<18x18x128xbf16, #tpu.memory_space<vmem>>, vector<18x1x128xbf16>
    tpu.vector_store %arg12[%c0_26, %c0_27, %c0_28], %8 {strides = array<i32>} : memref<18x18x128xbf16, #tpu.memory_space<vmem>>, vector<18x1x128xbf16>,
    %c0_29 = arith.constant 0 : index
    %c17_30 = arith.constant 17 : index
    %c0_31 = arith.constant 0 : index
    %12 = vector.load %arg12[%c0_29, %c17_30, %c0_31] : memref<18x18x128xbf16, #tpu.memory_space<vmem>>, vector<18x1x128xbf16>
    tpu.vector_store %arg12[%c0_29, %c17_30, %c0_31], %8 {strides = array<i32>} : memref<18x18x128xbf16, #tpu.memory_space<vmem>>, vector<18x1x128xbf16>,
    %cst_32 = arith.constant 0.000000e+00 : bf16
    %13 = vector.broadcast %cst_32 : bf16 to vector<1x18x128xbf16>
    %cst_33 = arith.constant 0.000000e+00 : bf16
    %14 = vector.broadcast %cst_33 : bf16 to vector<18x1x128xbf16>
    %c0_34 = arith.constant 0 : index
    %c0_35 = arith.constant 0 : index
    %c0_36 = arith.constant 0 : index
    %15 = vector.load %arg13[%c0_34, %c0_35, %c0_36] : memref<18x18x128xbf16, #tpu.memory_space<vmem>>, vector<1x18x128xbf16>
    tpu.vector_store %arg13[%c0_34, %c0_35, %c0_36], %13 {strides = array<i32>} : memref<18x18x128xbf16, #tpu.memory_space<vmem>>, vector<1x18x128xbf16>,
    %c17_37 = arith.constant 17 : index
    %c0_38 = arith.constant 0 : index
    %c0_39 = arith.constant 0 : index
    %16 = vector.load %arg13[%c17_37, %c0_38, %c0_39] : memref<18x18x128xbf16, #tpu.memory_space<vmem>>, vector<1x18x128xbf16>
    tpu.vector_store %arg13[%c17_37, %c0_38, %c0_39], %13 {strides = array<i32>} : memref<18x18x128xbf16, #tpu.memory_space<vmem>>, vector<1x18x128xbf16>,
    %c0_40 = arith.constant 0 : index
    %c0_41 = arith.constant 0 : index
    %c0_42 = arith.constant 0 : index
    %17 = vector.load %arg13[%c0_40, %c0_41, %c0_42] : memref<18x18x128xbf16, #tpu.memory_space<vmem>>, vector<18x1x128xbf16>
    tpu.vector_store %arg13[%c0_40, %c0_41, %c0_42], %14 {strides = array<i32>} : memref<18x18x128xbf16, #tpu.memory_space<vmem>>, vector<18x1x128xbf16>,
    %c0_43 = arith.constant 0 : index
    %c17_44 = arith.constant 17 : index
    %c0_45 = arith.constant 0 : index
    %18 = vector.load %arg13[%c0_43, %c17_44, %c0_45] : memref<18x18x128xbf16, #tpu.memory_space<vmem>>, vector<18x1x128xbf16>
    tpu.vector_store %arg13[%c0_43, %c17_44, %c0_45], %14 {strides = array<i32>} : memref<18x18x128xbf16, #tpu.memory_space<vmem>>, vector<18x1x128xbf16>,
    %c0_46 = arith.constant 0 : index
    %c0_47 = arith.constant 0 : index
    %c0_48 = arith.constant 0 : index
    %c0_49 = arith.constant 0 : index
    %19 = vector.load %arg1[%c0_46, %c0_47, %c0_48, %c0_49] : memref<1x16x16x128xf32, #tpu.memory_space<vmem>>, vector<1x16x16x128xf32>
    %20 = vector.shape_cast %19 : vector<1x16x16x128xf32> to vector<16x16x128xf32>
    %21 = vector.broadcast %0 : vector<1x1x128xf32> to vector<16x16x128xf32>
    %22 = arith.mulf %20, %21 : vector<16x16x128xf32>
    %23 = vector.broadcast %1 : vector<1x1x128xf32> to vector<16x16x128xf32>
    %24 = arith.addf %22, %23 : vector<16x16x128xf32>
    %25 = arith.truncf %24 : vector<16x16x128xf32> to vector<16x16x128xbf16>
    %c1 = arith.constant 1 : index
    %c1_50 = arith.constant 1 : index
    %c0_51 = arith.constant 0 : index
    %26 = vector.load %arg12[%c1, %c1_50, %c0_51] : memref<18x18x128xbf16, #tpu.memory_space<vmem>>, vector<16x16x128xbf16>
    tpu.vector_store %arg12[%c1, %c1_50, %c0_51], %25 {strides = array<i32>} : memref<18x18x128xbf16, #tpu.memory_space<vmem>>, vector<16x16x128xbf16>,
    %c0_52 = arith.constant 0 : index
    %c0_53 = arith.constant 0 : index
    %c0_54 = arith.constant 0 : index
    %27 = vector.load %arg12[%c0_52, %c0_53, %c0_54] : memref<18x18x128xbf16, #tpu.memory_space<vmem>>, vector<16x16x128xbf16>
    %c0_55 = arith.constant 0 : index
    %c0_56 = arith.constant 0 : index
    %c0_57 = arith.constant 0 : index
    %28 = vector.load %arg14[%c0_55, %c0_56, %c0_57] : memref<16x16x1152xbf16, #tpu.memory_space<vmem>>, vector<16x16x128xbf16>
    tpu.vector_store %arg14[%c0_55, %c0_56, %c0_57], %27 {strides = array<i32>} : memref<16x16x1152xbf16, #tpu.memory_space<vmem>>, vector<16x16x128xbf16>,
    %c0_58 = arith.constant 0 : index
    %c1_59 = arith.constant 1 : index
    %c0_60 = arith.constant 0 : index
    %29 = vector.load %arg12[%c0_58, %c1_59, %c0_60] : memref<18x18x128xbf16, #tpu.memory_space<vmem>>, vector<16x16x128xbf16>
    %c0_61 = arith.constant 0 : index
    %c0_62 = arith.constant 0 : index
    %c128 = arith.constant 128 : index
    %30 = vector.load %arg14[%c0_61, %c0_62, %c128] : memref<16x16x1152xbf16, #tpu.memory_space<vmem>>, vector<16x16x128xbf16>
    tpu.vector_store %arg14[%c0_61, %c0_62, %c128], %29 {strides = array<i32>} : memref<16x16x1152xbf16, #tpu.memory_space<vmem>>, vector<16x16x128xbf16>,
    %c0_63 = arith.constant 0 : index
    %c2 = arith.constant 2 : index
    %c0_64 = arith.constant 0 : index
    %31 = vector.load %arg12[%c0_63, %c2, %c0_64] : memref<18x18x128xbf16, #tpu.memory_space<vmem>>, vector<16x16x128xbf16>
    %c0_65 = arith.constant 0 : index
    %c0_66 = arith.constant 0 : index
    %c256 = arith.constant 256 : index
    %32 = vector.load %arg14[%c0_65, %c0_66, %c256] : memref<16x16x1152xbf16, #tpu.memory_space<vmem>>, vector<16x16x128xbf16>
    tpu.vector_store %arg14[%c0_65, %c0_66, %c256], %31 {strides = array<i32>} : memref<16x16x1152xbf16, #tpu.memory_space<vmem>>, vector<16x16x128xbf16>,
    %c1_67 = arith.constant 1 : index
    %c0_68 = arith.constant 0 : index
    %c0_69 = arith.constant 0 : index
    %33 = vector.load %arg12[%c1_67, %c0_68, %c0_69] : memref<18x18x128xbf16, #tpu.memory_space<vmem>>, vector<16x16x128xbf16>
    %c0_70 = arith.constant 0 : index
    %c0_71 = arith.constant 0 : index
    %c384 = arith.constant 384 : index
    %34 = vector.load %arg14[%c0_70, %c0_71, %c384] : memref<16x16x1152xbf16, #tpu.memory_space<vmem>>, vector<16x16x128xbf16>
    tpu.vector_store %arg14[%c0_70, %c0_71, %c384], %33 {strides = array<i32>} : memref<16x16x1152xbf16, #tpu.memory_space<vmem>>, vector<16x16x128xbf16>,
    %c1_72 = arith.constant 1 : index
    %c1_73 = arith.constant 1 : index
    %c0_74 = arith.constant 0 : index
    %35 = vector.load %arg12[%c1_72, %c1_73, %c0_74] : memref<18x18x128xbf16, #tpu.memory_space<vmem>>, vector<16x16x128xbf16>
    %c0_75 = arith.constant 0 : index
    %c0_76 = arith.constant 0 : index
    %c512 = arith.constant 512 : index
    %36 = vector.load %arg14[%c0_75, %c0_76, %c512] : memref<16x16x1152xbf16, #tpu.memory_space<vmem>>, vector<16x16x128xbf16>
    tpu.vector_store %arg14[%c0_75, %c0_76, %c512], %35 {strides = array<i32>} : memref<16x16x1152xbf16, #tpu.memory_space<vmem>>, vector<16x16x128xbf16>,
    %c1_77 = arith.constant 1 : index
    %c2_78 = arith.constant 2 : index
    %c0_79 = arith.constant 0 : index
    %37 = vector.load %arg12[%c1_77, %c2_78, %c0_79] : memref<18x18x128xbf16, #tpu.memory_space<vmem>>, vector<16x16x128xbf16>
    %c0_80 = arith.constant 0 : index
    %c0_81 = arith.constant 0 : index
    %c640 = arith.constant 640 : index
    %38 = vector.load %arg14[%c0_80, %c0_81, %c640] : memref<16x16x1152xbf16, #tpu.memory_space<vmem>>, vector<16x16x128xbf16>
    tpu.vector_store %arg14[%c0_80, %c0_81, %c640], %37 {strides = array<i32>} : memref<16x16x1152xbf16, #tpu.memory_space<vmem>>, vector<16x16x128xbf16>,
    %c2_82 = arith.constant 2 : index
    %c0_83 = arith.constant 0 : index
    %c0_84 = arith.constant 0 : index
    %39 = vector.load %arg12[%c2_82, %c0_83, %c0_84] : memref<18x18x128xbf16, #tpu.memory_space<vmem>>, vector<16x16x128xbf16>
    %c0_85 = arith.constant 0 : index
    %c0_86 = arith.constant 0 : index
    %c768 = arith.constant 768 : index
    %40 = vector.load %arg14[%c0_85, %c0_86, %c768] : memref<16x16x1152xbf16, #tpu.memory_space<vmem>>, vector<16x16x128xbf16>
    tpu.vector_store %arg14[%c0_85, %c0_86, %c768], %39 {strides = array<i32>} : memref<16x16x1152xbf16, #tpu.memory_space<vmem>>, vector<16x16x128xbf16>,
    %c2_87 = arith.constant 2 : index
    %c1_88 = arith.constant 1 : index
    %c0_89 = arith.constant 0 : index
    %41 = vector.load %arg12[%c2_87, %c1_88, %c0_89] : memref<18x18x128xbf16, #tpu.memory_space<vmem>>, vector<16x16x128xbf16>
    %c0_90 = arith.constant 0 : index
    %c0_91 = arith.constant 0 : index
    %c896 = arith.constant 896 : index
    %42 = vector.load %arg14[%c0_90, %c0_91, %c896] : memref<16x16x1152xbf16, #tpu.memory_space<vmem>>, vector<16x16x128xbf16>
    tpu.vector_store %arg14[%c0_90, %c0_91, %c896], %41 {strides = array<i32>} : memref<16x16x1152xbf16, #tpu.memory_space<vmem>>, vector<16x16x128xbf16>,
    %c2_92 = arith.constant 2 : index
    %c2_93 = arith.constant 2 : index
    %c0_94 = arith.constant 0 : index
    %43 = vector.load %arg12[%c2_92, %c2_93, %c0_94] : memref<18x18x128xbf16, #tpu.memory_space<vmem>>, vector<16x16x128xbf16>
    %c0_95 = arith.constant 0 : index
    %c0_96 = arith.constant 0 : index
    %c1024 = arith.constant 1024 : index
    %44 = vector.load %arg14[%c0_95, %c0_96, %c1024] : memref<16x16x1152xbf16, #tpu.memory_space<vmem>>, vector<16x16x128xbf16>
    tpu.vector_store %arg14[%c0_95, %c0_96, %c1024], %43 {strides = array<i32>} : memref<16x16x1152xbf16, #tpu.memory_space<vmem>>, vector<16x16x128xbf16>,
    %c0_97 = arith.constant 0 : index
    %c0_98 = arith.constant 0 : index
    %c0_99 = arith.constant 0 : index
    %45 = vector.load %arg14[%c0_97, %c0_98, %c0_99] : memref<16x16x1152xbf16, #tpu.memory_space<vmem>>, vector<16x16x1152xbf16>
    %46 = vector.shape_cast %45 : vector<16x16x1152xbf16> to vector<256x1152xbf16>
    %c0_100 = arith.constant 0 : index
    %c0_101 = arith.constant 0 : index
    %47 = vector.load %arg2[%c0_100, %c0_101] : memref<1152x128xbf16, #tpu.memory_space<vmem>>, vector<1152x128xbf16>
    %cst_102 = arith.constant dense<0.000000e+00> : vector<256x128xf32>
    %48 = tpu.matmul %46, %47, %cst_102 {dimension_numbers = #tpu.dot_dimension_numbers<[1], [0], [0], [1], [0, 0, 1, 1], [], []>} : vector<256x1152xbf16>, vector<1152x128xbf16>, vector<256x128xf32> -> vector<256x128xf32>
    %49 = vector.shape_cast %48 : vector<256x128xf32> to vector<16x16x128xf32>
    %50 = vector.broadcast %2 : vector<1x1x128xf32> to vector<16x16x128xf32>
    %51 = arith.mulf %49, %50 : vector<16x16x128xf32>
    %52 = vector.broadcast %3 : vector<1x1x128xf32> to vector<16x16x128xf32>
    %53 = arith.addf %51, %52 : vector<16x16x128xf32>
    %cst_103 = arith.constant 0.000000e+00 : f32
    %54 = vector.broadcast %cst_103 : f32 to vector<16x16x128xf32>
    %55 = arith.cmpf ogt, %53, %54 : vector<16x16x128xf32>
    %56 = vector.broadcast %6 : vector<1x1x128xf32> to vector<16x16x128xf32>
    %57 = arith.mulf %56, %53 : vector<16x16x128xf32>
    %58 = arith.select %55, %53, %57 : vector<16x16x128xi1>, vector<16x16x128xf32>
    %59 = arith.truncf %58 : vector<16x16x128xf32> to vector<16x16x128xbf16>
    %c1_104 = arith.constant 1 : index
    %c1_105 = arith.constant 1 : index
    %c0_106 = arith.constant 0 : index
    %60 = vector.load %arg13[%c1_104, %c1_105, %c0_106] : memref<18x18x128xbf16, #tpu.memory_space<vmem>>, vector<16x16x128xbf16>
    tpu.vector_store %arg13[%c1_104, %c1_105, %c0_106], %59 {strides = array<i32>} : memref<18x18x128xbf16, #tpu.memory_space<vmem>>, vector<16x16x128xbf16>,
    %c0_107 = arith.constant 0 : index
    %c0_108 = arith.constant 0 : index
    %c0_109 = arith.constant 0 : index
    %61 = vector.load %arg13[%c0_107, %c0_108, %c0_109] : memref<18x18x128xbf16, #tpu.memory_space<vmem>>, vector<16x16x128xbf16>
    %c0_110 = arith.constant 0 : index
    %c0_111 = arith.constant 0 : index
    %c0_112 = arith.constant 0 : index
    %62 = vector.load %arg15[%c0_110, %c0_111, %c0_112] : memref<16x16x1152xbf16, #tpu.memory_space<vmem>>, vector<16x16x128xbf16>
    tpu.vector_store %arg15[%c0_110, %c0_111, %c0_112], %61 {strides = array<i32>} : memref<16x16x1152xbf16, #tpu.memory_space<vmem>>, vector<16x16x128xbf16>,
    %c0_113 = arith.constant 0 : index
    %c1_114 = arith.constant 1 : index
    %c0_115 = arith.constant 0 : index
    %63 = vector.load %arg13[%c0_113, %c1_114, %c0_115] : memref<18x18x128xbf16, #tpu.memory_space<vmem>>, vector<16x16x128xbf16>
    %c0_116 = arith.constant 0 : index
    %c0_117 = arith.constant 0 : index
    %c128_118 = arith.constant 128 : index
    %64 = vector.load %arg15[%c0_116, %c0_117, %c128_118] : memref<16x16x1152xbf16, #tpu.memory_space<vmem>>, vector<16x16x128xbf16>
    tpu.vector_store %arg15[%c0_116, %c0_117, %c128_118], %63 {strides = array<i32>} : memref<16x16x1152xbf16, #tpu.memory_space<vmem>>, vector<16x16x128xbf16>,
    %c0_119 = arith.constant 0 : index
    %c2_120 = arith.constant 2 : index
    %c0_121 = arith.constant 0 : index
    %65 = vector.load %arg13[%c0_119, %c2_120, %c0_121] : memref<18x18x128xbf16, #tpu.memory_space<vmem>>, vector<16x16x128xbf16>
    %c0_122 = arith.constant 0 : index
    %c0_123 = arith.constant 0 : index
    %c256_124 = arith.constant 256 : index
    %66 = vector.load %arg15[%c0_122, %c0_123, %c256_124] : memref<16x16x1152xbf16, #tpu.memory_space<vmem>>, vector<16x16x128xbf16>
    tpu.vector_store %arg15[%c0_122, %c0_123, %c256_124], %65 {strides = array<i32>} : memref<16x16x1152xbf16, #tpu.memory_space<vmem>>, vector<16x16x128xbf16>,
    %c1_125 = arith.constant 1 : index
    %c0_126 = arith.constant 0 : index
    %c0_127 = arith.constant 0 : index
    %67 = vector.load %arg13[%c1_125, %c0_126, %c0_127] : memref<18x18x128xbf16, #tpu.memory_space<vmem>>, vector<16x16x128xbf16>
    %c0_128 = arith.constant 0 : index
    %c0_129 = arith.constant 0 : index
    %c384_130 = arith.constant 384 : index
    %68 = vector.load %arg15[%c0_128, %c0_129, %c384_130] : memref<16x16x1152xbf16, #tpu.memory_space<vmem>>, vector<16x16x128xbf16>
    tpu.vector_store %arg15[%c0_128, %c0_129, %c384_130], %67 {strides = array<i32>} : memref<16x16x1152xbf16, #tpu.memory_space<vmem>>, vector<16x16x128xbf16>,
    %c1_131 = arith.constant 1 : index
    %c1_132 = arith.constant 1 : index
    %c0_133 = arith.constant 0 : index
    %69 = vector.load %arg13[%c1_131, %c1_132, %c0_133] : memref<18x18x128xbf16, #tpu.memory_space<vmem>>, vector<16x16x128xbf16>
    %c0_134 = arith.constant 0 : index
    %c0_135 = arith.constant 0 : index
    %c512_136 = arith.constant 512 : index
    %70 = vector.load %arg15[%c0_134, %c0_135, %c512_136] : memref<16x16x1152xbf16, #tpu.memory_space<vmem>>, vector<16x16x128xbf16>
    tpu.vector_store %arg15[%c0_134, %c0_135, %c512_136], %69 {strides = array<i32>} : memref<16x16x1152xbf16, #tpu.memory_space<vmem>>, vector<16x16x128xbf16>,
    %c1_137 = arith.constant 1 : index
    %c2_138 = arith.constant 2 : index
    %c0_139 = arith.constant 0 : index
    %71 = vector.load %arg13[%c1_137, %c2_138, %c0_139] : memref<18x18x128xbf16, #tpu.memory_space<vmem>>, vector<16x16x128xbf16>
    %c0_140 = arith.constant 0 : index
    %c0_141 = arith.constant 0 : index
    %c640_142 = arith.constant 640 : index
    %72 = vector.load %arg15[%c0_140, %c0_141, %c640_142] : memref<16x16x1152xbf16, #tpu.memory_space<vmem>>, vector<16x16x128xbf16>
    tpu.vector_store %arg15[%c0_140, %c0_141, %c640_142], %71 {strides = array<i32>} : memref<16x16x1152xbf16, #tpu.memory_space<vmem>>, vector<16x16x128xbf16>,
    %c2_143 = arith.constant 2 : index
    %c0_144 = arith.constant 0 : index
    %c0_145 = arith.constant 0 : index
    %73 = vector.load %arg13[%c2_143, %c0_144, %c0_145] : memref<18x18x128xbf16, #tpu.memory_space<vmem>>, vector<16x16x128xbf16>
    %c0_146 = arith.constant 0 : index
    %c0_147 = arith.constant 0 : index
    %c768_148 = arith.constant 768 : index
    %74 = vector.load %arg15[%c0_146, %c0_147, %c768_148] : memref<16x16x1152xbf16, #tpu.memory_space<vmem>>, vector<16x16x128xbf16>
    tpu.vector_store %arg15[%c0_146, %c0_147, %c768_148], %73 {strides = array<i32>} : memref<16x16x1152xbf16, #tpu.memory_space<vmem>>, vector<16x16x128xbf16>,
    %c2_149 = arith.constant 2 : index
    %c1_150 = arith.constant 1 : index
    %c0_151 = arith.constant 0 : index
    %75 = vector.load %arg13[%c2_149, %c1_150, %c0_151] : memref<18x18x128xbf16, #tpu.memory_space<vmem>>, vector<16x16x128xbf16>
    %c0_152 = arith.constant 0 : index
    %c0_153 = arith.constant 0 : index
    %c896_154 = arith.constant 896 : index
    %76 = vector.load %arg15[%c0_152, %c0_153, %c896_154] : memref<16x16x1152xbf16, #tpu.memory_space<vmem>>, vector<16x16x128xbf16>
    tpu.vector_store %arg15[%c0_152, %c0_153, %c896_154], %75 {strides = array<i32>} : memref<16x16x1152xbf16, #tpu.memory_space<vmem>>, vector<16x16x128xbf16>,
    %c2_155 = arith.constant 2 : index
    %c2_156 = arith.constant 2 : index
    %c0_157 = arith.constant 0 : index
    %77 = vector.load %arg13[%c2_155, %c2_156, %c0_157] : memref<18x18x128xbf16, #tpu.memory_space<vmem>>, vector<16x16x128xbf16>
    %c0_158 = arith.constant 0 : index
    %c0_159 = arith.constant 0 : index
    %c1024_160 = arith.constant 1024 : index
    %78 = vector.load %arg15[%c0_158, %c0_159, %c1024_160] : memref<16x16x1152xbf16, #tpu.memory_space<vmem>>, vector<16x16x128xbf16>
    tpu.vector_store %arg15[%c0_158, %c0_159, %c1024_160], %77 {strides = array<i32>} : memref<16x16x1152xbf16, #tpu.memory_space<vmem>>, vector<16x16x128xbf16>,
    %c0_161 = arith.constant 0 : index
    %c0_162 = arith.constant 0 : index
    %c0_163 = arith.constant 0 : index
    %79 = vector.load %arg15[%c0_161, %c0_162, %c0_163] : memref<16x16x1152xbf16, #tpu.memory_space<vmem>>, vector<16x16x1152xbf16>
    %80 = vector.shape_cast %79 : vector<16x16x1152xbf16> to vector<256x1152xbf16>
    %c0_164 = arith.constant 0 : index
    %c0_165 = arith.constant 0 : index
    %81 = vector.load %arg3[%c0_164, %c0_165] : memref<1152x128xbf16, #tpu.memory_space<vmem>>, vector<1152x128xbf16>
    %cst_166 = arith.constant dense<0.000000e+00> : vector<256x128xf32>
    %82 = tpu.matmul %80, %81, %cst_166 {dimension_numbers = #tpu.dot_dimension_numbers<[1], [0], [0], [1], [0, 0, 1, 1], [], []>} : vector<256x1152xbf16>, vector<1152x128xbf16>, vector<256x128xf32> -> vector<256x128xf32>
    %83 = vector.shape_cast %82 : vector<256x128xf32> to vector<16x16x128xf32>
    %84 = vector.broadcast %4 : vector<1x1x128xf32> to vector<16x16x128xf32>
    %85 = arith.mulf %83, %84 : vector<16x16x128xf32>
    %86 = vector.broadcast %5 : vector<1x1x128xf32> to vector<16x16x128xf32>
    %87 = arith.addf %85, %86 : vector<16x16x128xf32>
    %c0_167 = arith.constant 0 : index
    %c0_168 = arith.constant 0 : index
    %c0_169 = arith.constant 0 : index
    %c0_170 = arith.constant 0 : index
    %88 = vector.load %arg1[%c0_167, %c0_168, %c0_169, %c0_170] : memref<1x16x16x128xf32, #tpu.memory_space<vmem>>, vector<1x16x16x128xf32>
    %89 = vector.shape_cast %88 : vector<1x16x16x128xf32> to vector<16x16x128xf32>
    %90 = arith.addf %87, %89 : vector<16x16x128xf32>
    %c0_171 = arith.constant 0 : index
    %c0_172 = arith.constant 0 : index
    %c0_173 = arith.constant 0 : index
    %c0_174 = arith.constant 0 : index
    %91 = vector.load %arg11[%c0_171, %c0_172, %c0_173, %c0_174] : memref<1x16x16x128xf32, #tpu.memory_space<vmem>>, vector<1x16x16x128xf32>
    %92 = vector.shape_cast %91 : vector<1x16x16x128xf32> to vector<16x16x128xf32>
    %93 = vector.shape_cast %90 : vector<16x16x128xf32> to vector<1x16x16x128xf32>
    tpu.vector_store %arg11[%c0_171, %c0_172, %c0_173, %c0_174], %93 {strides = array<i32>} : memref<1x16x16x128xf32, #tpu.memory_space<vmem>>, vector<1x16x16x128xf32>,
    return
  }
  func.func @transform_0(%arg0: i32) -> (i32, i32, i32, i32) {
    %c0_i32 = arith.constant 0 : i32
    %c0_i32_0 = arith.constant 0 : i32
    %c0_i32_1 = arith.constant 0 : i32
    %c0_i32_2 = arith.constant 0 : i32
    return %arg0, %c0_i32, %c0_i32_0, %c0_i32_1 : i32, i32, i32, i32
  }
  func.func @transform_1(%arg0: i32) -> (i32, i32) {
    %c0_i32 = arith.constant 0 : i32
    %c0_i32_0 = arith.constant 0 : i32
    %c0_i32_1 = arith.constant 0 : i32
    return %c0_i32, %c0_i32_0 : i32, i32
  }
  func.func @transform_2(%arg0: i32) -> (i32, i32) {
    %c0_i32 = arith.constant 0 : i32
    %c0_i32_0 = arith.constant 0 : i32
    %c0_i32_1 = arith.constant 0 : i32
    return %c0_i32, %c0_i32_0 : i32, i32
  }
  func.func @transform_3(%arg0: i32) -> (i32, i32, i32) {
    %c0_i32 = arith.constant 0 : i32
    %c0_i32_0 = arith.constant 0 : i32
    %c0_i32_1 = arith.constant 0 : i32
    %c0_i32_2 = arith.constant 0 : i32
    return %c0_i32, %c0_i32_0, %c0_i32_1 : i32, i32, i32
  }
  func.func @transform_4(%arg0: i32) -> (i32, i32, i32) {
    %c0_i32 = arith.constant 0 : i32
    %c0_i32_0 = arith.constant 0 : i32
    %c0_i32_1 = arith.constant 0 : i32
    %c0_i32_2 = arith.constant 0 : i32
    return %c0_i32, %c0_i32_0, %c0_i32_1 : i32, i32, i32
  }
  func.func @transform_5(%arg0: i32) -> (i32, i32, i32) {
    %c0_i32 = arith.constant 0 : i32
    %c0_i32_0 = arith.constant 0 : i32
    %c0_i32_1 = arith.constant 0 : i32
    %c0_i32_2 = arith.constant 0 : i32
    return %c0_i32, %c0_i32_0, %c0_i32_1 : i32, i32, i32
  }
  func.func @transform_6(%arg0: i32) -> (i32, i32, i32) {
    %c0_i32 = arith.constant 0 : i32
    %c0_i32_0 = arith.constant 0 : i32
    %c0_i32_1 = arith.constant 0 : i32
    %c0_i32_2 = arith.constant 0 : i32
    return %c0_i32, %c0_i32_0, %c0_i32_1 : i32, i32, i32
  }
  func.func @transform_7(%arg0: i32) -> (i32, i32, i32) {
    %c0_i32 = arith.constant 0 : i32
    %c0_i32_0 = arith.constant 0 : i32
    %c0_i32_1 = arith.constant 0 : i32
    %c0_i32_2 = arith.constant 0 : i32
    return %c0_i32, %c0_i32_0, %c0_i32_1 : i32, i32, i32
  }
  func.func @transform_8(%arg0: i32) -> (i32, i32, i32) {
    %c0_i32 = arith.constant 0 : i32
    %c0_i32_0 = arith.constant 0 : i32
    %c0_i32_1 = arith.constant 0 : i32
    %c0_i32_2 = arith.constant 0 : i32
    return %c0_i32, %c0_i32_0, %c0_i32_1 : i32, i32, i32
  }
  func.func @transform_9(%arg0: i32) -> (i32, i32, i32) {
    %c0_i32 = arith.constant 0 : i32
    %c0_i32_0 = arith.constant 0 : i32
    %c0_i32_1 = arith.constant 0 : i32
    %c0_i32_2 = arith.constant 0 : i32
    return %c0_i32, %c0_i32_0, %c0_i32_1 : i32, i32, i32
  }
  func.func @transform_10(%arg0: i32) -> (i32, i32, i32, i32) {
    %c0_i32 = arith.constant 0 : i32
    %c0_i32_0 = arith.constant 0 : i32
    %c0_i32_1 = arith.constant 0 : i32
    %c0_i32_2 = arith.constant 0 : i32
    return %arg0, %c0_i32, %c0_i32_0, %c0_i32_1 : i32, i32, i32, i32
  }
}

</mosaic_0001>

<bundles_post_ra>
// kernel: tpu_custom_call.1
= control target key start
LH: loop header
LB: loop body
LE: loop exit
PB: predicated region body
PF: predicated region fallthrough
CT: control target
= control target key end

     0   :  { %s17458_s0 = inlined_call_operand.hbm [shape: f32[2,16,16,128], index: 0, kind: input, shape index: {}]   ;;  %s17459_s1 = inlined_call_operand.hbm [shape: bf16[1152,128], index: 1, kind: input, shape index: {}]   ;;  %s17460_s2 = inlined_call_operand.hbm [shape: bf16[1152,128], index: 2, kind: input, shape index: {}]   ;;  %s17461_s3 = inlined_call_operand.vmem [shape: f32[1,1,128], index: 3, kind: input, shape index: {}]   ;;  %s17462_s4 = inlined_call_operand.vmem [shape: f32[1,1,128], index: 4, kind: input, shape index: {}]   ;;  %s17463_s5 = inlined_call_operand.vmem [shape: f32[1,1,128], index: 5, kind: input, shape index: {}]   ;;  %s17464_s6 = inlined_call_operand.vmem [shape: f32[1,1,128], index: 6, kind: input, shape index: {}]   ;;  %s17465_s7 = inlined_call_operand.vmem [shape: f32[1,1,128], index: 7, kind: input, shape index: {}]   ;;  %s17466_s8 = inlined_call_operand.vmem [shape: f32[1,1,128], index: 8, kind: input, shape index: {}]   ;;  %s17467_s9 = inlined_call_operand.vmem [shape: f32[1,1,128], index: 9, kind: input, shape index: {}]   ;;  %s17468_s10 = inlined_call_operand.hbm [shape: f32[2,16,16,128], index: 10, kind: output, shape index: {}]  }
   0x1   :  { %17482 = sst [smem:[#allocation57_spill]] %s17459_s1 }
   0x2   :  { %17483 = sst [smem:[#allocation58_spill]] %s17460_s2 }
   0x3   :  { %15 = vsyncpa [#allocation7], 0 }
   0x4   :  { %17 = vsyncpa [#allocation7 + $0x1], 0 }
   0x5   :  { %18 = vsyncpa [#allocation10], 0 }
   0x6   :  { %19 = vsyncpa [#allocation8], 0 }
   0x7   :  { %21 = vsyncpa [#allocation8 + $0x1], 0  ;;  %s14396_s13 = smov 0   ;;  %s14398_s14 = smov 0  }
   0x8   :  { %s14400_s15 = smov 0   ;;  %s14402_s16 = smov 0  }
   0x9 LB: > { %17484 = sst [smem:[#allocation16_spill]] %s14324_s15  ;;  %s14417_s17 = sadd.s32 4294967295, %s14328_s16   ;;  %s14328_s16 = sphi %s14402_s16, %s17662_s16   ;;  %s14324_s15 = sphi %s14400_s15, %s17659_s15   ;;  %s14320_s14 = sphi %s14398_s14, %s17661_s14   ;;  %s14316_s13 = sphi %s14396_s13, %s17660_s13  }
   0xa   : > { %s11830_s18 = sadd.s32 4294967294, %s14328_s16   ;;  %p47_p0 = scmp.ne.s32.totalorder %s14320_s14, %s14316_s13 }
   0xb   : > { %p17469_p1 = scmp.eq.s32.totalorder %s14417_s17, 0  ;;  %p266_p3 = scmp.eq.s32.totalorder %s11830_s18, 1 }
   0xc   : > { %p11831_p5 = scmp.ge.s32.totalorder %s14328_s16, 1  ;;  %p273_p7 = scmp.lt.s32.totalorder %s14328_s16, 3 }
   0xd   : > { %p14426_p4 = por %p17469_p1, %p47_p0  ;;  %p14431_p6 = por %p266_p3, %p47_p0 }
   0xe   : > { %p14436_p8 = pnand %p11831_p5, %p273_p7  ;;  %s14330_s22 = smov [#allocation9]  }
   0xf   : > { %s17485_s19 = scalar_select %p14426_p4, 1, 0 }
  0x10   : > { %s17486_s20 = scalar_select %p14431_p6, 1, 0 }
  0x11   : > { %s17487_s21 = scalar_select %p14436_p8, 1, 0 }
  0x12   : > { %s285_s23 = sshll.u32 %s14330_s22, 4  ;;  %p13565_p9 = pneg %p14436_p8  ;;  %s286_s23 = int_to_ptr.vmem [resolvable:$true] %s285_s23 }
  0x13   : > { %s14331_s25 = smov [#allocation11]   ;;  %s14191_s27 = scalar_lea.vmem %s286_s23, 9216 }
  0x14   : > { %p14445_p11 = pnand %p13565_p9, %p17469_p1  ;;  %s298_s26 = sshll.u32 %s14331_s25, 4  ;;  %s299_s26 = int_to_ptr.vmem [resolvable:$true] %s298_s26 }
  0x15   : > { %p14192_p13 = scmp.ne.s32.totalorder %s286_s23, %s14191_s27  ;;  %p14199_p5 = scmp.lt.s32.totalorder %s286_s23, %s286_s23 }
  0x16   : > { %p14182_p12 = pneg %p14445_p11  ;;  %p14200_p7 = scmp.lt.s32.totalorder %s14191_s27, %s14191_s27 }
  0x18   : > { %p14194_p0 = pnand %p14192_p13, %p14182_p12  ;;  %p14201_p10 = por %p14200_p7, %p14199_p5 }
  0x1a   : > { %p14195_p3 = pneg %p14194_p0 }
  0x1c   : > { %p14202_p9 = pnand %p14201_p10, %p14195_p3 }
  0x1e   : > { %14205 = shalt.err (!%p14202_p9)
}
  0x1f   : > { %s14332_s28 = smov 64   ;;  %s14333_s29 = smov 4  }
  0x20   : > { %s17489_s1 = sld [smem:[#allocation57_spill]]  ;;  %s14217_s12 = scalar_lea.vmem %s299_s26, 9216 }
  0x21   : > { %p14218_p1 = scmp.ne.s32.totalorder %s299_s26, %s14217_s12  ;;  %p14225_p2 = scmp.lt.s32.totalorder %s299_s26, %s299_s26 }
  0x22   : > { %p14226_p6 = scmp.lt.s32.totalorder %s14217_s12, %s14217_s12 }
  0x23   : > { %p14220_p13 = pnand %p14218_p1, %p14182_p12 }
  0x24   : > { %p14227_p5 = por %p14226_p6, %p14225_p2 }
  0x25   : > { %p14221_p0 = pneg %p14220_p13 }
  0x26   : > { %13568 = dma.hbm_to_vmem [thread:$0]  (!%p14445_p11), %s17489_s1, 9216, %s286_s23, [#allocation10], %s14332_s28, %s14332_s28, %s14333_s29  }
  0x27   : > { %p14228_p10 = pnand %p14227_p5, %p14221_p0 }
  0x29   : > { %14231 = shalt.err (!%p14228_p10)
}
  0x2a   : > { %s17490_s2 = sld [smem:[#allocation58_spill]]  ;;  %s14468_s23 = sadd.s32 1, %s14328_s16  }
  0x2b   : > { %s34_s25 = sadd.s32 1, %s14324_s15  ;;  %s31_s24 = ssub.s32 %s14328_s16, %s14468_s23 }
  0x2c   : > { %p41_p1 = scmp.ne.s32.totalorder %s14324_s15, %s14320_s14  ;;  %p32_p2 = scmp.eq.s32.totalorder %s31_s24, 0 }
  0x2d   : > { %p42_p6 = scmp.eq.s32.totalorder %s14328_s16, 0  ;;  %p17491_p12 = scmp.eq.s32.totalorder %s14417_s17, 1 }
  0x2e   : > { %p13582_p7 = scmp.lt.s32.totalorder %s14328_s16, 2  ;;  %s333_s11 = sand.u32 1, %s14324_s15  }
  0x2f   : > { %p14478_p3 = por %p17491_p12, %p41_p1  ;;  %p43_p9 = por %p42_p6, %p41_p1 }
  0x30   : > { %13571 = dma.hbm_to_vmem [thread:$0]  (!%p14445_p11), %s17490_s2, 9216, %s299_s26, [#allocation10], %s14332_s28, %s14332_s28, %s14333_s29  }
  0x31   : > { %s17492_s27 = scalar_select %p14478_p3, 1, 0 }
  0x32   : > { %s14484_s30 = scalar_select %p32_p2, %s14324_s15, %s34_s25  }
  0x33   : > { %s11835_s12 = sshll.u32 %s333_s11, 8  ;;  %s12447_s26 = sshll.u32 %s14328_s16, 12 }
  0x34   : > { %17493 = sst [smem:[#allocation17_spill]] %s14484_s30  ;;  %s14491_s18 = scalar_lea.hbm %s17458_s0, %s12447_s26 }
  0x35   : > { %s337_s22 = scalar_lea.vmem [#allocation6], %s11835_s12  ;;  %p14495_p11 = pnand %p13582_p7, %p43_p9 }
  0x36   : > { %s344_s24 = sshll.u32 %s337_s22, 4  ;;  %s14499_s25 = scalar_lea.sflag [#allocation7], %s333_s11  ;;  %s14493_s24 = int_to_ptr.vmem [resolvable:$true] %s344_s24 }
  0x37   : > { %s14232_s2 = scalar_lea.hbm %s14491_s18, 4096  ;;  %p14234_p0 = pneg %p14495_p11 }
  0x38   : > { %p14233_p13 = scmp.ne.s32.totalorder %s14491_s18, %s14232_s2  ;;  %s14237_s12 = scalar_lea.hbm %s17458_s0, 8192 }
  0x39   : > { %p14238_p1 = scmp.lt.s32.totalorder %s14491_s18, %s17458_s0  ;;  %p14239_p2 = scmp.lt.s32.totalorder %s14237_s12, %s14232_s2 }
  0x3a   : > { %p14235_p5 = pnand %p14234_p0, %p14233_p13 }
  0x3b   : > { %p14240_p6 = por %p14239_p2, %p14238_p1 }
  0x3c   : > { %p14236_p10 = pneg %p14235_p5 }
  0x3e   : > { %p14241_p12 = pnand %p14240_p6, %p14236_p10 }
  0x40   : > { %14244 = shalt.err (!%p14241_p12)
}
  0x41   : > { %s14245_s11 = scalar_lea.vmem %s14493_s24, 4096  ;;  %s14334_s30 = smov [#allocation6]  }
  0x42   : > { %p14246_p7 = scmp.ne.s32.totalorder %s14493_s24, %s14245_s11  ;;  %s14250_s15 = sshll.u32 %s14334_s30, 4  ;;  %s14251_s15 = int_to_ptr.vmem [resolvable:$false] %s14250_s15 }
  0x43   : > { %s14252_s26 = scalar_lea.vmem %s14251_s15, 8192  ;;  %p14253_p5 = scmp.lt.s32.totalorder %s14493_s24, %s14251_s15 }
  0x44   : > { %p14248_p9 = pnand %p14246_p7, %p14234_p0  ;;  %p14254_p3 = scmp.lt.s32.totalorder %s14252_s26, %s14245_s11 }
  0x46   : > { %p14249_p13 = pneg %p14248_p9  ;;  %p14255_p4 = por %p14254_p3, %p14253_p5 }
  0x48   : > { %p14256_p8 = pnand %p14255_p4, %p14249_p13 }
  0x4a   : > { %14259 = shalt.err (!%p14256_p8)
}
  0x4b   : > { %s14335_s2 = smov 128   ;;  %s14336_s28 = smov 8  }
  0x4c   : > { %13575 = dma.hbm_to_vmem [thread:$0]  (!%p14495_p11), %s14491_s18, 4096, %s14493_s24, %s14499_s25, %s14335_s2, %s14335_s2, %s14336_s28  }
  0x4d   : > { %p17495_p0 = scmp.ne.s32.totalorder %s17487_s21, 0 }
  0x4f   : > { %356 = sbr.rel (%p17495_p0) target bundleno = 1523 (0x5f3), region = 60 }
  0x54   : > { %s14523_s30 = sand.u32 1, %s14320_s14   ;;  %p17496_p4 = scmp.ne.s32.totalorder %s17485_s19, 0 }
  0x55   : > { %s11839_s15 = sshll.u32 %s14523_s30, 8  ;;  %s359_s12 = scalar_lea.sflag [#allocation7], %s14523_s30 }
  0x56   : > { %s14529_s29 = scalar_lea.vmem [#allocation6], %s11839_s15 }
  0x57   : > { %14303 = dma.done.wait (%p17496_p4), %s359_s12, 4096  }
  0x58   : > { %14305 = vsyncadd (%p17496_p4), %s359_s12, 4294963200  ;;  %p17497_p8 = scmp.eq.s32.totalorder %s14417_s17, 0 }
  0x5a   : > { %14307 = dma.done.wait (%p17497_p8), [#allocation10], 18432   ;;  %p17498_p3 = pmov %p17497_p8 }
  0x5b   : > { %v14337_v0 = vmov 0   ;;  %v13627_v1 = vld [vmem:[#allocation9 + $0x78] sm:$0xff]   ;;  %v13631_v5 = vld [vmem:[#allocation9 + $0x70] sm:$0xff]   ;;  %v13635_v9 = vld [vmem:[#allocation9 + $0x68] sm:$0xff]   ;;  %vm423_vm0 = vsmask.f32 256 }
  0x5c   : > { %14309 = vsyncadd (%p17498_p3), [#allocation10], 4294948864  ;;  %415 = vst [vmem:[#allocation2] sm:$0xf] %v14337_v0  ;;  %v13628_v2 = vld [vmem:[#allocation9 + $0xf8] sm:$0xff]   ;;  %12513 = vmatprep.subr.bf16.mxu0 %v13627_v1  ;;  %v13632_v6 = vld [vmem:[#allocation9 + $0xf0] sm:$0xff]  }
  0x5d   : > { %416 = vst [vmem:[#allocation2 + $0x4] sm:$0xf] %v14337_v0  ;;  %417 = vst [vmem:[#allocation2 + $0x8] sm:$0x1] %v14337_v0  ;;  %v13629_v3 = vld [vmem:[#allocation9 + $0x38] sm:$0xff]   ;;  %12625 = vmatprep.subr.bf16.mxu1 %v13628_v2  ;;  %v13633_v7 = vld [vmem:[#allocation9 + $0x30] sm:$0xff]  }
  0x5e   : > { %419 = vst [vmem:[#allocation2 + $0xcc] sm:$0xf] %v14337_v0  ;;  %420 = vst [vmem:[#allocation2 + $0xd0] sm:$0xf] %v14337_v0  ;;  %v13630_v4 = vld [vmem:[#allocation9 + $0xb8] sm:$0xff]   ;;  %12514 = vmatpush3.bf16.msra.mxu0 %v13629_v3  ;;  %v13634_v8 = vld [vmem:[#allocation9 + $0xb0] sm:$0xff]  }
  0x5f   : > { %421 = vst [vmem:[#allocation2 + $0xd4] sm:$0x1] %v14337_v0  ;;  %535 = vst [vmem:[#allocation3] sm:$0xf] %v14337_v0  ;;  %12626 = vmatpush3.bf16.msra.mxu1 %v13630_v4  ;;  %12515 = vmatprep.subr.bf16.mxu0 %v13631_v5  ;;  %v13636_v10 = vld [vmem:[#allocation9 + $0xe8] sm:$0xff]   ;;  %v13639_v13 = vld [vmem:[#allocation9 + $0x60] sm:$0xff]  }
  0x60   : > { %536 = vst [vmem:[#allocation3 + $0x4] sm:$0xf] %v14337_v0  ;;  %537 = vst [vmem:[#allocation3 + $0x8] sm:$0x1] %v14337_v0  ;;  %12627 = vmatprep.subr.bf16.mxu1 %v13632_v6  ;;  %v13637_v11 = vld [vmem:[#allocation9 + $0x28] sm:$0xff]   ;;  %v13640_v14 = vld [vmem:[#allocation9 + $0xe0] sm:$0xff]  }
  0x61   : > { %539 = vst [vmem:[#allocation3 + $0xcc] sm:$0xf] %v14337_v0  ;;  %540 = vst [vmem:[#allocation3 + $0xd0] sm:$0xf] %v14337_v0  ;;  %v13638_v12 = vld [vmem:[#allocation9 + $0xa8] sm:$0xff]   ;;  %v13641_v15 = vld [vmem:[#allocation9 + $0x20] sm:$0xff]  }
  0x62   : > { %541 = vst [vmem:[#allocation3 + $0xd4] sm:$0x1] %v14337_v0  ;;  %12516 = vmatpush3.bf16.msra.mxu0 %v13633_v7  ;;  %vm479_vm1 = vsmask.f32 7938  ;;  %v13642_v16 = vld [vmem:[#allocation9 + $0xa0] sm:$0xff]   ;;  %v13643_v17 = vld [vmem:[#allocation9 + $0x58] sm:$0xff]  }
  0x63   : > { %12628 = vmatpush3.bf16.msra.mxu1 %v13634_v8  ;;  %12517 = vmatprep.subr.bf16.mxu0 %v13635_v9  ;;  %v13644_v18 = vld [vmem:[#allocation9 + $0xd8] sm:$0xff]   ;;  %vm422_vm2 = vcmask 1040384   ;;  %v13647_v21 = vld [vmem:[#allocation9 + $0x50] sm:$0xff]   ;;  %v13651_v27 = vld [vmem:[#allocation9 + $0x48] sm:$0xff]   ;;  %vm1950_vm5 = vcmask 1042432   ;;  %vm1951_vm6 = vcmask 1046532  }
  0x64   : > { %12629 = vmatprep.subr.bf16.mxu1 %v13636_v10  ;;  %v13645_v19 = vld [vmem:[#allocation9 + $0x18] sm:$0xff]   ;;  %v13648_v22 = vld [vmem:[#allocation9 + $0xd0] sm:$0xff]   ;;  %vm14540_vm3 = vmand %vm422_vm2, %vm423_vm0  ;;  %vm1403_vm7 = vsmask.f32 3328  ;;  %vm1404_vm8 = vsmask.f32 7440 }
  0x65   : > { %v13646_v20 = vld [vmem:[#allocation9 + $0x98] sm:$0xff]   ;;  %v13649_v23 = vld [vmem:[#allocation9 + $0x10] sm:$0xff]   ;;  %vm14545_vm4 = vmand %vm422_vm2, %vm479_vm1  ;;  %v17503_v58 = vmov 0  ;;  %vm854_vm10 = vsmask.f32 4368  ;;  %vm1177_vm11 = vcmask 1043456  }
  0x66   : > { %12518 = vmatpush3.bf16.msra.mxu0 %v13637_v11  ;;  %v13650_v26 = vld [vmem:[#allocation9 + $0x90] sm:$0xff]   ;;  %v13652_v28 = vld [vmem:[#allocation9 + $0xc8] sm:$0xff]   ;;  %v13655_v31 = vld [vmem:[#allocation9 + $0x40] sm:$0xff]   ;;  %s17196_s24 = scalar_lea.vmem [#allocation12], %s11839_s15  ;;  %s12512_s15 = sshll.u32 %s14417_s17, 12 }
  0x67   : > { %12630 = vmatpush3.bf16.msra.mxu1 %v13638_v12  ;;  %12519 = vmatprep.subr.bf16.mxu0 %v13639_v13  ;;  %v13653_v29 = vld [vmem:[#allocation9 + $0x8] sm:$0xff]   ;;  %v13656_v32 = vld [vmem:[#allocation9 + $0xc0] sm:$0xff]   ;;  %v425_v35 = vld [vmem:[#allocation2] sm:$0x1]  ;;  %s11738_s25 = sshll.u32 %s17196_s24, 4  ;;  %s17411_s26 = scalar_lea.hbm %s17468_s10, %s12512_s15  ;;  %s17413_s25 = int_to_ptr.vmem [resolvable:$true] %s11738_s25 }
  0x68   : > { %12631 = vmatprep.subr.bf16.mxu1 %v13640_v14  ;;  %v13654_v30 = vld [vmem:[#allocation9 + $0x88] sm:$0xff]   ;;  %v13657_v33 = vld [vmem:[#allocation9] sm:$0xff]   ;;  %v481_v36 = vld [vmem:[#allocation2 + $0x8] sm:$0x1]  ;;  %v426_v38 = vsel %vm14540_vm3, 0, %v425_v35  ;;  %s11725_s17 = scalar_lea.sflag [#allocation8], %s14523_s30 }
  0x69   : > { %v13658_v34 = vld [vmem:[#allocation9 + $0x80] sm:$0xff]   ;;  %v1292_v37 = vld [vmem:[#allocation2 + $0x4] sm:$0xf]  ;;  %v482_v39 = vsel %vm14545_vm4, 0, %v481_v36  ;;  %v14556_v41 = vld [vmem:[%s17461_s3] ss:$0 sm:$0xff] }
  0x6a   : > { %12520 = vmatpush3.bf16.msra.mxu0 %v13641_v15  ;;  %1324 = vst [vmem:[#allocation4 + $0x24] sm:$0xf] %v1292_v37  ;;  %v1356_v40 = vld [vmem:[#allocation2 + $0x4] sm:$0xf]  ;;  %427 = vst [vmem:[#allocation2] sm:$0x1] %v426_v38 }
  0x6b   : > { %12632 = vmatpush3.bf16.msra.mxu1 %v13642_v16  ;;  %12521 = vmatprep.subr.bf16.mxu0 %v13643_v17  ;;  %483 = vst [vmem:[#allocation2 + $0x8] sm:$0x1] %v482_v39  ;;  %v1416_v42 = vshll.u32 %v1356_v40, 16  ;;  %v1420_v43 = vshrl.u32 %v1356_v40, 16  ;;  %v14561_v44 = vld [vmem:[%s17462_s4] ss:$0 sm:$0xff]  ;;  %vm14575_vm9 = vmor %vm1950_vm5, %vm1951_vm6 }
  0x6c   : > { %12633 = vmatprep.subr.bf16.mxu1 %v13644_v18  ;;  %v428_v45 = vld [vmem:[#allocation2 + $0xc] sm:$0x1]  ;;  %v484_v47 = vld [vmem:[#allocation2 + $0x14] sm:$0x1]  ;;  %v651_v49 = vld [vmem:[%s14529_s29 + $0x8] sm:$0xff]  ;;  %v17504_v58 = vsel %vm14575_vm9, 4294967295, %v17503_v58 }
  0x6d   : > { %v429_v46 = vsel %vm14540_vm3, 0, %v428_v45  ;;  %v650_v48 = vld [vmem:[%s14529_s29] sm:$0xff]  ;;  %v14567_v50 = vrot.slane %v1416_v42, 5  ;;  %v1422_v51 = vrot.slane %v1420_v43, 4  ;;  %v485_v52 = vsel %vm14545_vm4, 0, %v484_v47  ;;  %v13665_v55 = vld [vmem:[#allocation9 + $0x178] sm:$0xff]   ;;  %vm14591_vm12 = vmor %vm1403_vm7, %vm1404_vm8 }
  0x6e   : > { %12522 = vmatpush3.bf16.msra.mxu0 %v13645_v19  ;;  %430 = vst [vmem:[#allocation2 + $0xc] sm:$0x1] %v429_v46  ;;  %v688_v53 = vmul.f32 %v14556_v41, %v650_v48  ;;  %v1854_v54 = vld [vmem:[#allocation2] sm:$0xe]  ;;  %486 = vst [vmem:[#allocation2 + $0x14] sm:$0x1] %v485_v52  ;;  %v689_v56 = vmul.f32 %v14556_v41, %v651_v49 }
  0x6f   : > { %12634 = vmatpush3.bf16.msra.mxu1 %v13646_v20  ;;  %12523 = vmatprep.subr.bf16.mxu0 %v13647_v21  ;;  %v1855_v57 = vld [vmem:[#allocation2 + $0x4] sm:$0xf]  ;;  %17505 = vst [vmem:[#allocation18_spill] sm:$0xff] %v17504_v58  ;;  %v11877_v59 = vrot.slane %v1854_v54, 9  ;;  %v1423_v60 = vor.u32 %v1422_v51, %v14567_v50  ;;  %v653_v1 = vld [vmem:[%s14529_s29 + $0x18] sm:$0xff]  ;;  %v17506_v19 = vmov 0  ;;  %vm14597_vm13 = vmand %vm1177_vm11, %vm479_vm1 }
  0x70   : > { %12635 = vmatprep.subr.bf16.mxu1 %v13648_v22  ;;  %v726_v61 = vadd.f32 %v14561_v44, %v688_v53  ;;  %v1955_v62 = vrot.slane %v1855_v57, 5  ;;  %v652_v63 = vld [vmem:[%s14529_s29 + $0x10] sm:$0xff]  ;;  %v727_v0 = vadd.f32 %v14561_v44, %v689_v56  ;;  %v431_v7 = vld [vmem:[#allocation2 + $0x18] sm:$0x1]  ;;  %v691_v12 = vmul.f32 %v14556_v41, %v653_v1  ;;  %vm14610_vm14 = vmor %vm423_vm0, %vm854_vm10  ;;  %s14260_s2 = scalar_lea.vmem %s17413_s25, 4096  ;;  %p17655_p10 = scmp.ne.s32.totalorder %s17492_s27, 0 }
  0x71   : > { %v690_v2 = vmul.f32 %v14556_v41, %v652_v63  ;;  %v1424_v3 = vrot.slane %v1423_v60, 4  ;;  %v1291_v8 = vld [vmem:[#allocation2] sm:$0xf]  ;;  %v17507_v19 = vsel %vm14591_vm12, 4294967295, %v17506_v19  ;;  %v432_v37 = vsel %vm14540_vm3, 0, %v431_v7  ;;  %v654_v51 = vld [vmem:[%s14529_s29 + $0x20] sm:$0xff]  ;;  %p14261_p11 = scmp.ne.s32.totalorder %s17413_s25, %s14260_s2 }
  0x72   : > { %12524 = vmatpush3.bf16.msra.mxu0 %v13649_v23  ;;  %v12448_v4 = vpack.c.bf16 %v726_v61, %v726_v61  ;;  %v1956_v5 = vsel %vm14575_vm9, %v11877_v59, %v1955_v62  ;;  %v1957_v6 = vrot.slane %v1955_v62, 4  ;;  %v1355_v9 = vld [vmem:[#allocation2] sm:$0xf]  ;;  %v1357_v10 = vld [vmem:[#allocation2 + $0x8] sm:$0x1]  ;;  %v12449_v11 = vpack.c.bf16 %v727_v0, %v727_v0  ;;  %17508 = vst [vmem:[#allocation19_spill] sm:$0xff] %v17507_v19 }
  0x73   : > { %12636 = vmatpush3.bf16.msra.mxu1 %v13650_v26  ;;  %12525 = vmatprep.subr.bf16.mxu0 %v13651_v27  ;;  %2097 = vst [vmem:[#allocation4 + $0x8] sm:$0xf] %v1956_v5  ;;  %v728_v13 = vadd.f32 %v14561_v44, %v690_v2  ;;  %1323 = vst [vmem:[#allocation4] sm:$0xf] %v1291_v8  ;;  %v1407_v14 = vshrl.u32 %v1355_v9, 16  ;;  %v1410_v15 = vshll.u32 %v1355_v9, 16  ;;  %p14262_p1 = pnand %p14261_p11, %p17655_p10 }
  0x74   : > { %12637 = vmatprep.subr.bf16.mxu1 %v13652_v28  ;;  %v1426_v16 = vshll.u32 %v1357_v10, 16  ;;  %v857_v17 = vshrl.u32 %v12448_v4, 16  ;;  %v1856_v18 = vld [vmem:[#allocation2 + $0x8] sm:$0x1]  ;;  %v860_v20 = vshll.u32 %v12448_v4, 16  ;;  %v865_v21 = vshrl.u32 %v12449_v11, 16 }
  0x75   : > { %v868_v22 = vshll.u32 %v12449_v11, 16  ;;  %v1958_v23 = vrot.slane %v1856_v18, 5  ;;  %v487_v26 = vld [vmem:[#allocation2 + $0x20] sm:$0x1]  ;;  %v434_v27 = vld [vmem:[#allocation2 + $0x24] sm:$0x1]  ;;  %v729_v38 = vadd.f32 %v14561_v44, %v691_v12  ;;  %v12450_v48 = vpack.c.bf16 %v728_v13, %v728_v13  ;;  %p14263_p2 = pneg %p14262_p1 }
  0x76   : > { %12526 = vmatpush3.bf16.msra.mxu0 %v13653_v29  ;;  %v1409_v28 = vrot.slane %v1407_v14, 4  ;;  %v1412_v29 = vrot.slane %v1410_v15, 5  ;;  %v1183_v35 = vld [vmem:[#allocation2 + $0x14] sm:$0x1]  ;;  %v17512_v42 = vmov 0  ;;  %v435_v56 = vsel %vm14540_vm3, 0, %v434_v27 }
  0x77   : > { %12638 = vmatpush3.bf16.msra.mxu1 %v13654_v30  ;;  %12527 = vmatprep.subr.bf16.mxu0 %v13655_v31  ;;  %v1428_v30 = vrot.slane %v1426_v16, 5  ;;  %v859_v31 = vrot.slane %v857_v17, 7  ;;  %v1959_v36 = vsel %vm14575_vm9, %v1957_v6, %v1958_v23  ;;  %v17513_v42 = vsel %vm14610_vm14, 4294967295, %v17512_v42  ;;  %433 = vst [vmem:[#allocation2 + $0x18] sm:$0x1] %v432_v37  ;;  %v655_v63 = vld [vmem:[%s14529_s29 + $0x28] sm:$0xff] }
  0x78   : > { %12639 = vmatprep.subr.bf16.mxu1 %v13656_v32  ;;  %v1179_v32 = vld [vmem:[#allocation2 + $0xc] sm:$0xf]  ;;  %v1413_v39 = vor.u32 %v1412_v29, %v1409_v28  ;;  %17514 = vst [vmem:[#allocation21_spill] sm:$0xff] %v17513_v42  ;;  %2098 = vst [vmem:[#allocation4 + $0x2c] sm:$0xf] %v1959_v36  ;;  %v12451_v49 = vpack.c.bf16 %v729_v38, %v729_v38  ;;  %v874_v61 = vshrl.u32 %v12450_v48, 16 }
  0x79   : > { %v1429_v40 = vsel %vm14591_vm12, %v1424_v3, %v1428_v30  ;;  %v862_v43 = vor.u32 %v860_v20, %v859_v31  ;;  %v863_v45 = vrot.slane %v859_v31, 4  ;;  %v490_v52 = vld [vmem:[#allocation2 + $0x2c] sm:$0x1]  ;;  %v437_v57 = vld [vmem:[#allocation2 + $0x30] sm:$0x1]  ;;  %v877_v62 = vshll.u32 %v12450_v48, 16 }
  0x7a   : > { %12528 = vmatpush3.bf16.msra.mxu0 %v13657_v33  ;;  %v867_v33 = vrot.slane %v865_v21, 7  ;;  %1823 = vst [vmem:[#allocation4 + $0x28] sm:$0xf] %v1429_v40  ;;  %v1414_v53 = vrot.slane %v1413_v39, 4  ;;  %436 = vst [vmem:[#allocation2 + $0x24] sm:$0x1] %v435_v56  ;;  %v692_v4 = vmul.f32 %v14556_v41, %v654_v51  ;;  %v693_v18 = vmul.f32 %v14556_v41, %v655_v63 }
  0x7b   : > { %12640 = vmatpush3.bf16.msra.mxu1 %v13658_v34  ;;  %12737 = vmatprep.subr.bf16.mxu0 %v13665_v55  ;;  %v17509_v34 = vmov 0  ;;  %v1180_v54 = vsel %vm14597_vm13, %v862_v43, %v1179_v32  ;;  %v488_v55 = vsel %vm14545_vm4, 0, %v487_v26  ;;  %v656_v0 = vld [vmem:[%s14529_s29 + $0x30] sm:$0xff]  ;;  %v882_v2 = vshrl.u32 %v12451_v49, 16  ;;  %v493_v5 = vld [vmem:[#allocation2 + $0x38] sm:$0x1] }
  0x7c   : > { %v17510_v34 = vsel %vm14597_vm13, 4294967295, %v17509_v34  ;;  %v870_v46 = vor.u32 %v868_v22, %v867_v33  ;;  %v872_v47 = vrot.slane %v867_v33, 4  ;;  %1181 = vst [vmem:[#allocation2 + $0xc] sm:$0xf] %v1180_v54  ;;  %489 = vst [vmem:[#allocation2 + $0x20] sm:$0x1] %v488_v55  ;;  %v1419_v1 = vsel %vm14591_vm12, %v1414_v53, %v14567_v50 }
  0x7d   : > { %17511 = vst [vmem:[#allocation20_spill] sm:$0xff] %v17510_v34  ;;  %v885_v3 = vshll.u32 %v12451_v49, 16  ;;  %v440_v6 = vld [vmem:[#allocation2 + $0x3c] sm:$0x1]  ;;  %1822 = vst [vmem:[#allocation4 + $0x4] sm:$0xf] %v1419_v1  ;;  %v730_v50 = vadd.f32 %v14561_v44, %v692_v4  ;;  %v694_v20 = vmul.f32 %v14556_v41, %v656_v0 }
  0x7e   : > { %v871_v59 = vsel %vm14610_vm14, %v863_v45, %v870_v46  ;;  %v1184_v60 = vsel %vm14540_vm3, %v872_v47, %v1183_v35  ;;  %v876_v7 = vrot.slane %v874_v61, 7  ;;  %v491_v8 = vsel %vm14545_vm4, 0, %v490_v52  ;;  %v657_v10 = vld [vmem:[%s14529_s29 + $0x38] sm:$0xff]  ;;  %v658_v12 = vld [vmem:[%s14529_s29 + $0x40] sm:$0xff]  ;;  %v1186_v15 = vld [vmem:[#allocation2 + $0x18] sm:$0xf] }
  0x7f   : > { %1182 = vst [vmem:[#allocation2 + $0x10] sm:$0xf] %v871_v59  ;;  %1185 = vst [vmem:[#allocation2 + $0x14] sm:$0x1] %v1184_v60  ;;  %v438_v9 = vsel %vm14540_vm3, 0, %v437_v57  ;;  %v14636_v11 = vrot.slane %v882_v2, 7  ;;  %v695_v21 = vmul.f32 %v14556_v41, %v657_v10  ;;  %v14649_v26 = vpack.c.bf16 %v730_v50, %v730_v50 }
  0x80   : > { %492 = vst [vmem:[#allocation2 + $0x2c] sm:$0x1] %v491_v8  ;;  %439 = vst [vmem:[#allocation2 + $0x30] sm:$0x1] %v438_v9  ;;  %v879_v13 = vor.u32 %v877_v62, %v876_v7  ;;  %v880_v14 = vrot.slane %v876_v7, 4  ;;  %v494_v16 = vsel %vm14545_vm4, 0, %v493_v5  ;;  %v696_v35 = vmul.f32 %v14556_v41, %v658_v12 }
  0x81   : > { %v887_v17 = vor.u32 %v885_v3, %v14636_v11  ;;  %495 = vst [vmem:[#allocation2 + $0x38] sm:$0x1] %v494_v16  ;;  %v889_v22 = vrot.slane %v14636_v11, 4  ;;  %v441_v27 = vsel %vm14540_vm3, 0, %v440_v6  ;;  %v659_v28 = vld [vmem:[%s14529_s29 + $0x48] sm:$0xff]  ;;  %v13666_v30 = vld [vmem:[#allocation9 + $0x138] sm:$0xff]   ;;  %v731_v46 = vadd.f32 %v14561_v44, %v693_v18 }
  0x82   : > { %v1187_v23 = vsel %vm14597_vm13, %v879_v13, %v1186_v15  ;;  %442 = vst [vmem:[#allocation2 + $0x3c] sm:$0x1] %v441_v27  ;;  %v13677_v39 = vld [vmem:[#allocation9 + $0x170] sm:$0xff]   ;;  %v13659_v40 = vld [vmem:[#allocation4] ss:$36 sps:$4 sm:$0xff]   ;;  %v732_v47 = vadd.f32 %v14561_v44, %v694_v20  ;;  %v733_v48 = vadd.f32 %v14561_v44, %v695_v21  ;;  %v891_v54 = vshrl.u32 %v14649_v26, 16 }
  0x83   : > { %v2129_v29 = vld [vmem:[#allocation2 + $0xc] sm:$0xf]  ;;  %v888_v33 = vsel %vm14610_vm14, %v880_v14, %v887_v17  ;;  %1188 = vst [vmem:[#allocation2 + $0x18] sm:$0xf] %v1187_v23  ;;  %v13678_v60 = vld [vmem:[#allocation9 + $0x130] sm:$0xff]   ;;  %v697_v61 = vmul.f32 %v14556_v41, %v659_v28  ;;  %v734_v62 = vadd.f32 %v14561_v44, %v696_v35  ;;  %v13689_v4 = vld [vmem:[#allocation9 + $0x168] sm:$0xff]   ;;  %v12453_v20 = vpack.c.bf16 %v731_v46, %v731_v46 }
  0x84   : > { %v1293_v31 = vld [vmem:[#allocation2 + $0xc] sm:$0xf]  ;;  %2161 = vst [vmem:[#allocation4 + $0xc] sm:$0xf] %v2129_v29  ;;  %1189 = vst [vmem:[#allocation2 + $0x1c] sm:$0xf] %v888_v33  ;;  %v14669_v21 = vpack.c.bf16 %v732_v47, %v732_v47 }
  0x85   : > { %v1358_v32 = vld [vmem:[#allocation2 + $0xc] sm:$0xf]  ;;  %1325 = vst [vmem:[#allocation4 + $0x48] sm:$0xf] %v1293_v31  ;;  %v13661_v43 = vld [vmem:[#allocation4 + $0x4] ss:$36 sps:$4 sm:$0xff]   ;;  %v735_v29 = vadd.f32 %v14561_v44, %v697_v61 }
  0x86   : > { %v2130_v36 = vld [vmem:[#allocation2 + $0x10] sm:$0xf]  ;;  %v1431_v45 = vshrl.u32 %v1358_v32, 16  ;;  %v1360_v49 = vld [vmem:[#allocation2 + $0x14] sm:$0x1]  ;;  %v1434_v51 = vshll.u32 %v1358_v32, 16  ;;  %5298 = vmatprep.mubr.bf16.mxu0 %v13661_v43 }
  0x87   : > { %v1294_v37 = vld [vmem:[#allocation2 + $0x10] sm:$0xf]  ;;  %2162 = vst [vmem:[#allocation4 + $0x30] sm:$0xf] %v2130_v36  ;;  %v1450_v56 = vshll.u32 %v1360_v49, 16  ;;  %5299 = vmatmul.mubr.bf16.vlgmr.msra.gmra.mxu0 %v13659_v40  ;;  %v14663_v9 = vrot.slane %v891_v54, 7 }
  0x88   : > { %v1359_v38 = vld [vmem:[#allocation2 + $0x10] sm:$0xf]  ;;  %1326 = vst [vmem:[#allocation4 + $0x6c] sm:$0xf] %v1294_v37  ;;  %v1433_v55 = vrot.slane %v1431_v45, 4  ;;  %v1436_v63 = vrot.slane %v1434_v51, 5  ;;  %12738 = vmatpush3.bf16.msra.mxu0 %v13666_v30  ;;  %v14674_v30 = vpack.c.bf16 %v734_v62, %v734_v62 }
  0x89   : > { %v1440_v52 = vshll.u32 %v1359_v38, 16  ;;  %v1444_v53 = vshrl.u32 %v1359_v38, 16  ;;  %v1857_v57 = vld [vmem:[#allocation2 + $0xc] sm:$0xe]  ;;  %v1858_v59 = vld [vmem:[#allocation2 + $0x10] sm:$0xf]  ;;  %12739 = vmatprep.subr.bf16.mxu0 %v13677_v39 }
  0x8a   : > { %v1859_v2 = vld [vmem:[#allocation2 + $0x14] sm:$0x1]  ;;  %v11878_v3 = vrot.slane %v1857_v57, 9  ;;  %v1452_v5 = vrot.slane %v1450_v56, 5  ;;  %v1962_v6 = vrot.slane %v1858_v59, 5  ;;  %v1437_v10 = vor.u32 %v1436_v63, %v1433_v55  ;;  %v13690_v37 = vld [vmem:[#allocation9 + $0x128] sm:$0xff]  }
  0x8b   : > { %v1442_v0 = vrot.slane %v1440_v52, 5  ;;  %v1446_v1 = vrot.slane %v1444_v53, 4  ;;  %v1965_v7 = vrot.slane %v1859_v2, 5  ;;  %v1190_v8 = vld [vmem:[#allocation2 + $0x20] sm:$0x1]  ;;  %v894_v43 = vshll.u32 %v14649_v26, 16 }
  0x8c   : > { %v2131_v50 = vld [vmem:[#allocation2 + $0x18] sm:$0xf]  ;;  %v1191_v12 = vsel %vm14540_vm3, %v889_v22, %v1190_v8  ;;  %v1963_v15 = vsel %vm14575_vm9, %v11878_v3, %v1962_v6  ;;  %v1964_v16 = vrot.slane %v1962_v6, 4  ;;  %v2132_v17 = vld [vmem:[#allocation2 + $0x1c] sm:$0xf]  ;;  %v1438_v28 = vrot.slane %v1437_v10, 4  ;;  %12740 = vmatpush3.bf16.msra.mxu0 %v13678_v60 }
  0x8d   : > { %v1447_v11 = vor.u32 %v1446_v1, %v1442_v0  ;;  %v1295_v13 = vld [vmem:[#allocation2 + $0x18] sm:$0xf]  ;;  %2163 = vst [vmem:[#allocation4 + $0x54] sm:$0xf] %v2131_v50  ;;  %1192 = vst [vmem:[#allocation2 + $0x20] sm:$0x1] %v1191_v12  ;;  %v14671_v22 = vpack.c.bf16 %v733_v48, %v733_v48  ;;  %12741 = vmatprep.subr.bf16.mxu0 %v13689_v4  ;;  %v896_v55 = vor.u32 %v894_v43, %v14663_v9 }
  0x8e   : > { %v1361_v14 = vld [vmem:[#allocation2 + $0x18] sm:$0xf]  ;;  %v1296_v18 = vld [vmem:[#allocation2 + $0x1c] sm:$0xf]  ;;  %1327 = vst [vmem:[#allocation4 + $0x90] sm:$0xf] %v1295_v13  ;;  %v1966_v32 = vsel %vm14575_vm9, %v1964_v16, %v1965_v7  ;;  %v1443_v38 = vsel %vm14591_vm12, %v1438_v28, %v1442_v0 }
  0x8f   : > { %v13662_v23 = vld [vmem:[#allocation4 + $0x8] ss:$36 sps:$4 sm:$0xff]   ;;  %2099 = vst [vmem:[#allocation4 + $0x50] sm:$0xf] %v1963_v15  ;;  %2164 = vst [vmem:[#allocation4 + $0x78] sm:$0xf] %v2132_v17  ;;  %v14692_v17 = vpack.c.bf16 %v735_v29, %v735_v29 }
  0x90   : > { %v13664_v27 = vld [vmem:[#allocation4 + $0xc] ss:$36 sps:$4 sm:$0xff]   ;;  %1328 = vst [vmem:[#allocation4 + $0xb4] sm:$0xf] %v1296_v18  ;;  %v1448_v31 = vrot.slane %v1447_v11, 4  ;;  %v1455_v35 = vshrl.u32 %v1361_v14, 16  ;;  %12742 = vmatpush3.bf16.msra.mxu0 %v13690_v37 }
  0x91   : > { %v1362_v33 = vld [vmem:[#allocation2 + $0x1c] sm:$0xf]  ;;  %v1458_v36 = vshll.u32 %v1361_v14, 16  ;;  %5459 = vmatprep.mubr.bf16.mxu1 %v13664_v27  ;;  %2100 = vst [vmem:[#allocation4 + $0x74] sm:$0xf] %v1966_v32  ;;  %v897_v49 = vrot.slane %v14663_v9, 4 }
  0x92   : > { %v1464_v39 = vshll.u32 %v1362_v33, 16  ;;  %v1468_v40 = vshrl.u32 %v1362_v33, 16  ;;  %v1193_v45 = vld [vmem:[#allocation2 + $0x24] sm:$0xf]  ;;  %5460 = vmatmul.mubr.bf16.vlgmr.msra.gmra.mxu1 %v13662_v23  ;;  %v1453_v46 = vsel %vm14591_vm12, %v1448_v31, %v1452_v5  ;;  %1824 = vst [vmem:[#allocation4 + $0x4c] sm:$0xf] %v1443_v38 }
  0x93   : > { %v1457_v47 = vrot.slane %v1455_v35, 4  ;;  %v1460_v48 = vrot.slane %v1458_v36, 5  ;;  %v1860_v51 = vld [vmem:[#allocation2 + $0x18] sm:$0xe]  ;;  %v13701_v52 = vld [vmem:[#allocation9 + $0x160] sm:$0xff]   ;;  %v899_v56 = vshrl.u32 %v12453_v20, 16  ;;  %v1194_v2 = vsel %vm14597_vm13, %v896_v55, %v1193_v45 }
  0x94   : > { %1825 = vst [vmem:[#allocation4 + $0x70] sm:$0xf] %v1453_v46  ;;  %v1466_v53 = vrot.slane %v1464_v39, 5  ;;  %v1470_v54 = vrot.slane %v1468_v40, 4  ;;  %v1861_v26 = vld [vmem:[#allocation2 + $0x1c] sm:$0xf]  ;;  %12743 = vmatprep.subr.bf16.mxu0 %v13701_v52 }
  0x95   : > { %v1461_v57 = vor.u32 %v1460_v48, %v1457_v47  ;;  %v902_v59 = vshll.u32 %v12453_v20, 16  ;;  %v11879_v60 = vrot.slane %v1860_v51, 9  ;;  %v1969_v61 = vrot.slane %v1861_v26, 5  ;;  %v13702_v62 = vld [vmem:[#allocation9 + $0x120] sm:$0xff]   ;;  %v1363_v63 = vld [vmem:[#allocation2 + $0x20] sm:$0x1] }
  0x96   : > { %v1471_v0 = vor.u32 %v1470_v54, %v1466_v53  ;;  %v901_v1 = vrot.slane %v899_v56, 7  ;;  %v1862_v3 = vld [vmem:[#allocation2 + $0x20] sm:$0x1]  ;;  %v908_v4 = vshrl.u32 %v14669_v21, 16  ;;  %v1474_v6 = vshll.u32 %v1363_v63, 16  ;;  %12744 = vmatpush3.bf16.msra.mxu0 %v13702_v62  ;;  %v661_v51 = vld [vmem:[%s14529_s29 + $0x58] sm:$0xff] }
  0x97   : > { %v1462_v5 = vrot.slane %v1461_v57, 4  ;;  %1195 = vst [vmem:[#allocation2 + $0x24] sm:$0xf] %v1194_v2  ;;  %v1970_v7 = vsel %vm14575_vm9, %v11879_v60, %v1969_v61  ;;  %v1971_v8 = vrot.slane %v1969_v61, 4  ;;  %v1197_v9 = vld [vmem:[#allocation2 + $0x2c] sm:$0x1] }
  0x98   : > { %v1472_v10 = vrot.slane %v1471_v0, 4  ;;  %v904_v11 = vor.u32 %v902_v59, %v901_v1  ;;  %v906_v50 = vrot.slane %v901_v1, 4  ;;  %v1972_v12 = vrot.slane %v1862_v3, 5  ;;  %2101 = vst [vmem:[#allocation4 + $0x98] sm:$0xf] %v1970_v7  ;;  %v660_v31 = vld [vmem:[%s14529_s29 + $0x50] sm:$0xff] }
  0x99   : > { %v13669_v13 = vld [vmem:[#allocation4 + $0x54] ss:$36 sps:$4 sm:$0xff]   ;;  %v1467_v15 = vsel %vm14591_vm12, %v1462_v5, %v1466_v53  ;;  %v1476_v16 = vrot.slane %v1474_v6, 5  ;;  %v3804_v18 = vld [vmem:[#allocation4 + $0x48] sm:$0xff]  ;;  %v910_v28 = vrot.slane %v908_v4, 7  ;;  %v911_v35 = vshll.u32 %v14669_v21, 16 }
  0x9a   : > { %v13671_v14 = vld [vmem:[#allocation4 + $0x50] ss:$36 sps:$4 sm:$0xff]   ;;  %1826 = vst [vmem:[#allocation4 + $0x94] sm:$0xf] %v1467_v15  ;;  %v905_v20 = vsel %vm14610_vm14, %v897_v49, %v904_v11  ;;  %v1973_v23 = vsel %vm14575_vm9, %v1971_v8, %v1972_v12  ;;  %v1198_v27 = vsel %vm14540_vm3, %v906_v50, %v1197_v9  ;;  %5467 = vmatprep.mubr.bf16.mxu1 %v13669_v13  ;;  %v916_v36 = vshrl.u32 %v14671_v22, 16  ;;  %v662_v55 = vld [vmem:[%s14529_s29 + $0x60] sm:$0xff] }
  0x9b   : > { %v3809_v32 = vld [vmem:[#allocation4 + $0x6c] sm:$0xff]  ;;  %v1477_v29 = vsel %vm14591_vm12, %v1472_v10, %v1476_v16  ;;  %1196 = vst [vmem:[#allocation2 + $0x28] sm:$0xf] %v905_v20  ;;  %2102 = vst [vmem:[#allocation4 + $0xbc] sm:$0xf] %v1973_v23  ;;  %v919_v37 = vshll.u32 %v14671_v22, 16  ;;  %5468 = vmatmul.mubr.bf16.gmra.mxu1 %v13671_v14  ;;  %v913_v47 = vor.u32 %v911_v35, %v910_v28 }
  0x9c   : > { %v13667_v33 = vld [vmem:[#allocation4 + $0x4c] ss:$36 sps:$4 sm:$0xff]   ;;  %1199 = vst [vmem:[#allocation2 + $0x2c] sm:$0x1] %v1198_v27  ;;  %v1200_v38 = vld [vmem:[#allocation2 + $0x30] sm:$0xf]  ;;  %v11934_v39 = vcombine.low %v3804_v18, %v3809_v32  ;;  %v698_v54 = vmul.f32 %v14556_v41, %v660_v31  ;;  %v699_v12 = vmul.f32 %v14556_v41, %v661_v51  ;;  %v700_v23 = vmul.f32 %v14556_v41, %v662_v55 }
  0x9d   : > { %1827 = vst [vmem:[#allocation4 + $0xb8] sm:$0xf] %v1477_v29  ;;  %v914_v40 = vrot.slane %v910_v28, 4  ;;  %v1204_v43 = vld [vmem:[#allocation2 + $0x38] sm:$0x1]  ;;  %v925_v45 = vshrl.u32 %v14674_v30, 16  ;;  %5306 = vmatprep.mubr.bf16.mxu0 %v13667_v33  ;;  %v1201_v61 = vsel %vm14597_vm13, %v913_v47, %v1200_v38 }
  0x9e   : > { %v928_v46 = vshll.u32 %v14674_v30, 16  ;;  %v918_v48 = vrot.slane %v916_v36, 7  ;;  %v933_v21 = vshrl.u32 %v14692_v17, 16  ;;  %v936_v49 = vshll.u32 %v14692_v17, 16  ;;  %5307 = vmatmul.mubr.bf16.gmra.mxu0 %v11934_v39  ;;  %v2133_v22 = vld [vmem:[#allocation2 + $0x24] sm:$0xf] }
  0x9f   : > { %v1297_v52 = vld [vmem:[#allocation2 + $0x24] sm:$0xf]  ;;  %2165 = vst [vmem:[#allocation4 + $0x9c] sm:$0xf] %v2133_v22  ;;  %v13713_v60 = vld [vmem:[#allocation9 + $0x158] sm:$0xff]   ;;  %v14715_v63 = vrot.slane %v925_v45, 7  ;;  %v736_v13 = vadd.f32 %v14561_v44, %v698_v54 }
  0xa0   : > { %v1364_v53 = vld [vmem:[#allocation2 + $0x24] sm:$0xf]  ;;  %1329 = vst [vmem:[#allocation4 + $0xd8] sm:$0xf] %v1297_v52  ;;  %v921_v30 = vor.u32 %v919_v37, %v918_v48  ;;  %v923_v57 = vrot.slane %v918_v48, 4  ;;  %v14717_v0 = vrot.slane %v933_v21, 7  ;;  %12745 = vmatprep.subr.bf16.mxu0 %v13713_v60 }
  0xa1   : > { %v1479_v56 = vshrl.u32 %v1364_v53, 16  ;;  %v1482_v26 = vshll.u32 %v1364_v53, 16  ;;  %v1863_v59 = vld [vmem:[#allocation2 + $0x24] sm:$0xe]  ;;  %v13714_v1 = vld [vmem:[#allocation9 + $0x118] sm:$0xff]   ;;  %v930_v11 = vor.u32 %v928_v46, %v14715_v63  ;;  %v663_v39 = vld [vmem:[%s14529_s29 + $0x68] sm:$0xff] }
  0xa2   : > { %v11880_v62 = vrot.slane %v1863_v59, 9  ;;  %v3814_v2 = vld [vmem:[#allocation4 + $0x90] sm:$0xff]  ;;  %v922_v5 = vsel %vm14610_vm14, %v914_v40, %v921_v30  ;;  %1202 = vst [vmem:[#allocation2 + $0x30] sm:$0xf] %v1201_v61  ;;  %v1205_v6 = vsel %vm14540_vm3, %v923_v57, %v1204_v43  ;;  %v1207_v7 = vld [vmem:[#allocation2 + $0x3c] sm:$0xf]  ;;  %12746 = vmatpush3.bf16.msra.mxu0 %v13714_v1  ;;  %v938_v20 = vor.u32 %v936_v49, %v14717_v0 }
  0xa3   : > { %v1481_v3 = vrot.slane %v1479_v56, 4  ;;  %v1484_v4 = vrot.slane %v1482_v26, 5  ;;  %v2134_v8 = vld [vmem:[#allocation2 + $0x28] sm:$0xf]  ;;  %1203 = vst [vmem:[#allocation2 + $0x34] sm:$0xf] %v922_v5  ;;  %v1208_v29 = vsel %vm14597_vm13, %v930_v11, %v1207_v7  ;;  %v701_v30 = vmul.f32 %v14556_v41, %v663_v39 }
  0xa4   : > { %v1298_v9 = vld [vmem:[#allocation2 + $0x28] sm:$0xf]  ;;  %1206 = vst [vmem:[#allocation2 + $0x38] sm:$0x1] %v1205_v6  ;;  %v496_v50 = vld [vmem:[#allocation2 + $0x44] sm:$0x1] }
  0xa5   : > { %v1365_v10 = vld [vmem:[#allocation2 + $0x28] sm:$0xf]  ;;  %2166 = vst [vmem:[#allocation4 + $0xc0] sm:$0xf] %v2134_v8  ;;  %1330 = vst [vmem:[#allocation4 + $0xfc] sm:$0xf] %v1298_v9  ;;  %v1485_v17 = vor.u32 %v1484_v4, %v1481_v3  ;;  %v738_v4 = vadd.f32 %v14561_v44, %v700_v23 }
  0xa6   : > { %v3819_v14 = vld [vmem:[#allocation4 + $0xb4] sm:$0xff]  ;;  %v1366_v16 = vld [vmem:[#allocation2 + $0x2c] sm:$0x1]  ;;  %v1488_v18 = vshll.u32 %v1365_v10, 16  ;;  %v1492_v28 = vshrl.u32 %v1365_v10, 16  ;;  %v931_v45 = vrot.slane %v14715_v63, 4  ;;  %v14747_v63 = vpack.c.bf16 %v736_v13, %v736_v13 }
  0xa7   : > { %v13672_v15 = vld [vmem:[#allocation4 + $0x94] ss:$36 sps:$4 sm:$0xff]   ;;  %v11943_v27 = vcombine.low %v3814_v2, %v3819_v14  ;;  %v1498_v31 = vshll.u32 %v1366_v16, 16  ;;  %v1865_v33 = vld [vmem:[#allocation2 + $0x2c] sm:$0x1]  ;;  %v1486_v35 = vrot.slane %v1485_v17, 4  ;;  %v739_v16 = vadd.f32 %v14561_v44, %v701_v30 }
  0xa8   : > { %v1864_v32 = vld [vmem:[#allocation2 + $0x28] sm:$0xf]  ;;  %5314 = vmatprep.mubr.bf16.mxu0 %v13672_v15  ;;  %v1490_v36 = vrot.slane %v1488_v18, 5  ;;  %v1979_v38 = vrot.slane %v1865_v33, 5  ;;  %1209 = vst [vmem:[#allocation2 + $0x3c] sm:$0xf] %v1208_v29  ;;  %v939_v26 = vsel %vm14610_vm14, %v931_v45, %v938_v20 }
  0xa9   : > { %v1976_v37 = vrot.slane %v1864_v32, 5  ;;  %5315 = vmatmul.mubr.bf16.gmra.mxu0 %v11943_v27  ;;  %v1494_v40 = vrot.slane %v1492_v28, 4  ;;  %v1500_v43 = vrot.slane %v1498_v31, 5  ;;  %v940_v46 = vrot.slane %v14717_v0, 4  ;;  %v443_v51 = vld [vmem:[#allocation2 + $0x48] sm:$0x1] }
  0xaa   : > { %v1491_v47 = vsel %vm14591_vm12, %v1486_v35, %v1490_v36  ;;  %v497_v49 = vsel %vm14545_vm4, 0, %v496_v50  ;;  %v664_v22 = vld [vmem:[%s14529_s29 + $0x70] sm:$0xff]  ;;  %v665_v52 = vld [vmem:[%s14529_s29 + $0x78] sm:$0xff]  ;;  %v2135_v54 = vld [vmem:[#allocation2 + $0x30] sm:$0xf]  ;;  %v444_v15 = vsel %vm14540_vm3, 0, %v443_v51 }
  0xab   : > { %v1977_v48 = vsel %vm14575_vm9, %v11880_v62, %v1976_v37  ;;  %v1978_v21 = vrot.slane %v1976_v37, 4  ;;  %v1495_v53 = vor.u32 %v1494_v40, %v1490_v36  ;;  %1828 = vst [vmem:[#allocation4 + $0xdc] sm:$0xf] %v1491_v47  ;;  %v1299_v55 = vld [vmem:[#allocation2 + $0x30] sm:$0xf]  ;;  %v737_v62 = vadd.f32 %v14561_v44, %v699_v12 }
  0xac   : > { %2103 = vst [vmem:[#allocation4 + $0xe0] sm:$0xf] %v1977_v48  ;;  %v1367_v56 = vld [vmem:[#allocation2 + $0x30] sm:$0xf]  ;;  %498 = vst [vmem:[#allocation2 + $0x44] sm:$0x1] %v497_v49  ;;  %v702_v5 = vmul.f32 %v14556_v41, %v664_v22  ;;  %v703_v6 = vmul.f32 %v14556_v41, %v665_v52 }
  0xad   : > { %v1980_v57 = vsel %vm14575_vm9, %v1978_v21, %v1979_v38  ;;  %v2136_v59 = vld [vmem:[#allocation2 + $0x34] sm:$0xf]  ;;  %2167 = vst [vmem:[#allocation4 + $0xe4] sm:$0xf] %v2135_v54  ;;  %1331 = vst [vmem:[#allocation4 + $0x120] sm:$0xf] %v1299_v55  ;;  %v14765_v49 = vpack.c.bf16 %v737_v62, %v737_v62  ;;  %v14769_v54 = vpack.c.bf16 %v739_v16, %v739_v16 }
  0xae   : > { %v1300_v60 = vld [vmem:[#allocation2 + $0x34] sm:$0xf]  ;;  %1210 = vst [vmem:[#allocation2 + $0x40] sm:$0xf] %v939_v26  ;;  %v13674_v1 = vld [vmem:[#allocation4 + $0x9c] ss:$36 sps:$4 sm:$0xff]   ;;  %v740_v33 = vadd.f32 %v14561_v44, %v702_v5  ;;  %v741_v0 = vadd.f32 %v14561_v44, %v703_v6 }
  0xaf   : > { %v1368_v61 = vld [vmem:[#allocation2 + $0x34] sm:$0xf]  ;;  %v13676_v2 = vld [vmem:[#allocation4 + $0x98] ss:$36 sps:$4 sm:$0xff]   ;;  %v1496_v3 = vrot.slane %v1495_v53, 4  ;;  %v1503_v8 = vshrl.u32 %v1367_v56, 16  ;;  %5475 = vmatprep.mubr.bf16.mxu1 %v13674_v1  ;;  %v14767_v53 = vpack.c.bf16 %v738_v4, %v738_v4 }
  0xb0   : > { %2104 = vst [vmem:[#allocation4 + $0x104] sm:$0xf] %v1980_v57  ;;  %2168 = vst [vmem:[#allocation4 + $0x108] sm:$0xf] %v2136_v59  ;;  %v1369_v7 = vld [vmem:[#allocation2 + $0x38] sm:$0x1]  ;;  %5476 = vmatmul.mubr.bf16.gmra.mxu1 %v13676_v2  ;;  %v14776_v59 = vpack.c.bf16 %v740_v33, %v740_v33 }
  0xb1   : > { %1332 = vst [vmem:[#allocation4 + $0x144] sm:$0xf] %v1300_v60  ;;  %v1506_v9 = vshll.u32 %v1367_v56, 16  ;;  %v1512_v10 = vshll.u32 %v1368_v61, 16  ;;  %v1516_v11 = vshrl.u32 %v1368_v61, 16  ;;  %v1501_v50 = vsel %vm14591_vm12, %v1496_v3, %v1500_v43 }
  0xb2   : > { %v1522_v12 = vshll.u32 %v1369_v7, 16  ;;  %v1866_v13 = vld [vmem:[#allocation2 + $0x30] sm:$0xe]  ;;  %v1867_v14 = vld [vmem:[#allocation2 + $0x34] sm:$0xf]  ;;  %v1505_v41 = vrot.slane %v1503_v8, 4 }
  0xb3   : > { %1829 = vst [vmem:[#allocation4 + $0x100] sm:$0xf] %v1501_v50  ;;  %v1508_v17 = vrot.slane %v1506_v9, 5  ;;  %v1514_v18 = vrot.slane %v1512_v10, 5  ;;  %v1518_v20 = vrot.slane %v1516_v11, 4  ;;  %v11881_v27 = vrot.slane %v1866_v13, 9 }
  0xb4   : > { %v1868_v23 = vld [vmem:[#allocation2 + $0x38] sm:$0x1]  ;;  %445 = vst [vmem:[#allocation2 + $0x48] sm:$0x1] %v444_v15  ;;  %v1983_v28 = vrot.slane %v1867_v14, 5  ;;  %v1524_v36 = vrot.slane %v1522_v12, 5 }
  0xb5   : > { %v1986_v31 = vrot.slane %v1868_v23, 5  ;;  %v2137_v32 = vld [vmem:[#allocation2 + $0x3c] sm:$0xf]  ;;  %v1509_v29 = vor.u32 %v1508_v17, %v1505_v41  ;;  %v1519_v35 = vor.u32 %v1518_v20, %v1514_v18  ;;  %v1211_v37 = vld [vmem:[#allocation2 + $0x44] sm:$0x1]  ;;  %v942_v39 = vshrl.u32 %v14747_v63, 16 }
  0xb6   : > { %2169 = vst [vmem:[#allocation4 + $0x12c] sm:$0xf] %v2137_v32  ;;  %v1301_v38 = vld [vmem:[#allocation2 + $0x3c] sm:$0xf]  ;;  %v3824_v40 = vld [vmem:[#allocation4 + $0xd8] sm:$0xff]  ;;  %v1984_v43 = vsel %vm14575_vm9, %v11881_v27, %v1983_v28  ;;  %v1985_v45 = vrot.slane %v1983_v28, 4  ;;  %v1212_v48 = vsel %vm14540_vm3, %v940_v46, %v1211_v37  ;;  %v14793_v37 = vpack.c.bf16 %v741_v0, %v741_v0 }
  0xb7   : > { %v2138_v47 = vld [vmem:[#allocation2 + $0x40] sm:$0xf]  ;;  %1333 = vst [vmem:[#allocation4 + $0x168] sm:$0xf] %v1301_v38  ;;  %v13681_v51 = vld [vmem:[#allocation4 + $0xe4] ss:$36 sps:$4 sm:$0xff]  }
  0xb8   : > { %v1302_v21 = vld [vmem:[#allocation2 + $0x40] sm:$0xf]  ;;  %v13683_v22 = vld [vmem:[#allocation4 + $0xe0] ss:$36 sps:$4 sm:$0xff]   ;;  %v1510_v52 = vrot.slane %v1509_v29, 4  ;;  %v1520_v55 = vrot.slane %v1519_v35, 4  ;;  %v1987_v46 = vsel %vm14575_vm9, %v1985_v45, %v1986_v31  ;;  %5483 = vmatprep.mubr.bf16.mxu1 %v13681_v51 }
  0xb9   : > { %2105 = vst [vmem:[#allocation4 + $0x128] sm:$0xf] %v1984_v43  ;;  %2170 = vst [vmem:[#allocation4 + $0x150] sm:$0xf] %v2138_v47  ;;  %v1370_v56 = vld [vmem:[#allocation2 + $0x3c] sm:$0xf]  ;;  %5484 = vmatmul.mubr.bf16.gmra.mxu1 %v13683_v22 }
  0xba   : > { %1213 = vst [vmem:[#allocation2 + $0x44] sm:$0x1] %v1212_v48  ;;  %1334 = vst [vmem:[#allocation4 + $0x18c] sm:$0xf] %v1302_v21  ;;  %v1371_v26 = vld [vmem:[#allocation2 + $0x40] sm:$0xf]  ;;  %v1515_v60 = vsel %vm14591_vm12, %v1510_v52, %v1514_v18  ;;  %v1525_v4 = vsel %vm14591_vm12, %v1520_v55, %v1524_v36 }
  0xbb   : > { %v14774_v30 = vrot.slane %v942_v39, 7  ;;  %v499_v57 = vld [vmem:[#allocation2 + $0x50] sm:$0x1]  ;;  %2106 = vst [vmem:[#allocation4 + $0x14c] sm:$0xf] %v1987_v46  ;;  %v1527_v61 = vshrl.u32 %v1370_v56, 16 }
  0xbc   : > { %v1530_v62 = vshll.u32 %v1370_v56, 16  ;;  %v1536_v1 = vshll.u32 %v1371_v26, 16  ;;  %v1869_v44 = vld [vmem:[#allocation2 + $0x3c] sm:$0xe]  ;;  %v3829_v2 = vld [vmem:[#allocation4 + $0xfc] sm:$0xff]  ;;  %v1540_v5 = vshrl.u32 %v1371_v26, 16 }
  0xbd   : > { %v13679_v3 = vld [vmem:[#allocation4 + $0xdc] ss:$36 sps:$4 sm:$0xff]   ;;  %1830 = vst [vmem:[#allocation4 + $0x124] sm:$0xf] %v1515_v60  ;;  %v945_v6 = vshll.u32 %v14747_v63, 16  ;;  %v948_v7 = vrot.slane %v14774_v30, 4  ;;  %v11952_v8 = vcombine.low %v3824_v40, %v3829_v2 }
  0xbe   : > { %1831 = vst [vmem:[#allocation4 + $0x148] sm:$0xf] %v1525_v4  ;;  %v1529_v9 = vrot.slane %v1527_v61, 4  ;;  %v1532_v10 = vrot.slane %v1530_v62, 5  ;;  %v1538_v11 = vrot.slane %v1536_v1, 5  ;;  %v666_v12 = vld [vmem:[%s14529_s29 + $0x80] sm:$0xff]  ;;  %5322 = vmatprep.mubr.bf16.mxu0 %v13679_v3 }
  0xbf   : > { %v1214_v50 = vld [vmem:[#allocation2 + $0x48] sm:$0xf]  ;;  %v667_v13 = vld [vmem:[%s14529_s29 + $0x88] sm:$0xff]  ;;  %v1542_v14 = vrot.slane %v1540_v5, 4  ;;  %v947_v15 = vor.u32 %v945_v6, %v14774_v30  ;;  %v950_v16 = vshrl.u32 %v14765_v49, 16  ;;  %v953_v41 = vshll.u32 %v14765_v49, 16  ;;  %5323 = vmatmul.mubr.bf16.gmra.mxu0 %v11952_v8 }
  0xc0   : > { %v1870_v63 = vld [vmem:[#allocation2 + $0x40] sm:$0xf]  ;;  %v1533_v18 = vor.u32 %v1532_v10, %v1529_v9  ;;  %v11882_v20 = vrot.slane %v1869_v44, 9  ;;  %v500_v27 = vsel %vm14545_vm4, 0, %v499_v57  ;;  %v446_v28 = vld [vmem:[#allocation2 + $0x54] sm:$0x1] }
  0xc1   : > { %v13725_v17 = vld [vmem:[#allocation9 + $0x150] sm:$0xff]   ;;  %v1990_v23 = vrot.slane %v1870_v63, 5  ;;  %v1543_v33 = vor.u32 %v1542_v14, %v1538_v11  ;;  %v952_v29 = vrot.slane %v950_v16, 7  ;;  %v1215_v35 = vsel %vm14597_vm13, %v947_v15, %v1214_v50  ;;  %501 = vst [vmem:[#allocation2 + $0x50] sm:$0x1] %v500_v27 }
  0xc2   : > { %v13726_v31 = vld [vmem:[#allocation9 + $0x110] sm:$0xff]   ;;  %12747 = vmatprep.subr.bf16.mxu0 %v13725_v17  ;;  %v1534_v38 = vrot.slane %v1533_v18, 4  ;;  %1216 = vst [vmem:[#allocation2 + $0x48] sm:$0xf] %v1215_v35  ;;  %v502_v45 = vld [vmem:[#allocation2 + $0x5c] sm:$0x1] }
  0xc3   : > { %v1372_v32 = vld [vmem:[#allocation2 + $0x44] sm:$0x1]  ;;  %v1991_v40 = vsel %vm14575_vm9, %v11882_v20, %v1990_v23  ;;  %v1992_v43 = vrot.slane %v1990_v23, 4  ;;  %v449_v47 = vld [vmem:[#allocation2 + $0x60] sm:$0x1]  ;;  %12748 = vmatpush3.bf16.msra.mxu0 %v13726_v31  ;;  %v1544_v49 = vrot.slane %v1543_v33, 4  ;;  %v955_v51 = vor.u32 %v953_v41, %v952_v29 }
  0xc4   : > { %v1871_v36 = vld [vmem:[#allocation2 + $0x44] sm:$0x1]  ;;  %v1546_v39 = vshll.u32 %v1372_v32, 16  ;;  %v13686_v48 = vld [vmem:[#allocation4 + $0x12c] ss:$36 sps:$4 sm:$0xff]   ;;  %v3834_v55 = vld [vmem:[#allocation4 + $0x120] sm:$0xff]  ;;  %v1539_v46 = vsel %vm14591_vm12, %v1534_v38, %v1538_v11 }
  0xc5   : > { %v13688_v21 = vld [vmem:[#allocation4 + $0x128] ss:$36 sps:$4 sm:$0xff]   ;;  %2107 = vst [vmem:[#allocation4 + $0x170] sm:$0xf] %v1991_v40  ;;  %v14800_v22 = vld [vmem:[%s17461_s3] ss:$0 sm:$0xff]  ;;  %5491 = vmatprep.mubr.bf16.mxu1 %v13686_v48  ;;  %v956_v61 = vsel %vm14610_vm14, %v948_v7, %v955_v51 }
  0xc6   : > { %v704_v52 = vmul.f32 %v14800_v22, %v666_v12  ;;  %v705_v0 = vmul.f32 %v14800_v22, %v667_v13  ;;  %v1548_v56 = vrot.slane %v1546_v39, 5  ;;  %v957_v26 = vrot.slane %v952_v29, 4  ;;  %v3839_v57 = vld [vmem:[#allocation4 + $0x144] sm:$0xff]  ;;  %1832 = vst [vmem:[#allocation4 + $0x16c] sm:$0xf] %v1539_v46  ;;  %5492 = vmatmul.mubr.bf16.gmra.mxu1 %v13688_v21 }
  0xc7   : > { %v1993_v30 = vrot.slane %v1871_v36, 5  ;;  %v13684_v60 = vld [vmem:[#allocation4 + $0x124] ss:$36 sps:$4 sm:$0xff]   ;;  %v447_v62 = vsel %vm14540_vm3, 0, %v446_v28  ;;  %v959_v1 = vshrl.u32 %v14767_v53, 16  ;;  %v962_v44 = vshll.u32 %v14767_v53, 16 }
  0xc8   : > { %v11961_v2 = vcombine.low %v3834_v55, %v3839_v57  ;;  %v1549_v3 = vsel %vm14591_vm12, %v1544_v49, %v1548_v56  ;;  %1217 = vst [vmem:[#allocation2 + $0x4c] sm:$0xf] %v956_v61  ;;  %448 = vst [vmem:[#allocation2 + $0x54] sm:$0x1] %v447_v62  ;;  %v967_v5 = vshrl.u32 %v14769_v54, 16  ;;  %5330 = vmatprep.mubr.bf16.mxu0 %v13684_v60  ;;  %v970_v7 = vshll.u32 %v14769_v54, 16 }
  0xc9   : > { %v1994_v4 = vsel %vm14575_vm9, %v1992_v43, %v1993_v30  ;;  %1833 = vst [vmem:[#allocation4 + $0x190] sm:$0xf] %v1549_v3  ;;  %v961_v6 = vrot.slane %v959_v1, 7  ;;  %v503_v53 = vsel %vm14545_vm4, 0, %v502_v45  ;;  %v450_v8 = vsel %vm14540_vm3, 0, %v449_v47 }
  0xca   : > { %2108 = vst [vmem:[#allocation4 + $0x194] sm:$0xf] %v1994_v4  ;;  %5331 = vmatmul.mubr.bf16.gmra.mxu0 %v11961_v2  ;;  %v1218_v9 = vld [vmem:[#allocation2 + $0x50] sm:$0x1]  ;;  %v14822_v10 = vrot.slane %v967_v5, 7  ;;  %v976_v11 = vshrl.u32 %v14776_v59, 16 }
  0xcb   : > { %504 = vst [vmem:[#allocation2 + $0x5c] sm:$0x1] %v503_v53  ;;  %451 = vst [vmem:[#allocation2 + $0x60] sm:$0x1] %v450_v8  ;;  %v979_v50 = vshll.u32 %v14776_v59, 16  ;;  %v984_v12 = vshrl.u32 %v14793_v37, 16  ;;  %v1219_v54 = vsel %vm14540_vm3, %v957_v26, %v1218_v9  ;;  %v964_v16 = vor.u32 %v962_v44, %v961_v6 }
  0xcc   : > { %v2139_v13 = vld [vmem:[#allocation2 + $0x48] sm:$0xf]  ;;  %v14832_v41 = vld [vmem:[%s17462_s4] ss:$0 sm:$0xff]  ;;  %1220 = vst [vmem:[#allocation2 + $0x50] sm:$0x1] %v1219_v54  ;;  %v972_v23 = vor.u32 %v970_v7, %v14822_v10 }
  0xcd   : > { %v1303_v14 = vld [vmem:[#allocation2 + $0x48] sm:$0xf]  ;;  %v742_v63 = vadd.f32 %v14832_v41, %v704_v52  ;;  %v743_v17 = vadd.f32 %v14832_v41, %v705_v0  ;;  %2171 = vst [vmem:[#allocation4 + $0x174] sm:$0xf] %v2139_v13  ;;  %v965_v20 = vrot.slane %v961_v6, 4  ;;  %v974_v28 = vrot.slane %v14822_v10, 4 }
  0xce   : > { %v1373_v15 = vld [vmem:[#allocation2 + $0x48] sm:$0xf]  ;;  %1335 = vst [vmem:[#allocation4 + $0x1b0] sm:$0xf] %v1303_v14  ;;  %v978_v32 = vrot.slane %v976_v11, 7  ;;  %v14838_v33 = vrot.slane %v984_v12, 7 }
  0xcf   : > { %v1551_v59 = vshrl.u32 %v1373_v15, 16  ;;  %v1554_v18 = vshll.u32 %v1373_v15, 16  ;;  %v1872_v27 = vld [vmem:[#allocation2 + $0x48] sm:$0xe]  ;;  %v3844_v29 = vld [vmem:[#allocation4 + $0x168] sm:$0xff]  ;;  %v973_v38 = vsel %vm14610_vm14, %v965_v20, %v972_v23  ;;  %v987_v39 = vshll.u32 %v14793_v37, 16 }
  0xd0   : > { %v11883_v31 = vrot.slane %v1872_v27, 9  ;;  %v2140_v40 = vld [vmem:[#allocation2 + $0x4c] sm:$0xf]  ;;  %1224 = vst [vmem:[#allocation2 + $0x58] sm:$0xf] %v973_v38  ;;  %v981_v47 = vor.u32 %v979_v50, %v978_v32  ;;  %v3849_v48 = vld [vmem:[#allocation4 + $0x18c] sm:$0xff]  ;;  %v14844_v57 = vpack.c.bf16 %v742_v63, %v742_v63  ;;  %v14846_v60 = vpack.c.bf16 %v743_v17, %v743_v17 }
  0xd1   : > { %v1553_v35 = vrot.slane %v1551_v59, 4  ;;  %v1556_v36 = vrot.slane %v1554_v18, 5  ;;  %v1304_v43 = vld [vmem:[#allocation2 + $0x4c] sm:$0xf]  ;;  %v13691_v21 = vld [vmem:[#allocation4 + $0x16c] ss:$36 sps:$4 sm:$0xff]   ;;  %v11970_v46 = vcombine.low %v3844_v29, %v3849_v48  ;;  %v989_v37 = vor.u32 %v987_v39, %v14838_v33 }
  0xd2   : > { %v1374_v45 = vld [vmem:[#allocation2 + $0x4c] sm:$0xf]  ;;  %2172 = vst [vmem:[#allocation4 + $0x198] sm:$0xf] %v2140_v40  ;;  %1336 = vst [vmem:[#allocation4 + $0x1d4] sm:$0xf] %v1304_v43  ;;  %5338 = vmatprep.mubr.bf16.mxu0 %v13691_v21 }
  0xd3   : > { %v1557_v49 = vor.u32 %v1556_v36, %v1553_v35  ;;  %v1560_v51 = vshll.u32 %v1374_v45, 16  ;;  %v1564_v52 = vshrl.u32 %v1374_v45, 16  ;;  %v982_v0 = vrot.slane %v978_v32, 4  ;;  %v505_v55 = vld [vmem:[#allocation2 + $0x68] sm:$0x1]  ;;  %v668_v4 = vld [vmem:[%s14529_s29 + $0x90] sm:$0xff]  ;;  %5339 = vmatmul.mubr.bf16.gmra.mxu0 %v11970_v46 }
  0xd4   : > { %v1221_v56 = vld [vmem:[#allocation2 + $0x54] sm:$0xf]  ;;  %v1873_v26 = vld [vmem:[#allocation2 + $0x4c] sm:$0xf]  ;;  %v1225_v30 = vld [vmem:[#allocation2 + $0x5c] sm:$0x1]  ;;  %v706_v23 = vmul.f32 %v14800_v22, %v668_v4 }
  0xd5   : > { %v1558_v61 = vrot.slane %v1557_v49, 4  ;;  %v1562_v62 = vrot.slane %v1560_v51, 5  ;;  %v1566_v1 = vrot.slane %v1564_v52, 4  ;;  %v1222_v44 = vsel %vm14597_vm13, %v964_v16, %v1221_v56  ;;  %v1228_v2 = vld [vmem:[#allocation2 + $0x60] sm:$0xf]  ;;  %v669_v10 = vld [vmem:[%s14529_s29 + $0x98] sm:$0xff] }
  0xd6   : > { %v452_v3 = vld [vmem:[#allocation2 + $0x6c] sm:$0x1]  ;;  %v1375_v5 = vld [vmem:[#allocation2 + $0x50] sm:$0x1]  ;;  %1223 = vst [vmem:[#allocation2 + $0x54] sm:$0xf] %v1222_v44  ;;  %v1226_v53 = vsel %vm14540_vm3, %v974_v28, %v1225_v30  ;;  %v990_v8 = vsel %vm14610_vm14, %v982_v0, %v989_v37  ;;  %v1229_v9 = vsel %vm14597_vm13, %v981_v47, %v1228_v2  ;;  %v707_v45 = vmul.f32 %v14800_v22, %v669_v10 }
  0xd7   : > { %v1874_v6 = vld [vmem:[#allocation2 + $0x50] sm:$0x1]  ;;  %v1997_v7 = vrot.slane %v1873_v26, 5  ;;  %v1563_v11 = vsel %vm14591_vm12, %v1558_v61, %v1562_v62  ;;  %v1567_v50 = vor.u32 %v1566_v1, %v1562_v62  ;;  %v1570_v12 = vshll.u32 %v1375_v5, 16  ;;  %1227 = vst [vmem:[#allocation2 + $0x5c] sm:$0x1] %v1226_v53 }
  0xd8   : > { %v2000_v13 = vrot.slane %v1874_v6, 5  ;;  %1230 = vst [vmem:[#allocation2 + $0x60] sm:$0xf] %v1229_v9  ;;  %1231 = vst [vmem:[#allocation2 + $0x64] sm:$0xf] %v990_v8  ;;  %v991_v15 = vrot.slane %v14838_v33, 4  ;;  %v745_v44 = vadd.f32 %v14832_v41, %v707_v45 }
  0xd9   : > { %1834 = vst [vmem:[#allocation4 + $0x1b4] sm:$0xf] %v1563_v11  ;;  %v1998_v54 = vsel %vm14575_vm9, %v11883_v31, %v1997_v7  ;;  %v1999_v14 = vrot.slane %v1997_v7, 4  ;;  %v506_v16 = vsel %vm14545_vm4, 0, %v505_v55  ;;  %v13737_v63 = vld [vmem:[#allocation9 + $0x148] sm:$0xff]   ;;  %v1568_v17 = vrot.slane %v1567_v50, 4 }
  0xda   : > { %v1572_v59 = vrot.slane %v1570_v12, 5  ;;  %2109 = vst [vmem:[#allocation4 + $0x1b8] sm:$0xf] %v1998_v54  ;;  %v2142_v18 = vld [vmem:[#allocation2 + $0x58] sm:$0xf]  ;;  %v453_v32 = vsel %vm14540_vm3, 0, %v452_v3  ;;  %12749 = vmatprep.subr.bf16.mxu0 %v13737_v63  ;;  %v744_v55 = vadd.f32 %v14832_v41, %v706_v23 }
  0xdb   : > { %v1306_v20 = vld [vmem:[#allocation2 + $0x58] sm:$0xf]  ;;  %507 = vst [vmem:[#allocation2 + $0x68] sm:$0x1] %v506_v16  ;;  %v13693_v27 = vld [vmem:[#allocation4 + $0x174] ss:$36 sps:$4 sm:$0xff]   ;;  %v2001_v31 = vsel %vm14575_vm9, %v1999_v14, %v2000_v13 }
  0xdc   : > { %v13695_v28 = vld [vmem:[#allocation4 + $0x170] ss:$36 sps:$4 sm:$0xff]   ;;  %2174 = vst [vmem:[#allocation4 + $0x1e0] sm:$0xf] %v2142_v18  ;;  %1338 = vst [vmem:[#allocation4 + $0x21c] sm:$0xf] %v1306_v20  ;;  %v1573_v36 = vsel %vm14591_vm12, %v1568_v17, %v1572_v59  ;;  %5499 = vmatprep.mubr.bf16.mxu1 %v13693_v27  ;;  %v14889_v17 = vpack.c.bf16 %v744_v55, %v744_v55 }
  0xdd   : > { %v670_v29 = vld [vmem:[%s14529_s29 + $0xa0] sm:$0xff]  ;;  %v671_v35 = vld [vmem:[%s14529_s29 + $0xa8] sm:$0xff]  ;;  %2110 = vst [vmem:[#allocation4 + $0x1dc] sm:$0xf] %v2001_v31  ;;  %454 = vst [vmem:[#allocation2 + $0x6c] sm:$0x1] %v453_v32  ;;  %5500 = vmatmul.mubr.bf16.gmra.mxu1 %v13695_v28 }
  0xde   : > { %v1377_v38 = vld [vmem:[#allocation2 + $0x58] sm:$0xf]  ;;  %v993_v40 = vshrl.u32 %v14844_v57, 16  ;;  %v996_v43 = vshll.u32 %v14844_v57, 16  ;;  %1835 = vst [vmem:[#allocation4 + $0x1d8] sm:$0xf] %v1573_v36  ;;  %v708_v2 = vmul.f32 %v14800_v22, %v670_v29  ;;  %v709_v3 = vmul.f32 %v14800_v22, %v671_v35 }
  0xdf   : > { %v1876_v39 = vld [vmem:[#allocation2 + $0x58] sm:$0xf]  ;;  %v1584_v47 = vshll.u32 %v1377_v38, 16  ;;  %v1588_v48 = vshrl.u32 %v1377_v38, 16  ;;  %v1001_v49 = vshrl.u32 %v14846_v60, 16 }
  0xe0   : > { %v2004_v21 = vrot.slane %v1876_v39, 5  ;;  %v2141_v51 = vld [vmem:[#allocation2 + $0x54] sm:$0xf]  ;;  %v1378_v46 = vld [vmem:[#allocation2 + $0x5c] sm:$0x1]  ;;  %v3854_v57 = vld [vmem:[#allocation4 + $0x1b0] sm:$0xff] }
  0xe1   : > { %v1305_v52 = vld [vmem:[#allocation2 + $0x54] sm:$0xf]  ;;  %2173 = vst [vmem:[#allocation4 + $0x1bc] sm:$0xf] %v2141_v51  ;;  %v14879_v30 = vrot.slane %v1584_v47, 5  ;;  %v1590_v37 = vrot.slane %v1588_v48, 4  ;;  %v14903_v47 = vpack.c.bf16 %v745_v44, %v745_v44  ;;  %v746_v48 = vadd.f32 %v14832_v41, %v708_v2 }
  0xe2   : > { %v1376_v0 = vld [vmem:[#allocation2 + $0x54] sm:$0xf]  ;;  %1337 = vst [vmem:[#allocation4 + $0x1f8] sm:$0xf] %v1305_v52  ;;  %v1594_v61 = vshll.u32 %v1378_v46, 16  ;;  %v13738_v8 = vld [vmem:[#allocation9 + $0x108] sm:$0xff]  }
  0xe3   : > { %v1575_v56 = vshrl.u32 %v1376_v0, 16  ;;  %v1578_v26 = vshll.u32 %v1376_v0, 16  ;;  %v1875_v62 = vld [vmem:[#allocation2 + $0x54] sm:$0xe]  ;;  %v1877_v1 = vld [vmem:[#allocation2 + $0x5c] sm:$0x1]  ;;  %v1591_v6 = vor.u32 %v1590_v37, %v14879_v30  ;;  %12750 = vmatpush3.bf16.msra.mxu0 %v13738_v8 }
  0xe4   : > { %v11884_v7 = vrot.slane %v1875_v62, 9  ;;  %v2143_v53 = vld [vmem:[#allocation2 + $0x60] sm:$0xf]  ;;  %v1596_v9 = vrot.slane %v1594_v61, 5  ;;  %v2006_v10 = vrot.slane %v2004_v21, 4  ;;  %v2007_v11 = vrot.slane %v1877_v1, 5 }
  0xe5   : > { %v1577_v4 = vrot.slane %v1575_v56, 4  ;;  %v1580_v5 = vrot.slane %v1578_v26, 5  ;;  %v2144_v50 = vld [vmem:[#allocation2 + $0x64] sm:$0xf]  ;;  %2175 = vst [vmem:[#allocation4 + $0x204] sm:$0xf] %v2143_v53 }
  0xe6   : > { %v14885_v12 = vrot.slane %v993_v40, 7  ;;  %v1592_v54 = vrot.slane %v1591_v6, 4  ;;  %v2005_v14 = vsel %vm14575_vm9, %v11884_v7, %v2004_v21  ;;  %2176 = vst [vmem:[#allocation4 + $0x228] sm:$0xf] %v2144_v50  ;;  %v1232_v16 = vld [vmem:[#allocation2 + $0x68] sm:$0x1]  ;;  %v2008_v20 = vsel %vm14575_vm9, %v2006_v10, %v2007_v11 }
  0xe7   : > { %v1581_v13 = vor.u32 %v1580_v5, %v1577_v4  ;;  %v1307_v63 = vld [vmem:[#allocation2 + $0x60] sm:$0xf]  ;;  %v3859_v59 = vld [vmem:[#allocation4 + $0x1d4] sm:$0xff]  ;;  %2111 = vst [vmem:[#allocation4 + $0x200] sm:$0xf] %v2005_v14  ;;  %v1233_v23 = vsel %vm14540_vm3, %v991_v15, %v1232_v16  ;;  %v14901_v33 = vrot.slane %v1001_v49, 7  ;;  %v14907_v21 = vadd.f32 %v14832_v41, %v709_v3 }
  0xe8   : > { %v13696_v18 = vld [vmem:[#allocation4 + $0x1b4] ss:$36 sps:$4 sm:$0xff]   ;;  %1339 = vst [vmem:[#allocation4 + $0x240] sm:$0xf] %v1307_v63  ;;  %v998_v28 = vor.u32 %v996_v43, %v14885_v12  ;;  %v999_v31 = vrot.slane %v14885_v12, 4  ;;  %v11979_v32 = vcombine.low %v3854_v57, %v3859_v59  ;;  %v1597_v35 = vsel %vm14591_vm12, %v1592_v54, %v1596_v9 }
  0xe9   : > { %v1308_v27 = vld [vmem:[#allocation2 + $0x64] sm:$0xf]  ;;  %v1582_v29 = vrot.slane %v1581_v13, 4  ;;  %2112 = vst [vmem:[#allocation4 + $0x224] sm:$0xf] %v2008_v20  ;;  %5346 = vmatprep.mubr.bf16.mxu0 %v13696_v18  ;;  %v13739_v56 = vld [vmem:[#allocation9 + $0x1f8] sm:$0xff]  }
  0xea   : > { %1234 = vst [vmem:[#allocation2 + $0x68] sm:$0x1] %v1233_v23  ;;  %1340 = vst [vmem:[#allocation4 + $0x264] sm:$0xf] %v1308_v27  ;;  %v1379_v36 = vld [vmem:[#allocation2 + $0x60] sm:$0xf]  ;;  %5347 = vmatmul.mubr.bf16.gmra.mxu0 %v11979_v32  ;;  %12849 = vmatprep.subr.bf16.mxu1 %v13739_v56 }
  0xeb   : > { %v1380_v38 = vld [vmem:[#allocation2 + $0x64] sm:$0xf]  ;;  %v508_v39 = vld [vmem:[#allocation2 + $0x74] sm:$0x1]  ;;  %v455_v15 = vld [vmem:[#allocation2 + $0x78] sm:$0x1]  ;;  %v1587_v49 = vsel %vm14591_vm12, %v1582_v29, %v14879_v30 }
  0xec   : > { %v13698_v40 = vld [vmem:[#allocation4 + $0x1bc] ss:$36 sps:$4 sm:$0xff]   ;;  %1837 = vst [vmem:[#allocation4 + $0x220] sm:$0xf] %v1597_v35  ;;  %v1599_v45 = vshrl.u32 %v1379_v36, 16  ;;  %v1602_v51 = vshll.u32 %v1379_v36, 16 }
  0xed   : > { %v13700_v43 = vld [vmem:[#allocation4 + $0x1b8] ss:$36 sps:$4 sm:$0xff]   ;;  %v1608_v52 = vshll.u32 %v1380_v38, 16  ;;  %v1612_v0 = vshrl.u32 %v1380_v38, 16  ;;  %v672_v46 = vld [vmem:[%s14529_s29 + $0xb0] sm:$0xff]  ;;  %5507 = vmatprep.mubr.bf16.mxu1 %v13698_v40  ;;  %v1004_v37 = vshll.u32 %v14846_v60, 16 }
  0xee   : > { %v1235_v55 = vld [vmem:[#allocation2 + $0x6c] sm:$0xf]  ;;  %1836 = vst [vmem:[#allocation4 + $0x1fc] sm:$0xf] %v1587_v49  ;;  %v1601_v26 = vrot.slane %v1599_v45, 4  ;;  %v1008_v57 = vrot.slane %v14901_v33, 4  ;;  %5508 = vmatmul.mubr.bf16.gmra.mxu1 %v13700_v43  ;;  %v710_v59 = vmul.f32 %v14800_v22, %v672_v46 }
  0xef   : > { %v1236_v61 = vsel %vm14597_vm13, %v998_v28, %v1235_v55  ;;  %v1878_v62 = vld [vmem:[#allocation2 + $0x60] sm:$0xe]  ;;  %v13740_v1 = vld [vmem:[#allocation9 + $0x1b8] sm:$0xff]   ;;  %v1604_v30 = vrot.slane %v1602_v51, 5  ;;  %v1610_v44 = vrot.slane %v1608_v52, 5  ;;  %v1614_v2 = vrot.slane %v1612_v0, 4 }
  0xf0   : > { %1237 = vst [vmem:[#allocation2 + $0x6c] sm:$0xf] %v1236_v61  ;;  %v1879_v3 = vld [vmem:[#allocation2 + $0x64] sm:$0xf]  ;;  %v11885_v4 = vrot.slane %v1878_v62, 9  ;;  %v1006_v5 = vor.u32 %v1004_v37, %v14901_v33  ;;  %v509_v60 = vsel %vm14545_vm4, 0, %v508_v39  ;;  %12850 = vmatpush3.bf16.msra.mxu1 %v13740_v1  ;;  %v14929_v28 = vpack.c.bf16 %v746_v48, %v746_v48 }
  0xf1   : > { %v2011_v6 = vrot.slane %v1879_v3, 5  ;;  %v456_v7 = vsel %vm14540_vm3, 0, %v455_v15  ;;  %v13741_v53 = vld [vmem:[#allocation9 + $0x1f0] sm:$0xff]   ;;  %v1605_v8 = vor.u32 %v1604_v30, %v1601_v26  ;;  %v1615_v9 = vor.u32 %v1614_v2, %v1610_v44  ;;  %510 = vst [vmem:[#allocation2 + $0x74] sm:$0x1] %v509_v60  ;;  %v673_v48 = vld [vmem:[%s14529_s29 + $0xb8] sm:$0xff] }
  0xf2   : > { %457 = vst [vmem:[#allocation2 + $0x78] sm:$0x1] %v456_v7  ;;  %v1010_v10 = vshrl.u32 %v14889_v17, 16  ;;  %v1013_v11 = vshll.u32 %v14889_v17, 16  ;;  %v511_v50 = vld [vmem:[#allocation2 + $0x80] sm:$0x1]  ;;  %v1007_v54 = vsel %vm14610_vm14, %v999_v31, %v1006_v5  ;;  %12851 = vmatprep.subr.bf16.mxu1 %v13741_v53  ;;  %v14945_v61 = vpack.c.bf16 %v14907_v21, %v14907_v21 }
  0xf3   : > { %v13705_v12 = vld [vmem:[#allocation4 + $0x204] ss:$36 sps:$4 sm:$0xff]   ;;  %v2012_v14 = vsel %vm14575_vm9, %v11885_v4, %v2011_v6  ;;  %v2013_v16 = vrot.slane %v2011_v6, 4  ;;  %v458_v63 = vld [vmem:[#allocation2 + $0x84] sm:$0x1]  ;;  %v3869_v18 = vld [vmem:[#allocation4 + $0x21c] sm:$0xff] }
  0xf4   : > { %v13707_v13 = vld [vmem:[#allocation4 + $0x200] ss:$36 sps:$4 sm:$0xff]   ;;  %v1381_v20 = vld [vmem:[#allocation2 + $0x68] sm:$0x1]  ;;  %v1606_v23 = vrot.slane %v1605_v8, 4  ;;  %v1616_v27 = vrot.slane %v1615_v9, 4  ;;  %5515 = vmatprep.mubr.bf16.mxu1 %v13705_v12 }
  0xf5   : > { %1238 = vst [vmem:[#allocation2 + $0x70] sm:$0xf] %v1007_v54  ;;  %2113 = vst [vmem:[#allocation4 + $0x248] sm:$0xf] %v2012_v14  ;;  %v1012_v17 = vrot.slane %v1010_v10, 7  ;;  %v1618_v31 = vshll.u32 %v1381_v20, 16  ;;  %v14959_v10 = vmul.f32 %v14800_v22, %v673_v48 }
  0xf6   : > { %v1880_v32 = vld [vmem:[#allocation2 + $0x68] sm:$0x1]  ;;  %v1018_v29 = vshrl.u32 %v14903_v47, 16  ;;  %v1021_v35 = vshll.u32 %v14903_v47, 16  ;;  %v512_v36 = vsel %vm14545_vm4, 0, %v511_v50  ;;  %v1611_v15 = vsel %vm14591_vm12, %v1606_v23, %v1610_v44  ;;  %5516 = vmatmul.mubr.bf16.gmra.mxu1 %v13707_v13 }
  0xf7   : > { %v3864_v38 = vld [vmem:[#allocation4 + $0x1f8] sm:$0xff]  ;;  %v2014_v40 = vrot.slane %v1880_v32, 5  ;;  %v1015_v43 = vor.u32 %v1013_v11, %v1012_v17  ;;  %v1016_v45 = vrot.slane %v1012_v17, 4  ;;  %513 = vst [vmem:[#allocation2 + $0x80] sm:$0x1] %v512_v36  ;;  %v1620_v51 = vrot.slane %v1618_v31, 5 }
  0xf8   : > { %v13703_v39 = vld [vmem:[#allocation4 + $0x1fc] ss:$36 sps:$4 sm:$0xff]   ;;  %v11988_v49 = vcombine.low %v3864_v38, %v3869_v18  ;;  %1838 = vst [vmem:[#allocation4 + $0x244] sm:$0xf] %v1611_v15  ;;  %v1020_v55 = vrot.slane %v1018_v29, 7  ;;  %v748_v47 = vadd.f32 %v14832_v41, %v710_v59  ;;  %v459_v37 = vsel %vm14540_vm3, 0, %v458_v63 }
  0xf9   : > { %v2145_v52 = vld [vmem:[#allocation2 + $0x6c] sm:$0xf]  ;;  %5354 = vmatprep.mubr.bf16.mxu0 %v13703_v39  ;;  %v2015_v46 = vsel %vm14575_vm9, %v2013_v16, %v2014_v40  ;;  %v1027_v62 = vshrl.u32 %v14929_v28, 16  ;;  %v1621_v1 = vsel %vm14591_vm12, %v1616_v27, %v1620_v51  ;;  %v1239_v30 = vld [vmem:[#allocation2 + $0x74] sm:$0x1]  ;;  %v1030_v18 = vshll.u32 %v14929_v28, 16 }
  0xfa   : > { %v1309_v0 = vld [vmem:[#allocation2 + $0x6c] sm:$0xf]  ;;  %2177 = vst [vmem:[#allocation4 + $0x24c] sm:$0xf] %v2145_v52  ;;  %5355 = vmatmul.mubr.bf16.gmra.mxu0 %v11988_v49  ;;  %2114 = vst [vmem:[#allocation4 + $0x26c] sm:$0xf] %v2015_v46  ;;  %v1023_v3 = vor.u32 %v1021_v35, %v1020_v55  ;;  %v1240_v21 = vsel %vm14540_vm3, %v1008_v57, %v1239_v30  ;;  %v14961_v33 = vpack.c.bf16 %v748_v47, %v748_v47 }
  0xfb   : > { %1341 = vst [vmem:[#allocation4 + $0x288] sm:$0xf] %v1309_v0  ;;  %v1382_v56 = vld [vmem:[#allocation2 + $0x6c] sm:$0xf]  ;;  %v1242_v4 = vld [vmem:[#allocation2 + $0x78] sm:$0xf] }
  0xfc   : > { %v1881_v26 = vld [vmem:[#allocation2 + $0x6c] sm:$0xe]  ;;  %v1623_v44 = vshrl.u32 %v1382_v56, 16  ;;  %v1626_v2 = vshll.u32 %v1382_v56, 16  ;;  %460 = vst [vmem:[#allocation2 + $0x84] sm:$0x1] %v459_v37  ;;  %v1243_v6 = vsel %vm14597_vm13, %v1015_v43, %v1242_v4  ;;  %v1024_v9 = vsel %vm14610_vm14, %v1016_v45, %v1023_v3 }
  0xfd   : > { %1839 = vst [vmem:[#allocation4 + $0x268] sm:$0xf] %v1621_v1  ;;  %v1025_v5 = vrot.slane %v1020_v55, 4  ;;  %v11886_v60 = vrot.slane %v1881_v26, 9  ;;  %v2146_v7 = vld [vmem:[#allocation2 + $0x70] sm:$0xf] }
  0xfe   : > { %1241 = vst [vmem:[#allocation2 + $0x74] sm:$0x1] %v1240_v21  ;;  %v1310_v53 = vld [vmem:[#allocation2 + $0x70] sm:$0xf]  ;;  %1244 = vst [vmem:[#allocation2 + $0x78] sm:$0xf] %v1243_v6 }
  0xff   : > { %v1383_v8 = vld [vmem:[#allocation2 + $0x70] sm:$0xf]  ;;  %2178 = vst [vmem:[#allocation4 + $0x270] sm:$0xf] %v2146_v7  ;;  %1342 = vst [vmem:[#allocation4 + $0x2ac] sm:$0xf] %v1310_v53 }
 0x100   : > { %v1625_v57 = vrot.slane %v1623_v44, 4  ;;  %v1628_v11 = vrot.slane %v1626_v2, 5  ;;  %v1632_v50 = vshll.u32 %v1383_v8, 16  ;;  %v1636_v12 = vshrl.u32 %v1383_v8, 16  ;;  %1245 = vst [vmem:[#allocation2 + $0x7c] sm:$0xf] %v1024_v9 }
 0x101   : > { %v1882_v13 = vld [vmem:[#allocation2 + $0x70] sm:$0xf]  ;;  %v514_v54 = vld [vmem:[#allocation2 + $0x8c] sm:$0x1]  ;;  %v1246_v63 = vld [vmem:[#allocation2 + $0x80] sm:$0x1] }
 0x102   : > { %v461_v14 = vld [vmem:[#allocation2 + $0x90] sm:$0x1]  ;;  %v2018_v16 = vrot.slane %v1882_v13, 5  ;;  %v1029_v59 = vrot.slane %v1027_v62, 7  ;;  %v1035_v20 = vshrl.u32 %v14945_v61, 16  ;;  %v1629_v27 = vor.u32 %v1628_v11, %v1625_v57  ;;  %v13746_v29 = vld [vmem:[#allocation9 + $0x1b0] sm:$0xff]  }
 0x103   : > { %v3874_v23 = vld [vmem:[#allocation4 + $0x240] sm:$0xff]  ;;  %v1634_v17 = vrot.slane %v1632_v50, 5  ;;  %v1638_v31 = vrot.slane %v1636_v12, 4  ;;  %v1247_v32 = vsel %vm14540_vm3, %v1025_v5, %v1246_v63  ;;  %v13748_v15 = vld [vmem:[#allocation9 + $0x1e8] sm:$0xff]   ;;  %v1038_v45 = vshll.u32 %v14945_v61, 16  ;;  %12852 = vmatpush3.bf16.msra.mxu1 %v13746_v29 }
 0x104   : > { %v2019_v35 = vsel %vm14575_vm9, %v11886_v60, %v2018_v16  ;;  %v2020_v36 = vrot.slane %v2018_v16, 4  ;;  %1248 = vst [vmem:[#allocation2 + $0x80] sm:$0x1] %v1247_v32  ;;  %v1032_v38 = vor.u32 %v1030_v18, %v1029_v59  ;;  %v1033_v39 = vrot.slane %v1029_v59, 4  ;;  %v1249_v48 = vld [vmem:[#allocation2 + $0x84] sm:$0xf]  ;;  %12853 = vmatprep.subr.bf16.mxu1 %v13748_v15 }
 0x105   : > { %v1630_v28 = vrot.slane %v1629_v27, 4  ;;  %v1639_v40 = vor.u32 %v1638_v31, %v1634_v17  ;;  %2115 = vst [vmem:[#allocation4 + $0x290] sm:$0xf] %v2019_v35  ;;  %v14969_v43 = vrot.slane %v1035_v20, 7  ;;  %v13749_v49 = vld [vmem:[#allocation9 + $0x1a8] sm:$0xff]   ;;  %v515_v55 = vsel %vm14545_vm4, 0, %v514_v54 }
 0x106   : > { %v3879_v51 = vld [vmem:[#allocation4 + $0x264] sm:$0xff]  ;;  %v1250_v0 = vsel %vm14597_vm13, %v1032_v38, %v1249_v48  ;;  %v462_v47 = vsel %vm14540_vm3, 0, %v461_v14  ;;  %v1044_v46 = vshrl.u32 %v14961_v33, 16  ;;  %516 = vst [vmem:[#allocation2 + $0x8c] sm:$0x1] %v515_v55  ;;  %v749_v14 = vadd.f32 %v14832_v41, %v14959_v10 }
 0x107   : > { %v13708_v52 = vld [vmem:[#allocation4 + $0x244] ss:$36 sps:$4 sm:$0xff]   ;;  %v11997_v26 = vcombine.low %v3874_v23, %v3879_v51  ;;  %v1635_v61 = vsel %vm14591_vm12, %v1630_v28, %v1634_v17  ;;  %v1640_v62 = vrot.slane %v1639_v40, 4  ;;  %v1040_v30 = vor.u32 %v1038_v45, %v14969_v43  ;;  %1251 = vst [vmem:[#allocation2 + $0x84] sm:$0xf] %v1250_v0  ;;  %12854 = vmatpush3.bf16.msra.mxu1 %v13749_v49  ;;  %v676_v45 = vld [vmem:[%s14529_s29 + $0xd0] sm:$0xff] }
 0x108   : > { %v674_v56 = vld [vmem:[%s14529_s29 + $0xc0] sm:$0xff]  ;;  %463 = vst [vmem:[#allocation2 + $0x90] sm:$0x1] %v462_v47  ;;  %5362 = vmatprep.mubr.bf16.mxu0 %v13708_v52  ;;  %v13710_v2 = vld [vmem:[#allocation4 + $0x24c] ss:$36 sps:$4 sm:$0xff]   ;;  %v1042_v53 = vrot.slane %v14969_v43, 4  ;;  %v14998_v55 = vpack.c.bf16 %v749_v14, %v749_v14 }
 0x109   : > { %v1384_v37 = vld [vmem:[#allocation2 + $0x74] sm:$0x1]  ;;  %v13712_v3 = vld [vmem:[#allocation4 + $0x248] ss:$36 sps:$4 sm:$0xff]   ;;  %1840 = vst [vmem:[#allocation4 + $0x28c] sm:$0xf] %v1635_v61  ;;  %5363 = vmatmul.mubr.bf16.gmra.mxu0 %v11997_v26  ;;  %v1041_v7 = vsel %vm14610_vm14, %v1033_v39, %v1040_v30  ;;  %5523 = vmatprep.mubr.bf16.mxu1 %v13710_v2  ;;  %v712_v16 = vmul.f32 %v14800_v22, %v674_v56 }
 0x10a   : > { %v1883_v1 = vld [vmem:[#allocation2 + $0x74] sm:$0x1]  ;;  %v1642_v4 = vshll.u32 %v1384_v37, 16  ;;  %v675_v21 = vld [vmem:[%s14529_s29 + $0xc8] sm:$0xff]  ;;  %1252 = vst [vmem:[#allocation2 + $0x88] sm:$0xf] %v1041_v7  ;;  %5524 = vmatmul.mubr.bf16.gmra.mxu1 %v13712_v3 }
 0x10b   : > { %v13750_v44 = vld [vmem:[#allocation9 + $0x1e0] sm:$0xff]   ;;  %v2021_v5 = vrot.slane %v1883_v1, 5  ;;  %v2147_v6 = vld [vmem:[#allocation2 + $0x78] sm:$0xf]  ;;  %v2148_v60 = vld [vmem:[#allocation2 + $0x7c] sm:$0xf]  ;;  %v713_v29 = vmul.f32 %v14800_v22, %v675_v21  ;;  %v15001_v47 = vadd.f32 %v14832_v41, %v712_v16 }
 0x10c   : > { %v1644_v8 = vrot.slane %v1642_v4, 5  ;;  %2179 = vst [vmem:[#allocation4 + $0x294] sm:$0xf] %v2147_v6  ;;  %2180 = vst [vmem:[#allocation4 + $0x2b8] sm:$0xf] %v2148_v60  ;;  %v14987_v11 = vrot.slane %v1044_v46, 7  ;;  %12855 = vmatprep.subr.bf16.mxu1 %v13750_v44 }
 0x10d   : > { %v1311_v9 = vld [vmem:[#allocation2 + $0x78] sm:$0xf]  ;;  %v1312_v57 = vld [vmem:[#allocation2 + $0x7c] sm:$0xf]  ;;  %v2022_v50 = vsel %vm14575_vm9, %v2020_v36, %v2021_v5  ;;  %v1387_v54 = vld [vmem:[#allocation2 + $0x80] sm:$0x1]  ;;  %v751_v7 = vadd.f32 %v14832_v41, %v713_v29 }
 0x10e   : > { %1343 = vst [vmem:[#allocation4 + $0x2d0] sm:$0xf] %v1311_v9  ;;  %1344 = vst [vmem:[#allocation4 + $0x2f4] sm:$0xf] %v1312_v57  ;;  %v1385_v12 = vld [vmem:[#allocation2 + $0x78] sm:$0xf]  ;;  %v1645_v63 = vsel %vm14591_vm12, %v1640_v62, %v1644_v8 }
 0x10f   : > { %v1386_v13 = vld [vmem:[#allocation2 + $0x7c] sm:$0xf]  ;;  %2116 = vst [vmem:[#allocation4 + $0x2b4] sm:$0xf] %v2022_v50  ;;  %v1647_v59 = vshrl.u32 %v1385_v12, 16  ;;  %v1650_v18 = vshll.u32 %v1385_v12, 16 }
 0x110   : > { %v1656_v20 = vshll.u32 %v1386_v13, 16  ;;  %v1884_v23 = vld [vmem:[#allocation2 + $0x78] sm:$0xe]  ;;  %1841 = vst [vmem:[#allocation4 + $0x2b0] sm:$0xf] %v1645_v63  ;;  %v1660_v27 = vshrl.u32 %v1386_v13, 16 }
 0x111   : > { %v1666_v17 = vshll.u32 %v1387_v54, 16  ;;  %v1885_v31 = vld [vmem:[#allocation2 + $0x7c] sm:$0xf]  ;;  %v1886_v32 = vld [vmem:[#allocation2 + $0x80] sm:$0x1]  ;;  %v1649_v35 = vrot.slane %v1647_v59, 4 }
 0x112   : > { %v1652_v10 = vrot.slane %v1650_v18, 5  ;;  %v1658_v36 = vrot.slane %v1656_v20, 5  ;;  %v11887_v38 = vrot.slane %v1884_v23, 9  ;;  %v2149_v39 = vld [vmem:[#allocation2 + $0x84] sm:$0xf]  ;;  %v1662_v15 = vrot.slane %v1660_v27, 4 }
 0x113   : > { %v1668_v28 = vrot.slane %v1666_v17, 5  ;;  %v2025_v40 = vrot.slane %v1885_v31, 5  ;;  %v2028_v43 = vrot.slane %v1886_v32, 5  ;;  %2181 = vst [vmem:[#allocation4 + $0x2dc] sm:$0xf] %v2149_v39  ;;  %v3884_v48 = vld [vmem:[#allocation4 + $0x288] sm:$0xff] }
 0x114   : > { %v1653_v49 = vor.u32 %v1652_v10, %v1649_v35  ;;  %v1253_v51 = vld [vmem:[#allocation2 + $0x8c] sm:$0x1]  ;;  %v1313_v52 = vld [vmem:[#allocation2 + $0x84] sm:$0xf]  ;;  %v1663_v46 = vor.u32 %v1662_v15, %v1658_v36  ;;  %v2150_v37 = vld [vmem:[#allocation2 + $0x88] sm:$0xf] }
 0x115   : > { %v1388_v0 = vld [vmem:[#allocation2 + $0x84] sm:$0xf]  ;;  %v2026_v56 = vsel %vm14575_vm9, %v11887_v38, %v2025_v40  ;;  %v2027_v26 = vrot.slane %v2025_v40, 4  ;;  %v1254_v61 = vsel %vm14540_vm3, %v1042_v53, %v1253_v51  ;;  %v1314_v62 = vld [vmem:[#allocation2 + $0x88] sm:$0xf]  ;;  %v1047_v3 = vshll.u32 %v14961_v33, 16 }
 0x116   : > { %1345 = vst [vmem:[#allocation4 + $0x318] sm:$0xf] %v1313_v52  ;;  %v1654_v1 = vrot.slane %v1653_v49, 4  ;;  %2117 = vst [vmem:[#allocation4 + $0x2d8] sm:$0xf] %v2026_v56  ;;  %v1671_v44 = vshrl.u32 %v1388_v0, 16  ;;  %v714_v53 = vmul.f32 %v14800_v22, %v676_v45  ;;  %v15032_v52 = vpack.c.bf16 %v15001_v47, %v15001_v47 }
 0x117   : > { %2182 = vst [vmem:[#allocation4 + $0x300] sm:$0xf] %v2150_v37  ;;  %1255 = vst [vmem:[#allocation2 + $0x8c] sm:$0x1] %v1254_v61  ;;  %v1389_v30 = vld [vmem:[#allocation2 + $0x88] sm:$0xf]  ;;  %v2029_v6 = vsel %vm14575_vm9, %v2027_v26, %v2028_v43  ;;  %v1049_v22 = vor.u32 %v1047_v3, %v14987_v11 }
 0x118   : > { %1346 = vst [vmem:[#allocation4 + $0x33c] sm:$0xf] %v1314_v62  ;;  %v1674_v2 = vshll.u32 %v1388_v0, 16  ;;  %v13717_v4 = vld [vmem:[#allocation4 + $0x294] ss:$36 sps:$4 sm:$0xff]   ;;  %v1664_v5 = vrot.slane %v1663_v46, 4  ;;  %v1659_v57 = vsel %vm14591_vm12, %v1654_v1, %v1658_v36  ;;  %v15034_v0 = vpack.c.bf16 %v751_v7, %v751_v7 }
 0x119   : > { %v13719_v21 = vld [vmem:[#allocation4 + $0x290] ss:$36 sps:$4 sm:$0xff]   ;;  %v517_v60 = vld [vmem:[#allocation2 + $0x98] sm:$0x1]  ;;  %2118 = vst [vmem:[#allocation4 + $0x2fc] sm:$0xf] %v2029_v6  ;;  %5531 = vmatprep.mubr.bf16.mxu1 %v13717_v4 }
 0x11a   : > { %v3889_v8 = vld [vmem:[#allocation4 + $0x2ac] sm:$0xff]  ;;  %v1673_v50 = vrot.slane %v1671_v44, 4  ;;  %v1676_v12 = vrot.slane %v1674_v2, 5  ;;  %v1680_v33 = vshll.u32 %v1389_v30, 16  ;;  %v1669_v14 = vsel %vm14591_vm12, %v1664_v5, %v1668_v28  ;;  %1842 = vst [vmem:[#allocation4 + $0x2d4] sm:$0xf] %v1659_v57  ;;  %5532 = vmatmul.mubr.bf16.gmra.mxu1 %v13719_v21 }
 0x11b   : > { %v13715_v9 = vld [vmem:[#allocation4 + $0x28c] ss:$36 sps:$4 sm:$0xff]   ;;  %v12006_v54 = vcombine.low %v3884_v48, %v3889_v8  ;;  %v1684_v16 = vshrl.u32 %v1389_v30, 16  ;;  %v1256_v63 = vld [vmem:[#allocation2 + $0x90] sm:$0xf]  ;;  %v1050_v27 = vrot.slane %v14987_v11, 4  ;;  %v752_v44 = vadd.f32 %v14832_v41, %v714_v53 }
 0x11c   : > { %v464_v13 = vld [vmem:[#allocation2 + $0x9c] sm:$0x1]  ;;  %v1887_v59 = vld [vmem:[#allocation2 + $0x84] sm:$0xe]  ;;  %v13755_v18 = vld [vmem:[#allocation9 + $0x1a0] sm:$0xff]   ;;  %5370 = vmatprep.mubr.bf16.mxu0 %v13715_v9  ;;  %v1677_v20 = vor.u32 %v1676_v12, %v1673_v50  ;;  %v1682_v23 = vrot.slane %v1680_v33, 5  ;;  %v1257_v36 = vsel %vm14597_vm13, %v1049_v22, %v1256_v63 }
 0x11d   : > { %1843 = vst [vmem:[#allocation4 + $0x2f8] sm:$0xf] %v1669_v14  ;;  %v1052_v17 = vshrl.u32 %v14998_v55, 16  ;;  %v1888_v31 = vld [vmem:[#allocation2 + $0x88] sm:$0xf]  ;;  %v13757_v29 = vld [vmem:[#allocation9 + $0x140] sm:$0xff]   ;;  %5371 = vmatmul.mubr.bf16.gmra.mxu0 %v12006_v54  ;;  %12856 = vmatpush3.bf16.msra.mxu1 %v13755_v18 }
 0x11e   : > { %v677_v32 = vld [vmem:[%s14529_s29 + $0xd8] sm:$0xff]  ;;  %v1686_v35 = vrot.slane %v1684_v16, 4  ;;  %v1055_v10 = vshll.u32 %v14998_v55, 16  ;;  %v11888_v38 = vrot.slane %v1887_v59, 9  ;;  %v13758_v39 = vld [vmem:[#allocation9 + $0x100] sm:$0xff]   ;;  %v1678_v15 = vrot.slane %v1677_v20, 4  ;;  %12751 = vmatprep.subr.bf16.mxu0 %v13757_v29 }
 0x11f   : > { %v15023_v28 = vrot.slane %v1052_v17, 7  ;;  %1258 = vst [vmem:[#allocation2 + $0x90] sm:$0xf] %v1257_v36  ;;  %v2032_v11 = vrot.slane %v1888_v31, 5  ;;  %v518_v40 = vsel %vm14545_vm4, 0, %v517_v60  ;;  %v678_v43 = vld [vmem:[%s14529_s29 + $0xe0] sm:$0xff]  ;;  %12752 = vmatpush3.bf16.msra.mxu0 %v13758_v39 }
 0x120   : > { %v1390_v45 = vld [vmem:[#allocation2 + $0x8c] sm:$0x1]  ;;  %v1687_v48 = vor.u32 %v1686_v35, %v1682_v23  ;;  %519 = vst [vmem:[#allocation2 + $0x98] sm:$0x1] %v518_v40  ;;  %v465_v51 = vsel %vm14540_vm3, 0, %v464_v13  ;;  %v1683_v55 = vsel %vm14591_vm12, %v1678_v15, %v1682_v23  ;;  %v1061_v7 = vshrl.u32 %v15032_v52, 16 }
 0x121   : > { %v1889_v49 = vld [vmem:[#allocation2 + $0x8c] sm:$0x1]  ;;  %v1690_v46 = vshll.u32 %v1390_v45, 16  ;;  %v1057_v56 = vor.u32 %v1055_v10, %v15023_v28  ;;  %v1059_v26 = vrot.slane %v15023_v28, 4  ;;  %466 = vst [vmem:[#allocation2 + $0x9c] sm:$0x1] %v465_v51  ;;  %v2033_v47 = vsel %vm14575_vm9, %v11888_v38, %v2032_v11 }
 0x122   : > { %v13722_v37 = vld [vmem:[#allocation4 + $0x2dc] ss:$36 sps:$4 sm:$0xff]   ;;  %v1688_v62 = vrot.slane %v1687_v48, 4  ;;  %1844 = vst [vmem:[#allocation4 + $0x31c] sm:$0xf] %v1683_v55  ;;  %v3894_v2 = vld [vmem:[#allocation4 + $0x2d0] sm:$0xff] }
 0x123   : > { %v13724_v61 = vld [vmem:[#allocation4 + $0x2d8] ss:$36 sps:$4 sm:$0xff]   ;;  %v15045_v1 = vld [vmem:[%s17461_s3] ss:$0 sm:$0xff]  ;;  %v1692_v3 = vrot.slane %v1690_v46, 5  ;;  %v1058_v4 = vsel %vm14610_vm14, %v1050_v27, %v1057_v56  ;;  %v2034_v21 = vrot.slane %v2032_v11, 4  ;;  %5539 = vmatprep.mubr.bf16.mxu1 %v13722_v37 }
 0x124   : > { %v715_v30 = vmul.f32 %v15045_v1, %v677_v32  ;;  %v2035_v5 = vrot.slane %v1889_v49, 5  ;;  %2119 = vst [vmem:[#allocation4 + $0x320] sm:$0xf] %v2033_v47  ;;  %v3899_v6 = vld [vmem:[#allocation4 + $0x2f4] sm:$0xff]  ;;  %1259 = vst [vmem:[#allocation2 + $0x94] sm:$0xf] %v1058_v4  ;;  %v716_v41 = vmul.f32 %v15045_v1, %v678_v43  ;;  %5540 = vmatmul.mubr.bf16.gmra.mxu1 %v13724_v61 }
 0x125   : > { %v13720_v60 = vld [vmem:[#allocation4 + $0x2d4] ss:$36 sps:$4 sm:$0xff]   ;;  %v1064_v8 = vshll.u32 %v15032_v52, 16  ;;  %v1069_v9 = vshrl.u32 %v15034_v0, 16  ;;  %v12015_v53 = vcombine.low %v3894_v2, %v3899_v6  ;;  %v1693_v57 = vsel %vm14591_vm12, %v1688_v62, %v1692_v3  ;;  %v15063_v16 = vld [vmem:[%s17462_s4] ss:$0 sm:$0xff] }
 0x126   : > { %v2036_v50 = vsel %vm14575_vm9, %v2034_v21, %v2035_v5  ;;  %v1072_v12 = vshll.u32 %v15034_v0, 16  ;;  %v13759_v33 = vld [vmem:[#allocation9 + $0x1d8] sm:$0xff]   ;;  %5378 = vmatprep.mubr.bf16.mxu0 %v13720_v60  ;;  %1845 = vst [vmem:[#allocation4 + $0x340] sm:$0xf] %v1693_v57  ;;  %v2151_v13 = vld [vmem:[#allocation2 + $0x90] sm:$0xf]  ;;  %v753_v22 = vadd.f32 %v15063_v16, %v715_v30  ;;  %v15070_v32 = vpack.c.bf16 %v752_v44, %v752_v44 }
 0x127   : > { %2120 = vst [vmem:[#allocation4 + $0x344] sm:$0xf] %v2036_v50  ;;  %v1315_v54 = vld [vmem:[#allocation2 + $0x90] sm:$0xf]  ;;  %5379 = vmatmul.mubr.bf16.gmra.mxu0 %v12015_v53  ;;  %2183 = vst [vmem:[#allocation4 + $0x324] sm:$0xf] %v2151_v13  ;;  %12857 = vmatprep.subr.bf16.mxu1 %v13759_v33  ;;  %v754_v29 = vadd.f32 %v15063_v16, %v716_v41 }
 0x128   : > { %v1391_v14 = vld [vmem:[#allocation2 + $0x90] sm:$0xf]  ;;  %v1260_v63 = vld [vmem:[#allocation2 + $0x98] sm:$0x1]  ;;  %1347 = vst [vmem:[#allocation4 + $0x360] sm:$0xf] %v1315_v54  ;;  %v12475_v46 = vpack.c.bf16 %v753_v22, %v753_v22 }
 0x129   : > { %v1695_v59 = vshrl.u32 %v1391_v14, 16  ;;  %v1698_v18 = vshll.u32 %v1391_v14, 16  ;;  %v1063_v20 = vrot.slane %v1061_v7, 7  ;;  %v15066_v23 = vrot.slane %v1069_v9, 7  ;;  %v1263_v17 = vld [vmem:[#allocation2 + $0x9c] sm:$0xf] }
 0x12a   : > { %v1261_v27 = vsel %vm14540_vm3, %v1059_v26, %v1260_v63  ;;  %v1890_v31 = vld [vmem:[#allocation2 + $0x90] sm:$0xe]  ;;  %v3904_v35 = vld [vmem:[#allocation4 + $0x318] sm:$0xff]  ;;  %v520_v15 = vld [vmem:[#allocation2 + $0xa4] sm:$0x1]  ;;  %v1078_v4 = vshrl.u32 %v15070_v32, 16  ;;  %v15084_v21 = vpack.c.bf16 %v754_v29, %v754_v29 }
 0x12b   : > { %1262 = vst [vmem:[#allocation2 + $0x98] sm:$0x1] %v1261_v27  ;;  %v1697_v10 = vrot.slane %v1695_v59, 4  ;;  %v1700_v36 = vrot.slane %v1698_v18, 5  ;;  %v1066_v38 = vor.u32 %v1064_v8, %v1063_v20  ;;  %v1067_v39 = vrot.slane %v1063_v20, 4  ;;  %v13760_v48 = vld [vmem:[#allocation9 + $0x198] sm:$0xff]  }
 0x12c   : > { %v1074_v28 = vor.u32 %v1072_v12, %v15066_v23  ;;  %v1076_v11 = vrot.slane %v15066_v23, 4  ;;  %v11889_v40 = vrot.slane %v1890_v31, 9  ;;  %v521_v43 = vsel %vm14545_vm4, 0, %v520_v15  ;;  %v467_v45 = vld [vmem:[#allocation2 + $0xa8] sm:$0x1]  ;;  %12858 = vmatpush3.bf16.msra.mxu1 %v13760_v48  ;;  %v13761_v47 = vld [vmem:[#allocation9 + $0x1d0] sm:$0xff]  }
 0x12d   : > { %v2152_v49 = vld [vmem:[#allocation2 + $0x94] sm:$0xf]  ;;  %v1701_v0 = vor.u32 %v1700_v36, %v1697_v10  ;;  %v1264_v55 = vsel %vm14597_vm13, %v1066_v38, %v1263_v17  ;;  %522 = vst [vmem:[#allocation2 + $0xa4] sm:$0x1] %v521_v43  ;;  %v468_v62 = vsel %vm14540_vm3, 0, %v467_v45  ;;  %v3909_v30 = vld [vmem:[#allocation4 + $0x33c] sm:$0xff]  ;;  %12859 = vmatprep.subr.bf16.mxu1 %v13761_v47 }
 0x12e   : > { %v1316_v51 = vld [vmem:[#allocation2 + $0x94] sm:$0xf]  ;;  %2184 = vst [vmem:[#allocation4 + $0x348] sm:$0xf] %v2152_v49  ;;  %v1075_v37 = vsel %vm14610_vm14, %v1067_v39, %v1074_v28  ;;  %1265 = vst [vmem:[#allocation2 + $0x9c] sm:$0xf] %v1264_v55  ;;  %v12024_v5 = vcombine.low %v3904_v35, %v3909_v30 }
 0x12f   : > { %v1392_v52 = vld [vmem:[#allocation2 + $0x94] sm:$0xf]  ;;  %1348 = vst [vmem:[#allocation4 + $0x384] sm:$0xf] %v1316_v51  ;;  %v13727_v44 = vld [vmem:[#allocation4 + $0x31c] ss:$36 sps:$4 sm:$0xff]  }
 0x130   : > { %v1704_v56 = vshll.u32 %v1392_v52, 16  ;;  %v1708_v26 = vshrl.u32 %v1392_v52, 16  ;;  %v1891_v61 = vld [vmem:[#allocation2 + $0x94] sm:$0xf]  ;;  %v1702_v2 = vrot.slane %v1701_v0, 4  ;;  %v1081_v7 = vshll.u32 %v15070_v32, 16  ;;  %5386 = vmatprep.mubr.bf16.mxu0 %v13727_v44 }
 0x131   : > { %1266 = vst [vmem:[#allocation2 + $0xa0] sm:$0xf] %v1075_v37  ;;  %v2039_v3 = vrot.slane %v1891_v61, 5  ;;  %469 = vst [vmem:[#allocation2 + $0xa8] sm:$0x1] %v468_v62  ;;  %v1080_v41 = vrot.slane %v1078_v4, 7  ;;  %5387 = vmatmul.mubr.bf16.gmra.mxu0 %v12024_v5 }
 0x132   : > { %v1706_v6 = vrot.slane %v1704_v56, 5  ;;  %v1710_v60 = vrot.slane %v1708_v26, 4  ;;  %v1086_v53 = vshrl.u32 %v12475_v46, 16  ;;  %v1393_v57 = vld [vmem:[#allocation2 + $0x98] sm:$0x1]  ;;  %v1089_v13 = vshll.u32 %v12475_v46, 16 }
 0x133   : > { %v2040_v8 = vsel %vm14575_vm9, %v11889_v40, %v2039_v3  ;;  %v2041_v9 = vrot.slane %v2039_v3, 4  ;;  %v1892_v33 = vld [vmem:[#allocation2 + $0x98] sm:$0x1]  ;;  %v1714_v14 = vshll.u32 %v1393_v57, 16  ;;  %v1084_v63 = vrot.slane %v1080_v41, 4  ;;  %v680_v44 = vld [vmem:[%s14529_s29 + $0xf0] sm:$0xff] }
 0x134   : > { %v1707_v50 = vsel %vm14591_vm12, %v1702_v2, %v1706_v6  ;;  %v1711_v12 = vor.u32 %v1710_v60, %v1706_v6  ;;  %2121 = vst [vmem:[#allocation4 + $0x368] sm:$0xf] %v2040_v8  ;;  %v679_v54 = vld [vmem:[%s14529_s29 + $0xe8] sm:$0xff]  ;;  %v2042_v22 = vrot.slane %v1892_v33, 5  ;;  %v1095_v59 = vshrl.u32 %v15084_v21, 16  ;;  %v13766_v2 = vld [vmem:[#allocation9 + $0x190] sm:$0xff]  }
 0x135   : > { %1846 = vst [vmem:[#allocation4 + $0x364] sm:$0xf] %v1707_v50  ;;  %v1267_v20 = vld [vmem:[#allocation2 + $0xa4] sm:$0x1]  ;;  %v15093_v23 = vrot.slane %v1086_v53, 7  ;;  %v1716_v31 = vrot.slane %v1714_v14, 5  ;;  %v1083_v35 = vor.u32 %v1081_v7, %v1080_v41  ;;  %12860 = vmatpush3.bf16.msra.mxu1 %v13766_v2  ;;  %v718_v33 = vmul.f32 %v15045_v1, %v680_v44 }
 0x136   : > { %v1712_v18 = vrot.slane %v1711_v12, 4  ;;  %v13729_v27 = vld [vmem:[#allocation4 + $0x324] ss:$36 sps:$4 sm:$0xff]   ;;  %v2043_v32 = vsel %vm14575_vm9, %v2041_v9, %v2042_v22  ;;  %v1268_v29 = vsel %vm14540_vm3, %v1076_v11, %v1267_v20  ;;  %v2153_v10 = vld [vmem:[#allocation2 + $0x9c] sm:$0xf]  ;;  %v717_v11 = vmul.f32 %v15045_v1, %v679_v54  ;;  %v681_v12 = vld [vmem:[%s14529_s29 + $0xf8] sm:$0xff] }
 0x137   : > { %v13731_v17 = vld [vmem:[#allocation4 + $0x320] ss:$36 sps:$4 sm:$0xff]   ;;  %2122 = vst [vmem:[#allocation4 + $0x38c] sm:$0xf] %v2043_v32  ;;  %1269 = vst [vmem:[#allocation2 + $0xa4] sm:$0x1] %v1268_v29  ;;  %v1091_v39 = vor.u32 %v1089_v13, %v15093_v23  ;;  %5547 = vmatprep.mubr.bf16.mxu1 %v13729_v27 }
 0x138   : > { %v2154_v36 = vld [vmem:[#allocation2 + $0xa0] sm:$0xf]  ;;  %v1317_v38 = vld [vmem:[#allocation2 + $0x9c] sm:$0xf]  ;;  %v1717_v15 = vsel %vm14591_vm12, %v1712_v18, %v1716_v31  ;;  %2185 = vst [vmem:[#allocation4 + $0x36c] sm:$0xf] %v2153_v10  ;;  %5548 = vmatmul.mubr.bf16.gmra.mxu1 %v13731_v17  ;;  %v755_v6 = vadd.f32 %v15063_v16, %v717_v11 }
 0x139   : > { %2186 = vst [vmem:[#allocation4 + $0x390] sm:$0xf] %v2154_v36  ;;  %v1318_v28 = vld [vmem:[#allocation2 + $0xa0] sm:$0xf]  ;;  %1349 = vst [vmem:[#allocation4 + $0x3a8] sm:$0xf] %v1317_v38  ;;  %v1092_v0 = vsel %vm14610_vm14, %v1084_v63, %v1091_v39  ;;  %v756_v39 = vadd.f32 %v15063_v16, %v718_v33 }
 0x13a   : > { %v1394_v40 = vld [vmem:[#allocation2 + $0x9c] sm:$0xf]  ;;  %v1395_v43 = vld [vmem:[#allocation2 + $0xa0] sm:$0xf]  ;;  %1847 = vst [vmem:[#allocation4 + $0x388] sm:$0xf] %v1717_v15  ;;  %v12477_v20 = vpack.c.bf16 %v755_v6, %v755_v6 }
 0x13b   : > { %1350 = vst [vmem:[#allocation4 + $0x3cc] sm:$0xf] %v1318_v28  ;;  %v1719_v45 = vshrl.u32 %v1394_v40, 16  ;;  %v1722_v48 = vshll.u32 %v1394_v40, 16  ;;  %v1728_v49 = vshll.u32 %v1395_v43, 16  ;;  %v1732_v51 = vshrl.u32 %v1395_v43, 16 }
 0x13c   : > { %v1270_v52 = vld [vmem:[#allocation2 + $0xa8] sm:$0xf]  ;;  %v1093_v55 = vrot.slane %v15093_v23, 4  ;;  %v1893_v56 = vld [vmem:[#allocation2 + $0x9c] sm:$0xe]  ;;  %v15108_v37 = vrot.slane %v1095_v59, 7  ;;  %v719_v43 = vmul.f32 %v15045_v1, %v681_v12  ;;  %v15131_v2 = vpack.c.bf16 %v756_v39, %v756_v39 }
 0x13d   : > { %v1271_v46 = vsel %vm14597_vm13, %v1083_v35, %v1270_v52  ;;  %v1894_v26 = vld [vmem:[#allocation2 + $0xa0] sm:$0xf]  ;;  %v1721_v61 = vrot.slane %v1719_v45, 4  ;;  %v1724_v62 = vrot.slane %v1722_v48, 5  ;;  %v1730_v47 = vrot.slane %v1728_v49, 5  ;;  %v3914_v3 = vld [vmem:[#allocation4 + $0x360] sm:$0xff] }
 0x13e   : > { %v1734_v30 = vrot.slane %v1732_v51, 4  ;;  %1272 = vst [vmem:[#allocation2 + $0xa8] sm:$0xf] %v1271_v46  ;;  %1273 = vst [vmem:[#allocation2 + $0xac] sm:$0xf] %v1092_v0  ;;  %v11890_v4 = vrot.slane %v1893_v56, 9 }
 0x13f   : > { %v2046_v5 = vrot.slane %v1894_v26, 5  ;;  %v1725_v60 = vor.u32 %v1724_v62, %v1721_v61  ;;  %v523_v8 = vld [vmem:[#allocation2 + $0xb0] sm:$0x1]  ;;  %v1396_v9 = vld [vmem:[#allocation2 + $0xa4] sm:$0x1]  ;;  %v1098_v29 = vshll.u32 %v15084_v21, 16 }
 0x140   : > { %v1735_v7 = vor.u32 %v1734_v30, %v1730_v47  ;;  %v1895_v41 = vld [vmem:[#allocation2 + $0xa4] sm:$0x1]  ;;  %v524_v50 = vsel %vm14545_vm4, 0, %v523_v8  ;;  %v13734_v13 = vld [vmem:[#allocation4 + $0x36c] ss:$36 sps:$4 sm:$0xff]   ;;  %v1738_v18 = vshll.u32 %v1396_v9, 16 }
 0x141   : > { %v2047_v53 = vsel %vm14575_vm9, %v11890_v4, %v2046_v5  ;;  %v2048_v57 = vrot.slane %v2046_v5, 4  ;;  %v1726_v54 = vrot.slane %v1725_v60, 4  ;;  %525 = vst [vmem:[#allocation2 + $0xb0] sm:$0x1] %v524_v50  ;;  %v3919_v22 = vld [vmem:[#allocation4 + $0x384] sm:$0xff]  ;;  %5555 = vmatprep.mubr.bf16.mxu1 %v13734_v13  ;;  %v2049_v31 = vrot.slane %v1895_v41, 5 }
 0x142   : > { %v1736_v14 = vrot.slane %v1735_v7, 4  ;;  %2123 = vst [vmem:[#allocation4 + $0x3b0] sm:$0xf] %v2047_v53  ;;  %v13732_v63 = vld [vmem:[#allocation4 + $0x364] ss:$36 sps:$4 sm:$0xff]   ;;  %v12033_v27 = vcombine.low %v3914_v3, %v3919_v22  ;;  %v1740_v35 = vrot.slane %v1738_v18, 5  ;;  %v1100_v30 = vor.u32 %v1098_v29, %v15108_v37 }
 0x143   : > { %v13736_v59 = vld [vmem:[#allocation4 + $0x368] ss:$36 sps:$4 sm:$0xff]   ;;  %v1731_v17 = vsel %vm14591_vm12, %v1726_v54, %v1730_v47  ;;  %v470_v32 = vld [vmem:[#allocation2 + $0xb4] sm:$0x1]  ;;  %5394 = vmatprep.mubr.bf16.mxu0 %v13732_v63  ;;  %v2050_v15 = vsel %vm14575_vm9, %v2048_v57, %v2049_v31  ;;  %v1101_v51 = vrot.slane %v15108_v37, 4  ;;  %v1103_v56 = vshrl.u32 %v12477_v20, 16 }
 0x144   : > { %5556 = vmatmul.mubr.bf16.gmra.mxu1 %v13736_v59  ;;  %1848 = vst [vmem:[#allocation4 + $0x3ac] sm:$0xf] %v1731_v17  ;;  %v471_v38 = vsel %vm14540_vm3, 0, %v470_v32  ;;  %5395 = vmatmul.mubr.bf16.gmra.mxu0 %v12033_v27  ;;  %v1741_v11 = vsel %vm14591_vm12, %v1736_v14, %v1740_v35  ;;  %2124 = vst [vmem:[#allocation4 + $0x3d4] sm:$0xf] %v2050_v15  ;;  %v13768_v52 = vld [vmem:[#allocation9 + $0x1c8] sm:$0xff]   ;;  %v757_v37 = vadd.f32 %v15063_v16, %v719_v43 }
 0x145   : > { %v2155_v10 = vld [vmem:[#allocation2 + $0xa8] sm:$0xf]  ;;  %v2156_v36 = vld [vmem:[#allocation2 + $0xac] sm:$0xf]  ;;  %472 = vst [vmem:[#allocation2 + $0xb4] sm:$0x1] %v471_v38  ;;  %12861 = vmatprep.subr.bf16.mxu1 %v13768_v52 }
 0x146   : > { %2187 = vst [vmem:[#allocation4 + $0x3b4] sm:$0xf] %v2155_v10  ;;  %2188 = vst [vmem:[#allocation4 + $0x3d8] sm:$0xf] %v2156_v36  ;;  %v1319_v28 = vld [vmem:[#allocation2 + $0xa8] sm:$0xf] }
 0x147   : > { %v1320_v40 = vld [vmem:[#allocation2 + $0xac] sm:$0xf]  ;;  %v1397_v21 = vld [vmem:[#allocation2 + $0xa8] sm:$0xf]  ;;  %1351 = vst [vmem:[#allocation4 + $0x3f0] sm:$0xf] %v1319_v28 }
 0x148   : > { %1352 = vst [vmem:[#allocation4 + $0x414] sm:$0xf] %v1320_v40  ;;  %v1398_v45 = vld [vmem:[#allocation2 + $0xac] sm:$0xf]  ;;  %v1743_v48 = vshrl.u32 %v1397_v21, 16  ;;  %v1746_v49 = vshll.u32 %v1397_v21, 16 }
 0x149   : > { %1849 = vst [vmem:[#allocation4 + $0x3d0] sm:$0xf] %v1741_v11  ;;  %v1752_v0 = vshll.u32 %v1398_v45, 16  ;;  %v1756_v46 = vshrl.u32 %v1398_v45, 16  ;;  %v1106_v26 = vshll.u32 %v12477_v20, 16  ;;  %v15137_v6 = vrot.slane %v1103_v56, 7 }
 0x14a   : > { %v1896_v61 = vld [vmem:[#allocation2 + $0xa8] sm:$0xe]  ;;  %v1274_v62 = vld [vmem:[#allocation2 + $0xb0] sm:$0x1]  ;;  %v1745_v1 = vrot.slane %v1743_v48, 4  ;;  %v1748_v47 = vrot.slane %v1746_v49, 5  ;;  %v12479_v20 = vpack.c.bf16 %v757_v37, %v757_v37 }
 0x14b   : > { %v1897_v44 = vld [vmem:[#allocation2 + $0xac] sm:$0xf]  ;;  %v1275_v3 = vsel %vm14540_vm3, %v1093_v55, %v1274_v62  ;;  %v1754_v4 = vrot.slane %v1752_v0, 5  ;;  %v1758_v5 = vrot.slane %v1756_v46, 4  ;;  %v13769_v60 = vld [vmem:[#allocation9 + $0x188] sm:$0xff]   ;;  %v11891_v8 = vrot.slane %v1896_v61, 9 }
 0x14c   : > { %1276 = vst [vmem:[#allocation2 + $0xb0] sm:$0x1] %v1275_v3  ;;  %v1749_v7 = vor.u32 %v1748_v47, %v1745_v1  ;;  %v2053_v9 = vrot.slane %v1897_v44, 5  ;;  %v3924_v41 = vld [vmem:[#allocation4 + $0x3a8] sm:$0xff]  ;;  %v1108_v57 = vor.u32 %v1106_v26, %v15137_v6  ;;  %12862 = vmatpush3.bf16.msra.mxu1 %v13769_v60  ;;  %v1277_v50 = vld [vmem:[#allocation2 + $0xb4] sm:$0xf] }
 0x14d   : > { %v1759_v53 = vor.u32 %v1758_v5, %v1754_v4  ;;  %v1112_v33 = vshrl.u32 %v15131_v2, 16  ;;  %v13744_v13 = vld [vmem:[#allocation4 + $0x3b4] ss:$36 sps:$4 sm:$0xff]   ;;  %v1278_v16 = vsel %vm14597_vm13, %v1100_v30, %v1277_v50  ;;  %v526_v31 = vld [vmem:[#allocation2 + $0xbc] sm:$0x1]  ;;  %v1115_v10 = vshll.u32 %v15131_v2, 16 }
 0x14e   : > { %v1750_v23 = vrot.slane %v1749_v7, 4  ;;  %v2054_v55 = vsel %vm14575_vm9, %v11891_v8, %v2053_v9  ;;  %v2055_v12 = vrot.slane %v2053_v9, 4  ;;  %v13747_v54 = vld [vmem:[#allocation4 + $0x3b0] ss:$36 sps:$4 sm:$0xff]   ;;  %v1109_v22 = vsel %vm14610_vm14, %v1101_v51, %v1108_v57  ;;  %1279 = vst [vmem:[#allocation2 + $0xb4] sm:$0xf] %v1278_v16  ;;  %5563 = vmatprep.mubr.bf16.mxu1 %v13744_v13 }
 0x14f   : > { %v1760_v14 = vrot.slane %v1759_v53, 4  ;;  %2125 = vst [vmem:[#allocation4 + $0x3f8] sm:$0xf] %v2054_v55  ;;  %1280 = vst [vmem:[#allocation2 + $0xb8] sm:$0xf] %v1109_v22  ;;  %v1114_v27 = vrot.slane %v1112_v33, 7  ;;  %5564 = vmatmul.mubr.bf16.gmra.mxu1 %v13747_v54 }
 0x150   : > { %v3929_v63 = vld [vmem:[#allocation4 + $0x3cc] sm:$0xff]  ;;  %v1755_v18 = vsel %vm14591_vm12, %v1750_v23, %v1754_v4  ;;  %v527_v35 = vsel %vm14545_vm4, 0, %v526_v31  ;;  %v1120_v28 = vshrl.u32 %v12479_v20, 16  ;;  %v1123_v21 = vshll.u32 %v12479_v20, 16  ;;  %v13774_v37 = vld [vmem:[#allocation9 + $0x180] sm:$0xff]   ;;  %v15169_v33 = vld [vmem:[#allocation9 + $0x238] sm:$0xff]  }
 0x151   : > { %v13742_v59 = vld [vmem:[#allocation4 + $0x3ac] ss:$36 sps:$4 sm:$0xff]   ;;  %v12042_v17 = vcombine.low %v3924_v41, %v3929_v63  ;;  %1850 = vst [vmem:[#allocation4 + $0x3f4] sm:$0xf] %v1755_v18  ;;  %528 = vst [vmem:[#allocation2 + $0xbc] sm:$0x1] %v527_v35  ;;  %v1117_v47 = vor.u32 %v1115_v10, %v1114_v27  ;;  %13457 = vmatprep.subr.bf16.mxu0 %v15169_v33 }
 0x152   : > { %5402 = vmatprep.mubr.bf16.mxu0 %v13742_v59  ;;  %v473_v39 = vld [vmem:[#allocation2 + $0xc0] sm:$0x1]  ;;  %v1118_v15 = vrot.slane %v1114_v27, 4  ;;  %v15157_v45 = vrot.slane %v1120_v28, 7  ;;  %v1110_v0 = vrot.slane %v15137_v6, 4  ;;  %v13770_v6 = vld [vmem:[#allocation9 + $0x1c0] sm:$0xff]  }
 0x153   : > { %5403 = vmatmul.mubr.bf16.gmra.mxu0 %v12042_v17  ;;  %v1399_v32 = vld [vmem:[#allocation2 + $0xb0] sm:$0x1]  ;;  %v474_v40 = vsel %vm14540_vm3, 0, %v473_v39  ;;  %12863 = vmatprep.subr.bf16.mxu1 %v13770_v6  ;;  %v629_v19 = vld [vmem:[#allocation3 + $0x8c] sm:$0x1] }
 0x154   : > { %v1898_v29 = vld [vmem:[#allocation2 + $0xb0] sm:$0x1]  ;;  %v1762_v36 = vshll.u32 %v1399_v32, 16  ;;  %475 = vst [vmem:[#allocation2 + $0xc0] sm:$0x1] %v474_v40  ;;  %v1125_v26 = vor.u32 %v1123_v21, %v15157_v45  ;;  %12864 = vmatpush3.bf16.msra.mxu1 %v13774_v37 }
 0x155   : > { %v2056_v38 = vrot.slane %v1898_v29, 5  ;;  %v2157_v48 = vld [vmem:[#allocation2 + $0xb4] sm:$0xf]  ;;  %v2194_v22 = vld [vmem:[#allocation2 + $0x10] sm:$0xf] }
 0x156   : > { %v1764_v43 = vrot.slane %v1762_v36, 5  ;;  %v2158_v49 = vld [vmem:[#allocation2 + $0xb8] sm:$0xf]  ;;  %v1321_v51 = vld [vmem:[#allocation2 + $0xb4] sm:$0xf]  ;;  %v1126_v3 = vsel %vm14610_vm14, %v1118_v15, %v1125_v26  ;;  %v2251_v15 = vshll.u32 %v2194_v22, 16 }
 0x157   : > { %v2057_v11 = vsel %vm14575_vm9, %v2055_v12, %v2056_v38  ;;  %2189 = vst [vmem:[#allocation4 + $0x3fc] sm:$0xf] %v2157_v48  ;;  %2190 = vst [vmem:[#allocation4 + $0x420] sm:$0xf] %v2158_v49  ;;  %v1322_v46 = vld [vmem:[#allocation2 + $0xb8] sm:$0xf] }
 0x158   : > { %2126 = vst [vmem:[#allocation4 + $0x41c] sm:$0xf] %v2057_v11  ;;  %v1765_v52 = vsel %vm14591_vm12, %v1760_v14, %v1764_v43  ;;  %1353 = vst [vmem:[#allocation4 + $0x438] sm:$0xf] %v1321_v51  ;;  %v1400_v56 = vld [vmem:[#allocation2 + $0xb4] sm:$0xf] }
 0x159   : > { %1851 = vst [vmem:[#allocation4 + $0x418] sm:$0xf] %v1765_v52  ;;  %1354 = vst [vmem:[#allocation4 + $0x45c] sm:$0xf] %v1322_v46  ;;  %v1401_v61 = vld [vmem:[#allocation2 + $0xb8] sm:$0xf] }
 0x15a   : > { %v1767_v62 = vshrl.u32 %v1400_v56, 16  ;;  %v1770_v1 = vshll.u32 %v1400_v56, 16  ;;  %v1899_v30 = vld [vmem:[#allocation2 + $0xb4] sm:$0xe]  ;;  %v1776_v44 = vshll.u32 %v1401_v61, 16  ;;  %v1780_v2 = vshrl.u32 %v1401_v61, 16 }
 0x15b   : > { %v1900_v4 = vld [vmem:[#allocation2 + $0xb8] sm:$0xf]  ;;  %v11892_v5 = vrot.slane %v1899_v30, 9  ;;  %v1281_v60 = vld [vmem:[#allocation2 + $0xbc] sm:$0x1]  ;;  %v3934_v41 = vld [vmem:[#allocation4 + $0x3f0] sm:$0xff] }
 0x15c   : > { %v1769_v7 = vrot.slane %v1767_v62, 4  ;;  %v1772_v8 = vrot.slane %v1770_v1, 5  ;;  %1287 = vst [vmem:[#allocation2 + $0xc4] sm:$0xf] %v1126_v3  ;;  %v2060_v9 = vrot.slane %v1900_v4, 5  ;;  %v1282_v53 = vsel %vm14540_vm3, %v1110_v0, %v1281_v60 }
 0x15d   : > { %v1778_v57 = vrot.slane %v1776_v44, 5  ;;  %v1782_v23 = vrot.slane %v1780_v2, 4  ;;  %1283 = vst [vmem:[#allocation2 + $0xbc] sm:$0x1] %v1282_v53  ;;  %v1284_v55 = vld [vmem:[#allocation2 + $0xc0] sm:$0xf] }
 0x15e   : > { %v1773_v50 = vor.u32 %v1772_v8, %v1769_v7  ;;  %v2061_v12 = vsel %vm14575_vm9, %v11892_v5, %v2060_v9  ;;  %v1285_v54 = vsel %vm14597_vm13, %v1117_v47, %v1284_v55  ;;  %v2193_v14 = vld [vmem:[#allocation2 + $0xc] sm:$0xf]  ;;  %v2062_v17 = vrot.slane %v2060_v9, 4  ;;  %v2195_v29 = vld [vmem:[#allocation2 + $0x14] sm:$0x1] }
 0x15f   : > { %v1783_v13 = vor.u32 %v1782_v23, %v1778_v57  ;;  %2127 = vst [vmem:[#allocation4 + $0x440] sm:$0xf] %v2061_v12  ;;  %v13753_v16 = vld [vmem:[#allocation4 + $0x3fc] ss:$36 sps:$4 sm:$0xff]   ;;  %1286 = vst [vmem:[#allocation2 + $0xc0] sm:$0xf] %v1285_v54 }
 0x160   : > { %v1774_v63 = vrot.slane %v1773_v50, 4  ;;  %v2242_v59 = vshrl.u32 %v2193_v14, 16  ;;  %v3939_v18 = vld [vmem:[#allocation4 + $0x414] sm:$0xff]  ;;  %5571 = vmatprep.mubr.bf16.mxu1 %v13753_v16  ;;  %v2245_v10 = vshll.u32 %v2193_v14, 16  ;;  %v2689_v36 = vld [vmem:[#allocation2 + $0xc] sm:$0xe] }
 0x161   : > { %v13751_v20 = vld [vmem:[#allocation4 + $0x3f4] ss:$36 sps:$4 sm:$0xff]   ;;  %v12051_v31 = vcombine.low %v3934_v41, %v3939_v18  ;;  %v1784_v38 = vrot.slane %v1783_v13, 4  ;;  %v2255_v28 = vshrl.u32 %v2194_v22, 16  ;;  %v2261_v40 = vshll.u32 %v2195_v29, 16 }
 0x162   : > { %v13756_v27 = vld [vmem:[#allocation4 + $0x3f8] ss:$36 sps:$4 sm:$0xff]   ;;  %v1779_v32 = vsel %vm14591_vm12, %v1774_v63, %v1778_v57  ;;  %v2244_v35 = vrot.slane %v2242_v59, 4  ;;  %5410 = vmatprep.mubr.bf16.mxu0 %v13751_v20  ;;  %v2247_v21 = vrot.slane %v2245_v10, 5  ;;  %v2690_v43 = vld [vmem:[#allocation2 + $0x10] sm:$0xf] }
 0x163   : > { %5572 = vmatmul.mubr.bf16.gmra.mxu1 %v13756_v27  ;;  %1852 = vst [vmem:[#allocation4 + $0x43c] sm:$0xf] %v1779_v32  ;;  %v2160_v39 = vld [vmem:[#allocation2 + $0xc4] sm:$0xf]  ;;  %5411 = vmatmul.mubr.bf16.gmra.mxu0 %v12051_v31  ;;  %v2691_v11 = vld [vmem:[#allocation2 + $0x14] sm:$0x1] }
 0x164   : > { %2192 = vst [vmem:[#allocation4 + $0x468] sm:$0xf] %v2160_v39  ;;  %v11893_v48 = vrot.slane %v2689_v36, 9  ;;  %v1402_v49 = vld [vmem:[#allocation2 + $0xbc] sm:$0x1]  ;;  %v2253_v52 = vrot.slane %v2251_v15, 5  ;;  %v2248_v26 = vor.u32 %v2247_v21, %v2244_v35 }
 0x165   : > { %v1901_v51 = vld [vmem:[#allocation2 + $0xbc] sm:$0x1]  ;;  %v2257_v0 = vrot.slane %v2255_v28, 4  ;;  %v1786_v46 = vshll.u32 %v1402_v49, 16  ;;  %v2263_v61 = vrot.slane %v2261_v40, 5  ;;  %v2787_v47 = vrot.slane %v2690_v43, 5 }
 0x166   : > { %v2063_v56 = vrot.slane %v1901_v51, 5  ;;  %v2159_v62 = vld [vmem:[#allocation2 + $0xc0] sm:$0xf]  ;;  %v2790_v30 = vrot.slane %v2691_v11, 5  ;;  %v2249_v3 = vrot.slane %v2248_v26, 4 }
 0x167   : > { %v2258_v1 = vor.u32 %v2257_v0, %v2253_v52  ;;  %v1788_v44 = vrot.slane %v1786_v46, 5  ;;  %2191 = vst [vmem:[#allocation4 + $0x444] sm:$0xf] %v2159_v62  ;;  %v2788_v5 = vsel %vm14575_vm9, %v11893_v48, %v2787_v47  ;;  %v2789_v6 = vrot.slane %v2787_v47, 4  ;;  %v2962_v60 = vld [vmem:[#allocation2 + $0x18] sm:$0xf] }
 0x168   : > { %v2064_v2 = vsel %vm14575_vm9, %v2062_v17, %v2063_v56  ;;  %v2963_v7 = vld [vmem:[#allocation2 + $0x1c] sm:$0xf]  ;;  %v2254_v9 = vsel %vm14591_vm12, %v2249_v3, %v2253_v52  ;;  %2929 = vst [vmem:[#allocation4 + $0x14] sm:$0xf] %v2788_v5  ;;  %2994 = vst [vmem:[#allocation4 + $0x18] sm:$0xf] %v2962_v60 }
 0x169   : > { %2128 = vst [vmem:[#allocation4 + $0x464] sm:$0xf] %v2064_v2  ;;  %v2259_v4 = vrot.slane %v2258_v1, 4  ;;  %v1789_v8 = vsel %vm14591_vm12, %v1784_v38, %v1788_v44  ;;  %2995 = vst [vmem:[#allocation4 + $0x3c] sm:$0xf] %v2963_v7  ;;  %v2791_v57 = vsel %vm14575_vm9, %v2789_v6, %v2790_v30 }
 0x16a   : > { %v3026_v37 = vld [vmem:[#allocation2 + $0x18] sm:$0xf]  ;;  %v3027_v41 = vld [vmem:[#allocation2 + $0x1c] sm:$0xf]  ;;  %1853 = vst [vmem:[#allocation4 + $0x460] sm:$0xf] %v1789_v8 }
 0x16b   : > { %v2264_v53 = vsel %vm14591_vm12, %v2259_v4, %v2263_v61  ;;  %2657 = vst [vmem:[#allocation4 + $0x10] sm:$0xf] %v2254_v9  ;;  %v3028_v23 = vld [vmem:[#allocation2 + $0x20] sm:$0x1]  ;;  %v3075_v50 = vshrl.u32 %v3026_v37, 16  ;;  %v3078_v55 = vshll.u32 %v3026_v37, 16 }
 0x16c   : > { %v2196_v12 = vld [vmem:[#allocation2 + $0x18] sm:$0xf]  ;;  %2658 = vst [vmem:[#allocation4 + $0x34] sm:$0xf] %v2264_v53  ;;  %2930 = vst [vmem:[#allocation4 + $0x38] sm:$0xf] %v2791_v57 }
 0x16d   : > { %v3084_v13 = vshll.u32 %v3027_v41, 16  ;;  %v3088_v54 = vshrl.u32 %v3027_v41, 16  ;;  %v3094_v14 = vshll.u32 %v3028_v23, 16  ;;  %v2197_v22 = vld [vmem:[#allocation2 + $0x1c] sm:$0xf]  ;;  %v2266_v16 = vshrl.u32 %v2196_v12, 16 }
 0x16e   : > { %v3077_v63 = vrot.slane %v3075_v50, 4  ;;  %v3080_v59 = vrot.slane %v3078_v55, 5  ;;  %v2198_v18 = vld [vmem:[#allocation2 + $0x20] sm:$0x1]  ;;  %v2269_v20 = vshll.u32 %v2196_v12, 16  ;;  %v2275_v27 = vshll.u32 %v2197_v22, 16  ;;  %v12529_v50 = vpop.f32.mrf.mxu0 }
 0x16f   : > { %v3944_v17 = vld [vmem:[#allocation4 + $0x438] sm:$0xff]  ;;  %v3086_v31 = vrot.slane %v3084_v13, 5  ;;  %v3090_v32 = vrot.slane %v3088_v54, 4  ;;  %v3096_v29 = vrot.slane %v3094_v14, 5  ;;  %v2268_v35 = vrot.slane %v2266_v16, 4 }
 0x170   : > { %v2692_v10 = vld [vmem:[#allocation2 + $0x18] sm:$0xe]  ;;  %v3081_v36 = vor.u32 %v3080_v59, %v3077_v63  ;;  %v2271_v38 = vrot.slane %v2269_v20, 5  ;;  %v2277_v39 = vrot.slane %v2275_v27, 5  ;;  %v2279_v15 = vshrl.u32 %v2197_v22, 16  ;;  %v12530_v27 = vpop.f32.mrf.mxu0 }
 0x171   : > { %v2693_v28 = vld [vmem:[#allocation2 + $0x1c] sm:$0xf]  ;;  %v13764_v40 = vld [vmem:[#allocation4 + $0x444] ss:$36 sps:$4 sm:$0xff]   ;;  %v3091_v43 = vor.u32 %v3090_v32, %v3086_v31  ;;  %v2285_v11 = vshll.u32 %v2198_v18, 16  ;;  %v11894_v0 = vrot.slane %v2692_v10, 9 }
 0x172   : > { %v13767_v21 = vld [vmem:[#allocation4 + $0x440] ss:$36 sps:$4 sm:$0xff]   ;;  %v3082_v48 = vrot.slane %v3081_v36, 4  ;;  %v2272_v49 = vor.u32 %v2271_v38, %v2268_v35  ;;  %v2281_v51 = vrot.slane %v2279_v15, 4  ;;  %v2694_v52 = vld [vmem:[#allocation2 + $0x20] sm:$0x1]  ;;  %5579 = vmatprep.mubr.bf16.mxu1 %v13764_v40  ;;  %v12532_v40 = vpop.f32.mrf.mxu0 }
 0x173   : > { %v3949_v46 = vld [vmem:[#allocation4 + $0x45c] sm:$0xff]  ;;  %v3092_v26 = vrot.slane %v3091_v43, 4  ;;  %v2287_v61 = vrot.slane %v2285_v11, 5  ;;  %5580 = vmatmul.mubr.bf16.gmra.mxu1 %v13767_v21  ;;  %v13773_v1 = vld [vmem:[#allocation4 + $0x14] ss:$36 sps:$4 sm:$0xff]   ;;  %v2794_v3 = vrot.slane %v2693_v28, 5 }
 0x174   : > { %v13762_v56 = vld [vmem:[#allocation4 + $0x43c] ss:$36 sps:$4 sm:$0xff]   ;;  %v12060_v62 = vcombine.low %v3944_v17, %v3949_v46  ;;  %v3087_v47 = vsel %vm14591_vm12, %v3082_v48, %v3086_v31  ;;  %v2273_v30 = vrot.slane %v2272_v49, 4  ;;  %v2282_v44 = vor.u32 %v2281_v51, %v2277_v39  ;;  %v2964_v5 = vld [vmem:[#allocation2 + $0x24] sm:$0xf] }
 0x175   : > { %5418 = vmatprep.mubr.bf16.mxu0 %v13762_v56  ;;  %v3097_v2 = vsel %vm14591_vm12, %v3092_v26, %v3096_v29  ;;  %3490 = vst [vmem:[#allocation4 + $0x1c] sm:$0xf] %v3087_v47  ;;  %v2797_v4 = vrot.slane %v2694_v52, 5  ;;  %v2965_v6 = vld [vmem:[#allocation2 + $0x28] sm:$0xf]  ;;  %v2795_v37 = vsel %vm14575_vm9, %v11894_v0, %v2794_v3  ;;  %v2796_v41 = vrot.slane %v2794_v3, 4  ;;  %v12641_v47 = vpop.f32.mrf.mxu1 }
 0x176   : > { %5419 = vmatmul.mubr.bf16.gmra.mxu0 %v12060_v62  ;;  %3491 = vst [vmem:[#allocation4 + $0x40] sm:$0xf] %v3097_v2  ;;  %v2278_v60 = vsel %vm14591_vm12, %v2273_v30, %v2277_v39  ;;  %v2283_v7 = vrot.slane %v2282_v44, 4  ;;  %2996 = vst [vmem:[#allocation4 + $0x60] sm:$0xf] %v2964_v5  ;;  %v13788_v28 = vld [vmem:[#allocation9 + $0x230] sm:$0xff]   ;;  %v15200_v46 = vadd.f32 %v12530_v27, %v12529_v50 }
 0x177   : > { %2997 = vst [vmem:[#allocation4 + $0x84] sm:$0xf] %v2965_v6  ;;  %v3029_v8 = vld [vmem:[#allocation2 + $0x24] sm:$0xf]  ;;  %v3030_v9 = vld [vmem:[#allocation2 + $0x28] sm:$0xf]  ;;  %5620 = vmatprep.mubr.bf16.mxu0 %v13773_v1  ;;  %v2798_v16 = vsel %vm14575_vm9, %v2796_v41, %v2797_v4  ;;  %v12533_v4 = vpop.f32.mrf.mxu0 }
 0x178   : > { %2659 = vst [vmem:[#allocation4 + $0x58] sm:$0xf] %v2278_v60  ;;  %v3031_v53 = vld [vmem:[#allocation2 + $0x2c] sm:$0x1]  ;;  %v3099_v57 = vshrl.u32 %v3029_v8, 16  ;;  %v3102_v23 = vshll.u32 %v3029_v8, 16  ;;  %v2288_v12 = vsel %vm14591_vm12, %v2283_v7, %v2287_v61 }
 0x179   : > { %v13771_v55 = vld [vmem:[#allocation4 + $0x10] ss:$36 sps:$4 sm:$0xff]   ;;  %2931 = vst [vmem:[#allocation4 + $0x5c] sm:$0xf] %v2795_v37  ;;  %v3108_v13 = vshll.u32 %v3030_v9, 16  ;;  %v3112_v54 = vshrl.u32 %v3030_v9, 16  ;;  %v12642_v37 = vpop.f32.mrf.mxu1 }
 0x17a   : > { %v3118_v14 = vshll.u32 %v3031_v53, 16  ;;  %v2199_v22 = vld [vmem:[#allocation2 + $0x24] sm:$0xf]  ;;  %2660 = vst [vmem:[#allocation4 + $0x7c] sm:$0xf] %v2288_v12  ;;  %v3101_v63 = vrot.slane %v3099_v57, 4 }
 0x17b   : > { %v3104_v59 = vrot.slane %v3102_v23, 5  ;;  %v2200_v18 = vld [vmem:[#allocation2 + $0x28] sm:$0xf]  ;;  %v2201_v20 = vld [vmem:[#allocation2 + $0x2c] sm:$0x1]  ;;  %v3110_v17 = vrot.slane %v3108_v13, 5  ;;  %v12643_v23 = vadd.f32 %v12642_v37, %v12641_v47 }
 0x17c   : > { %2932 = vst [vmem:[#allocation4 + $0x80] sm:$0xf] %v2798_v16  ;;  %v3114_v31 = vrot.slane %v3112_v54, 4  ;;  %v3120_v32 = vrot.slane %v3118_v14, 5  ;;  %v2290_v29 = vshrl.u32 %v2199_v22, 16  ;;  %v2293_v36 = vshll.u32 %v2199_v22, 16  ;;  %v12644_v54 = vpop.f32.mrf.mxu1 }
 0x17d   : > { %v2695_v35 = vld [vmem:[#allocation2 + $0x24] sm:$0xe]  ;;  %v3105_v10 = vor.u32 %v3104_v59, %v3101_v63  ;;  %v2299_v38 = vshll.u32 %v2200_v18, 16  ;;  %v2303_v39 = vshrl.u32 %v2200_v18, 16  ;;  %v2696_v15 = vld [vmem:[#allocation2 + $0x28] sm:$0xf]  ;;  %v15211_v14 = vadd.f32 %v12533_v4, %v12532_v40 }
 0x17e   : > { %v3115_v21 = vor.u32 %v3114_v31, %v3110_v17  ;;  %v2292_v43 = vrot.slane %v2290_v29, 4  ;;  %v2309_v11 = vshll.u32 %v2201_v20, 16  ;;  %v2697_v48 = vld [vmem:[#allocation2 + $0x2c] sm:$0x1]  ;;  %v11895_v49 = vrot.slane %v2695_v35, 9  ;;  %5621 = vmatmul.mubr.bf16.vlgmr.msra.gmra.mxu0 %v13771_v55  ;;  %v15202_v1 = vld [vmem:[#allocation9 + $0x228] sm:$0xff]  }
 0x17f   : > { %v13776_v51 = vld [vmem:[#allocation4 + $0x18] ss:$36 sps:$4 sm:$0xff]   ;;  %v3106_v0 = vrot.slane %v3105_v10, 4  ;;  %v2295_v26 = vrot.slane %v2293_v36, 5  ;;  %v2301_v61 = vrot.slane %v2299_v38, 5  ;;  %v2305_v62 = vrot.slane %v2303_v39, 4  ;;  %13458 = vmatpush3.bf16.msra.mxu0 %v15169_v33  ;;  %v12645_v10 = vpop.f32.mrf.mxu1 }
 0x180   : > { %v13778_v52 = vld [vmem:[#allocation4 + $0x1c] ss:$36 sps:$4 sm:$0xff]   ;;  %v3116_v56 = vrot.slane %v3115_v21, 4  ;;  %v2311_v44 = vrot.slane %v2309_v11, 5  ;;  %v2801_v2 = vrot.slane %v2696_v15, 5  ;;  %v2804_v3 = vrot.slane %v2697_v48, 5  ;;  %13459 = vmatprep.subr.bf16.mxu0 %v13788_v28 }
 0x181   : > { %5781 = vmatprep.mubr.bf16.mxu1 %v13778_v52  ;;  %v3111_v30 = vsel %vm14591_vm12, %v3106_v0, %v3110_v17  ;;  %v2296_v6 = vor.u32 %v2295_v26, %v2292_v43  ;;  %v2306_v60 = vor.u32 %v2305_v62, %v2301_v61  ;;  %v2966_v7 = vld [vmem:[#allocation2 + $0x30] sm:$0xf]  ;;  %v2967_v8 = vld [vmem:[#allocation2 + $0x34] sm:$0xf]  ;;  %v13781_v41 = vld [vmem:[#allocation4 + $0x58] ss:$36 sps:$4 sm:$0xff]  }
 0x182   : > { %5782 = vmatmul.mubr.bf16.vlgmr.msra.gmra.mxu1 %v13776_v51  ;;  %v3121_v5 = vsel %vm14591_vm12, %v3116_v56, %v3120_v32  ;;  %3492 = vst [vmem:[#allocation4 + $0x64] sm:$0xf] %v3111_v30  ;;  %v3032_v9 = vld [vmem:[#allocation2 + $0x30] sm:$0xf]  ;;  %v2802_v53 = vsel %vm14575_vm9, %v11895_v49, %v2801_v2  ;;  %v2803_v57 = vrot.slane %v2801_v2, 4  ;;  %v15220_v49 = vld [vmem:[#allocation9 + $0x218] sm:$0xff]   ;;  %v15224_v2 = vadd.f32 %v12643_v23, %v15200_v46 }
 0x183   : > { %v13779_v33 = vld [vmem:[#allocation4 + $0x5c] ss:$36 sps:$4 sm:$0xff]   ;;  %3493 = vst [vmem:[#allocation4 + $0x88] sm:$0xf] %v3121_v5  ;;  %2998 = vst [vmem:[#allocation4 + $0xa8] sm:$0xf] %v2966_v7  ;;  %13460 = vmatpush3.bf16.msra.mxu0 %v13788_v28 }
 0x184   : > { %2999 = vst [vmem:[#allocation4 + $0xcc] sm:$0xf] %v2967_v8  ;;  %v2297_v50 = vrot.slane %v2296_v6, 4  ;;  %v2307_v55 = vrot.slane %v2306_v60, 4  ;;  %2933 = vst [vmem:[#allocation4 + $0xa4] sm:$0xf] %v2802_v53  ;;  %5628 = vmatprep.mubr.bf16.mxu0 %v13779_v33  ;;  %v2805_v22 = vsel %vm14575_vm9, %v2803_v57, %v2804_v3  ;;  %13461 = vmatprep.subr.bf16.mxu0 %v15202_v1  ;;  %v12535_v8 = vpop.f32.mrf.mxu0 }
 0x185   : > { %v3033_v12 = vld [vmem:[#allocation2 + $0x34] sm:$0xf]  ;;  %v3034_v13 = vld [vmem:[#allocation2 + $0x38] sm:$0x1]  ;;  %v3123_v16 = vshrl.u32 %v3032_v9, 16  ;;  %v3126_v63 = vshll.u32 %v3032_v9, 16  ;;  %v12646_v3 = vadd.f32 %v12645_v10, %v12644_v54 }
 0x186   : > { %v3132_v59 = vshll.u32 %v3033_v12, 16  ;;  %v2202_v18 = vld [vmem:[#allocation2 + $0x30] sm:$0xf]  ;;  %v2302_v27 = vsel %vm14591_vm12, %v2297_v50, %v2301_v61  ;;  %v2312_v17 = vsel %vm14591_vm12, %v2307_v55, %v2311_v44  ;;  %2934 = vst [vmem:[#allocation4 + $0xc8] sm:$0xf] %v2805_v22  ;;  %v3136_v31 = vshrl.u32 %v3033_v12, 16  ;;  %5629 = vmatmul.mubr.bf16.gmra.mxu0 %v13781_v41  ;;  %v12647_v61 = vpop.f32.mrf.mxu1 }
 0x187   : > { %v13814_v20 = vld [vmem:[#allocation9 + $0x220] sm:$0xff]   ;;  %v3142_v32 = vshll.u32 %v3034_v13, 16  ;;  %v2204_v35 = vld [vmem:[#allocation2 + $0x38] sm:$0x1]  ;;  %2661 = vst [vmem:[#allocation4 + $0xa0] sm:$0xf] %v2302_v27  ;;  %13462 = vmatpush3.bf16.msra.mxu0 %v15202_v1  ;;  %v15229_v12 = vadd.f32 %v12646_v3, %v15211_v14  ;;  %v12536_v13 = vpop.f32.mrf.mxu0 }
 0x188   : > { %v2203_v29 = vld [vmem:[#allocation2 + $0x34] sm:$0xf]  ;;  %2662 = vst [vmem:[#allocation4 + $0xc4] sm:$0xf] %v2312_v17  ;;  %v3125_v36 = vrot.slane %v3123_v16, 4  ;;  %v3128_v38 = vrot.slane %v3126_v63, 5  ;;  %13463 = vmatprep.subr.bf16.mxu0 %v13814_v20  ;;  %v12648_v53 = vpop.f32.mrf.mxu1 }
 0x189   : > { %v3134_v39 = vrot.slane %v3132_v59, 5  ;;  %v2314_v15 = vshrl.u32 %v2202_v18, 16  ;;  %v2698_v28 = vld [vmem:[#allocation2 + $0x30] sm:$0xe]  ;;  %v3138_v40 = vrot.slane %v3136_v31, 4  ;;  %v3144_v21 = vrot.slane %v3142_v32, 5 }
 0x18a   : > { %v2317_v43 = vshll.u32 %v2202_v18, 16  ;;  %v2323_v11 = vshll.u32 %v2203_v29, 16  ;;  %v2699_v48 = vld [vmem:[#allocation2 + $0x34] sm:$0xf]  ;;  %v3129_v51 = vor.u32 %v3128_v38, %v3125_v36  ;;  %v2327_v0 = vshrl.u32 %v2203_v29, 16  ;;  %v15231_v54 = vld [vmem:[#allocation9 + $0x210] sm:$0xff]   ;;  %v12538_v29 = vpop.f32.mrf.mxu0 }
 0x18b   : > { %v2316_v52 = vrot.slane %v2314_v15, 4  ;;  %v2333_v56 = vshll.u32 %v2204_v35, 16  ;;  %v2700_v26 = vld [vmem:[#allocation2 + $0x38] sm:$0x1]  ;;  %v13784_v47 = vld [vmem:[#allocation4 + $0x60] ss:$36 sps:$4 sm:$0xff]   ;;  %v3139_v30 = vor.u32 %v3138_v40, %v3134_v39  ;;  %13464 = vmatpush3.bf16.msra.mxu0 %v13814_v20  ;;  %v12537_v31 = vadd.f32 %v12536_v13, %v12535_v8 }
 0x18c   : > { %v13782_v62 = vld [vmem:[#allocation4 + $0x64] ss:$36 sps:$4 sm:$0xff]   ;;  %v2319_v44 = vrot.slane %v2317_v43, 5  ;;  %v3130_v4 = vrot.slane %v3129_v51, 4  ;;  %v2325_v5 = vrot.slane %v2323_v11, 5  ;;  %v2329_v6 = vrot.slane %v2327_v0, 4  ;;  %13465 = vmatprep.subr.bf16.mxu0 %v15220_v49  ;;  %v12539_v51 = vpop.f32.mrf.mxu0 }
 0x18d   : > { %v2335_v60 = vrot.slane %v2333_v56, 5  ;;  %v2968_v7 = vld [vmem:[#allocation2 + $0x3c] sm:$0xf]  ;;  %5789 = vmatprep.mubr.bf16.mxu1 %v13782_v62  ;;  %v3140_v9 = vrot.slane %v3139_v30, 4  ;;  %v11896_v1 = vrot.slane %v2698_v28, 9  ;;  %v2808_v33 = vrot.slane %v2699_v48, 5  ;;  %v12650_v48 = vpop.f32.mrf.mxu1 }
 0x18e   : > { %v2320_v37 = vor.u32 %v2319_v44, %v2316_v52  ;;  %v2969_v41 = vld [vmem:[#allocation2 + $0x40] sm:$0xf]  ;;  %3000 = vst [vmem:[#allocation4 + $0xf0] sm:$0xf] %v2968_v7  ;;  %5790 = vmatmul.mubr.bf16.gmra.mxu1 %v13784_v47  ;;  %v3135_v46 = vsel %vm14591_vm12, %v3130_v4, %v3134_v39  ;;  %v2330_v57 = vor.u32 %v2329_v6, %v2325_v5  ;;  %v2811_v23 = vrot.slane %v2700_v26, 5  ;;  %v13853_v52 = vld [vmem:[#allocation9 + $0x208] sm:$0xff]  }
 0x18f   : > { %3001 = vst [vmem:[#allocation4 + $0x114] sm:$0xf] %v2969_v41  ;;  %v3035_v50 = vld [vmem:[#allocation2 + $0x3c] sm:$0xf]  ;;  %v3036_v55 = vld [vmem:[#allocation2 + $0x40] sm:$0xf]  ;;  %v3145_v16 = vsel %vm14591_vm12, %v3140_v9, %v3144_v21  ;;  %v2809_v59 = vsel %vm14575_vm9, %v11896_v1, %v2808_v33  ;;  %v12649_v32 = vadd.f32 %v12648_v53, %v12647_v61  ;;  %13466 = vmatpush3.bf16.msra.mxu0 %v15220_v49  ;;  %v12651_v53 = vpop.f32.mrf.mxu1 }
 0x190   : > { %v13785_v22 = vld [vmem:[#allocation4 + $0xa4] ss:$36 sps:$4 sm:$0xff]   ;;  %3494 = vst [vmem:[#allocation4 + $0xac] sm:$0xf] %v3135_v46  ;;  %v2321_v63 = vrot.slane %v2320_v37, 4  ;;  %v2810_v18 = vrot.slane %v2808_v33, 4  ;;  %13467 = vmatprep.subr.bf16.mxu0 %v15231_v54  ;;  %v12540_v13 = vadd.f32 %v12539_v51, %v12538_v29 }
 0x191   : > { %v13787_v27 = vld [vmem:[#allocation4 + $0xa0] ss:$36 sps:$4 sm:$0xff]   ;;  %3495 = vst [vmem:[#allocation4 + $0xd0] sm:$0xf] %v3145_v16  ;;  %v2331_v20 = vrot.slane %v2330_v57, 4  ;;  %v3147_v17 = vshrl.u32 %v3035_v50, 16  ;;  %5636 = vmatprep.mubr.bf16.mxu0 %v13785_v22 }
 0x192   : > { %2935 = vst [vmem:[#allocation4 + $0xec] sm:$0xf] %v2809_v59  ;;  %v3037_v14 = vld [vmem:[#allocation2 + $0x44] sm:$0x1]  ;;  %v2326_v35 = vsel %vm14591_vm12, %v2321_v63, %v2325_v5  ;;  %v2812_v10 = vsel %vm14575_vm9, %v2810_v18, %v2811_v23  ;;  %v3150_v36 = vshll.u32 %v3035_v50, 16  ;;  %v3156_v38 = vshll.u32 %v3036_v55, 16  ;;  %5637 = vmatmul.mubr.bf16.gmra.mxu0 %v13787_v27  ;;  %v12541_v5 = vpop.f32.mrf.mxu0 }
 0x193   : > { %v2205_v39 = vld [vmem:[#allocation2 + $0x3c] sm:$0xf]  ;;  %v2206_v15 = vld [vmem:[#allocation2 + $0x40] sm:$0xf]  ;;  %v2336_v28 = vsel %vm14591_vm12, %v2331_v20, %v2335_v60  ;;  %2663 = vst [vmem:[#allocation4 + $0xe8] sm:$0xf] %v2326_v35  ;;  %13468 = vmatpush3.bf16.msra.mxu0 %v15231_v54  ;;  %v12652_v35 = vadd.f32 %v12651_v53, %v12650_v48 }
 0x194   : > { %2936 = vst [vmem:[#allocation4 + $0x110] sm:$0xf] %v2812_v10  ;;  %v3149_v40 = vrot.slane %v3147_v17, 4  ;;  %v3160_v21 = vshrl.u32 %v3036_v55, 16  ;;  %v3166_v43 = vshll.u32 %v3037_v14, 16  ;;  %v3152_v0 = vrot.slane %v3150_v36, 5  ;;  %v12542_v46 = vpop.f32.mrf.mxu0  ;;  %13469 = vmatprep.subr.bf16.mxu0 %v13853_v52 }
 0x195   : > { %v2207_v11 = vld [vmem:[#allocation2 + $0x44] sm:$0x1]  ;;  %2664 = vst [vmem:[#allocation4 + $0x10c] sm:$0xf] %v2336_v28  ;;  %v3158_v56 = vrot.slane %v3156_v38, 5  ;;  %v2338_v26 = vshrl.u32 %v2205_v39, 16  ;;  %v15246_v55 = vadd.f32 %v12649_v32, %v12537_v31  ;;  %v12543_v36 = vadd.f32 %v12542_v46, %v12541_v5 }
 0x196   : > { %v2341_v61 = vshll.u32 %v2205_v39, 16  ;;  %v2701_v62 = vld [vmem:[#allocation2 + $0x3c] sm:$0xe]  ;;  %v3162_v47 = vrot.slane %v3160_v21, 4  ;;  %v3168_v30 = vrot.slane %v3166_v43, 5  ;;  %v2347_v44 = vshll.u32 %v2206_v15, 16  ;;  %v12544_v18 = vpop.f32.mrf.mxu0  ;;  %v12653_v21 = vpop.f32.mrf.mxu1 }
 0x197   : > { %v2351_v3 = vshrl.u32 %v2206_v15, 16  ;;  %v2702_v4 = vld [vmem:[#allocation2 + $0x40] sm:$0xf]  ;;  %v3153_v6 = vor.u32 %v3152_v0, %v3149_v40  ;;  %v2340_v60 = vrot.slane %v2338_v26, 4  ;;  %v2357_v8 = vshll.u32 %v2207_v11, 16  ;;  %13470 = vmatpush3.bf16.msra.mxu0 %v13853_v52  ;;  %v13866_v11 = vld [vmem:[#allocation9 + $0x200] sm:$0xff]  }
 0x198   : > { %v2343_v7 = vrot.slane %v2341_v61, 5  ;;  %v2703_v9 = vld [vmem:[#allocation2 + $0x44] sm:$0x1]  ;;  %v3163_v37 = vor.u32 %v3162_v47, %v3158_v56  ;;  %v2349_v1 = vrot.slane %v2347_v44, 5  ;;  %v11897_v41 = vrot.slane %v2701_v62, 9  ;;  %v12545_v43 = vpop.f32.mrf.mxu0  ;;  %v12654_v44 = vpop.f32.mrf.mxu1  ;;  %13471 = vmatprep.subr.bf16.mxu0 %v13866_v11 }
 0x199   : > { %v2353_v33 = vrot.slane %v2351_v3, 4  ;;  %v13789_v49 = vld [vmem:[#allocation4 + $0xac] ss:$36 sps:$4 sm:$0xff]   ;;  %v3154_v23 = vrot.slane %v3153_v6, 4  ;;  %v2359_v63 = vrot.slane %v2357_v8, 5  ;;  %v2815_v59 = vrot.slane %v2702_v4, 5 }
 0x19a   : > { %v13791_v57 = vld [vmem:[#allocation4 + $0xa8] ss:$36 sps:$4 sm:$0xff]   ;;  %v2344_v50 = vor.u32 %v2343_v7, %v2340_v60  ;;  %v3164_v22 = vrot.slane %v3163_v37, 4  ;;  %5797 = vmatprep.mubr.bf16.mxu1 %v13789_v49  ;;  %v2818_v14 = vrot.slane %v2703_v9, 5  ;;  %v2970_v17 = vld [vmem:[#allocation2 + $0x48] sm:$0xf]  ;;  %v15257_v40 = vadd.f32 %v12652_v35, %v12540_v13 }
 0x19b   : > { %v2354_v16 = vor.u32 %v2353_v33, %v2349_v1  ;;  %v3159_v27 = vsel %vm14591_vm12, %v3154_v23, %v3158_v56  ;;  %5798 = vmatmul.mubr.bf16.gmra.mxu1 %v13791_v57  ;;  %v13792_v31 = vld [vmem:[#allocation4 + $0xec] ss:$36 sps:$4 sm:$0xff]   ;;  %v2816_v10 = vsel %vm14575_vm9, %v11897_v41, %v2815_v59  ;;  %3002 = vst [vmem:[#allocation4 + $0x138] sm:$0xf] %v2970_v17  ;;  %v2817_v39 = vrot.slane %v2815_v59, 4  ;;  %v12656_v41 = vpop.f32.mrf.mxu1 }
 0x19c   : > { %v2345_v20 = vrot.slane %v2344_v50, 4  ;;  %v13794_v32 = vld [vmem:[#allocation4 + $0xe8] ss:$36 sps:$4 sm:$0xff]   ;;  %v3169_v54 = vsel %vm14591_vm12, %v3164_v22, %v3168_v30  ;;  %3496 = vst [vmem:[#allocation4 + $0xf4] sm:$0xf] %v3159_v27  ;;  %5644 = vmatprep.mubr.bf16.mxu0 %v13792_v31  ;;  %v12655_v60 = vadd.f32 %v12654_v44, %v12653_v21  ;;  %v12546_v7 = vadd.f32 %v12545_v43, %v12544_v18 }
 0x19d   : > { %v2355_v29 = vrot.slane %v2354_v16, 4  ;;  %3497 = vst [vmem:[#allocation4 + $0x118] sm:$0xf] %v3169_v54  ;;  %2937 = vst [vmem:[#allocation4 + $0x134] sm:$0xf] %v2816_v10  ;;  %5645 = vmatmul.mubr.bf16.gmra.mxu0 %v13794_v32  ;;  %v2819_v61 = vsel %vm14575_vm9, %v2817_v39, %v2818_v14  ;;  %v12657_v59 = vpop.f32.mrf.mxu1 }
 0x19e   : > { %v2350_v38 = vsel %vm14591_vm12, %v2345_v20, %v2349_v1  ;;  %v2971_v15 = vld [vmem:[#allocation2 + $0x4c] sm:$0xf]  ;;  %v3038_v28 = vld [vmem:[#allocation2 + $0x48] sm:$0xf]  ;;  %v3040_v0 = vld [vmem:[#allocation2 + $0x50] sm:$0x1]  ;;  %13472 = vmatpush3.bf16.msra.mxu0 %v13866_v11  ;;  %v15263_v14 = vadd.f32 %v12655_v60, %v12543_v36  ;;  %v12658_v17 = vadd.f32 %v12657_v59, %v12656_v41 }
 0x19f   : > { %v2360_v48 = vsel %vm14591_vm12, %v2355_v29, %v2359_v63  ;;  %2665 = vst [vmem:[#allocation4 + $0x130] sm:$0xf] %v2350_v38  ;;  %3003 = vst [vmem:[#allocation4 + $0x15c] sm:$0xf] %v2971_v15  ;;  %v3039_v51 = vld [vmem:[#allocation2 + $0x4c] sm:$0xf]  ;;  %v12659_v29 = vpop.f32.mrf.mxu1 }
 0x1a0   : > { %v3171_v56 = vshrl.u32 %v3038_v28, 16  ;;  %v3174_v26 = vshll.u32 %v3038_v28, 16  ;;  %2666 = vst [vmem:[#allocation4 + $0x154] sm:$0xf] %v2360_v48  ;;  %v3180_v62 = vshll.u32 %v3039_v51, 16  ;;  %v3184_v47 = vshrl.u32 %v3039_v51, 16 }
 0x1a1   : > { %v3190_v30 = vshll.u32 %v3040_v0, 16  ;;  %v2208_v52 = vld [vmem:[#allocation2 + $0x48] sm:$0xf]  ;;  %2938 = vst [vmem:[#allocation4 + $0x158] sm:$0xf] %v2819_v61  ;;  %v15269_v51 = vadd.f32 %v12658_v17, %v12546_v7  ;;  %v12547_v0 = vpop.f32.mrf.mxu0 }
 0x1a2   : > { %v3173_v3 = vrot.slane %v3171_v56, 4  ;;  %v3176_v4 = vrot.slane %v3174_v26, 5  ;;  %v2209_v5 = vld [vmem:[#allocation2 + $0x4c] sm:$0xf]  ;;  %v2210_v6 = vld [vmem:[#allocation2 + $0x50] sm:$0x1]  ;;  %v12660_v56 = vpop.f32.mrf.mxu1 }
 0x1a3   : > { %v3182_v8 = vrot.slane %v3180_v62, 5  ;;  %v3186_v9 = vrot.slane %v3184_v47, 4  ;;  %v3192_v37 = vrot.slane %v3190_v30, 5  ;;  %v2362_v1 = vshrl.u32 %v2208_v52, 16  ;;  %v2704_v33 = vld [vmem:[#allocation2 + $0x48] sm:$0xe] }
 0x1a4   : > { %v3177_v53 = vor.u32 %v3176_v4, %v3173_v3  ;;  %v2365_v46 = vshll.u32 %v2208_v52, 16  ;;  %v2371_v49 = vshll.u32 %v2209_v5, 16  ;;  %v2375_v57 = vshrl.u32 %v2209_v5, 16  ;;  %v2705_v23 = vld [vmem:[#allocation2 + $0x4c] sm:$0xf]  ;;  %v12548_v5 = vpop.f32.mrf.mxu0 }
 0x1a5   : > { %v3187_v50 = vor.u32 %v3186_v9, %v3182_v8  ;;  %v2364_v13 = vrot.slane %v2362_v1, 4  ;;  %v2381_v22 = vshll.u32 %v2210_v6, 16  ;;  %v2706_v16 = vld [vmem:[#allocation2 + $0x50] sm:$0x1]  ;;  %v11898_v63 = vrot.slane %v2704_v33, 9  ;;  %v15275_v6 = vpop.f32.mrf.mxu1 }
 0x1a6   : > { %v13795_v27 = vld [vmem:[#allocation4 + $0xf4] ss:$36 sps:$4 sm:$0xff]   ;;  %v3178_v20 = vrot.slane %v3177_v53, 4  ;;  %v2367_v31 = vrot.slane %v2365_v46, 5  ;;  %v2373_v32 = vrot.slane %v2371_v49, 5  ;;  %v2377_v54 = vrot.slane %v2375_v57, 4  ;;  %v12550_v57 = vpop.f32.mrf.mxu0 }
 0x1a7   : > { %v13797_v18 = vld [vmem:[#allocation4 + $0xf0] ss:$36 sps:$4 sm:$0xff]   ;;  %v3188_v35 = vrot.slane %v3187_v50, 4  ;;  %5805 = vmatprep.mubr.bf16.mxu1 %v13795_v27  ;;  %v2383_v38 = vrot.slane %v2381_v22, 5  ;;  %v2822_v39 = vrot.slane %v2705_v23, 5  ;;  %v2825_v15 = vrot.slane %v2706_v16, 5  ;;  %v12663_v23 = vpop.f32.mrf.mxu1 }
 0x1a8   : > { %v3183_v10 = vsel %vm14591_vm12, %v3178_v20, %v3182_v8  ;;  %v2972_v28 = vld [vmem:[#allocation2 + $0x54] sm:$0xf]  ;;  %5806 = vmatmul.mubr.bf16.gmra.mxu1 %v13797_v18  ;;  %v13798_v21 = vld [vmem:[#allocation4 + $0x134] ss:$36 sps:$4 sm:$0xff]   ;;  %v2368_v11 = vor.u32 %v2367_v31, %v2364_v13  ;;  %v2378_v48 = vor.u32 %v2377_v54, %v2373_v32  ;;  %v2973_v62 = vld [vmem:[#allocation2 + $0x58] sm:$0xf]  ;;  %v15273_v30 = vadd.f32 %v12660_v56, %v12659_v29 }
 0x1a9   : > { %v13800_v43 = vld [vmem:[#allocation4 + $0x130] ss:$36 sps:$4 sm:$0xff]   ;;  %v3193_v36 = vsel %vm14591_vm12, %v3188_v35, %v3192_v37  ;;  %3498 = vst [vmem:[#allocation4 + $0x13c] sm:$0xf] %v3183_v10  ;;  %3004 = vst [vmem:[#allocation4 + $0x180] sm:$0xf] %v2972_v28  ;;  %v2823_v26 = vsel %vm14575_vm9, %v11898_v63, %v2822_v39  ;;  %5652 = vmatprep.mubr.bf16.mxu0 %v13798_v21  ;;  %v12551_v35 = vpop.f32.mrf.mxu0  ;;  %v12665_v31 = vpop.f32.mrf.mxu1 }
 0x1aa   : > { %3499 = vst [vmem:[#allocation4 + $0x160] sm:$0xf] %v3193_v36  ;;  %v2824_v61 = vrot.slane %v2822_v39, 4  ;;  %v3041_v47 = vld [vmem:[#allocation2 + $0x54] sm:$0xf]  ;;  %v2369_v52 = vrot.slane %v2368_v11, 4  ;;  %5653 = vmatmul.mubr.bf16.gmra.mxu0 %v13800_v43  ;;  %v12549_v43 = vadd.f32 %v12548_v5, %v12547_v0  ;;  %v12552_v36 = vadd.f32 %v12551_v35, %v12550_v57 }
 0x1ab   : > { %v2379_v44 = vrot.slane %v2378_v48, 4  ;;  %2939 = vst [vmem:[#allocation4 + $0x17c] sm:$0xf] %v2823_v26  ;;  %3005 = vst [vmem:[#allocation4 + $0x1a4] sm:$0xf] %v2973_v62  ;;  %v3195_v7 = vshrl.u32 %v3041_v47, 16  ;;  %v12553_v11 = vpop.f32.mrf.mxu0  ;;  %v12666_v62 = vpop.f32.mrf.mxu1 }
 0x1ac   : > { %v3042_v3 = vld [vmem:[#allocation2 + $0x58] sm:$0xf]  ;;  %v3043_v4 = vld [vmem:[#allocation2 + $0x5c] sm:$0x1]  ;;  %v2826_v60 = vsel %vm14575_vm9, %v2824_v61, %v2825_v15  ;;  %v3198_v8 = vshll.u32 %v3041_v47, 16  ;;  %v2374_v1 = vsel %vm14591_vm12, %v2369_v52, %v2373_v32 }
 0x1ad   : > { %v3204_v9 = vshll.u32 %v3042_v3, 16  ;;  %v2211_v37 = vld [vmem:[#allocation2 + $0x54] sm:$0xf]  ;;  %v2384_v33 = vsel %vm14591_vm12, %v2379_v44, %v2383_v38  ;;  %2940 = vst [vmem:[#allocation4 + $0x1a0] sm:$0xf] %v2826_v60  ;;  %v3208_v41 = vshrl.u32 %v3042_v3, 16 }
 0x1ae   : > { %v3214_v53 = vshll.u32 %v3043_v4, 16  ;;  %v2212_v46 = vld [vmem:[#allocation2 + $0x58] sm:$0xf]  ;;  %v2213_v49 = vld [vmem:[#allocation2 + $0x5c] sm:$0x1]  ;;  %v3197_v50 = vrot.slane %v3195_v7, 4  ;;  %v12554_v4 = vpop.f32.mrf.mxu0 }
 0x1af   : > { %2667 = vst [vmem:[#allocation4 + $0x178] sm:$0xf] %v2374_v1  ;;  %2668 = vst [vmem:[#allocation4 + $0x19c] sm:$0xf] %v2384_v33  ;;  %v3200_v13 = vrot.slane %v3198_v8, 5  ;;  %v3206_v22 = vrot.slane %v3204_v9, 5  ;;  %v15286_v9 = vadd.f32 %v15273_v30, %v12549_v43  ;;  %v12664_v30 = vadd.f32 %v12663_v23, %v15275_v6 }
 0x1b0   : > { %v2386_v16 = vshrl.u32 %v2211_v37, 16  ;;  %v2707_v63 = vld [vmem:[#allocation2 + $0x54] sm:$0xe]  ;;  %v3210_v59 = vrot.slane %v3208_v41, 4  ;;  %v3216_v27 = vrot.slane %v3214_v53, 5  ;;  %v2389_v18 = vshll.u32 %v2211_v37, 16 }
 0x1b1   : > { %v2395_v20 = vshll.u32 %v2212_v46, 16  ;;  %v2708_v17 = vld [vmem:[#allocation2 + $0x58] sm:$0xf]  ;;  %v3201_v32 = vor.u32 %v3200_v13, %v3197_v50  ;;  %v2399_v29 = vshrl.u32 %v2212_v46, 16  ;;  %v2405_v10 = vshll.u32 %v2213_v49, 16  ;;  %v12556_v46 = vpop.f32.mrf.mxu0 }
 0x1b2   : > { %v2388_v54 = vrot.slane %v2386_v16, 4  ;;  %v2709_v38 = vld [vmem:[#allocation2 + $0x5c] sm:$0x1]  ;;  %v13802_v39 = vld [vmem:[#allocation4 + $0x13c] ss:$36 sps:$4 sm:$0xff]   ;;  %v3211_v28 = vor.u32 %v3210_v59, %v3206_v22  ;;  %v2391_v21 = vrot.slane %v2389_v18, 5  ;;  %v12555_v13 = vadd.f32 %v12554_v4, %v12553_v11  ;;  %v12668_v16 = vpop.f32.mrf.mxu1 }
 0x1b3   : > { %v13804_v15 = vld [vmem:[#allocation4 + $0x138] ss:$36 sps:$4 sm:$0xff]   ;;  %v3202_v48 = vrot.slane %v3201_v32, 4  ;;  %v2397_v56 = vrot.slane %v2395_v20, 5  ;;  %v2401_v26 = vrot.slane %v2399_v29, 4  ;;  %v2407_v61 = vrot.slane %v2405_v10, 5  ;;  %5813 = vmatprep.mubr.bf16.mxu1 %v13802_v39  ;;  %v12557_v35 = vpop.f32.mrf.mxu0 }
 0x1b4   : > { %v3212_v47 = vrot.slane %v3211_v28, 4  ;;  %v2392_v52 = vor.u32 %v2391_v21, %v2388_v54  ;;  %v11899_v44 = vrot.slane %v2707_v63, 9  ;;  %v2829_v3 = vrot.slane %v2708_v17, 5  ;;  %5814 = vmatmul.mubr.bf16.gmra.mxu1 %v13804_v15  ;;  %v2974_v0 = vld [vmem:[#allocation2 + $0x60] sm:$0xf] }
 0x1b5   : > { %v3207_v60 = vsel %vm14591_vm12, %v3202_v48, %v3206_v22  ;;  %v2402_v7 = vor.u32 %v2401_v26, %v2397_v56  ;;  %v2832_v8 = vrot.slane %v2709_v38, 5  ;;  %v2975_v5 = vld [vmem:[#allocation2 + $0x64] sm:$0xf]  ;;  %v13805_v37 = vld [vmem:[#allocation4 + $0x17c] ss:$36 sps:$4 sm:$0xff]   ;;  %v12667_v22 = vadd.f32 %v12666_v62, %v12665_v31  ;;  %v12669_v26 = vpop.f32.mrf.mxu1 }
 0x1b6   : > { %v3217_v1 = vsel %vm14591_vm12, %v3212_v47, %v3216_v27  ;;  %3500 = vst [vmem:[#allocation4 + $0x184] sm:$0xf] %v3207_v60  ;;  %v2393_v33 = vrot.slane %v2392_v52, 4  ;;  %v2830_v41 = vsel %vm14575_vm9, %v11899_v44, %v2829_v3  ;;  %v2831_v53 = vrot.slane %v2829_v3, 4  ;;  %3006 = vst [vmem:[#allocation4 + $0x1c8] sm:$0xf] %v2974_v0  ;;  %5660 = vmatprep.mubr.bf16.mxu0 %v13805_v37 }
 0x1b7   : > { %3007 = vst [vmem:[#allocation4 + $0x1ec] sm:$0xf] %v2975_v5  ;;  %v13807_v49 = vld [vmem:[#allocation4 + $0x178] ss:$36 sps:$4 sm:$0xff]   ;;  %3501 = vst [vmem:[#allocation4 + $0x1a8] sm:$0xf] %v3217_v1  ;;  %v15299_v15 = vadd.f32 %v12664_v30, %v12552_v36  ;;  %v15301_v28 = vadd.f32 %v12667_v22, %v12555_v13 }
 0x1b8   : > { %v2403_v57 = vrot.slane %v2402_v7, 4  ;;  %2941 = vst [vmem:[#allocation4 + $0x1c4] sm:$0xf] %v2830_v41  ;;  %v3044_v50 = vld [vmem:[#allocation2 + $0x60] sm:$0xf]  ;;  %v2398_v63 = vsel %vm14591_vm12, %v2393_v33, %v2397_v56  ;;  %v2833_v59 = vsel %vm14575_vm9, %v2831_v53, %v2832_v8  ;;  %5661 = vmatmul.mubr.bf16.gmra.mxu0 %v13807_v49  ;;  %v12558_v33 = vadd.f32 %v12557_v35, %v12556_v46 }
 0x1b9   : > { %v3045_v27 = vld [vmem:[#allocation2 + $0x64] sm:$0xf]  ;;  %v3046_v18 = vld [vmem:[#allocation2 + $0x68] sm:$0x1]  ;;  %v3219_v20 = vshrl.u32 %v3044_v50, 16  ;;  %v3222_v17 = vshll.u32 %v3044_v50, 16  ;;  %v12670_v41 = vadd.f32 %v12669_v26, %v12668_v16 }
 0x1ba   : > { %v2408_v32 = vsel %vm14591_vm12, %v2403_v57, %v2407_v61  ;;  %2669 = vst [vmem:[#allocation4 + $0x1c0] sm:$0xf] %v2398_v63  ;;  %2942 = vst [vmem:[#allocation4 + $0x1e8] sm:$0xf] %v2833_v59  ;;  %v3228_v6 = vshll.u32 %v3045_v27, 16  ;;  %v3232_v23 = vshrl.u32 %v3045_v27, 16  ;;  %v12559_v61 = vpop.f32.mrf.mxu0 }
 0x1bb   : > { %v3238_v31 = vshll.u32 %v3046_v18, 16  ;;  %v2214_v54 = vld [vmem:[#allocation2 + $0x60] sm:$0xf]  ;;  %2670 = vst [vmem:[#allocation4 + $0x1e4] sm:$0xf] %v2408_v32  ;;  %v3221_v29 = vrot.slane %v3219_v20, 4  ;;  %v15309_v32 = vadd.f32 %v12670_v41, %v12558_v33 }
 0x1bc   : > { %v3224_v10 = vrot.slane %v3222_v17, 5  ;;  %v2215_v38 = vld [vmem:[#allocation2 + $0x64] sm:$0xf]  ;;  %v2216_v39 = vld [vmem:[#allocation2 + $0x68] sm:$0x1]  ;;  %v3230_v21 = vrot.slane %v3228_v6, 5  ;;  %v12560_v0 = vpop.f32.mrf.mxu0 }
 0x1bd   : > { %v3234_v43 = vrot.slane %v3232_v23, 4  ;;  %v3240_v11 = vrot.slane %v3238_v31, 5  ;;  %v2410_v48 = vshrl.u32 %v2214_v54, 16  ;;  %v2710_v56 = vld [vmem:[#allocation2 + $0x60] sm:$0xe]  ;;  %v2413_v47 = vshll.u32 %v2214_v54, 16 }
 0x1be   : > { %v3225_v62 = vor.u32 %v3224_v10, %v3221_v29  ;;  %v2419_v52 = vshll.u32 %v2215_v38, 16  ;;  %v2423_v44 = vshrl.u32 %v2215_v38, 16  ;;  %v2711_v3 = vld [vmem:[#allocation2 + $0x64] sm:$0xf]  ;;  %v2429_v7 = vshll.u32 %v2216_v39, 16  ;;  %v12671_v29 = vpop.f32.mrf.mxu1  ;;  %v12562_v10 = vpop.f32.mrf.mxu0 }
 0x1bf   : > { %v3235_v4 = vor.u32 %v3234_v43, %v3230_v21  ;;  %v2412_v60 = vrot.slane %v2410_v48, 4  ;;  %v2712_v8 = vld [vmem:[#allocation2 + $0x68] sm:$0x1]  ;;  %v11900_v36 = vrot.slane %v2710_v56, 9  ;;  %v13808_v5 = vld [vmem:[#allocation4 + $0x184] ss:$36 sps:$4 sm:$0xff]   ;;  %v15303_v53 = vadd.f32 %v12560_v0, %v12559_v61 }
 0x1c0   : > { %v13810_v37 = vld [vmem:[#allocation4 + $0x180] ss:$36 sps:$4 sm:$0xff]   ;;  %v3226_v1 = vrot.slane %v3225_v62, 4  ;;  %v2415_v57 = vrot.slane %v2413_v47, 5  ;;  %v2421_v50 = vrot.slane %v2419_v52, 5  ;;  %v2425_v30 = vrot.slane %v2423_v44, 4  ;;  %5821 = vmatprep.mubr.bf16.mxu1 %v13808_v5  ;;  %v12672_v47 = vpop.f32.mrf.mxu1  ;;  %v12563_v33 = vpop.f32.mrf.mxu0 }
 0x1c1   : > { %v3236_v49 = vrot.slane %v3235_v4, 4  ;;  %v2976_v13 = vld [vmem:[#allocation2 + $0x6c] sm:$0xf]  ;;  %v2431_v63 = vrot.slane %v2429_v7, 5  ;;  %v2836_v59 = vrot.slane %v2711_v3, 5  ;;  %v2839_v27 = vrot.slane %v2712_v8, 5  ;;  %5822 = vmatmul.mubr.bf16.gmra.mxu1 %v13810_v37 }
 0x1c2   : > { %v3231_v22 = vsel %vm14591_vm12, %v3226_v1, %v3230_v21  ;;  %v2977_v18 = vld [vmem:[#allocation2 + $0x70] sm:$0xf]  ;;  %3008 = vst [vmem:[#allocation4 + $0x210] sm:$0xf] %v2976_v13  ;;  %v13811_v20 = vld [vmem:[#allocation4 + $0x1c4] ss:$36 sps:$4 sm:$0xff]   ;;  %v2416_v17 = vor.u32 %v2415_v57, %v2412_v60  ;;  %v2426_v35 = vor.u32 %v2425_v30, %v2421_v50  ;;  %v12674_v1 = vpop.f32.mrf.mxu1 }
 0x1c3   : > { %v13813_v46 = vld [vmem:[#allocation4 + $0x1c0] ss:$36 sps:$4 sm:$0xff]   ;;  %v3241_v16 = vsel %vm14591_vm12, %v3236_v49, %v3240_v11  ;;  %3502 = vst [vmem:[#allocation4 + $0x1cc] sm:$0xf] %v3231_v22  ;;  %3009 = vst [vmem:[#allocation4 + $0x234] sm:$0xf] %v2977_v18  ;;  %v2837_v6 = vsel %vm14575_vm9, %v11900_v36, %v2836_v59  ;;  %5668 = vmatprep.mubr.bf16.mxu0 %v13811_v20 }
 0x1c4   : > { %3503 = vst [vmem:[#allocation4 + $0x1f0] sm:$0xf] %v3241_v16  ;;  %v2838_v23 = vrot.slane %v2836_v59, 4  ;;  %v3047_v31 = vld [vmem:[#allocation2 + $0x6c] sm:$0xf]  ;;  %v2417_v38 = vrot.slane %v2416_v17, 4  ;;  %5669 = vmatmul.mubr.bf16.gmra.mxu0 %v13813_v46  ;;  %v12675_v18 = vpop.f32.mrf.mxu1  ;;  %v12673_v17 = vadd.f32 %v12672_v47, %v12671_v29 }
 0x1c5   : > { %v3048_v54 = vld [vmem:[#allocation2 + $0x70] sm:$0xf]  ;;  %v2427_v39 = vrot.slane %v2426_v35, 4  ;;  %2943 = vst [vmem:[#allocation4 + $0x20c] sm:$0xf] %v2837_v6  ;;  %v3243_v43 = vshrl.u32 %v3047_v31, 16  ;;  %v12564_v35 = vadd.f32 %v12563_v33, %v12562_v10  ;;  %v12676_v6 = vadd.f32 %v12675_v18, %v12674_v1 }
 0x1c6   : > { %v3049_v21 = vld [vmem:[#allocation2 + $0x74] sm:$0x1]  ;;  %v3246_v11 = vshll.u32 %v3047_v31, 16  ;;  %v2840_v48 = vsel %vm14575_vm9, %v2838_v23, %v2839_v27  ;;  %v3252_v56 = vshll.u32 %v3048_v54, 16  ;;  %v3256_v26 = vshrl.u32 %v3048_v54, 16 }
 0x1c7   : > { %v3262_v61 = vshll.u32 %v3049_v21, 16  ;;  %v2217_v62 = vld [vmem:[#allocation2 + $0x6c] sm:$0xf]  ;;  %v2422_v52 = vsel %vm14591_vm12, %v2417_v38, %v2421_v50  ;;  %v2432_v44 = vsel %vm14591_vm12, %v2427_v39, %v2431_v63  ;;  %2944 = vst [vmem:[#allocation4 + $0x230] sm:$0xf] %v2840_v48  ;;  %v3245_v3 = vrot.slane %v3243_v43, 4  ;;  %v12565_v48 = vpop.f32.mrf.mxu0 }
 0x1c8   : > { %v3248_v4 = vrot.slane %v3246_v11, 5  ;;  %v2218_v60 = vld [vmem:[#allocation2 + $0x70] sm:$0xf]  ;;  %v2219_v7 = vld [vmem:[#allocation2 + $0x74] sm:$0x1]  ;;  %v3254_v8 = vrot.slane %v3252_v56, 5  ;;  %v15324_v47 = vadd.f32 %v12673_v17, %v15303_v53 }
 0x1c9   : > { %2671 = vst [vmem:[#allocation4 + $0x208] sm:$0xf] %v2422_v52  ;;  %2672 = vst [vmem:[#allocation4 + $0x22c] sm:$0xf] %v2432_v44  ;;  %v3258_v36 = vrot.slane %v3256_v26, 4  ;;  %v3264_v0 = vrot.slane %v3262_v61, 5 }
 0x1ca   : > { %v2434_v5 = vshrl.u32 %v2217_v62, 16  ;;  %v2713_v37 = vld [vmem:[#allocation2 + $0x6c] sm:$0xe]  ;;  %v3249_v41 = vor.u32 %v3248_v4, %v3245_v3  ;;  %v2437_v49 = vshll.u32 %v2217_v62, 16  ;;  %v2443_v57 = vshll.u32 %v2218_v60, 16 }
 0x1cb   : > { %v2447_v50 = vshrl.u32 %v2218_v60, 16  ;;  %v2714_v30 = vld [vmem:[#allocation2 + $0x70] sm:$0xf]  ;;  %v3259_v13 = vor.u32 %v3258_v36, %v3254_v8  ;;  %v2453_v63 = vshll.u32 %v2219_v7, 16  ;;  %v2715_v59 = vld [vmem:[#allocation2 + $0x74] sm:$0x1]  ;;  %v15328_v60 = vadd.f32 %v12676_v6, %v12564_v35  ;;  %v12677_v7 = vpop.f32.mrf.mxu1 }
 0x1cc   : > { %v2436_v22 = vrot.slane %v2434_v5, 4  ;;  %v11901_v27 = vrot.slane %v2713_v37, 9  ;;  %v13815_v20 = vld [vmem:[#allocation4 + $0x1cc] ss:$36 sps:$4 sm:$0xff]   ;;  %v3250_v16 = vrot.slane %v3249_v41, 4  ;;  %v2439_v31 = vrot.slane %v2437_v49, 5 }
 0x1cd   : > { %v13817_v46 = vld [vmem:[#allocation4 + $0x1c8] ss:$36 sps:$4 sm:$0xff]   ;;  %v3260_v23 = vrot.slane %v3259_v13, 4  ;;  %v2445_v54 = vrot.slane %v2443_v57, 5  ;;  %v2449_v38 = vrot.slane %v2447_v50, 4  ;;  %5829 = vmatprep.mubr.bf16.mxu1 %v13815_v20  ;;  %v2455_v21 = vrot.slane %v2453_v63, 5  ;;  %v12678_v50 = vpop.f32.mrf.mxu1 }
 0x1ce   : > { %v3255_v39 = vsel %vm14591_vm12, %v3250_v16, %v3254_v8  ;;  %v2843_v43 = vrot.slane %v2714_v30, 5  ;;  %v2846_v11 = vrot.slane %v2715_v59, 5  ;;  %5830 = vmatmul.mubr.bf16.gmra.mxu1 %v13817_v46  ;;  %v2440_v29 = vor.u32 %v2439_v31, %v2436_v22  ;;  %v2978_v26 = vld [vmem:[#allocation2 + $0x78] sm:$0xf]  ;;  %v2979_v61 = vld [vmem:[#allocation2 + $0x7c] sm:$0xf]  ;;  %v12566_v8 = vpop.f32.mrf.mxu0 }
 0x1cf   : > { %v3265_v56 = vsel %vm14591_vm12, %v3260_v23, %v3264_v0  ;;  %3504 = vst [vmem:[#allocation4 + $0x214] sm:$0xf] %v3255_v39  ;;  %v2450_v10 = vor.u32 %v2449_v38, %v2445_v54  ;;  %v3050_v62 = vld [vmem:[#allocation2 + $0x78] sm:$0xf]  ;;  %v13818_v52 = vld [vmem:[#allocation4 + $0x20c] ss:$36 sps:$4 sm:$0xff]   ;;  %v15330_v53 = vadd.f32 %v12566_v8, %v12565_v48  ;;  %v12680_v6 = vpop.f32.mrf.mxu1 }
 0x1d0   : > { %3505 = vst [vmem:[#allocation4 + $0x238] sm:$0xf] %v3265_v56  ;;  %v2844_v44 = vsel %vm14575_vm9, %v11901_v27, %v2843_v43  ;;  %v2845_v3 = vrot.slane %v2843_v43, 4  ;;  %3010 = vst [vmem:[#allocation4 + $0x258] sm:$0xf] %v2978_v26  ;;  %v3267_v4 = vshrl.u32 %v3050_v62, 16  ;;  %5676 = vmatprep.mubr.bf16.mxu0 %v13818_v52  ;;  %v12568_v30 = vpop.f32.mrf.mxu0 }
 0x1d1   : > { %3011 = vst [vmem:[#allocation4 + $0x27c] sm:$0xf] %v2979_v61  ;;  %v13820_v36 = vld [vmem:[#allocation4 + $0x208] ss:$36 sps:$4 sm:$0xff]   ;;  %v2441_v0 = vrot.slane %v2440_v29, 4  ;;  %v2451_v5 = vrot.slane %v2450_v10, 4  ;;  %v12681_v10 = vpop.f32.mrf.mxu1 }
 0x1d2   : > { %2945 = vst [vmem:[#allocation4 + $0x254] sm:$0xf] %v2844_v44  ;;  %v3051_v37 = vld [vmem:[#allocation2 + $0x7c] sm:$0xf]  ;;  %v2847_v1 = vsel %vm14575_vm9, %v2845_v3, %v2846_v11  ;;  %v3052_v33 = vld [vmem:[#allocation2 + $0x80] sm:$0x1]  ;;  %5677 = vmatmul.mubr.bf16.gmra.mxu0 %v13820_v36  ;;  %v12569_v23 = vpop.f32.mrf.mxu0  ;;  %v12679_v44 = vadd.f32 %v12678_v50, %v12677_v7 }
 0x1d3   : > { %v3269_v41 = vrot.slane %v3267_v4, 4  ;;  %v3270_v49 = vshll.u32 %v3050_v62, 16  ;;  %v3276_v57 = vshll.u32 %v3051_v37, 16  ;;  %v2446_v13 = vsel %vm14591_vm12, %v2441_v0, %v2445_v54  ;;  %2946 = vst [vmem:[#allocation4 + $0x278] sm:$0xf] %v2847_v1 }
 0x1d4   : > { %v2456_v22 = vsel %vm14591_vm12, %v2451_v5, %v2455_v21  ;;  %v3280_v63 = vshrl.u32 %v3051_v37, 16  ;;  %v3286_v59 = vshll.u32 %v3052_v33, 16  ;;  %v2220_v27 = vld [vmem:[#allocation2 + $0x78] sm:$0xf]  ;;  %v2221_v18 = vld [vmem:[#allocation2 + $0x7c] sm:$0xf]  ;;  %v12570_v3 = vadd.f32 %v12569_v23, %v12568_v30  ;;  %v15338_v37 = vpop.f32.mrf.mxu1 }
 0x1d5   : > { %2673 = vst [vmem:[#allocation4 + $0x250] sm:$0xf] %v2446_v13  ;;  %2674 = vst [vmem:[#allocation4 + $0x274] sm:$0xf] %v2456_v22  ;;  %v3272_v20 = vrot.slane %v3270_v49, 5  ;;  %v3278_v46 = vrot.slane %v3276_v57, 5  ;;  %v15340_v13 = vpop.f32.mrf.mxu0 }
 0x1d6   : > { %v2222_v16 = vld [vmem:[#allocation2 + $0x80] sm:$0x1]  ;;  %v2458_v17 = vshrl.u32 %v2220_v27, 16  ;;  %v2461_v35 = vshll.u32 %v2220_v27, 16  ;;  %v3282_v31 = vrot.slane %v3280_v63, 4  ;;  %v3288_v38 = vrot.slane %v3286_v59, 5  ;;  %v12684_v27 = vpop.f32.mrf.mxu1 }
 0x1d7   : > { %v2467_v54 = vshll.u32 %v2221_v18, 16  ;;  %v2471_v39 = vshrl.u32 %v2221_v18, 16  ;;  %v2716_v43 = vld [vmem:[#allocation2 + $0x78] sm:$0xe]  ;;  %v3273_v21 = vor.u32 %v3272_v20, %v3269_v41  ;;  %v2477_v56 = vshll.u32 %v2222_v16, 16 }
 0x1d8   : > { %v2460_v11 = vrot.slane %v2458_v17, 4  ;;  %v2463_v48 = vrot.slane %v2461_v35, 5  ;;  %v2717_v29 = vld [vmem:[#allocation2 + $0x7c] sm:$0xf]  ;;  %v13821_v26 = vld [vmem:[#allocation4 + $0x214] ss:$36 sps:$4 sm:$0xff]   ;;  %v3283_v62 = vor.u32 %v3282_v31, %v3278_v46  ;;  %v15345_v59 = vadd.f32 %v12679_v44, %v15330_v53  ;;  %v12572_v35 = vpop.f32.mrf.mxu0 }
 0x1d9   : > { %v13823_v61 = vld [vmem:[#allocation4 + $0x210] ss:$36 sps:$4 sm:$0xff]   ;;  %v2469_v52 = vrot.slane %v2467_v54, 5  ;;  %v3274_v4 = vrot.slane %v3273_v21, 4  ;;  %v2473_v36 = vrot.slane %v2471_v39, 4  ;;  %v2479_v0 = vrot.slane %v2477_v56, 5  ;;  %5837 = vmatprep.mubr.bf16.mxu1 %v13821_v26 }
 0x1da   : > { %v2464_v8 = vor.u32 %v2463_v48, %v2460_v11  ;;  %v2718_v5 = vld [vmem:[#allocation2 + $0x80] sm:$0x1]  ;;  %v3284_v1 = vrot.slane %v3283_v62, 4  ;;  %v11902_v33 = vrot.slane %v2716_v43, 9  ;;  %v2850_v41 = vrot.slane %v2717_v29, 5  ;;  %5838 = vmatmul.mubr.bf16.gmra.mxu1 %v13823_v61  ;;  %v12574_v29 = vpop.f32.mrf.mxu0 }
 0x1db   : > { %v2853_v49 = vrot.slane %v2718_v5, 5  ;;  %v2980_v57 = vld [vmem:[#allocation2 + $0x84] sm:$0xf]  ;;  %v3279_v7 = vsel %vm14591_vm12, %v3274_v4, %v3278_v46  ;;  %v2474_v30 = vor.u32 %v2473_v36, %v2469_v52  ;;  %v2981_v22 = vld [vmem:[#allocation2 + $0x88] sm:$0xf]  ;;  %v12682_v43 = vadd.f32 %v12681_v10, %v12680_v6  ;;  %v12686_v10 = vpop.f32.mrf.mxu1 }
 0x1dc   : > { %v2465_v50 = vrot.slane %v2464_v8, 4  ;;  %3012 = vst [vmem:[#allocation4 + $0x2a0] sm:$0xf] %v2980_v57  ;;  %v3053_v63 = vld [vmem:[#allocation2 + $0x84] sm:$0xf]  ;;  %v3289_v20 = vsel %vm14591_vm12, %v3284_v1, %v3288_v38  ;;  %v2851_v16 = vsel %vm14575_vm9, %v11902_v33, %v2850_v41  ;;  %v2852_v17 = vrot.slane %v2850_v41, 4 }
 0x1dd   : > { %v13824_v18 = vld [vmem:[#allocation4 + $0x254] ss:$36 sps:$4 sm:$0xff]   ;;  %3506 = vst [vmem:[#allocation4 + $0x25c] sm:$0xf] %v3279_v7  ;;  %3013 = vst [vmem:[#allocation4 + $0x2c4] sm:$0xf] %v2981_v22  ;;  %v15357_v6 = vadd.f32 %v12682_v43, %v12570_v3  ;;  %v12685_v43 = vadd.f32 %v12684_v27, %v15338_v37 }
 0x1de   : > { %v3291_v46 = vshrl.u32 %v3053_v63, 16  ;;  %v13826_v23 = vld [vmem:[#allocation4 + $0x250] ss:$36 sps:$4 sm:$0xff]   ;;  %3507 = vst [vmem:[#allocation4 + $0x280] sm:$0xf] %v3289_v20  ;;  %v2470_v31 = vsel %vm14591_vm12, %v2465_v50, %v2469_v52  ;;  %v2475_v53 = vrot.slane %v2474_v30, 4  ;;  %5684 = vmatprep.mubr.bf16.mxu0 %v13824_v18  ;;  %v2854_v38 = vsel %vm14575_vm9, %v2852_v17, %v2853_v49 }
 0x1df   : > { %2947 = vst [vmem:[#allocation4 + $0x29c] sm:$0xf] %v2851_v16  ;;  %v3054_v54 = vld [vmem:[#allocation2 + $0x88] sm:$0xf]  ;;  %v3294_v39 = vshll.u32 %v3053_v63, 16  ;;  %5685 = vmatmul.mubr.bf16.gmra.mxu0 %v13826_v23  ;;  %v12687_v23 = vpop.f32.mrf.mxu1 }
 0x1e0   : > { %2675 = vst [vmem:[#allocation4 + $0x298] sm:$0xf] %v2470_v31  ;;  %v3055_v21 = vld [vmem:[#allocation2 + $0x8c] sm:$0x1]  ;;  %v3293_v11 = vrot.slane %v3291_v46, 4  ;;  %v3300_v48 = vshll.u32 %v3054_v54, 16  ;;  %v2480_v26 = vsel %vm14591_vm12, %v2475_v53, %v2479_v0  ;;  %v12575_v0 = vpop.f32.mrf.mxu0  ;;  %v12573_v46 = vadd.f32 %v12572_v35, %v15340_v13 }
 0x1e1   : > { %v3304_v56 = vshrl.u32 %v3054_v54, 16  ;;  %2948 = vst [vmem:[#allocation4 + $0x2c0] sm:$0xf] %v2854_v38  ;;  %v3296_v61 = vrot.slane %v3294_v39, 5  ;;  %v3310_v62 = vshll.u32 %v3055_v21, 16  ;;  %v12576_v38 = vadd.f32 %v12575_v0, %v12574_v29 }
 0x1e2   : > { %v2223_v52 = vld [vmem:[#allocation2 + $0x84] sm:$0xf]  ;;  %v2224_v44 = vld [vmem:[#allocation2 + $0x88] sm:$0xf]  ;;  %2676 = vst [vmem:[#allocation4 + $0x2bc] sm:$0xf] %v2480_v26  ;;  %v12577_v26 = vpop.f32.mrf.mxu0  ;;  %v15365_v27 = vadd.f32 %v12685_v43, %v12573_v46  ;;  %v12688_v29 = vadd.f32 %v12687_v23, %v12686_v10 }
 0x1e3   : > { %v3302_v4 = vrot.slane %v3300_v48, 5  ;;  %v3306_v8 = vrot.slane %v3304_v56, 4  ;;  %v2225_v36 = vld [vmem:[#allocation2 + $0x8c] sm:$0x1]  ;;  %v2482_v5 = vshrl.u32 %v2223_v52, 16  ;;  %v2485_v1 = vshll.u32 %v2223_v52, 16 }
 0x1e4   : > { %v3297_v33 = vor.u32 %v3296_v61, %v3293_v11  ;;  %v3312_v41 = vrot.slane %v3310_v62, 5  ;;  %v2491_v49 = vshll.u32 %v2224_v44, 16  ;;  %v2495_v57 = vshrl.u32 %v2224_v44, 16  ;;  %v2719_v7 = vld [vmem:[#allocation2 + $0x84] sm:$0xe] }
 0x1e5   : > { %v3307_v50 = vor.u32 %v3306_v8, %v3302_v4  ;;  %v2484_v30 = vrot.slane %v2482_v5, 4  ;;  %v2487_v22 = vrot.slane %v2485_v1, 5  ;;  %v2501_v63 = vshll.u32 %v2225_v36, 16  ;;  %v2720_v18 = vld [vmem:[#allocation2 + $0x88] sm:$0xf]  ;;  %v12578_v8 = vpop.f32.mrf.mxu0 }
 0x1e6   : > { %v3298_v3 = vrot.slane %v3297_v33, 4  ;;  %v2493_v20 = vrot.slane %v2491_v49, 5  ;;  %v2497_v16 = vrot.slane %v2495_v57, 4  ;;  %v2721_v17 = vld [vmem:[#allocation2 + $0x8c] sm:$0x1]  ;;  %v11903_v56 = vrot.slane %v2719_v7, 9 }
 0x1e7   : > { %v13828_v31 = vld [vmem:[#allocation4 + $0x25c] ss:$36 sps:$4 sm:$0xff]   ;;  %v3308_v54 = vrot.slane %v3307_v50, 4  ;;  %v2488_v39 = vor.u32 %v2487_v22, %v2484_v30  ;;  %v2503_v48 = vrot.slane %v2501_v63, 5  ;;  %v2857_v35 = vrot.slane %v2720_v18, 5  ;;  %v12580_v22 = vpop.f32.mrf.mxu0 }
 0x1e8   : > { %v13830_v53 = vld [vmem:[#allocation4 + $0x258] ss:$36 sps:$4 sm:$0xff]   ;;  %v3303_v21 = vsel %vm14591_vm12, %v3298_v3, %v3302_v4  ;;  %v2498_v11 = vor.u32 %v2497_v16, %v2493_v20  ;;  %5845 = vmatprep.mubr.bf16.mxu1 %v13828_v31  ;;  %v2860_v62 = vrot.slane %v2721_v17, 5  ;;  %v12689_v4 = vpop.f32.mrf.mxu1  ;;  %v2982_v33 = vld [vmem:[#allocation2 + $0x90] sm:$0xf]  ;;  %v12579_v49 = vadd.f32 %v12578_v8, %v12577_v26 }
 0x1e9   : > { %v3313_v61 = vsel %vm14591_vm12, %v3308_v54, %v3312_v41  ;;  %3508 = vst [vmem:[#allocation4 + $0x2a4] sm:$0xf] %v3303_v21  ;;  %v2489_v13 = vrot.slane %v2488_v39, 4  ;;  %5846 = vmatmul.mubr.bf16.gmra.mxu1 %v13830_v53  ;;  %v13831_v52 = vld [vmem:[#allocation4 + $0x29c] ss:$36 sps:$4 sm:$0xff]   ;;  %v2858_v5 = vsel %vm14575_vm9, %v11903_v56, %v2857_v35  ;;  %v2859_v1 = vrot.slane %v2857_v35, 4  ;;  %v12581_v39 = vpop.f32.mrf.mxu0 }
 0x1ea   : > { %v13833_v44 = vld [vmem:[#allocation4 + $0x298] ss:$36 sps:$4 sm:$0xff]   ;;  %3509 = vst [vmem:[#allocation4 + $0x2c8] sm:$0xf] %v3313_v61  ;;  %v2499_v37 = vrot.slane %v2498_v11, 4  ;;  %5692 = vmatprep.mubr.bf16.mxu0 %v13831_v52  ;;  %v15373_v50 = vadd.f32 %v12688_v29, %v12576_v38  ;;  %v12690_v30 = vpop.f32.mrf.mxu1  ;;  %v12582_v8 = vadd.f32 %v12581_v39, %v12580_v22 }
 0x1eb   : > { %v2494_v36 = vsel %vm14591_vm12, %v2489_v13, %v2493_v20  ;;  %v2983_v41 = vld [vmem:[#allocation2 + $0x94] sm:$0xf]  ;;  %2949 = vst [vmem:[#allocation4 + $0x2e4] sm:$0xf] %v2858_v5  ;;  %3014 = vst [vmem:[#allocation4 + $0x2e8] sm:$0xf] %v2982_v33  ;;  %5693 = vmatmul.mubr.bf16.gmra.mxu0 %v13833_v44  ;;  %v2861_v63 = vsel %vm14575_vm9, %v2859_v1, %v2860_v62  ;;  %v12691_v53 = vadd.f32 %v12690_v30, %v12689_v4 }
 0x1ec   : > { %v2504_v57 = vsel %vm14591_vm12, %v2499_v37, %v2503_v48  ;;  %2677 = vst [vmem:[#allocation4 + $0x2e0] sm:$0xf] %v2494_v36  ;;  %3015 = vst [vmem:[#allocation4 + $0x30c] sm:$0xf] %v2983_v41  ;;  %v3056_v10 = vld [vmem:[#allocation2 + $0x90] sm:$0xf]  ;;  %v12692_v54 = vpop.f32.mrf.mxu1 }
 0x1ed   : > { %v3057_v7 = vld [vmem:[#allocation2 + $0x94] sm:$0xf]  ;;  %v3058_v0 = vld [vmem:[#allocation2 + $0x98] sm:$0x1]  ;;  %2678 = vst [vmem:[#allocation4 + $0x304] sm:$0xf] %v2504_v57  ;;  %v15377_v29 = vadd.f32 %v12691_v53, %v12579_v49 }
 0x1ee   : > { %v3315_v18 = vshrl.u32 %v3056_v10, 16  ;;  %v3318_v3 = vshll.u32 %v3056_v10, 16  ;;  %v3324_v20 = vshll.u32 %v3057_v7, 16  ;;  %v2226_v16 = vld [vmem:[#allocation2 + $0x90] sm:$0xf]  ;;  %v3328_v17 = vshrl.u32 %v3057_v7, 16  ;;  %v12693_v35 = vpop.f32.mrf.mxu1 }
 0x1ef   : > { %2950 = vst [vmem:[#allocation4 + $0x308] sm:$0xf] %v2861_v63  ;;  %v3334_v46 = vshll.u32 %v3058_v0, 16  ;;  %v2227_v23 = vld [vmem:[#allocation2 + $0x94] sm:$0xf]  ;;  %v2506_v11 = vshrl.u32 %v2226_v16, 16  ;;  %v12694_v0 = vadd.f32 %v12693_v35, %v12692_v54 }
 0x1f0   : > { %v2228_v31 = vld [vmem:[#allocation2 + $0x98] sm:$0x1]  ;;  %v3317_v43 = vrot.slane %v3315_v18, 4  ;;  %v3320_v38 = vrot.slane %v3318_v3, 5  ;;  %v3326_v21 = vrot.slane %v3324_v20, 5  ;;  %v3330_v56 = vrot.slane %v3328_v17, 4 }
 0x1f1   : > { %v2722_v48 = vld [vmem:[#allocation2 + $0x90] sm:$0xe]  ;;  %v3336_v26 = vrot.slane %v3334_v46, 5  ;;  %v2509_v61 = vshll.u32 %v2226_v16, 16  ;;  %v2515_v13 = vshll.u32 %v2227_v23, 16  ;;  %v2508_v37 = vrot.slane %v2506_v11, 4  ;;  %v12583_v11 = vpop.f32.mrf.mxu0 }
 0x1f2   : > { %v13834_v62 = vld [vmem:[#allocation4 + $0x2a4] ss:$36 sps:$4 sm:$0xff]   ;;  %v3321_v44 = vor.u32 %v3320_v38, %v3317_v43  ;;  %v3331_v4 = vor.u32 %v3330_v56, %v3326_v21  ;;  %v2519_v1 = vshrl.u32 %v2227_v23, 16  ;;  %v2525_v57 = vshll.u32 %v2228_v31, 16  ;;  %v2984_v20 = vld [vmem:[#allocation2 + $0x9c] sm:$0xf]  ;;  %v12695_v23 = vpop.f32.mrf.mxu1 }
 0x1f3   : > { %v13836_v52 = vld [vmem:[#allocation4 + $0x2a0] ss:$36 sps:$4 sm:$0xff]   ;;  %v2511_v36 = vrot.slane %v2509_v61, 5  ;;  %v2517_v5 = vrot.slane %v2515_v13, 5  ;;  %5853 = vmatprep.mubr.bf16.mxu1 %v13834_v62  ;;  %v2724_v10 = vld [vmem:[#allocation2 + $0x98] sm:$0x1]  ;;  %v15381_v46 = vadd.f32 %v12694_v0, %v12582_v8 }
 0x1f4   : > { %v2723_v33 = vld [vmem:[#allocation2 + $0x94] sm:$0xf]  ;;  %v3322_v41 = vrot.slane %v3321_v44, 4  ;;  %v11904_v7 = vrot.slane %v2722_v48, 9  ;;  %5854 = vmatmul.mubr.bf16.gmra.mxu1 %v13836_v52  ;;  %v3332_v30 = vrot.slane %v3331_v4, 4  ;;  %v2521_v18 = vrot.slane %v2519_v1, 4  ;;  %v12696_v13 = vpop.f32.mrf.mxu1 }
 0x1f5   : > { %v2512_v63 = vor.u32 %v2511_v36, %v2508_v37  ;;  %v2864_v3 = vrot.slane %v2723_v33, 5  ;;  %v13839_v16 = vld [vmem:[#allocation4 + $0x2e0] ss:$36 sps:$4 sm:$0xff]   ;;  %v2527_v17 = vrot.slane %v2525_v57, 5  ;;  %3016 = vst [vmem:[#allocation4 + $0x330] sm:$0xf] %v2984_v20  ;;  %v12584_v37 = vpop.f32.mrf.mxu0 }
 0x1f6   : > { %v13837_v49 = vld [vmem:[#allocation4 + $0x2e4] ss:$36 sps:$4 sm:$0xff]   ;;  %v3327_v22 = vsel %vm14591_vm12, %v3322_v41, %v3326_v21  ;;  %v3337_v31 = vsel %vm14591_vm12, %v3332_v30, %v3336_v26  ;;  %v2522_v54 = vor.u32 %v2521_v18, %v2517_v5  ;;  %v2985_v43 = vld [vmem:[#allocation2 + $0xa0] sm:$0xf]  ;;  %v3059_v38 = vld [vmem:[#allocation2 + $0x9c] sm:$0xf]  ;;  %v12698_v41 = vpop.f32.mrf.mxu1 }
 0x1f7   : > { %3510 = vst [vmem:[#allocation4 + $0x2ec] sm:$0xf] %v3327_v22  ;;  %v2513_v53 = vrot.slane %v2512_v63, 4  ;;  %v2865_v39 = vsel %vm14575_vm9, %v11904_v7, %v2864_v3  ;;  %5700 = vmatprep.mubr.bf16.mxu0 %v13837_v49  ;;  %3511 = vst [vmem:[#allocation4 + $0x310] sm:$0xf] %v3337_v31  ;;  %v2866_v21 = vrot.slane %v2864_v3, 4  ;;  %v12586_v30 = vpop.f32.mrf.mxu0 }
 0x1f8   : > { %v2867_v48 = vrot.slane %v2724_v10, 5  ;;  %2951 = vst [vmem:[#allocation4 + $0x32c] sm:$0xf] %v2865_v39  ;;  %3017 = vst [vmem:[#allocation4 + $0x354] sm:$0xf] %v2985_v43  ;;  %5701 = vmatmul.mubr.bf16.gmra.mxu0 %v13839_v16  ;;  %v2523_v35 = vrot.slane %v2522_v54, 4  ;;  %v12699_v16 = vpop.f32.mrf.mxu1 }
 0x1f9   : > { %v3060_v56 = vld [vmem:[#allocation2 + $0xa0] sm:$0xf]  ;;  %v3061_v61 = vld [vmem:[#allocation2 + $0xa4] sm:$0x1]  ;;  %v2518_v26 = vsel %vm14591_vm12, %v2513_v53, %v2517_v5  ;;  %v3339_v62 = vshrl.u32 %v3059_v38, 16  ;;  %v3342_v52 = vshll.u32 %v3059_v38, 16  ;;  %v12587_v43 = vpop.f32.mrf.mxu0 }
 0x1fa   : > { %v2229_v44 = vld [vmem:[#allocation2 + $0x9c] sm:$0xf]  ;;  %2679 = vst [vmem:[#allocation4 + $0x328] sm:$0xf] %v2518_v26  ;;  %v2868_v8 = vsel %vm14575_vm9, %v2866_v21, %v2867_v48  ;;  %v3348_v4 = vshll.u32 %v3060_v56, 16  ;;  %v3352_v36 = vshrl.u32 %v3060_v56, 16  ;;  %v2528_v57 = vsel %vm14591_vm12, %v2523_v35, %v2527_v17 }
 0x1fb   : > { %v3358_v1 = vshll.u32 %v3061_v61, 16  ;;  %v2230_v33 = vld [vmem:[#allocation2 + $0xa0] sm:$0xf]  ;;  %2952 = vst [vmem:[#allocation4 + $0x350] sm:$0xf] %v2868_v8  ;;  %v3341_v10 = vrot.slane %v3339_v62, 4  ;;  %v12701_v61 = vpop.f32.mrf.mxu1  ;;  %v12697_v8 = vadd.f32 %v12696_v13, %v12695_v23 }
 0x1fc   : > { %v3344_v5 = vrot.slane %v3342_v52, 5  ;;  %v2231_v7 = vld [vmem:[#allocation2 + $0xa4] sm:$0x1]  ;;  %v2530_v0 = vshrl.u32 %v2229_v44, 16  ;;  %2680 = vst [vmem:[#allocation4 + $0x34c] sm:$0xf] %v2528_v57  ;;  %v12585_v52 = vadd.f32 %v12584_v37, %v12583_v11 }
 0x1fd   : > { %v3350_v63 = vrot.slane %v3348_v4, 5  ;;  %v3354_v18 = vrot.slane %v3352_v36, 4  ;;  %v3360_v3 = vrot.slane %v3358_v1, 5  ;;  %v2533_v20 = vshll.u32 %v2229_v44, 16  ;;  %v2725_v49 = vld [vmem:[#allocation2 + $0x9c] sm:$0xe] }
 0x1fe   : > { %v3345_v22 = vor.u32 %v3344_v5, %v3341_v10  ;;  %v2532_v31 = vrot.slane %v2530_v0, 4  ;;  %v2539_v53 = vshll.u32 %v2230_v33, 16  ;;  %v2543_v54 = vshrl.u32 %v2230_v33, 16  ;;  %v2726_v39 = vld [vmem:[#allocation2 + $0xa0] sm:$0xf]  ;;  %v12589_v10 = vpop.f32.mrf.mxu0 }
 0x1ff   : > { %v3355_v17 = vor.u32 %v3354_v18, %v3350_v63  ;;  %v2535_v38 = vrot.slane %v2533_v20, 5  ;;  %v2549_v21 = vshll.u32 %v2231_v7, 16  ;;  %v2727_v48 = vld [vmem:[#allocation2 + $0xa4] sm:$0x1]  ;;  %v11905_v56 = vrot.slane %v2725_v49, 9  ;;  %v12702_v18 = vpop.f32.mrf.mxu1 }
 0x200   : > { %v13841_v26 = vld [vmem:[#allocation4 + $0x2ec] ss:$36 sps:$4 sm:$0xff]   ;;  %v3346_v62 = vrot.slane %v3345_v22, 4  ;;  %v12588_v44 = vadd.f32 %v12587_v43, %v12586_v30  ;;  %v2541_v1 = vrot.slane %v2539_v53, 5  ;;  %v2545_v57 = vrot.slane %v2543_v54, 4  ;;  %v12590_v49 = vpop.f32.mrf.mxu0 }
 0x201   : > { %v13843_v35 = vld [vmem:[#allocation4 + $0x2e8] ss:$36 sps:$4 sm:$0xff]   ;;  %v3356_v4 = vrot.slane %v3355_v17, 4  ;;  %v2536_v36 = vor.u32 %v2535_v38, %v2532_v31  ;;  %5861 = vmatprep.mubr.bf16.mxu1 %v13841_v26  ;;  %v2551_v5 = vrot.slane %v2549_v21, 5  ;;  %v2871_v7 = vrot.slane %v2726_v39, 5 }
 0x202   : > { %v3351_v33 = vsel %vm14591_vm12, %v3346_v62, %v3350_v63  ;;  %v2874_v0 = vrot.slane %v2727_v48, 5  ;;  %5862 = vmatmul.mubr.bf16.gmra.mxu1 %v13843_v35  ;;  %v2546_v11 = vor.u32 %v2545_v57, %v2541_v1  ;;  %v2986_v13 = vld [vmem:[#allocation2 + $0xa8] sm:$0xf]  ;;  %v2987_v37 = vld [vmem:[#allocation2 + $0xac] sm:$0xf]  ;;  %v15397_v30 = vadd.f32 %v12697_v8, %v12585_v52  ;;  %v12592_v48 = vpop.f32.mrf.mxu0 }
 0x203   : > { %v3361_v20 = vsel %vm14591_vm12, %v3356_v4, %v3360_v3  ;;  %3512 = vst [vmem:[#allocation4 + $0x334] sm:$0xf] %v3351_v33  ;;  %v2537_v23 = vrot.slane %v2536_v36, 4  ;;  %v13844_v22 = vld [vmem:[#allocation4 + $0x32c] ss:$36 sps:$4 sm:$0xff]   ;;  %v2872_v63 = vsel %vm14575_vm9, %v11905_v56, %v2871_v7  ;;  %v2873_v53 = vrot.slane %v2871_v7, 4 }
 0x204   : > { %v13846_v31 = vld [vmem:[#allocation4 + $0x328] ss:$36 sps:$4 sm:$0xff]   ;;  %3513 = vst [vmem:[#allocation4 + $0x358] sm:$0xf] %v3361_v20  ;;  %3018 = vst [vmem:[#allocation4 + $0x378] sm:$0xf] %v2986_v13  ;;  %v12700_v54 = vadd.f32 %v12699_v16, %v12698_v41  ;;  %v12591_v39 = vadd.f32 %v12590_v49, %v12589_v10  ;;  %v12703_v21 = vadd.f32 %v12702_v18, %v12701_v61  ;;  %5708 = vmatprep.mubr.bf16.mxu0 %v13844_v22  ;;  %v12593_v57 = vpop.f32.mrf.mxu0 }
 0x205   : > { %3019 = vst [vmem:[#allocation4 + $0x39c] sm:$0xf] %v2987_v37  ;;  %v2542_v3 = vsel %vm14591_vm12, %v2537_v23, %v2541_v1  ;;  %v2547_v43 = vrot.slane %v2546_v11, 4  ;;  %2953 = vst [vmem:[#allocation4 + $0x374] sm:$0xf] %v2872_v63  ;;  %v2875_v26 = vsel %vm14575_vm9, %v2873_v53, %v2874_v0  ;;  %5709 = vmatmul.mubr.bf16.gmra.mxu0 %v13846_v31  ;;  %v12704_v1 = vpop.f32.mrf.mxu1 }
 0x206   : > { %v3062_v17 = vld [vmem:[#allocation2 + $0xa8] sm:$0xf]  ;;  %v3063_v38 = vld [vmem:[#allocation2 + $0xac] sm:$0xf]  ;;  %2681 = vst [vmem:[#allocation4 + $0x370] sm:$0xf] %v2542_v3  ;;  %v15407_v61 = vadd.f32 %v12700_v54, %v12588_v44  ;;  %v12595_v44 = vpop.f32.mrf.mxu0 }
 0x207   : > { %v3064_v56 = vld [vmem:[#allocation2 + $0xb0] sm:$0x1]  ;;  %v3363_v35 = vshrl.u32 %v3062_v17, 16  ;;  %v3366_v62 = vshll.u32 %v3062_v17, 16  ;;  %v3372_v52 = vshll.u32 %v3063_v38, 16  ;;  %v2552_v41 = vsel %vm14591_vm12, %v2547_v43, %v2551_v5 }
 0x208   : > { %2954 = vst [vmem:[#allocation4 + $0x398] sm:$0xf] %v2875_v26  ;;  %v3376_v16 = vshrl.u32 %v3063_v38, 16  ;;  %v3382_v8 = vshll.u32 %v3064_v56, 16  ;;  %v2232_v4 = vld [vmem:[#allocation2 + $0xa8] sm:$0xf]  ;;  %v15409_v17 = vadd.f32 %v12703_v21, %v12591_v39  ;;  %v12594_v38 = vadd.f32 %v12593_v57, %v12592_v48  ;;  %v12705_v26 = vpop.f32.mrf.mxu1 }
 0x209   : > { %v2233_v36 = vld [vmem:[#allocation2 + $0xac] sm:$0xf]  ;;  %2682 = vst [vmem:[#allocation4 + $0x394] sm:$0xf] %v2552_v41  ;;  %v3365_v10 = vrot.slane %v3363_v35, 4  ;;  %v3368_v33 = vrot.slane %v3366_v62, 5 }
 0x20a   : > { %v3374_v7 = vrot.slane %v3372_v52, 5  ;;  %v2234_v0 = vld [vmem:[#allocation2 + $0xb0] sm:$0x1]  ;;  %v2554_v18 = vshrl.u32 %v2232_v4, 16  ;;  %v3378_v20 = vrot.slane %v3376_v16, 4  ;;  %v3384_v23 = vrot.slane %v3382_v8, 5  ;;  %v12596_v16 = vpop.f32.mrf.mxu0 }
 0x20b   : > { %v2557_v11 = vshll.u32 %v2232_v4, 16  ;;  %v2563_v13 = vshll.u32 %v2233_v36, 16  ;;  %v2728_v5 = vld [vmem:[#allocation2 + $0xa8] sm:$0xe]  ;;  %v3369_v37 = vor.u32 %v3368_v33, %v3365_v10  ;;  %v2567_v22 = vshrl.u32 %v2233_v36, 16 }
 0x20c   : > { %v2556_v49 = vrot.slane %v2554_v18, 4  ;;  %v2573_v31 = vshll.u32 %v2234_v0, 16  ;;  %v2729_v63 = vld [vmem:[#allocation2 + $0xac] sm:$0xf]  ;;  %v13847_v53 = vld [vmem:[#allocation4 + $0x334] ss:$36 sps:$4 sm:$0xff]   ;;  %v3379_v3 = vor.u32 %v3378_v20, %v3374_v7  ;;  %v12706_v18 = vadd.f32 %v12705_v26, %v12704_v1 }
 0x20d   : > { %v13849_v54 = vld [vmem:[#allocation4 + $0x330] ss:$36 sps:$4 sm:$0xff]   ;;  %v2559_v43 = vrot.slane %v2557_v11, 5  ;;  %v3370_v56 = vrot.slane %v3369_v37, 4  ;;  %v2565_v35 = vrot.slane %v2563_v13, 5  ;;  %v2569_v62 = vrot.slane %v2567_v22, 4  ;;  %5869 = vmatprep.mubr.bf16.mxu1 %v13847_v53 }
 0x20e   : > { %v2575_v52 = vrot.slane %v2573_v31, 5  ;;  %v2730_v41 = vld [vmem:[#allocation2 + $0xb0] sm:$0x1]  ;;  %v3380_v8 = vrot.slane %v3379_v3, 4  ;;  %v11906_v36 = vrot.slane %v2728_v5, 9  ;;  %v2878_v10 = vrot.slane %v2729_v63, 5  ;;  %5870 = vmatmul.mubr.bf16.gmra.mxu1 %v13849_v54  ;;  %v12707_v54 = vpop.f32.mrf.mxu1  ;;  %v12598_v3 = vpop.f32.mrf.mxu0 }
 0x20f   : > { %v2560_v4 = vor.u32 %v2559_v43, %v2556_v49  ;;  %v2988_v33 = vld [vmem:[#allocation2 + $0xb4] sm:$0xf]  ;;  %v3375_v0 = vsel %vm14591_vm12, %v3370_v56, %v3374_v7  ;;  %v2570_v39 = vor.u32 %v2569_v62, %v2565_v35  ;;  %v2881_v21 = vrot.slane %v2730_v41, 5  ;;  %v2989_v48 = vld [vmem:[#allocation2 + $0xb8] sm:$0xf]  ;;  %v13892_v20 = vld [vmem:[#allocation11 + $0x78] sm:$0xff]  }
 0x210   : > { %3020 = vst [vmem:[#allocation4 + $0x3c0] sm:$0xf] %v2988_v33  ;;  %v3065_v57 = vld [vmem:[#allocation2 + $0xb4] sm:$0xf]  ;;  %v13850_v11 = vld [vmem:[#allocation4 + $0x370] ss:$36 sps:$4 sm:$0xff]   ;;  %v3385_v37 = vsel %vm14591_vm12, %v3380_v8, %v3384_v23  ;;  %v2879_v49 = vsel %vm14575_vm9, %v11906_v36, %v2878_v10  ;;  %v15417_v22 = vadd.f32 %v12596_v16, %v12595_v44  ;;  %v15419_v53 = vadd.f32 %v12706_v18, %v12594_v38 }
 0x211   : > { %v13852_v13 = vld [vmem:[#allocation4 + $0x374] ss:$36 sps:$4 sm:$0xff]   ;;  %3514 = vst [vmem:[#allocation4 + $0x37c] sm:$0xf] %v3375_v0  ;;  %v2561_v5 = vrot.slane %v2560_v4, 4  ;;  %v2571_v7 = vrot.slane %v2570_v39, 4  ;;  %12985 = vmatprep.subr.bf16.mxu1 %v13892_v20 }
 0x212   : > { %3021 = vst [vmem:[#allocation4 + $0x3e4] sm:$0xf] %v2989_v48  ;;  %3515 = vst [vmem:[#allocation4 + $0x3a0] sm:$0xf] %v3385_v37  ;;  %v2880_v31 = vrot.slane %v2878_v10, 4  ;;  %5716 = vmatprep.mubr.bf16.mxu0 %v13852_v13  ;;  %v3387_v43 = vshrl.u32 %v3065_v57, 16  ;;  %v12708_v10 = vpop.f32.mrf.mxu1 }
 0x213   : > { %2955 = vst [vmem:[#allocation4 + $0x3bc] sm:$0xf] %v2879_v49  ;;  %v3066_v63 = vld [vmem:[#allocation2 + $0xb8] sm:$0xf]  ;;  %v3067_v1 = vld [vmem:[#allocation2 + $0xbc] sm:$0x1]  ;;  %v2566_v23 = vsel %vm14591_vm12, %v2561_v5, %v2565_v35  ;;  %5717 = vmatmul.mubr.bf16.gmra.mxu0 %v13850_v11  ;;  %v2576_v41 = vsel %vm14591_vm12, %v2571_v7, %v2575_v52 }
 0x214   : > { %17515 = vst [vmem:[#allocation22_spill] sm:$0xff] %v15419_v53  ;;  %v3390_v26 = vshll.u32 %v3065_v57, 16  ;;  %v3396_v56 = vshll.u32 %v3066_v63, 16  ;;  %v2235_v44 = vld [vmem:[#allocation2 + $0xb4] sm:$0xf]  ;;  %v13893_v62 = vld [vmem:[#allocation11 + $0x38] sm:$0xff]   ;;  %v2882_v38 = vsel %vm14575_vm9, %v2880_v31, %v2881_v21  ;;  %v12710_v13 = vpop.f32.mrf.mxu1  ;;  %v12599_v21 = vpop.f32.mrf.mxu0 }
 0x215   : > { %2683 = vst [vmem:[#allocation4 + $0x3b8] sm:$0xf] %v2566_v23  ;;  %v3400_v16 = vshrl.u32 %v3066_v63, 16  ;;  %v3406_v8 = vshll.u32 %v3067_v1, 16  ;;  %v2236_v4 = vld [vmem:[#allocation2 + $0xb8] sm:$0xf]  ;;  %12986 = vmatpush3.bf16.msra.mxu1 %v13893_v62 }
 0x216   : > { %v2237_v36 = vld [vmem:[#allocation2 + $0xbc] sm:$0x1]  ;;  %2684 = vst [vmem:[#allocation4 + $0x3dc] sm:$0xf] %v2576_v41  ;;  %2956 = vst [vmem:[#allocation4 + $0x3e0] sm:$0xf] %v2882_v38  ;;  %v12709_v38 = vadd.f32 %v12708_v10, %v12707_v54 }
 0x217   : > { %v3389_v35 = vrot.slane %v3387_v43, 4  ;;  %v3392_v33 = vrot.slane %v3390_v26, 5  ;;  %v3398_v0 = vrot.slane %v3396_v56, 5  ;;  %v2578_v39 = vshrl.u32 %v2235_v44, 16  ;;  %v2731_v48 = vld [vmem:[#allocation2 + $0xb4] sm:$0xe]  ;;  %v12711_v26 = vpop.f32.mrf.mxu1 }
 0x218   : > { %v3402_v57 = vrot.slane %v3400_v16, 4  ;;  %v3408_v18 = vrot.slane %v3406_v8, 5  ;;  %v2581_v52 = vshll.u32 %v2235_v44, 16  ;;  %v2587_v20 = vshll.u32 %v2236_v4, 16  ;;  %v2732_v11 = vld [vmem:[#allocation2 + $0xb8] sm:$0xf] }
 0x219   : > { %v3393_v37 = vor.u32 %v3392_v33, %v3389_v35  ;;  %v2580_v5 = vrot.slane %v2578_v39, 4  ;;  %v2591_v49 = vshrl.u32 %v2236_v4, 16  ;;  %v2597_v7 = vshll.u32 %v2237_v36, 16  ;;  %v2733_v31 = vld [vmem:[#allocation2 + $0xbc] sm:$0x1] }
 0x21a   : > { %v3403_v63 = vor.u32 %v3402_v57, %v3398_v0  ;;  %v2583_v1 = vrot.slane %v2581_v52, 5  ;;  %v2589_v23 = vrot.slane %v2587_v20, 5  ;;  %v11907_v43 = vrot.slane %v2731_v48, 9  ;;  %v13854_v56 = vld [vmem:[#allocation4 + $0x378] ss:$36 sps:$4 sm:$0xff]   ;;  %v12713_v48 = vpop.f32.mrf.mxu1 }
 0x21b   : > { %v13856_v41 = vld [vmem:[#allocation4 + $0x37c] ss:$36 sps:$4 sm:$0xff]   ;;  %v3394_v62 = vrot.slane %v3393_v37, 4  ;;  %v12600_v16 = vadd.f32 %v12599_v21, %v12598_v3  ;;  %v12712_v44 = vadd.f32 %v12711_v26, %v12710_v13  ;;  %v2593_v34 = vrot.slane %v2591_v49, 4  ;;  %v529_v33 = vld [vmem:[#allocation2 + $0xc8] sm:$0x1]  ;;  %v12601_v13 = vpop.f32.mrf.mxu0 }
 0x21c   : > { %v3404_v8 = vrot.slane %v3403_v63, 4  ;;  %v2584_v42 = vor.u32 %v2583_v1, %v2580_v5  ;;  %v2599_v53 = vrot.slane %v2597_v7, 5  ;;  %5877 = vmatprep.mubr.bf16.mxu1 %v13856_v41  ;;  %v2885_v36 = vrot.slane %v2732_v11, 5  ;;  %v2990_v21 = vld [vmem:[#allocation2 + $0xc0] sm:$0xf]  ;;  %v12714_v5 = vpop.f32.mrf.mxu1 }
 0x21d   : > { %v3399_v4 = vsel %vm14591_vm12, %v3394_v62, %v3398_v0  ;;  %v2888_v35 = vrot.slane %v2733_v31, 5  ;;  %v15430_v39 = vadd.f32 %v12709_v38, %v15417_v22  ;;  %5878 = vmatmul.mubr.bf16.gmra.mxu1 %v13854_v56  ;;  %v13857_v57 = vld [vmem:[#allocation4 + $0x3b8] ss:$36 sps:$4 sm:$0xff]   ;;  %v2594_v52 = vor.u32 %v2593_v34, %v2589_v23  ;;  %v2991_v37 = vld [vmem:[#allocation2 + $0xc4] sm:$0xf]  ;;  %v12602_v31 = vpop.f32.mrf.mxu0 }
 0x21e   : > { %v13859_v54 = vld [vmem:[#allocation4 + $0x3bc] ss:$36 sps:$4 sm:$0xff]   ;;  %v3409_v3 = vsel %vm14591_vm12, %v3404_v8, %v3408_v18  ;;  %3516 = vst [vmem:[#allocation4 + $0x3c4] sm:$0xf] %v3399_v4  ;;  %v2585_v10 = vrot.slane %v2584_v42, 4  ;;  %v15434_v20 = vadd.f32 %v12712_v44, %v12600_v16  ;;  %v2886_v0 = vsel %vm14575_vm9, %v11907_v43, %v2885_v36  ;;  %v15445_v41 = vpop.f32.mrf.mxu1 }
 0x21f   : > { %3517 = vst [vmem:[#allocation4 + $0x3e8] sm:$0xf] %v3409_v3  ;;  %v2887_v11 = vrot.slane %v2885_v36, 4  ;;  %v530_v22 = vsel %vm14545_vm4, 0, %v529_v33  ;;  %v1127_v49 = vrot.slane %v15157_v45, 4  ;;  %5724 = vmatprep.mubr.bf16.mxu0 %v13859_v54  ;;  %v2595_v42 = vrot.slane %v2594_v52, 4  ;;  %v12604_v8 = vpop.f32.mrf.mxu0 }
 0x220   : > { %v2590_v34 = vsel %vm14591_vm12, %v2585_v10, %v2589_v23  ;;  %2957 = vst [vmem:[#allocation4 + $0x404] sm:$0xf] %v2886_v0  ;;  %531 = vst [vmem:[#allocation2 + $0xc8] sm:$0x1] %v530_v22  ;;  %v3068_v18 = vld [vmem:[#allocation2 + $0xc0] sm:$0xf]  ;;  %v12715_v63 = vadd.f32 %v12714_v5, %v12713_v48  ;;  %5725 = vmatmul.mubr.bf16.gmra.mxu0 %v13857_v57 }
 0x221   : > { %3022 = vst [vmem:[#allocation4 + $0x408] sm:$0xf] %v2990_v21  ;;  %3023 = vst [vmem:[#allocation4 + $0x42c] sm:$0xf] %v2991_v37  ;;  %v3069_v7 = vld [vmem:[#allocation2 + $0xc4] sm:$0xf]  ;;  %v2889_v1 = vsel %vm14575_vm9, %v2887_v11, %v2888_v35  ;;  %v2600_v23 = vsel %vm14591_vm12, %v2595_v42, %v2599_v53  ;;  %v12717_v37 = vpop.f32.mrf.mxu1 }
 0x222   : > { %2685 = vst [vmem:[#allocation4 + $0x400] sm:$0xf] %v2590_v34  ;;  %v3411_v43 = vshrl.u32 %v3068_v18, 16  ;;  %v3414_v45 = vshll.u32 %v3068_v18, 16  ;;  %v3420_v26 = vshll.u32 %v3069_v7, 16  ;;  %v3424_v62 = vshrl.u32 %v3069_v7, 16 }
 0x223   : > { %v2238_v56 = vld [vmem:[#allocation2 + $0xc0] sm:$0xf]  ;;  %2958 = vst [vmem:[#allocation4 + $0x428] sm:$0xf] %v2889_v1  ;;  %v2239_v38 = vld [vmem:[#allocation2 + $0xc4] sm:$0xf]  ;;  %v12603_v1 = vadd.f32 %v12602_v31, %v12601_v13 }
 0x224   : > { %v2602_v16 = vshrl.u32 %v2238_v56, 16  ;;  %v2605_v44 = vshll.u32 %v2238_v56, 16  ;;  %2686 = vst [vmem:[#allocation4 + $0x424] sm:$0xf] %v2600_v23  ;;  %v3413_v4 = vrot.slane %v3411_v43, 4  ;;  %v3416_v36 = vrot.slane %v3414_v45, 5  ;;  %v12605_v43 = vpop.f32.mrf.mxu0 }
 0x225   : > { %v3422_v33 = vrot.slane %v3420_v26, 5  ;;  %v2611_v35 = vshll.u32 %v2239_v38, 16  ;;  %v2734_v48 = vld [vmem:[#allocation2 + $0xc0] sm:$0xe]  ;;  %v3426_v57 = vrot.slane %v3424_v62, 4  ;;  %v2615_v10 = vshrl.u32 %v2239_v38, 16 }
 0x226   : > { %v2604_v54 = vrot.slane %v2602_v16, 4  ;;  %v2607_v3 = vrot.slane %v2605_v44, 5  ;;  %v2735_v52 = vld [vmem:[#allocation2 + $0xc4] sm:$0xf]  ;;  %v3417_v0 = vor.u32 %v3416_v36, %v3413_v4  ;;  %v11908_v53 = vrot.slane %v2734_v48, 9 }
 0x227   : > { %v2613_v11 = vrot.slane %v2611_v35, 5  ;;  %v2892_v22 = vrot.slane %v2735_v52, 5  ;;  %v476_v21 = vld [vmem:[#allocation2 + $0xcc] sm:$0x1]  ;;  %v13860_v5 = vld [vmem:[#allocation4 + $0x3c0] ss:$36 sps:$4 sm:$0xff]   ;;  %v3427_v42 = vor.u32 %v3426_v57, %v3422_v33 }
 0x228   : > { %v13862_v34 = vld [vmem:[#allocation4 + $0x3c4] ss:$36 sps:$4 sm:$0xff]   ;;  %v2608_v18 = vor.u32 %v2607_v3, %v2604_v54  ;;  %v2617_v7 = vrot.slane %v2615_v10, 4  ;;  %v1288_v45 = vld [vmem:[#allocation2 + $0xc8] sm:$0x1]  ;;  %v3418_v26 = vrot.slane %v3417_v0, 4  ;;  %v15463_v3 = vadd.f32 %v12715_v63, %v12603_v1  ;;  %v12719_v10 = vpop.f32.mrf.mxu1 }
 0x229   : > { %v2893_v56 = vsel %vm14575_vm9, %v11908_v53, %v2892_v22  ;;  %v15451_v23 = vrot.slane %v2892_v22, 4  ;;  %v477_v62 = vsel %vm14540_vm3, 0, %v476_v21  ;;  %v13894_v38 = vld [vmem:[#allocation11 + $0x70] sm:$0xff]   ;;  %5885 = vmatprep.mubr.bf16.mxu1 %v13862_v34  ;;  %v1289_v16 = vsel %vm14540_vm3, %v1127_v49, %v1288_v45  ;;  %v532_v31 = vld [vmem:[#allocation2 + $0xd4] sm:$0x1]  ;;  %v12607_v21 = vpop.f32.mrf.mxu0 }
 0x22a   : > { %v15457_v44 = vrot.slane %v3427_v42, 4  ;;  %v2609_v4 = vrot.slane %v2608_v18, 4  ;;  %v2618_v13 = vor.u32 %v2617_v7, %v2613_v11  ;;  %2959 = vst [vmem:[#allocation4 + $0x44c] sm:$0xf] %v2893_v56  ;;  %478 = vst [vmem:[#allocation2 + $0xcc] sm:$0x1] %v477_v62  ;;  %5886 = vmatmul.mubr.bf16.gmra.mxu1 %v13860_v5  ;;  %v3423_v35 = vsel %vm14591_vm12, %v3418_v26, %v3422_v33  ;;  %v12720_v42 = vpop.f32.mrf.mxu1 }
 0x22b   : > { %v13895_v36 = vld [vmem:[#allocation11 + $0x30] sm:$0xff]   ;;  %1290 = vst [vmem:[#allocation2 + $0xc8] sm:$0x1] %v1289_v16  ;;  %v533_v48 = vsel %vm14545_vm4, 0, %v532_v31  ;;  %v2993_v57 = vld [vmem:[#allocation2 + $0xd0] sm:$0xf]  ;;  %v12606_v49 = vadd.f32 %v12605_v43, %v12604_v8  ;;  %12987 = vmatprep.subr.bf16.mxu1 %v13894_v38  ;;  %v12718_v33 = vadd.f32 %v12717_v37, %v15445_v41  ;;  %v12608_v45 = vpop.f32.mrf.mxu0  ;;  %v12721_v26 = vadd.f32 %v12720_v42, %v12719_v10 }
 0x22c   : > { %v3072_v54 = vld [vmem:[#allocation2 + $0xd0] sm:$0xf]  ;;  %v13865_v0 = vld [vmem:[#allocation4 + $0x404] ss:$36 sps:$4 sm:$0xff]   ;;  %3518 = vst [vmem:[#allocation4 + $0x40c] sm:$0xf] %v3423_v35  ;;  %v2614_v53 = vsel %vm14591_vm12, %v2609_v4, %v2613_v11  ;;  %12988 = vmatpush3.bf16.msra.mxu1 %v13895_v36  ;;  %v12722_v16 = vpop.f32.mrf.mxu1 }
 0x22d   : > { %v13863_v52 = vld [vmem:[#allocation4 + $0x400] ss:$36 sps:$4 sm:$0xff]   ;;  %v15467_v22 = vrot.slane %v2618_v13, 4  ;;  %534 = vst [vmem:[#allocation2 + $0xd4] sm:$0x1] %v533_v48  ;;  %v3444_v63 = vshll.u32 %v3072_v54, 16  ;;  %5732 = vmatprep.mubr.bf16.mxu0 %v13865_v0  ;;  %v15470_v11 = vadd.f32 %v12718_v33, %v12606_v49  ;;  %v12609_v48 = vadd.f32 %v12608_v45, %v12607_v21 }
 0x22e   : > { %3025 = vst [vmem:[#allocation4 + $0x474] sm:$0xf] %v2993_v57  ;;  %2687 = vst [vmem:[#allocation4 + $0x448] sm:$0xf] %v2614_v53  ;;  %v3448_v5 = vshrl.u32 %v3072_v54, 16  ;;  %5733 = vmatmul.mubr.bf16.gmra.mxu0 %v13863_v52  ;;  %v12610_v57 = vpop.f32.mrf.mxu0  ;;  %v12723_v53 = vpop.f32.mrf.mxu1 }
 0x22f   : > { %v3522_v8 = vld [vmem:[#allocation2 + $0x18] sm:$0xe]  ;;  %v3523_v34 = vld [vmem:[#allocation2 + $0x1c] sm:$0xf]  ;;  %v3524_v18 = vld [vmem:[#allocation2 + $0x20] sm:$0x1]  ;;  %v15481_v21 = vadd.f32 %v12721_v26, %v12609_v48 }
 0x230   : > { %v11909_v7 = vrot.slane %v3522_v8, 9  ;;  %v3620_v1 = vrot.slane %v3523_v34, 5  ;;  %v3525_v43 = vld [vmem:[#allocation2 + $0x24] sm:$0xe]  ;;  %v15472_v56 = vrot.slane %v3444_v63, 5  ;;  %v3450_v41 = vrot.slane %v3448_v5, 4  ;;  %v12611_v42 = vpop.f32.mrf.mxu0 }
 0x231   : > { %v3623_v37 = vrot.slane %v3524_v18, 5  ;;  %v3526_v62 = vld [vmem:[#allocation2 + $0x28] sm:$0xf]  ;;  %v11910_v38 = vrot.slane %v3525_v43, 9  ;;  %v3527_v31 = vld [vmem:[#allocation2 + $0x2c] sm:$0x1]  ;;  %v12724_v18 = vadd.f32 %v12723_v53, %v12722_v16 }
 0x232   : > { %v3621_v4 = vsel %vm14575_vm9, %v11909_v7, %v3620_v1  ;;  %v3622_v13 = vrot.slane %v3620_v1, 4  ;;  %v3627_v36 = vrot.slane %v3526_v62, 5  ;;  %v3528_v35 = vld [vmem:[#allocation2 + $0x30] sm:$0xe]  ;;  %v2992_v54 = vld [vmem:[#allocation2 + $0xcc] sm:$0xf]  ;;  %v3451_v10 = vor.u32 %v3450_v41, %v15472_v56 }
 0x233   : > { %v3071_v49 = vld [vmem:[#allocation2 + $0xcc] sm:$0xf]  ;;  %3762 = vst [vmem:[#allocation4 + $0x20] sm:$0xf] %v3621_v4  ;;  %v3630_v52 = vrot.slane %v3527_v31, 5  ;;  %v11911_v0 = vrot.slane %v3528_v35, 9  ;;  %v12612_v41 = vadd.f32 %v12611_v42, %v12610_v57 }
 0x234   : > { %v3070_v33 = vld [vmem:[#allocation2 + $0xc8] sm:$0x1]  ;;  %3024 = vst [vmem:[#allocation4 + $0x450] sm:$0xf] %v2992_v54  ;;  %v3624_v8 = vsel %vm14575_vm9, %v3622_v13, %v3623_v37  ;;  %v3628_v34 = vsel %vm14575_vm9, %v11910_v38, %v3627_v36  ;;  %v3073_v45 = vld [vmem:[#allocation2 + $0xd4] sm:$0x1] }
 0x235   : > { %v2240_v63 = vld [vmem:[#allocation2 + $0xc8] sm:$0x1]  ;;  %v3430_v7 = vshll.u32 %v3070_v33, 16  ;;  %3763 = vst [vmem:[#allocation4 + $0x44] sm:$0xf] %v3624_v8  ;;  %v3435_v62 = vshrl.u32 %v3071_v49, 16 }
 0x236   : > { %v2736_v5 = vld [vmem:[#allocation2 + $0xc8] sm:$0x1]  ;;  %v2621_v1 = vshll.u32 %v2240_v63, 16  ;;  %3764 = vst [vmem:[#allocation4 + $0x68] sm:$0xf] %v3628_v34  ;;  %v3438_v4 = vshll.u32 %v3071_v49, 16 }
 0x237   : > { %v2895_v43 = vrot.slane %v2736_v5, 5  ;;  %v3452_v31 = vrot.slane %v3451_v10, 4  ;;  %v3454_v35 = vshll.u32 %v3073_v45, 16  ;;  %v3432_v54 = vrot.slane %v3430_v7, 5  ;;  %v3529_v13 = vld [vmem:[#allocation2 + $0x34] sm:$0xf] }
 0x238   : > { %v2623_v37 = vrot.slane %v2621_v1, 5  ;;  %v3629_v38 = vrot.slane %v3627_v36, 4  ;;  %v3437_v16 = vrot.slane %v3435_v62, 4  ;;  %v3440_v48 = vrot.slane %v3438_v4, 5  ;;  %v3530_v33 = vld [vmem:[#allocation2 + $0x38] sm:$0x1] }
 0x239   : > { %v2896_v26 = vsel %vm14575_vm9, %v15451_v23, %v2895_v43  ;;  %v3456_v53 = vrot.slane %v3454_v35, 5  ;;  %v3634_v63 = vrot.slane %v3529_v13, 5  ;;  %v3433_v57 = vsel %vm14591_vm12, %v15457_v44, %v3432_v54  ;;  %v3531_v36 = vld [vmem:[#allocation2 + $0x3c] sm:$0xe]  ;;  %v3532_v5 = vld [vmem:[#allocation2 + $0x40] sm:$0xf]  ;;  %v12613_v13 = vpop.f32.mrf.mxu0 }
 0x23a   : > { %2960 = vst [vmem:[#allocation4 + $0x470] sm:$0xf] %v2896_v26  ;;  %v2624_v49 = vsel %vm14591_vm12, %v15467_v22, %v2623_v37  ;;  %v3631_v10 = vsel %vm14575_vm9, %v3629_v38, %v3630_v52  ;;  %v3637_v23 = vrot.slane %v3530_v33, 5  ;;  %3519 = vst [vmem:[#allocation4 + $0x430] sm:$0xf] %v3433_v57  ;;  %v3441_v8 = vor.u32 %v3440_v48, %v3437_v16  ;;  %v12725_v37 = vpop.f32.mrf.mxu1 }
 0x23b   : > { %2688 = vst [vmem:[#allocation4 + $0x46c] sm:$0xf] %v2624_v49  ;;  %v3457_v34 = vsel %vm14591_vm12, %v3452_v31, %v3456_v53  ;;  %3765 = vst [vmem:[#allocation4 + $0x8c] sm:$0xf] %v3631_v10  ;;  %v3635_v44 = vsel %vm14575_vm9, %v11911_v0, %v3634_v63  ;;  %v3636_v42 = vrot.slane %v3634_v63, 4  ;;  %v11912_v22 = vrot.slane %v3531_v36, 9 }
 0x23c   : > { %v3533_v7 = vld [vmem:[#allocation2 + $0x44] sm:$0x1]  ;;  %3521 = vst [vmem:[#allocation4 + $0x478] sm:$0xf] %v3457_v34  ;;  %3766 = vst [vmem:[#allocation4 + $0xb0] sm:$0xf] %v3635_v44  ;;  %v15498_v45 = vadd.f32 %v12724_v18, %v12612_v41  ;;  %v12726_v57 = vpop.f32.mrf.mxu1 }
 0x23d   : > { %v3641_v1 = vrot.slane %v3532_v5, 5  ;;  %v3644_v52 = vrot.slane %v3533_v7, 5  ;;  %v3534_v43 = vld [vmem:[#allocation2 + $0x48] sm:$0xe]  ;;  %v3442_v62 = vrot.slane %v3441_v8, 4  ;;  %v3638_v4 = vsel %vm14575_vm9, %v3636_v42, %v3637_v23  ;;  %v12614_v8 = vpop.f32.mrf.mxu0 }
 0x23e   : > { %v11913_v35 = vrot.slane %v3534_v43, 9  ;;  %3767 = vst [vmem:[#allocation4 + $0xd4] sm:$0xf] %v3638_v4  ;;  %v3535_v54 = vld [vmem:[#allocation2 + $0x4c] sm:$0xf]  ;;  %v12615_v42 = vadd.f32 %v12614_v8, %v12613_v13  ;;  %v12727_v7 = vadd.f32 %v12726_v57, %v12725_v37 }
 0x23f   : > { %v3642_v31 = vsel %vm14575_vm9, %v11912_v22, %v3641_v1  ;;  %v3643_v0 = vrot.slane %v3641_v1, 4  ;;  %v3447_v26 = vsel %vm14591_vm12, %v3442_v62, %v15472_v56  ;;  %v3536_v38 = vld [vmem:[#allocation2 + $0x50] sm:$0x1]  ;;  %v3648_v18 = vrot.slane %v3535_v54, 5  ;;  %v3537_v41 = vld [vmem:[#allocation2 + $0x54] sm:$0xe]  ;;  %v12728_v22 = vpop.f32.mrf.mxu1 }
 0x240   : > { %3768 = vst [vmem:[#allocation4 + $0xf8] sm:$0xf] %v3642_v31  ;;  %3520 = vst [vmem:[#allocation4 + $0x454] sm:$0xf] %v3447_v26  ;;  %v3651_v48 = vrot.slane %v3536_v38, 5  ;;  %v11914_v63 = vrot.slane %v3537_v41, 9  ;;  %v15515_v31 = vadd.f32 %v12727_v7, %v12615_v42 }
 0x241   : > { %v3645_v16 = vsel %vm14575_vm9, %v3643_v0, %v3644_v52  ;;  %v3538_v53 = vld [vmem:[#allocation2 + $0x58] sm:$0xf]  ;;  %v3539_v33 = vld [vmem:[#allocation2 + $0x5c] sm:$0x1]  ;;  %v13876_v49 = vld [vmem:[#allocation4 + $0x20] ss:$36 sps:$4 sm:$0xff]   ;;  %v3649_v10 = vsel %vm14575_vm9, %v11913_v35, %v3648_v18  ;;  %v12616_v35 = vpop.f32.mrf.mxu0  ;;  %v12729_v0 = vpop.f32.mrf.mxu1 }
 0x242   : > { %3769 = vst [vmem:[#allocation4 + $0x11c] sm:$0xf] %v3645_v16  ;;  %v3650_v56 = vrot.slane %v3648_v18, 4  ;;  %v3655_v23 = vrot.slane %v3538_v53, 5  ;;  %v3658_v36 = vrot.slane %v3539_v33, 5  ;;  %v12730_v38 = vadd.f32 %v12729_v0, %v12728_v22 }
 0x243   : > { %v3540_v5 = vld [vmem:[#allocation2 + $0x60] sm:$0xe]  ;;  %v13867_v34 = vld [vmem:[#allocation4 + $0x408] ss:$36 sps:$4 sm:$0xff]   ;;  %3770 = vst [vmem:[#allocation4 + $0x140] sm:$0xf] %v3649_v10  ;;  %v12617_v26 = vpop.f32.mrf.mxu0 }
 0x244   : > { %v13869_v44 = vld [vmem:[#allocation4 + $0x40c] ss:$36 sps:$4 sm:$0xff]   ;;  %v3652_v43 = vsel %vm14575_vm9, %v3650_v56, %v3651_v48  ;;  %v3656_v62 = vsel %vm14575_vm9, %v11914_v63, %v3655_v23  ;;  %v3657_v4 = vrot.slane %v3655_v23, 4  ;;  %v11915_v37 = vrot.slane %v3540_v5, 9  ;;  %v3541_v18 = vld [vmem:[#allocation2 + $0x64] sm:$0xf] }
 0x245   : > { %v13870_v1 = vld [vmem:[#allocation4 + $0x448] ss:$36 sps:$4 sm:$0xff]   ;;  %5893 = vmatprep.mubr.bf16.mxu1 %v13869_v44  ;;  %3771 = vst [vmem:[#allocation4 + $0x164] sm:$0xf] %v3652_v43  ;;  %3772 = vst [vmem:[#allocation4 + $0x188] sm:$0xf] %v3656_v62  ;;  %v12618_v13 = vadd.f32 %v12617_v26, %v12616_v35 }
 0x246   : > { %v13872_v52 = vld [vmem:[#allocation4 + $0x44c] ss:$36 sps:$4 sm:$0xff]   ;;  %5894 = vmatmul.mubr.bf16.gmra.mxu1 %v13867_v34  ;;  %v3659_v54 = vsel %vm14575_vm9, %v3657_v4, %v3658_v36  ;;  %v3542_v41 = vld [vmem:[#allocation2 + $0x68] sm:$0x1]  ;;  %v3662_v48 = vrot.slane %v3541_v18, 5 }
 0x247   : > { %5740 = vmatprep.mubr.bf16.mxu0 %v13872_v52  ;;  %3773 = vst [vmem:[#allocation4 + $0x1ac] sm:$0xf] %v3659_v54  ;;  %v13875_v16 = vld [vmem:[#allocation4 + $0x454] ss:$36 sps:$4 sm:$0xff]   ;;  %v13877_v33 = vld [vmem:[#allocation4 + $0x68] ss:$36 sps:$4 sm:$0xff]   ;;  %v15519_v57 = vadd.f32 %v12730_v38, %v12618_v13 }
 0x248   : > { %5741 = vmatmul.mubr.bf16.gmra.mxu0 %v13870_v1  ;;  %v13873_v53 = vld [vmem:[#allocation4 + $0x450] ss:$36 sps:$4 sm:$0xff]   ;;  %v3665_v63 = vrot.slane %v3542_v41, 5  ;;  %v13896_v10 = vld [vmem:[#allocation11 + $0x68] sm:$0xff]   ;;  %5901 = vmatprep.mubr.bf16.mxu1 %v13875_v16  ;;  %v3663_v56 = vsel %vm14575_vm9, %v11915_v37, %v3662_v48  ;;  %v3664_v23 = vrot.slane %v3662_v48, 4  ;;  %v12731_v37 = vpop.f32.mrf.mxu1 }
 0x249   : > { %13473 = vmatprep.mubr.bf16.mxu0 %v13876_v49  ;;  %v3543_v36 = vld [vmem:[#allocation2 + $0x6c] sm:$0xe]  ;;  %v13897_v5 = vld [vmem:[#allocation11 + $0x28] sm:$0xff]   ;;  %3774 = vst [vmem:[#allocation4 + $0x1d0] sm:$0xf] %v3663_v56  ;;  %12989 = vmatprep.subr.bf16.mxu1 %v13896_v10  ;;  %v12619_v56 = vpop.f32.mrf.mxu0 }
 0x24a   : > { %v3544_v8 = vld [vmem:[#allocation2 + $0x70] sm:$0xf]  ;;  %v3545_v34 = vld [vmem:[#allocation2 + $0x74] sm:$0x1]  ;;  %v11916_v44 = vrot.slane %v3543_v36, 9  ;;  %v3666_v42 = vsel %vm14575_vm9, %v3664_v23, %v3665_v63  ;;  %12990 = vmatpush3.bf16.msra.mxu1 %v13897_v5  ;;  %v12732_v23 = vpop.f32.mrf.mxu1 }
 0x24b   : > { %v13878_v49 = vld [vmem:[#allocation4 + $0xb0] ss:$36 sps:$4 sm:$0xff]   ;;  %3775 = vst [vmem:[#allocation4 + $0x1f4] sm:$0xf] %v3666_v42  ;;  %v3669_v7 = vrot.slane %v3544_v8, 5  ;;  %v3672_v22 = vrot.slane %v3545_v34, 5  ;;  %v12733_v34 = vadd.f32 %v12732_v23, %v12731_v37 }
 0x24c   : > { %v3546_v1 = vld [vmem:[#allocation2 + $0x78] sm:$0xe]  ;;  %v3547_v52 = vld [vmem:[#allocation2 + $0x7c] sm:$0xf]  ;;  %v3548_v43 = vld [vmem:[#allocation2 + $0x80] sm:$0x1] }
 0x24d   : > { %v3670_v62 = vsel %vm14575_vm9, %v11916_v44, %v3669_v7  ;;  %v3671_v4 = vrot.slane %v3669_v7, 4  ;;  %v11917_v35 = vrot.slane %v3546_v1, 9  ;;  %v3676_v0 = vrot.slane %v3547_v52, 5  ;;  %v3549_v54 = vld [vmem:[#allocation2 + $0x84] sm:$0xe]  ;;  %v12620_v52 = vpop.f32.mrf.mxu0 }
 0x24e   : > { %5902 = vmatmul.mubr.bf16.gmra.mxu1 %v13873_v53  ;;  %3776 = vst [vmem:[#allocation4 + $0x218] sm:$0xf] %v3670_v62  ;;  %v3679_v26 = vrot.slane %v3548_v43, 5  ;;  %v3550_v38 = vld [vmem:[#allocation2 + $0x88] sm:$0xf]  ;;  %v11918_v41 = vrot.slane %v3549_v54, 9  ;;  %v12734_v43 = vpop.f32.mrf.mxu1 }
 0x24f   : > { %v3551_v18 = vld [vmem:[#allocation2 + $0x8c] sm:$0x1]  ;;  %v3673_v16 = vsel %vm14575_vm9, %v3671_v4, %v3672_v22  ;;  %v3677_v48 = vsel %vm14575_vm9, %v11917_v35, %v3676_v0  ;;  %v3678_v53 = vrot.slane %v3676_v0, 4  ;;  %v3552_v63 = vld [vmem:[#allocation2 + $0x90] sm:$0xe]  ;;  %v12621_v0 = vadd.f32 %v12620_v52, %v12619_v56 }
 0x250   : > { %13474 = vmatmul.mubr.bf16.vlgmr.msra.gmra.mxu0 %v13877_v33  ;;  %v13879_v13 = vld [vmem:[#allocation4 + $0xf8] ss:$36 sps:$4 sm:$0xff]   ;;  %v3683_v33 = vrot.slane %v3550_v38, 5  ;;  %v3553_v10 = vld [vmem:[#allocation2 + $0x94] sm:$0xf]  ;;  %v3686_v36 = vrot.slane %v3551_v18, 5 }
 0x251   : > { %13477 = vmatprep.mubr.bf16.mxu0 %v13878_v49  ;;  %3777 = vst [vmem:[#allocation4 + $0x23c] sm:$0xf] %v3673_v16  ;;  %3778 = vst [vmem:[#allocation4 + $0x260] sm:$0xf] %v3677_v48  ;;  %v3554_v5 = vld [vmem:[#allocation2 + $0x98] sm:$0x1]  ;;  %v3680_v44 = vsel %vm14575_vm9, %v3678_v53, %v3679_v26  ;;  %v12622_v16 = vpop.f32.mrf.mxu0  ;;  %v12735_v48 = vpop.f32.mrf.mxu1  ;;  %v15539_v23 = vadd.f32 %v12733_v34, %v12621_v0 }
 0x252   : > { %v11919_v8 = vrot.slane %v3552_v63, 9  ;;  %v3684_v49 = vsel %vm14575_vm9, %v11918_v41, %v3683_v33  ;;  %v3685_v42 = vrot.slane %v3683_v33, 4  ;;  %v3690_v7 = vrot.slane %v3553_v10, 5  ;;  %v3555_v22 = vld [vmem:[#allocation2 + $0x9c] sm:$0xe] }
 0x253   : > { %v3556_v1 = vld [vmem:[#allocation2 + $0xa0] sm:$0xf]  ;;  %v13880_v62 = vld [vmem:[#allocation4 + $0x140] ss:$36 sps:$4 sm:$0xff]   ;;  %3779 = vst [vmem:[#allocation4 + $0x284] sm:$0xf] %v3680_v44  ;;  %v12736_v56 = vadd.f32 %v12735_v48, %v12734_v43 }
 0x254   : > { %3780 = vst [vmem:[#allocation4 + $0x2a8] sm:$0xf] %v3684_v49  ;;  %v3693_v4 = vrot.slane %v3554_v5, 5  ;;  %v11920_v35 = vrot.slane %v3555_v22, 9  ;;  %v3687_v54 = vsel %vm14575_vm9, %v3685_v42, %v3686_v36  ;;  %v3691_v37 = vsel %vm14575_vm9, %v11919_v8, %v3690_v7  ;;  %v3557_v38 = vld [vmem:[#allocation2 + $0xa4] sm:$0x1]  ;;  %v12623_v42 = vpop.f32.mrf.mxu0 }
 0x255   : > { %v3692_v26 = vrot.slane %v3690_v7, 4  ;;  %v3697_v18 = vrot.slane %v3556_v1, 5  ;;  %v3558_v41 = vld [vmem:[#allocation2 + $0xa8] sm:$0xe]  ;;  %3781 = vst [vmem:[#allocation4 + $0x2cc] sm:$0xf] %v3687_v54  ;;  %v12624_v52 = vadd.f32 %v12623_v42, %v12622_v16 }
 0x256   : > { %3782 = vst [vmem:[#allocation4 + $0x2f0] sm:$0xf] %v3691_v37  ;;  %v3700_v53 = vrot.slane %v3557_v38, 5  ;;  %v3559_v33 = vld [vmem:[#allocation2 + $0xac] sm:$0xf]  ;;  %v11921_v10 = vrot.slane %v3558_v41, 9  ;;  %v15551_v41 = vpop.f32.mrf.mxu1 }
 0x257   : > { %v3560_v63 = vld [vmem:[#allocation2 + $0xb0] sm:$0x1]  ;;  %17516 = vst [vmem:[#allocation23_spill] sm:$0xff] %v15539_v23  ;;  %v3694_v36 = vsel %vm14575_vm9, %v3692_v26, %v3693_v4  ;;  %v3698_v5 = vsel %vm14575_vm9, %v11920_v35, %v3697_v18  ;;  %v3699_v8 = vrot.slane %v3697_v18, 4  ;;  %v3704_v44 = vrot.slane %v3559_v33, 5  ;;  %v12753_v35 = vpop.f32.mrf.mxu0 }
 0x258   : > { %13478 = vmatmul.mubr.bf16.gmra.mxu0 %v13879_v13  ;;  %v3561_v49 = vld [vmem:[#allocation2 + $0xb4] sm:$0xe]  ;;  %3783 = vst [vmem:[#allocation4 + $0x314] sm:$0xf] %v3694_v36  ;;  %3784 = vst [vmem:[#allocation4 + $0x338] sm:$0xf] %v3698_v5  ;;  %v15549_v26 = vadd.f32 %v12736_v56, %v12624_v52  ;;  %v15557_v56 = vpop.f32.mrf.mxu1 }
 0x259   : > { %13481 = vmatprep.mubr.bf16.mxu0 %v13880_v62  ;;  %v3707_v7 = vrot.slane %v3560_v63, 5  ;;  %v3562_v22 = vld [vmem:[#allocation2 + $0xb8] sm:$0xf]  ;;  %v3563_v1 = vld [vmem:[#allocation2 + $0xbc] sm:$0x1]  ;;  %v11922_v34 = vrot.slane %v3561_v49, 9  ;;  %v3701_v13 = vsel %vm14575_vm9, %v3699_v8, %v3700_v53  ;;  %v3705_v4 = vsel %vm14575_vm9, %v11921_v10, %v3704_v44  ;;  %v12754_v18 = vpop.f32.mrf.mxu0 }
 0x25a   : > { %v13881_v43 = vld [vmem:[#allocation4 + $0x188] ss:$36 sps:$4 sm:$0xff]   ;;  %3785 = vst [vmem:[#allocation4 + $0x35c] sm:$0xf] %v3701_v13  ;;  %v3706_v0 = vrot.slane %v3704_v44, 4  ;;  %v3711_v54 = vrot.slane %v3562_v22, 5  ;;  %v12755_v36 = vadd.f32 %v12754_v18, %v12753_v35 }
 0x25b   : > { %3786 = vst [vmem:[#allocation4 + $0x380] sm:$0xf] %v3705_v4  ;;  %v3714_v62 = vrot.slane %v3563_v1, 5  ;;  %v3564_v37 = vld [vmem:[#allocation2 + $0xc0] sm:$0xe]  ;;  %17517 = vst [vmem:[#allocation24_spill] sm:$0xff] %v15549_v26  ;;  %v12756_v5 = vpop.f32.mrf.mxu0 }
 0x25c   : > { %v13882_v38 = vld [vmem:[#allocation4 + $0x1d0] ss:$36 sps:$4 sm:$0xff]   ;;  %v3708_v16 = vsel %vm14575_vm9, %v3706_v0, %v3707_v7  ;;  %v3712_v48 = vsel %vm14575_vm9, %v11922_v34, %v3711_v54  ;;  %v3713_v53 = vrot.slane %v3711_v54, 4  ;;  %v3566_v63 = vld [vmem:[#allocation2 + $0xc8] sm:$0x1]  ;;  %v11923_v10 = vrot.slane %v3564_v37, 9  ;;  %v15564_v34 = vpop.f32.mrf.mxu1 }
 0x25d   : > { %v3565_v33 = vld [vmem:[#allocation2 + $0xc4] sm:$0xf]  ;;  %3787 = vst [vmem:[#allocation4 + $0x3a4] sm:$0xf] %v3708_v16  ;;  %3788 = vst [vmem:[#allocation4 + $0x3c8] sm:$0xf] %v3712_v48  ;;  %v15562_v22 = vadd.f32 %v12755_v36, %v15224_v2  ;;  %v12757_v1 = vpop.f32.mrf.mxu0 }
 0x25e   : > { %v3715_v8 = vsel %vm14575_vm9, %v3713_v53, %v3714_v62  ;;  %v3718_v44 = vrot.slane %v3565_v33, 5  ;;  %v3721_v49 = vrot.slane %v3566_v63, 5  ;;  %v3567_v42 = vld [vmem:[#allocation2 + $0xcc] sm:$0xe]  ;;  %v3568_v7 = vld [vmem:[#allocation2 + $0xd0] sm:$0xf]  ;;  %v12758_v37 = vadd.f32 %v12757_v1, %v12756_v5  ;;  %v15572_v48 = vpop.f32.mrf.mxu1 }
 0x25f   : > { %3789 = vst [vmem:[#allocation4 + $0x3ec] sm:$0xf] %v3715_v8  ;;  %v3569_v4 = vld [vmem:[#allocation2 + $0xd4] sm:$0x1]  ;;  %v11924_v35 = vrot.slane %v3567_v42, 9  ;;  %v3725_v0 = vrot.slane %v3568_v7, 5 }
 0x260   : > { %13482 = vmatmul.mubr.bf16.gmra.mxu0 %v13881_v43  ;;  %v3719_v52 = vsel %vm14575_vm9, %v11923_v10, %v3718_v44  ;;  %v3720_v13 = vrot.slane %v3718_v44, 4  ;;  %v13898_v54 = vld [vmem:[#allocation11 + $0x60] sm:$0xff]   ;;  %v13883_v62 = vld [vmem:[#allocation4 + $0x218] ss:$36 sps:$4 sm:$0xff]   ;;  %v12759_v43 = vpop.f32.mrf.mxu0  ;;  %v15575_v53 = vadd.f32 %v12758_v37, %v15229_v12  ;;  %v15582_v44 = vpop.f32.mrf.mxu1  ;;  %v13885_v1 = vld [vmem:[#allocation4 + $0x2a8] ss:$36 sps:$4 sm:$0xff]  }
 0x261   : > { %13485 = vmatprep.mubr.bf16.mxu0 %v13882_v38  ;;  %3790 = vst [vmem:[#allocation4 + $0x410] sm:$0xf] %v3719_v52  ;;  %v3726_v18 = vsel %vm14575_vm9, %v11924_v35, %v3725_v0  ;;  %v3727_v16 = vrot.slane %v3725_v0, 4  ;;  %v3728_v38 = vrot.slane %v3569_v4, 5  ;;  %12991 = vmatprep.subr.bf16.mxu1 %v13898_v54  ;;  %v13884_v63 = vld [vmem:[#allocation4 + $0x260] ss:$36 sps:$4 sm:$0xff]  }
 0x262   : > { %v3722_v2 = vsel %vm14575_vm9, %v3720_v13, %v3721_v49  ;;  %3792 = vst [vmem:[#allocation4 + $0x458] sm:$0xf] %v3726_v18  ;;  %v12760_v33 = vpop.f32.mrf.mxu0  ;;  %v15584_v42 = vpop.f32.mrf.mxu1  ;;  %v13899_v7 = vld [vmem:[#allocation11 + $0x20] sm:$0xff]   ;;  %v13886_v35 = vld [vmem:[#allocation4 + $0x2f0] ss:$36 sps:$4 sm:$0xff]  }
 0x263   : > { %3791 = vst [vmem:[#allocation4 + $0x434] sm:$0xf] %v3722_v2  ;;  %v3729_v10 = vsel %vm14575_vm9, %v3727_v16, %v3728_v38  ;;  %v12761_v36 = vadd.f32 %v12760_v33, %v12759_v43  ;;  %12992 = vmatpush3.bf16.msra.mxu1 %v13899_v7  ;;  %v13887_v2 = vld [vmem:[#allocation4 + $0x338] ss:$36 sps:$4 sm:$0xff]  }
 0x264   : > { %3793 = vst [vmem:[#allocation4 + $0x47c] sm:$0xf] %v3729_v10  ;;  %v12762_v5 = vpop.f32.mrf.mxu0  ;;  %v15589_v13 = vpop.f32.mrf.mxu1  ;;  %v13900_v38 = vld [vmem:[#allocation11 + $0x58] sm:$0xff]  }
 0x265   : > { %v15580_v8 = vadd.f32 %v12761_v36, %v15246_v55  ;;  %12993 = vmatprep.subr.bf16.mxu1 %v13900_v38 }
 0x266   : > { %v12763_v49 = vpop.f32.mrf.mxu0  ;;  %v15591_v54 = vpop.f32.mrf.mxu1 }
 0x267   : > { %17518 = vst [vmem:[#allocation25_spill] sm:$0xff] %v15580_v8  ;;  %v12764_v12 = vadd.f32 %v12763_v49, %v12762_v5 }
 0x268   : > { %13486 = vmatmul.mubr.bf16.gmra.mxu0 %v13883_v62  ;;  %v12765_v4 = vpop.f32.mrf.mxu0  ;;  %v15596_v16 = vpop.f32.mrf.mxu1 }
 0x269   : > { %13489 = vmatprep.mubr.bf16.mxu0 %v13884_v63  ;;  %v15587_v52 = vadd.f32 %v12764_v12, %v15257_v40  ;;  %v13888_v40 = vld [vmem:[#allocation4 + $0x380] ss:$36 sps:$4 sm:$0xff]   ;;  %v13901_v63 = vld [vmem:[#allocation11 + $0x18] sm:$0xff]   ;;  %v13889_v12 = vld [vmem:[#allocation4 + $0x3c8] ss:$36 sps:$4 sm:$0xff]  }
 0x26a   : > { %v12766_v55 = vpop.f32.mrf.mxu0  ;;  %v15601_v10 = vpop.f32.mrf.mxu1  ;;  %12994 = vmatpush3.bf16.msra.mxu1 %v13901_v63 }
 0x26b   : > { %17519 = vst [vmem:[#allocation26_spill] sm:$0xff] %v15587_v52  ;;  %v12767_v0 = vadd.f32 %v12766_v55, %v12765_v4  ;;  %v13890_v4 = vld [vmem:[#allocation4 + $0x410] ss:$36 sps:$4 sm:$0xff]  }
 0x26c   : > { %v12768_v62 = vpop.f32.mrf.mxu0  ;;  %v15603_v5 = vpop.f32.mrf.mxu1 }
 0x26d   : > { %v15594_v37 = vadd.f32 %v12767_v0, %v15263_v14 }
 0x26e   : > { %v12769_v43 = vpop.f32.mrf.mxu0  ;;  %v15605_v7 = vpop.f32.mrf.mxu1 }
 0x26f   : > { %17520 = vst [vmem:[#allocation27_spill] sm:$0xff] %v15594_v37  ;;  %v12770_v18 = vadd.f32 %v12769_v43, %v12768_v62 }
 0x270   : > { %13490 = vmatmul.mubr.bf16.gmra.mxu0 %v13885_v1  ;;  %v12771_v36 = vpop.f32.mrf.mxu0  ;;  %v15610_v0 = vpop.f32.mrf.mxu1 }
 0x271   : > { %13493 = vmatprep.mubr.bf16.mxu0 %v13886_v35  ;;  %v15599_v33 = vadd.f32 %v12770_v18, %v15269_v51  ;;  %v13891_v18 = vld [vmem:[#allocation4 + $0x458] ss:$36 sps:$4 sm:$0xff]  }
 0x272   : > { %v12772_v14 = vpop.f32.mrf.mxu0  ;;  %v15615_v43 = vpop.f32.mrf.mxu1 }
 0x273   : > { %17521 = vst [vmem:[#allocation28_spill] sm:$0xff] %v15599_v33  ;;  %v12773_v49 = vadd.f32 %v12772_v14, %v12771_v36 }
 0x274   : > { %v12774_v1 = vpop.f32.mrf.mxu0 }
 0x275   : > { %v15608_v51 = vadd.f32 %v12773_v49, %v15286_v9 }
 0x276   : > { %v12775_v35 = vpop.f32.mrf.mxu0 }
 0x277   : > { %17522 = vst [vmem:[#allocation29_spill] sm:$0xff] %v15608_v51  ;;  %v12776_v55 = vadd.f32 %v12775_v35, %v12774_v1 }
 0x278   : > { %13494 = vmatmul.mubr.bf16.gmra.mxu0 %v13887_v2  ;;  %v12777_v2 = vpop.f32.mrf.mxu0 }
 0x279   : > { %13497 = vmatprep.mubr.bf16.mxu0 %v13888_v40  ;;  %v15613_v62 = vadd.f32 %v12776_v55, %v15299_v15  ;;  %v15617_v40 = vpop.f32.mrf.mxu1 }
 0x27a   : > { %v12778_v38 = vpop.f32.mrf.mxu0 }
 0x27b   : > { %17523 = vst [vmem:[#allocation30_spill] sm:$0xff] %v15613_v62  ;;  %v12779_v63 = vadd.f32 %v12778_v38, %v12777_v2  ;;  %v15619_v36 = vpop.f32.mrf.mxu1 }
 0x27c   : > { %v12780_v9 = vpop.f32.mrf.mxu0 }
 0x27d   : > { %v15622_v14 = vadd.f32 %v12779_v63, %v15301_v28  ;;  %v15624_v1 = vpop.f32.mrf.mxu1 }
 0x27e   : > { %v12781_v49 = vpop.f32.mrf.mxu0 }
 0x27f   : > { %17524 = vst [vmem:[#allocation31_spill] sm:$0xff] %v15622_v14  ;;  %v12782_v15 = vadd.f32 %v12781_v49, %v12780_v9  ;;  %v13903_v9 = vld [vmem:[#allocation11 + $0x10] sm:$0xff]  }
 0x280   : > { %13498 = vmatmul.mubr.bf16.gmra.mxu0 %v13889_v12  ;;  %v12783_v55 = vpop.f32.mrf.mxu0 }
 0x281   : > { %13501 = vmatprep.mubr.bf16.mxu0 %v13890_v4  ;;  %v15627_v12 = vadd.f32 %v12782_v15, %v15309_v32  ;;  %v15629_v4 = vpop.f32.mrf.mxu1 }
 0x282   : > { %v12784_v2 = vpop.f32.mrf.mxu0 }
 0x283   : > { %17525 = vst [vmem:[#allocation32_spill] sm:$0xff] %v15627_v12  ;;  %v15631_v35 = vpop.f32.mrf.mxu1  ;;  %v12785_v38 = vadd.f32 %v12784_v2, %v12783_v55  ;;  %v548_v55 = vld [vmem:[#allocation3 + $0x18] sm:$0x1] }
 0x284   : > { %v12786_v23 = vpop.f32.mrf.mxu0  ;;  %v549_v14 = vsel %vm14540_vm3, 0, %v548_v55  ;;  %v13904_v55 = vld [vmem:[#allocation11 + $0xf8] sm:$0xff]  }
 0x285   : > { %v15633_v26 = vpop.f32.mrf.mxu1  ;;  %v15636_v28 = vadd.f32 %v12785_v38, %v15324_v47  ;;  %550 = vst [vmem:[#allocation3 + $0x18] sm:$0x1] %v549_v14  ;;  %v602_v14 = vld [vmem:[#allocation3 + $0x20] sm:$0x1]  ;;  %13097 = vmatprep.subr.bf16.mxu0 %v13904_v55  ;;  %v551_v55 = vld [vmem:[#allocation3 + $0x24] sm:$0x1] }
 0x286   : > { %v12787_v63 = vpop.f32.mrf.mxu0 }
 0x287   : > { %17526 = vst [vmem:[#allocation33_spill] sm:$0xff] %v15636_v28  ;;  %v12788_v49 = vadd.f32 %v12787_v63, %v12786_v23  ;;  %v15638_v32 = vpop.f32.mrf.mxu1 }
 0x288   : > { %13502 = vmatmul.mubr.bf16.gmra.mxu0 %v13891_v18  ;;  %v13902_v18 = vld [vmem:[#allocation11 + $0x50] sm:$0xff]   ;;  %v12789_v2 = vpop.f32.mrf.mxu0 }
 0x289   : > { %12995 = vmatprep.subr.bf16.mxu1 %v13902_v18  ;;  %v15641_v15 = vadd.f32 %v12788_v49, %v15328_v60  ;;  %v15643_v12 = vpop.f32.mrf.mxu1  ;;  %v545_v49 = vld [vmem:[#allocation3 + $0xc] sm:$0x1] }
 0x28a   : > { %12996 = vmatpush3.bf16.msra.mxu1 %v13903_v9  ;;  %v12790_v38 = vpop.f32.mrf.mxu0  ;;  %v546_v62 = vsel %vm14540_vm3, 0, %v545_v49 }
 0x28b   : > { %17527 = vst [vmem:[#allocation34_spill] sm:$0xff] %v15641_v15  ;;  %v15647_v47 = vpop.f32.mrf.mxu1  ;;  %v12791_v28 = vadd.f32 %v12790_v38, %v12789_v2  ;;  %547 = vst [vmem:[#allocation3 + $0xc] sm:$0x1] %v546_v62  ;;  %v13906_v2 = vld [vmem:[#allocation11 + $0xb8] sm:$0xff]  }
 0x28c   : > { %v12792_v18 = vpop.f32.mrf.mxu0  ;;  %13098 = vmatpush3.bf16.msra.mxu0 %v13906_v2  ;;  %v552_v2 = vsel %vm14540_vm3, 0, %v551_v55 }
 0x28d   : > { %v15649_v23 = vpop.f32.mrf.mxu1  ;;  %v15652_v63 = vadd.f32 %v12791_v28, %v15345_v59  ;;  %v603_v59 = vsel %vm14545_vm4, 0, %v602_v14  ;;  %v599_v28 = vld [vmem:[#allocation3 + $0x14] sm:$0x1]  ;;  %553 = vst [vmem:[#allocation3 + $0x24] sm:$0x1] %v552_v2 }
 0x28e   : > { %v12793_v60 = vpop.f32.mrf.mxu0  ;;  %604 = vst [vmem:[#allocation3 + $0x20] sm:$0x1] %v603_v59  ;;  %v600_v49 = vsel %vm14545_vm4, 0, %v599_v28  ;;  %v13908_v59 = vld [vmem:[#allocation11 + $0xf0] sm:$0xff]   ;;  %v608_v28 = vld [vmem:[#allocation3 + $0x38] sm:$0x1] }
 0x28f   : > { %17528 = vst [vmem:[#allocation35_spill] sm:$0xff] %v15652_v63  ;;  %v12794_v9 = vadd.f32 %v12793_v60, %v12792_v18  ;;  %v15654_v15 = vpop.f32.mrf.mxu1  ;;  %601 = vst [vmem:[#allocation3 + $0x14] sm:$0x1] %v600_v49  ;;  %v13909_v49 = vld [vmem:[#allocation11 + $0xb0] sm:$0xff]   ;;  %13099 = vmatprep.subr.bf16.mxu0 %v13908_v59 }
 0x290   : > { %17529 = vst [vmem:[#allocation36_spill] sm:$0xff] %v15654_v15  ;;  %13100 = vmatpush3.bf16.msra.mxu0 %v13909_v49 }
 0x291   : > { %v15659_v51 = vadd.f32 %v12794_v9, %v15357_v6  ;;  %v15661_v38 = vpop.f32.mrf.mxu1  ;;  %v554_v6 = vld [vmem:[#allocation3 + $0x30] sm:$0x1] }
 0x292   : > { %17531 = vst [vmem:[#allocation38_spill] sm:$0xff] %v15661_v38  ;;  %v12795_v60 = vpop.f32.mrf.mxu0  ;;  %v555_v9 = vsel %vm14540_vm3, 0, %v554_v6  ;;  %v609_v6 = vsel %vm14545_vm4, 0, %v608_v28 }
 0x293   : > { %17530 = vst [vmem:[#allocation37_spill] sm:$0xff] %v15659_v51  ;;  %v15665_v18 = vpop.f32.mrf.mxu1  ;;  %556 = vst [vmem:[#allocation3 + $0x30] sm:$0x1] %v555_v9 }
 0x294   : > { %17532 = vst [vmem:[#allocation39_spill] sm:$0xff] %v15665_v18  ;;  %v12796_v62 = vpop.f32.mrf.mxu0  ;;  %610 = vst [vmem:[#allocation3 + $0x38] sm:$0x1] %v609_v6 }
 0x295   : > { %v15671_v51 = vpop.f32.mrf.mxu1  ;;  %v12797_v63 = vadd.f32 %v12796_v62, %v12795_v60  ;;  %v13910_v62 = vld [vmem:[#allocation11 + $0xe8] sm:$0xff]  }
 0x296   : > { %17533 = vst [vmem:[#allocation40_spill] sm:$0xff] %v15671_v51  ;;  %v12798_v14 = vpop.f32.mrf.mxu0  ;;  %13101 = vmatprep.subr.bf16.mxu0 %v13910_v62 }
 0x297   : > { %v15676_v33 = vadd.f32 %v12797_v63, %v15365_v27  ;;  %v605_v27 = vld [vmem:[#allocation3 + $0x2c] sm:$0x1]  ;;  %v13911_v63 = vld [vmem:[#allocation11 + $0xa8] sm:$0xff]  }
 0x298   : > { %v12799_v37 = vpop.f32.mrf.mxu0  ;;  %v606_v2 = vsel %vm14545_vm4, 0, %v605_v27  ;;  %13102 = vmatpush3.bf16.msra.mxu0 %v13911_v63 }
 0x299   : > { %17534 = vst [vmem:[#allocation41_spill] sm:$0xff] %v15676_v33  ;;  %v12800_v60 = vadd.f32 %v12799_v37, %v12798_v14  ;;  %607 = vst [vmem:[#allocation3 + $0x2c] sm:$0x1] %v606_v2  ;;  %v542_v14 = vld [vmem:[#allocation3] sm:$0x1]  ;;  %v13912_v2 = vld [vmem:[#allocation11 + $0xe0] sm:$0xff]  }
 0x29a   : > { %v15680_v52 = vpop.f32.mrf.mxu1  ;;  %v543_v49 = vsel %vm14540_vm3, 0, %v542_v14  ;;  %13103 = vmatprep.subr.bf16.mxu0 %v13912_v2  ;;  %v611_v2 = vld [vmem:[#allocation3 + $0x44] sm:$0x1] }
 0x29b   : > { %17535 = vst [vmem:[#allocation42_spill] sm:$0xff] %v15680_v52  ;;  %v15685_v55 = vadd.f32 %v12800_v60, %v15373_v50  ;;  %v13905_v60 = vld [vmem:[#allocation11 + $0x48] sm:$0xff]   ;;  %544 = vst [vmem:[#allocation3] sm:$0x1] %v543_v49 }
 0x29c   : > { %v15682_v9 = vpop.f32.mrf.mxu1  ;;  %12997 = vmatprep.subr.bf16.mxu1 %v13905_v60  ;;  %v13907_v60 = vld [vmem:[#allocation11 + $0x8] sm:$0xff]  }
 0x29d   : > { %17536 = vst [vmem:[#allocation43_spill] sm:$0xff] %v15682_v9  ;;  %17537 = vst [vmem:[#allocation44_spill] sm:$0xff] %v15685_v55  ;;  %v560_v55 = vld [vmem:[#allocation3 + $0x48] sm:$0x1]  ;;  %12998 = vmatpush3.bf16.msra.mxu1 %v13907_v60 }
 0x29e   : > { %v15689_v33 = vpop.f32.mrf.mxu1  ;;  %v561_v62 = vsel %vm14540_vm3, 0, %v560_v55 }
 0x29f   : > { %17538 = vst [vmem:[#allocation45_spill] sm:$0xff] %v15689_v33  ;;  %v12801_v59 = vpop.f32.mrf.mxu0  ;;  %562 = vst [vmem:[#allocation3 + $0x48] sm:$0x1] %v561_v62  ;;  %v596_v33 = vld [vmem:[#allocation3 + $0x8] sm:$0x1] }
 0x2a0   : > { %v15693_v6 = vpop.f32.mrf.mxu1  ;;  %v597_v49 = vsel %vm14545_vm4, 0, %v596_v33  ;;  %v612_v33 = vsel %vm14545_vm4, 0, %v611_v2  ;;  %v13916_v2 = vld [vmem:[#allocation11 + $0x98] sm:$0xff]  }
 0x2a1   : > { %v12802_v37 = vpop.f32.mrf.mxu0  ;;  %17539 = vst [vmem:[#allocation46_spill] sm:$0xff] %v15693_v6  ;;  %598 = vst [vmem:[#allocation3 + $0x8] sm:$0x1] %v597_v49 }
 0x2a2   : > { %v12803_v28 = vadd.f32 %v12802_v37, %v12801_v59  ;;  %v557_v59 = vld [vmem:[#allocation3 + $0x3c] sm:$0x1]  ;;  %613 = vst [vmem:[#allocation3 + $0x44] sm:$0x1] %v612_v33 }
 0x2a3   : > { %v12804_v50 = vpop.f32.mrf.mxu0  ;;  %v13913_v37 = vld [vmem:[#allocation11 + $0xa0] sm:$0xff]   ;;  %v558_v6 = vsel %vm14540_vm3, 0, %v557_v59 }
 0x2a4   : > { %v15696_v27 = vadd.f32 %v12803_v28, %v15377_v29  ;;  %559 = vst [vmem:[#allocation3 + $0x3c] sm:$0x1] %v558_v6  ;;  %v614_v28 = vld [vmem:[#allocation3 + $0x50] sm:$0x1]  ;;  %13104 = vmatpush3.bf16.msra.mxu0 %v13913_v37  ;;  %v6842_v6 = vld [vmem:[#allocation3] sm:$0xf] }
 0x2a5   : > { %v12805_v63 = vpop.f32.mrf.mxu0  ;;  %v566_v37 = vld [vmem:[#allocation3 + $0x60] sm:$0x1]  ;;  %v6894_v49 = vshll.u32 %v6842_v6, 16 }
 0x2a6   : > { %17540 = vst [vmem:[#allocation47_spill] sm:$0xff] %v15696_v27  ;;  %v12806_v14 = vadd.f32 %v12805_v63, %v12804_v50  ;;  %v615_v50 = vsel %vm14545_vm4, 0, %v614_v28  ;;  %v567_v28 = vsel %vm14540_vm3, 0, %v566_v37  ;;  %v13914_v27 = vld [vmem:[#allocation11 + $0xd8] sm:$0xff]  }
 0x2a7   : > { %616 = vst [vmem:[#allocation3 + $0x50] sm:$0x1] %v615_v50  ;;  %568 = vst [vmem:[#allocation3 + $0x60] sm:$0x1] %v567_v28  ;;  %v6896_v52 = vrot.slane %v6894_v49, 5  ;;  %13105 = vmatprep.subr.bf16.mxu0 %v13914_v27  ;;  %v13918_v28 = vld [vmem:[#allocation11 + $0xd0] sm:$0xff]  }
 0x2a8   : > { %v15707_v55 = vadd.f32 %v12806_v14, %v15381_v46  ;;  %v6843_v46 = vld [vmem:[#allocation3 + $0x4] sm:$0xf]  ;;  %v6891_v14 = vshrl.u32 %v6842_v6, 16  ;;  %v6844_v33 = vld [vmem:[#allocation3 + $0x8] sm:$0x1]  ;;  %13106 = vmatpush3.bf16.msra.mxu0 %v13916_v2 }
 0x2a9   : > { %v15704_v29 = vpop.f32.mrf.mxu1  ;;  %v6900_v50 = vshll.u32 %v6843_v46, 16  ;;  %v6910_v8 = vshll.u32 %v6844_v33, 16  ;;  %13107 = vmatprep.subr.bf16.mxu0 %v13918_v28  ;;  %v13917_v33 = vld [vmem:[#allocation11] sm:$0xff]  }
 0x2aa   : > { %17541 = vst [vmem:[#allocation48_spill] sm:$0xff] %v15704_v29  ;;  %17542 = vst [vmem:[#allocation49_spill] sm:$0xff] %v15707_v55  ;;  %v6893_v9 = vrot.slane %v6891_v14, 4 }
 0x2ab   : > { %v15711_v62 = vpop.f32.mrf.mxu1  ;;  %v12807_v63 = vpop.f32.mrf.mxu0  ;;  %v6902_v51 = vrot.slane %v6900_v50, 5  ;;  %v6912_v49 = vrot.slane %v6910_v8, 5  ;;  %v13919_v50 = vld [vmem:[#allocation11 + $0x90] sm:$0xff]  }
 0x2ac   : > { %17543 = vst [vmem:[#allocation50_spill] sm:$0xff] %v15711_v62  ;;  %v6904_v62 = vshrl.u32 %v6843_v46, 16  ;;  %v6897_v37 = vor.u32 %v6896_v52, %v6893_v9  ;;  %v13915_v52 = vld [vmem:[#allocation11 + $0x40] sm:$0xff]   ;;  %v6779_v9 = vld [vmem:[#allocation3 + $0x4] sm:$0xf]  ;;  %13108 = vmatpush3.bf16.msra.mxu0 %v13919_v50 }
 0x2ad   : > { %v15715_v59 = vpop.f32.mrf.mxu1  ;;  %v12808_v55 = vpop.f32.mrf.mxu0  ;;  %6811 = vst [vmem:[#allocation5 + $0x24] sm:$0xf] %v6779_v9  ;;  %12999 = vmatprep.subr.bf16.mxu1 %v13915_v52  ;;  %v617_v50 = vld [vmem:[#allocation3 + $0x5c] sm:$0x1] }
 0x2ae   : > { %17544 = vst [vmem:[#allocation51_spill] sm:$0xff] %v15715_v59  ;;  %v12809_v60 = vadd.f32 %v12808_v55, %v12807_v63  ;;  %v6906_v18 = vrot.slane %v6904_v62, 4  ;;  %v563_v63 = vld [vmem:[#allocation3 + $0x54] sm:$0x1]  ;;  %v6898_v14 = vrot.slane %v6897_v37, 4  ;;  %13000 = vmatpush3.bf16.msra.mxu1 %v13917_v33 }
 0x2af   : > { %v15719_v29 = vpop.f32.mrf.mxu1  ;;  %v12810_v59 = vpop.f32.mrf.mxu0  ;;  %v564_v27 = vsel %vm14540_vm3, 0, %v563_v63  ;;  %v572_v33 = vld [vmem:[#allocation3 + $0x78] sm:$0x1] }
 0x2b0   : > { %17545 = vst [vmem:[#allocation52_spill] sm:$0xff] %v15719_v29  ;;  %v15722_v6 = vadd.f32 %v12809_v60, %v15397_v30  ;;  %v6907_v46 = vor.u32 %v6906_v18, %v6902_v51  ;;  %565 = vst [vmem:[#allocation3 + $0x54] sm:$0x1] %v564_v27  ;;  %v6778_v18 = vld [vmem:[#allocation3] sm:$0xf] }
 0x2b1   : > { %v12811_v38 = vpop.f32.mrf.mxu0  ;;  %6810 = vst [vmem:[#allocation5] sm:$0xf] %v6778_v18  ;;  %v7339_v60 = vld [vmem:[#allocation3 + $0x4] sm:$0xf] }
 0x2b2   : > { %v12812_v55 = vadd.f32 %v12811_v38, %v12810_v59  ;;  %v6908_v62 = vrot.slane %v6907_v46, 4  ;;  %v6903_v38 = vsel %vm14591_vm12, %v6898_v14, %v6902_v51  ;;  %v7338_v59 = vld [vmem:[#allocation3] sm:$0xe]  ;;  %v7436_v46 = vrot.slane %v7339_v60, 5 }
 0x2b3   : > { %7306 = vst [vmem:[#allocation5 + $0x4] sm:$0xf] %v6903_v38  ;;  %v12176_v37 = vrot.slane %v7338_v59, 9  ;;  %v13921_v59 = vld [vmem:[#allocation11 + $0x88] sm:$0xff]  }
 0x2b4   : > { %v15724_v15 = vpop.f32.mrf.mxu1  ;;  %v15731_v30 = vadd.f32 %v12812_v55, %v15407_v61  ;;  %v6913_v8 = vsel %vm14591_vm12, %v6908_v62, %v6912_v49  ;;  %v620_v61 = vld [vmem:[#allocation3 + $0x68] sm:$0x1]  ;;  %v13920_v62 = vld [vmem:[#allocation11 + $0xc8] sm:$0xff]   ;;  %v7438_v52 = vrot.slane %v7436_v46, 4 }
 0x2b5   : > { %7307 = vst [vmem:[#allocation5 + $0x28] sm:$0xf] %v6913_v8  ;;  %v621_v51 = vsel %vm14545_vm4, 0, %v620_v61  ;;  %v7437_v28 = vsel %vm14575_vm9, %v12176_v37, %v7436_v46  ;;  %v7340_v49 = vld [vmem:[#allocation3 + $0x8] sm:$0x1]  ;;  %v618_v8 = vsel %vm14545_vm4, 0, %v617_v50  ;;  %13109 = vmatprep.subr.bf16.mxu0 %v13920_v62 }
 0x2b6   : > { %v15728_v29 = vpop.f32.mrf.mxu1  ;;  %622 = vst [vmem:[#allocation3 + $0x68] sm:$0x1] %v621_v51  ;;  %7578 = vst [vmem:[#allocation5 + $0x8] sm:$0xf] %v7437_v28  ;;  %v7439_v18 = vrot.slane %v7340_v49, 5  ;;  %13110 = vmatpush3.bf16.msra.mxu0 %v13921_v59  ;;  %v573_v46 = vsel %vm14540_vm3, 0, %v572_v33 }
 0x2b7   : > { %619 = vst [vmem:[#allocation3 + $0x5c] sm:$0x1] %v618_v8  ;;  %574 = vst [vmem:[#allocation3 + $0x78] sm:$0x1] %v573_v46  ;;  %v13925_v49 = vld [vmem:[#allocation11 + $0xc0] sm:$0xff]  }
 0x2b8   : > { %v12813_v2 = vpop.f32.mrf.mxu0  ;;  %v15737_v55 = vpop.f32.mrf.mxu1  ;;  %v13922_v37 = vld [vmem:[#allocation5] ss:$36 sps:$4 sm:$0xff]   ;;  %13111 = vmatprep.subr.bf16.mxu0 %v13925_v49  ;;  %v626_v8 = vld [vmem:[#allocation3 + $0x80] sm:$0x1]  ;;  %v623_v46 = vld [vmem:[#allocation3 + $0x74] sm:$0x1] }
 0x2ba   : > { %v12814_v63 = vpop.f32.mrf.mxu0  ;;  %v15743_v9 = vpop.f32.mrf.mxu1 }
 0x2bb   : > { %v12815_v14 = vadd.f32 %v12814_v63, %v12813_v2  ;;  %v7440_v2 = vsel %vm14575_vm9, %v7438_v52, %v7439_v18  ;;  %v17546_v63 = vld [vmem:[#allocation22_spill] sm:$0xff] }
 0x2bc   : > { %v12816_v27 = vpop.f32.mrf.mxu0  ;;  %7579 = vst [vmem:[#allocation5 + $0x2c] sm:$0xf] %v7440_v2 }
 0x2bd   : > { %v15746_v38 = vadd.f32 %v12815_v14, %v15409_v17  ;;  %v13924_v17 = vld [vmem:[#allocation5 + $0x4] ss:$36 sps:$4 sm:$0xff]   ;;  %v569_v14 = vld [vmem:[#allocation3 + $0x6c] sm:$0x1] }
 0x2be   : > { %v12817_v60 = vpop.f32.mrf.mxu0  ;;  %v570_v50 = vsel %vm14540_vm3, 0, %v569_v14  ;;  %10779 = vmatprep.mubr.bf16.mxu1 %v13924_v17  ;;  %v578_v14 = vld [vmem:[#allocation3 + $0x90] sm:$0x1] }
 0x2bf   : > { %v12818_v61 = vadd.f32 %v12817_v60, %v12816_v27  ;;  %v13926_v27 = vld [vmem:[#allocation11 + $0x80] sm:$0xff]   ;;  %571 = vst [vmem:[#allocation3 + $0x6c] sm:$0x1] %v570_v50  ;;  %10780 = vmatmul.mubr.bf16.vlgmr.msra.gmra.mxu1 %v13922_v37  ;;  %v627_v60 = vsel %vm14545_vm4, 0, %v626_v8  ;;  %v624_v37 = vsel %vm14545_vm4, 0, %v623_v46 }
 0x2c0   : > { %13112 = vmatpush3.bf16.msra.mxu0 %v13926_v27  ;;  %628 = vst [vmem:[#allocation3 + $0x80] sm:$0x1] %v627_v60  ;;  %625 = vst [vmem:[#allocation3 + $0x74] sm:$0x1] %v624_v37  ;;  %v579_v27 = vsel %vm14540_vm3, 0, %v578_v14 }
 0x2c1   : > { %v15757_v28 = vadd.f32 %v12818_v61, %v17546_v63  ;;  %580 = vst [vmem:[#allocation3 + $0x90] sm:$0x1] %v579_v27  ;;  %v632_v37 = vld [vmem:[#allocation3 + $0x98] sm:$0x1] }
 0x2c2   : > { %v15754_v51 = vpop.f32.mrf.mxu1 }
 0x2c4   : > { %v15761_v62 = vpop.f32.mrf.mxu1 }
 0x2c5   : > { %v12819_v18 = vpop.f32.mrf.mxu0 }
 0x2c6   : > { %v15763_v52 = vpop.f32.mrf.mxu1 }
 0x2c7   : > { %v12820_v59 = vpop.f32.mrf.mxu0 }
 0x2c8   : > { %v15767_v2 = vpop.f32.mrf.mxu1  ;;  %v12821_v61 = vadd.f32 %v12820_v59, %v12819_v18 }
 0x2c9   : > { %v12822_v33 = vpop.f32.mrf.mxu0 }
 0x2ca   : > { %v15770_v17 = vadd.f32 %v12821_v61, %v15430_v39  ;;  %v575_v39 = vld [vmem:[#allocation3 + $0x84] sm:$0x1] }
 0x2cb   : > { %v12823_v63 = vpop.f32.mrf.mxu0  ;;  %v576_v59 = vsel %vm14540_vm3, 0, %v575_v39 }
 0x2cc   : > { %17547 = vst [vmem:[#allocation22_spill] sm:$0xff] %v15770_v17  ;;  %v12824_v50 = vadd.f32 %v12823_v63, %v12822_v33  ;;  %577 = vst [vmem:[#allocation3 + $0x84] sm:$0x1] %v576_v59  ;;  %v633_v63 = vsel %vm14545_vm4, 0, %v632_v37  ;;  %v630_v59 = vsel %vm14545_vm4, 0, %v629_v19 }
 0x2cd   : > { %634 = vst [vmem:[#allocation3 + $0x98] sm:$0x1] %v633_v63  ;;  %631 = vst [vmem:[#allocation3 + $0x8c] sm:$0x1] %v630_v59 }
 0x2ce   : > { %v15774_v49 = vpop.f32.mrf.mxu1  ;;  %v15781_v8 = vadd.f32 %v12824_v50, %v15434_v20 }
 0x2d0   : > { %v15778_v18 = vpop.f32.mrf.mxu1  ;;  %17548 = vst [vmem:[#allocation53_spill] sm:$0xff] %v15781_v8 }
 0x2d2   : > { %v15785_v61 = vpop.f32.mrf.mxu1 }
 0x2d3   : > { %v12825_v60 = vpop.f32.mrf.mxu0 }
 0x2d4   : > { %v15792_v20 = vpop.f32.mrf.mxu1 }
 0x2d5   : > { %v12826_v46 = vpop.f32.mrf.mxu0 }
 0x2d6   : > { %v12827_v33 = vadd.f32 %v12826_v46, %v12825_v60  ;;  %v584_v46 = vld [vmem:[#allocation3 + $0xa8] sm:$0x1] }
 0x2d7   : > { %v12828_v14 = vpop.f32.mrf.mxu0 }
 0x2d8   : > { %v15790_v27 = vadd.f32 %v12827_v33, %v15463_v3  ;;  %v585_v3 = vsel %vm14540_vm3, 0, %v584_v46 }
 0x2d9   : > { %v12829_v50 = vpop.f32.mrf.mxu0  ;;  %586 = vst [vmem:[#allocation3 + $0xa8] sm:$0x1] %v585_v3  ;;  %v581_v3 = vld [vmem:[#allocation3 + $0x9c] sm:$0x1] }
 0x2da   : > { %17549 = vst [vmem:[#allocation54_spill] sm:$0xff] %v15790_v27  ;;  %v12830_v39 = vadd.f32 %v12829_v50, %v12828_v14  ;;  %v13930_v50 = vld [vmem:[#allocation11 + $0x178] sm:$0xff]  }
 0x2db   : > { %13209 = vmatprep.subr.bf16.mxu1 %v13930_v50 }
 0x2dc   : > { %v15797_v58 = vadd.f32 %v12830_v39, %v15470_v11 }
 0x2dd   : > { %v15799_v60 = vpop.f32.mrf.mxu1 }
 0x2de   : > { %17550 = vst [vmem:[#allocation55_spill] sm:$0xff] %v15797_v58  ;;  %v13931_v58 = vld [vmem:[#allocation11 + $0x138] sm:$0xff]  }
 0x2df   : > { %v15803_v63 = vpop.f32.mrf.mxu1  ;;  %13210 = vmatpush3.bf16.msra.mxu1 %v13931_v58 }
 0x2e0   : > { %v12831_v37 = vpop.f32.mrf.mxu0 }
 0x2e1   : > { %v15808_v11 = vpop.f32.mrf.mxu1 }
 0x2e2   : > { %v12832_v33 = vpop.f32.mrf.mxu0 }
 0x2e3   : > { %v12833_v27 = vadd.f32 %v12832_v33, %v12831_v37  ;;  %v15813_v46 = vpop.f32.mrf.mxu1  ;;  %v582_v37 = vsel %vm14540_vm3, 0, %v581_v3 }
 0x2e4   : > { %v12834_v14 = vpop.f32.mrf.mxu0  ;;  %583 = vst [vmem:[#allocation3 + $0x9c] sm:$0x1] %v582_v37 }
 0x2e5   : > { %v15806_v19 = vadd.f32 %v12833_v27, %v15481_v21 }
 0x2e6   : > { %v12835_v59 = vpop.f32.mrf.mxu0 }
 0x2e7   : > { %v12836_v39 = vadd.f32 %v12835_v59, %v12834_v14 }
 0x2e9   : > { %v15811_v8 = vadd.f32 %v12836_v39, %v15498_v45  ;;  %v638_v45 = vld [vmem:[#allocation3 + $0xb0] sm:$0x1] }
 0x2ea   : > { %v15817_v27 = vpop.f32.mrf.mxu1 }
 0x2eb   : > { %17551 = vst [vmem:[#allocation56_spill] sm:$0xff] %v15811_v8  ;;  %v639_v8 = vsel %vm14545_vm4, 0, %v638_v45  ;;  %v17558_v45 = vld [vmem:[#allocation27_spill] sm:$0xff] }
 0x2ec   : > { %v15822_v39 = vpop.f32.mrf.mxu1  ;;  %640 = vst [vmem:[#allocation3 + $0xb0] sm:$0x1] %v639_v8  ;;  %v12882_v8 = vadd.f32 %v15605_v7, %v15603_v5  ;;  %v17553_v5 = vld [vmem:[#allocation38_spill] sm:$0xff] }
 0x2ee   : > { %v12837_v17 = vpop.f32.mrf.mxu0  ;;  %v15829_v37 = vpop.f32.mrf.mxu1 }
 0x2f0   : > { %v12838_v21 = vpop.f32.mrf.mxu0 }
 0x2f1   : > { %v12839_v33 = vadd.f32 %v12838_v21, %v12837_v17  ;;  %v12867_v17 = vadd.f32 %v15557_v56, %v15551_v41  ;;  %v15835_v21 = vpop.f32.mrf.mxu1  ;;  %v12885_v41 = vadd.f32 %v15615_v43, %v15610_v0  ;;  %v17554_v43 = vld [vmem:[#allocation25_spill] sm:$0xff] }
 0x2f2   : > { %v12840_v50 = vpop.f32.mrf.mxu0 }
 0x2f3   : > { %v15820_v14 = vadd.f32 %v12839_v33, %v15515_v31  ;;  %v12870_v31 = vadd.f32 %v15572_v48, %v15564_v34  ;;  %v12873_v33 = vadd.f32 %v15584_v42, %v15582_v44  ;;  %v15848_v56 = vadd.f32 %v12867_v17, %v15562_v22 }
 0x2f4   : > { %v12841_v59 = vpop.f32.mrf.mxu0  ;;  %v12888_v48 = vadd.f32 %v15619_v36, %v15617_v40  ;;  %v12891_v44 = vadd.f32 %v15629_v4, %v15624_v1  ;;  %v12894_v42 = vadd.f32 %v15633_v26, %v15631_v35  ;;  %v12897_v22 = vadd.f32 %v15643_v12, %v15638_v32  ;;  %v17555_v36 = vld [vmem:[#allocation39_spill] sm:$0xff]  ;;  %v17556_v26 = vld [vmem:[#allocation40_spill] sm:$0xff]  ;;  %v17557_v35 = vld [vmem:[#allocation26_spill] sm:$0xff] }
 0x2f5   : > { %v12842_v58 = vadd.f32 %v12841_v59, %v12840_v50  ;;  %v12876_v50 = vadd.f32 %v15591_v54, %v15589_v13  ;;  %v635_v59 = vld [vmem:[#allocation3 + $0xa4] sm:$0x1]  ;;  %v15861_v54 = vadd.f32 %v12870_v31, %v15575_v53  ;;  %v5792_v40 = vadd.f32 %v12873_v33, %v17554_v43  ;;  %v17560_v12 = vld [vmem:[#allocation28_spill] sm:$0xff]  ;;  %v17564_v31 = vld [vmem:[#allocation45_spill] sm:$0xff] }
 0x2f6   : > { %v636_v34 = vsel %vm14545_vm4, 0, %v635_v59  ;;  %v12906_v1 = vadd.f32 %v17556_v26, %v17555_v36  ;;  %v15879_v32 = vadd.f32 %v12882_v8, %v17560_v12  ;;  %v17565_v59 = vld [vmem:[#allocation46_spill] sm:$0xff]  ;;  %v17566_v33 = vld [vmem:[#allocation48_spill] sm:$0xff]  ;;  %v17568_v36 = vld [vmem:[#allocation29_spill] sm:$0xff] }
 0x2f7   : > { %v15827_v3 = vadd.f32 %v12842_v58, %v15519_v57  ;;  %v12879_v57 = vadd.f32 %v15601_v10, %v15596_v16  ;;  %637 = vst [vmem:[#allocation3 + $0xa4] sm:$0x1] %v636_v34  ;;  %v12900_v16 = vadd.f32 %v15649_v23, %v15647_v47  ;;  %v17552_v10 = vld [vmem:[#allocation36_spill] sm:$0xff]  ;;  %v15873_v53 = vadd.f32 %v12876_v50, %v17557_v35  ;;  %v17562_v47 = vld [vmem:[#allocation42_spill] sm:$0xff]  ;;  %v17563_v23 = vld [vmem:[#allocation43_spill] sm:$0xff] }
 0x2f8   : > { %v12903_v7 = vadd.f32 %v17553_v5, %v17552_v10  ;;  %17561 = vst [vmem:[#allocation38_spill] sm:$0xff] %v15879_v32  ;;  %v12909_v17 = vadd.f32 %v17563_v23, %v17562_v47  ;;  %v12912_v34 = vadd.f32 %v17565_v59, %v17564_v31  ;;  %v17567_v10 = vld [vmem:[#allocation50_spill] sm:$0xff]  ;;  %v15888_v26 = vadd.f32 %v12885_v41, %v17568_v36  ;;  %v17570_v8 = vld [vmem:[#allocation31_spill] sm:$0xff]  ;;  %v17571_v32 = vld [vmem:[#allocation32_spill] sm:$0xff] }
 0x2f9   : > { %v15876_v58 = vadd.f32 %v12879_v57, %v17558_v45  ;;  %v12915_v5 = vadd.f32 %v17567_v10, %v17566_v33  ;;  %v17569_v57 = vld [vmem:[#allocation30_spill] sm:$0xff]  ;;  %v15894_v12 = vadd.f32 %v12891_v44, %v17570_v8  ;;  %v15897_v47 = vadd.f32 %v12894_v42, %v17571_v32  ;;  %v17572_v23 = vld [vmem:[#allocation51_spill] sm:$0xff]  ;;  %v17573_v31 = vld [vmem:[#allocation52_spill] sm:$0xff] }
 0x2fa   : > { %v15891_v45 = vadd.f32 %v12888_v48, %v17569_v57  ;;  %v12918_v59 = vadd.f32 %v17573_v31, %v17572_v23  ;;  %v17574_v33 = vld [vmem:[#allocation33_spill] sm:$0xff]  ;;  %v17575_v41 = vld [vmem:[#allocation34_spill] sm:$0xff]  ;;  %v12921_v48 = vadd.f32 %v15728_v29, %v15724_v15  ;;  %v12924_v44 = vadd.f32 %v15743_v9, %v15737_v55  ;;  %v17577_v32 = vld [vmem:[#allocation23_spill] sm:$0xff] }
 0x2fb   : > { %17559 = vst [vmem:[#allocation36_spill] sm:$0xff] %v15876_v58  ;;  %v15902_v10 = vadd.f32 %v12897_v22, %v17574_v33  ;;  %v15905_v36 = vadd.f32 %v12900_v16, %v17575_v41  ;;  %v17578_v8 = vld [vmem:[#allocation37_spill] sm:$0xff]  ;;  %v590_v22 = vld [vmem:[#allocation3 + $0xc0] sm:$0x1]  ;;  %v12927_v9 = vadd.f32 %v15761_v62, %v15754_v51  ;;  %v15944_v51 = vld [vmem:[%s17463_s5] ss:$0 sm:$0xff] }
 0x2fc   : > { %v15918_v23 = vadd.f32 %v12906_v1, %v17578_v8  ;;  %v17579_v16 = vld [vmem:[#allocation41_spill] sm:$0xff]  ;;  %v591_v29 = vsel %vm14540_vm3, 0, %v590_v22  ;;  %v12930_v1 = vadd.f32 %v15767_v2, %v15763_v52  ;;  %v12936_v8 = vadd.f32 %v15792_v20, %v15785_v61 }
 0x2fd   : > { %v15921_v33 = vadd.f32 %v12909_v17, %v17579_v16  ;;  %v587_v55 = vld [vmem:[#allocation3 + $0xb4] sm:$0x1]  ;;  %592 = vst [vmem:[#allocation3 + $0xc0] sm:$0x1] %v591_v29  ;;  %v15958_v61 = vadd.f32 %v12924_v44, %v15731_v30  ;;  %v12939_v20 = vadd.f32 %v15803_v63, %v15799_v60  ;;  %v15976_v63 = vadd.f32 %v12927_v9, %v15746_v38  ;;  %v13947_v38 = vld [vmem:[#allocation11 + $0x170] sm:$0xff]  }
 0x2fe   : > { %v588_v17 = vsel %vm14540_vm3, 0, %v587_v55  ;;  %v17582_v52 = vld [vmem:[#allocation49_spill] sm:$0xff]  ;;  %v641_v55 = vld [vmem:[#allocation3 + $0xbc] sm:$0x1]  ;;  %13211 = vmatprep.subr.bf16.mxu1 %v13947_v38 }
 0x2ff   : > { %v15947_v2 = vadd.f32 %v12918_v59, %v17582_v52  ;;  %589 = vst [vmem:[#allocation3 + $0xb4] sm:$0x1] %v588_v17  ;;  %v12942_v59 = vadd.f32 %v15813_v46, %v15808_v11  ;;  %v15979_v11 = vadd.f32 %v12930_v1, %v15757_v28  ;;  %v17585_v29 = vld [vmem:[#allocation53_spill] sm:$0xff]  ;;  %v17586_v1 = vld [vmem:[#allocation54_spill] sm:$0xff]  ;;  %v17587_v17 = vld [vmem:[#allocation56_spill] sm:$0xff] }
 0x306   : > { %v15858_v13 = vpop.f32.mrf.mxu1 }
 0x308   : > { %v12843_v0 = vpop.f32.mrf.mxu0  ;;  %v12950_v4 = vpop.f32.mrf.mxu1 }
 0x309   : > { %v12951_v46 = vadd.f32 %v12950_v4, %v15858_v13  ;;  %v642_v4 = vsel %vm14545_vm4, 0, %v641_v55 }
 0x30a   : > { %v12844_v43 = vpop.f32.mrf.mxu0  ;;  %v12952_v50 = vpop.f32.mrf.mxu1  ;;  %643 = vst [vmem:[#allocation3 + $0xbc] sm:$0x1] %v642_v4 }
 0x30b   : > { %v12845_v35 = vadd.f32 %v12844_v43, %v12843_v0  ;;  %v17576_v0 = vld [vmem:[#allocation35_spill] sm:$0xff] }
 0x30c   : > { %v12846_v58 = vpop.f32.mrf.mxu0  ;;  %v15908_v43 = vadd.f32 %v12903_v7, %v17576_v0  ;;  %v12953_v42 = vpop.f32.mrf.mxu1  ;;  %v17580_v7 = vld [vmem:[#allocation44_spill] sm:$0xff]  ;;  %v17581_v0 = vld [vmem:[#allocation47_spill] sm:$0xff] }
 0x30d   : > { %v15915_v57 = vadd.f32 %v12845_v35, %v17577_v32  ;;  %v15924_v41 = vadd.f32 %v12912_v34, %v17580_v7  ;;  %v15927_v15 = vadd.f32 %v12915_v5, %v17581_v0  ;;  %v644_v34 = vld [vmem:[#allocation3 + $0xc8] sm:$0x1]  ;;  %v12933_v5 = vadd.f32 %v15778_v18, %v15774_v49 }
 0x30e   : > { %v12847_v31 = vpop.f32.mrf.mxu0  ;;  %v12955_v35 = vpop.f32.mrf.mxu1  ;;  %v15955_v18 = vadd.f32 %v12921_v48, %v15722_v6  ;;  %v12945_v7 = vadd.f32 %v15822_v39, %v15817_v27  ;;  %v12948_v0 = vadd.f32 %v15835_v21, %v15829_v37  ;;  %v15971_v6 = vld [vmem:[%s17464_s6] ss:$0 sm:$0xff]  ;;  %v12954_v27 = vadd.f32 %v12953_v42, %v12952_v50  ;;  %v17584_v21 = vld [vmem:[#allocation22_spill] sm:$0xff] }
 0x30f   : > { %v12848_v32 = vadd.f32 %v12847_v31, %v12846_v58  ;;  %v645_v58 = vsel %vm14545_vm4, 0, %v644_v34  ;;  %v17583_v31 = vld [vmem:[#allocation24_spill] sm:$0xff]  ;;  %v15988_v44 = vadd.f32 %v12933_v5, %v17584_v21  ;;  %v17588_v5 = vld [vmem:[#allocation55_spill] sm:$0xff] }
 0x310   : > { %v13475_v62 = vpop.f32.mrf.mxu0  ;;  %v12956_v22 = vpop.f32.mrf.mxu1  ;;  %646 = vst [vmem:[#allocation3 + $0xc8] sm:$0x1] %v645_v58  ;;  %v15985_v39 = vld [vmem:[%s17465_s7] ss:$0 sm:$0xff]  ;;  %v15999_v42 = vadd.f32 %v12945_v7, %v15806_v19  ;;  %v16005_v34 = vadd.f32 %v12948_v0, %v17587_v17 }
 0x311   : > { %v15952_v16 = vadd.f32 %v12848_v32, %v17583_v31  ;;  %v5953_v49 = vadd.f32 %v13475_v62, %v5792_v40  ;;  %v16002_v32 = vadd.f32 %v12939_v20, %v17586_v1  ;;  %v16013_v58 = vadd.f32 %v12956_v22, %v12955_v35 }
 0x312   : > { %v5944_v30 = vpop.f32.mrf.mxu0  ;;  %v12958_v40 = vpop.f32.mrf.mxu1  ;;  %v16017_v20 = vadd.f32 %v12951_v46, %v15820_v14 }
 0x313   : > { %v6079_v48 = vmul.f32 %v15944_v51, %v5953_v49  ;;  %v5945_v60 = vadd.f32 %v5944_v30, %v15848_v56  ;;  %v15991_v56 = vadd.f32 %v12936_v8, %v17585_v29  ;;  %v16008_v8 = vadd.f32 %v12942_v59, %v17588_v5  ;;  %v6673_v5 = vld [vmem:[#allocation3 + $0x18] sm:$0xf] }
 0x314   : > { %v13476_v37 = vpop.f32.mrf.mxu0  ;;  %v12959_v62 = vpop.f32.mrf.mxu1  ;;  %v16020_v59 = vadd.f32 %v12954_v27, %v15827_v3  ;;  %v17589_v3 = vld [vmem:[#allocation36_spill] sm:$0xff] }
 0x315   : > { %v6117_v28 = vadd.f32 %v15971_v6, %v6079_v48  ;;  %v6077_v9 = vmul.f32 %v15944_v51, %v5945_v60  ;;  %v5956_v13 = vadd.f32 %v13476_v37, %v15873_v53  ;;  %v16024_v48 = vadd.f32 %v12959_v62, %v12958_v40 }
 0x316   : > { %v5947_v50 = vpop.f32.mrf.mxu0 }
 0x317   : > { %vm6149_vm15 = vcmp.gt.f32.partialorder %v6117_v28, 0.0  ;;  %v6187_v53 = vmul.f32 %v15985_v39, %v6117_v28  ;;  %v6115_v52 = vadd.f32 %v15971_v6, %v6077_v9  ;;  %v6080_v19 = vmul.f32 %v15944_v51, %v5956_v13 }
 0x318   : > { %v5948_v31 = vadd.f32 %v5947_v50, %v15861_v54  ;;  %v13479_v49 = vpop.f32.mrf.mxu0 }
 0x319   : > { %v6219_v7 = vsel %vm6149_vm15, %v6117_v28, %v6187_v53  ;;  %vm6147_vm0 = vcmp.gt.f32.partialorder %v6115_v52, 0.0  ;;  %v6185_v0 = vmul.f32 %v15985_v39, %v6115_v52  ;;  %v6118_v30 = vadd.f32 %v15971_v6, %v6080_v19 }
 0x31a   : > { %v12482_v60 = vpack.c.bf16 %v6219_v7, %v6219_v7  ;;  %v6078_v35 = vmul.f32 %v15944_v51, %v5948_v31  ;;  %v5969_v54 = vadd.f32 %v13479_v49, %v15888_v26  ;;  %v5960_v22 = vpop.f32.mrf.mxu0 }
 0x31b   : > { %v6217_v37 = vsel %vm6147_vm0, %v6115_v52, %v6185_v0  ;;  %vm6150_vm1 = vcmp.gt.f32.partialorder %v6118_v30, 0.0  ;;  %v6188_v14 = vmul.f32 %v15985_v39, %v6118_v30  ;;  %v5961_v46 = vadd.f32 %v5960_v22, %v17589_v3 }
 0x31c   : > { %v6363_v27 = vshrl.u32 %v12482_v60, 16  ;;  %v6366_v21 = vshll.u32 %v12482_v60, 16  ;;  %v12480_v29 = vpack.c.bf16 %v6217_v37, %v6217_v37  ;;  %v6116_v38 = vadd.f32 %v15971_v6, %v6078_v35  ;;  %v13480_v55 = vpop.f32.mrf.mxu0 }
 0x31d   : > { %v6220_v40 = vsel %vm6150_vm1, %v6118_v30, %v6188_v14  ;;  %v6083_v28 = vmul.f32 %v15944_v51, %v5969_v54  ;;  %v6081_v9 = vmul.f32 %v15944_v51, %v5961_v46  ;;  %v5972_v26 = vadd.f32 %v13480_v55, %v15891_v45  ;;  %v6666_v30 = vld [vmem:[#allocation3 + $0xc] sm:$0xf] }
 0x31e   : > { %v6365_v13 = vrot.slane %v6363_v27, 7  ;;  %v6346_v4 = vshrl.u32 %v12480_v29, 16  ;;  %v6349_v50 = vshll.u32 %v12480_v29, 16  ;;  %v12483_v1 = vpack.c.bf16 %v6220_v40, %v6220_v40  ;;  %v5963_v17 = vpop.f32.mrf.mxu0  ;;  %v13951_v54 = vld [vmem:[#allocation11 + $0x130] sm:$0xff]  }
 0x31f   : > { %vm6148_vm2 = vcmp.gt.f32.partialorder %v6116_v38, 0.0  ;;  %v6186_v62 = vmul.f32 %v15985_v39, %v6116_v38  ;;  %v6121_v53 = vadd.f32 %v15971_v6, %v6083_v28  ;;  %v6119_v52 = vadd.f32 %v15971_v6, %v6081_v9  ;;  %13212 = vmatpush3.bf16.msra.mxu1 %v13951_v54 }
 0x320   : > { %v6368_v19 = vor.u32 %v6366_v21, %v6365_v13  ;;  %v6369_v31 = vrot.slane %v6365_v13, 4  ;;  %v6348_v49 = vrot.slane %v6346_v4, 7  ;;  %v6371_v7 = vshrl.u32 %v12483_v1, 16  ;;  %v13483_v0 = vpop.f32.mrf.mxu0  ;;  %v6677_v21 = vld [vmem:[#allocation3 + $0x20] sm:$0x1] }
 0x321   : > { %v6374_v45 = vshll.u32 %v12483_v1, 16  ;;  %v6218_v60 = vsel %vm6148_vm2, %v6116_v38, %v6186_v62  ;;  %vm6153_vm5 = vcmp.gt.f32.partialorder %v6121_v53, 0.0  ;;  %v6191_v35 = vmul.f32 %v15985_v39, %v6121_v53 }
 0x322   : > { %v6674_v37 = vsel %vm14597_vm13, %v6368_v19, %v6673_v5  ;;  %v6351_v14 = vor.u32 %v6349_v50, %v6348_v49  ;;  %v6352_v3 = vrot.slane %v6348_v49, 4  ;;  %v6373_v46 = vrot.slane %v6371_v7, 7  ;;  %v5976_v27 = vpop.f32.mrf.mxu0 }
 0x323   : > { %6675 = vst [vmem:[#allocation3 + $0x18] sm:$0xf] %v6674_v37  ;;  %v12481_v29 = vpack.c.bf16 %v6218_v60, %v6218_v60  ;;  %v6223_v55 = vsel %vm6153_vm5, %v6121_v53, %v6191_v35  ;;  %vm6151_vm6 = vcmp.gt.f32.partialorder %v6119_v52, 0.0  ;;  %v6189_v40 = vmul.f32 %v15985_v39, %v6119_v52  ;;  %v17592_v37 = vld [vmem:[#allocation38_spill] sm:$0xff] }
 0x324   : > { %v6667_v38 = vsel %vm14597_vm13, %v6351_v14, %v6666_v30  ;;  %v6376_v28 = vor.u32 %v6374_v45, %v6373_v46  ;;  %v6378_v9 = vrot.slane %v6373_v46, 4  ;;  %v12486_v13 = vpack.c.bf16 %v6223_v55, %v6223_v55  ;;  %v13484_v4 = vpop.f32.mrf.mxu0 }
 0x325   : > { %6668 = vst [vmem:[#allocation3 + $0xc] sm:$0xf] %v6667_v38  ;;  %v6354_v50 = vshrl.u32 %v12481_v29, 16  ;;  %v6357_v1 = vshll.u32 %v12481_v29, 16  ;;  %v6221_v5 = vsel %vm6151_vm6, %v6119_v52, %v6189_v40  ;;  %v6084_v62 = vmul.f32 %v15944_v51, %v5972_v26  ;;  %v6670_v52 = vld [vmem:[#allocation3 + $0x14] sm:$0x1] }
 0x326   : > { %v6377_v53 = vsel %vm14610_vm14, %v6369_v31, %v6376_v28  ;;  %v6678_v49 = vsel %vm14540_vm3, %v6378_v9, %v6677_v21  ;;  %v6397_v7 = vshrl.u32 %v12486_v13, 16  ;;  %v6400_v60 = vshll.u32 %v12486_v13, 16  ;;  %v5979_v35 = vpop.f32.mrf.mxu0  ;;  %v6687_v40 = vld [vmem:[#allocation3 + $0x30] sm:$0xf] }
 0x327   : > { %6676 = vst [vmem:[#allocation3 + $0x1c] sm:$0xf] %v6377_v53  ;;  %6679 = vst [vmem:[#allocation3 + $0x20] sm:$0x1] %v6678_v49  ;;  %v6356_v30 = vrot.slane %v6354_v50, 7  ;;  %v12484_v45 = vpack.c.bf16 %v6221_v5, %v6221_v5  ;;  %v6122_v54 = vadd.f32 %v15971_v6, %v6084_v62  ;;  %v5964_v14 = vadd.f32 %v5963_v17, %v17592_v37 }
 0x328   : > { %v16050_v46 = vrot.slane %v6397_v7, 7  ;;  %v5985_v26 = vadd.f32 %v13483_v0, %v15902_v10  ;;  %v5977_v31 = vadd.f32 %v5976_v27, %v15894_v12  ;;  %v5988_v21 = vadd.f32 %v13484_v4, %v15905_v36  ;;  %v13487_v50 = vpop.f32.mrf.mxu0  ;;  %v13961_v4 = vld [vmem:[#allocation11 + $0x168] sm:$0xff]  }
 0x329   : > { %v6359_v29 = vor.u32 %v6357_v1, %v6356_v30  ;;  %v6361_v55 = vrot.slane %v6356_v30, 4  ;;  %v6380_v38 = vshrl.u32 %v12484_v45, 16  ;;  %v6383_v28 = vshll.u32 %v12484_v45, 16  ;;  %v6680_v62 = vld [vmem:[#allocation3 + $0x24] sm:$0xf]  ;;  %13213 = vmatprep.subr.bf16.mxu1 %v13961_v4 }
 0x32a   : > { %v6402_v9 = vor.u32 %v6400_v60, %v16050_v46  ;;  %v6403_v13 = vrot.slane %v16050_v46, 4  ;;  %vm6154_vm7 = vcmp.gt.f32.partialorder %v6122_v54, 0.0  ;;  %v6192_v17 = vmul.f32 %v15985_v39, %v6122_v54  ;;  %v7612_v5 = vld [vmem:[#allocation3 + $0x18] sm:$0xf]  ;;  %v6684_v46 = vld [vmem:[#allocation3 + $0x2c] sm:$0x1] }
 0x32b   : > { %v6360_v10 = vsel %vm14610_vm14, %v6352_v3, %v6359_v29  ;;  %v6671_v12 = vsel %vm14540_vm3, %v6361_v55, %v6670_v52  ;;  %v16062_v36 = vrot.slane %v6380_v38, 7  ;;  %v6082_v0 = vmul.f32 %v15944_v51, %v5964_v14  ;;  %7644 = vst [vmem:[#allocation5 + $0x54] sm:$0xf] %v7612_v5  ;;  %v6782_v27 = vld [vmem:[#allocation3 + $0x18] sm:$0xf]  ;;  %v13965_v52 = vld [vmem:[#allocation11 + $0x128] sm:$0xff]  }
 0x32c   : > { %6669 = vst [vmem:[#allocation3 + $0x10] sm:$0xf] %v6360_v10  ;;  %6672 = vst [vmem:[#allocation3 + $0x14] sm:$0x1] %v6671_v12  ;;  %v6688_v1 = vsel %vm14597_vm13, %v6402_v9, %v6687_v40  ;;  %v6224_v53 = vsel %vm6154_vm7, %v6122_v54, %v6192_v17  ;;  %v6087_v49 = vmul.f32 %v15944_v51, %v5985_v26  ;;  %v7610_v7 = vld [vmem:[#allocation3 + $0xc] sm:$0xf]  ;;  %v5992_v40 = vpop.f32.mrf.mxu0  ;;  %13214 = vmatpush3.bf16.msra.mxu1 %v13965_v52 }
 0x32d   : > { %v6085_v3 = vmul.f32 %v15944_v51, %v5977_v31  ;;  %v6780_v60 = vld [vmem:[#allocation3 + $0xc] sm:$0xf]  ;;  %6814 = vst [vmem:[#allocation5 + $0x90] sm:$0xf] %v6782_v27  ;;  %6689 = vst [vmem:[#allocation3 + $0x30] sm:$0xf] %v6688_v1  ;;  %v6385_v30 = vor.u32 %v6383_v28, %v16062_v36  ;;  %v12487_v37 = vpack.c.bf16 %v6224_v53, %v6224_v53 }
 0x32e   : > { %v6386_v45 = vrot.slane %v16062_v36, 4  ;;  %v6120_v14 = vadd.f32 %v15971_v6, %v6082_v0  ;;  %7642 = vst [vmem:[#allocation5 + $0xc] sm:$0xf] %v7610_v7  ;;  %6812 = vst [vmem:[#allocation5 + $0x48] sm:$0xf] %v6780_v60  ;;  %v6125_v26 = vadd.f32 %v15971_v6, %v6087_v49  ;;  %v6088_v29 = vmul.f32 %v15944_v51, %v5988_v21 }
 0x32f   : > { %v8443_v54 = vld [vmem:[#allocation3 + $0x18] sm:$0xf]  ;;  %v6123_v31 = vadd.f32 %v15971_v6, %v6085_v3  ;;  %v5980_v55 = vadd.f32 %v5979_v35, %v15897_v47  ;;  %v7613_v38 = vld [vmem:[#allocation3 + $0x1c] sm:$0xf]  ;;  %v6681_v28 = vsel %vm14597_vm13, %v6385_v30, %v6680_v62  ;;  %v6405_v9 = vshrl.u32 %v12487_v37, 16  ;;  %v16088_v3 = vpop.f32.mrf.mxu0 }
 0x330   : > { %8475 = vst [vmem:[#allocation5 + $0x18] sm:$0xf] %v8443_v54  ;;  %v6408_v17 = vshll.u32 %v12487_v37, 16  ;;  %vm6152_vm8 = vcmp.gt.f32.partialorder %v6120_v14, 0.0  ;;  %7645 = vst [vmem:[#allocation5 + $0x78] sm:$0xf] %v7613_v38  ;;  %v6190_v10 = vmul.f32 %v15985_v39, %v6120_v14  ;;  %v6195_v21 = vmul.f32 %v15985_v39, %v6125_v26 }
 0x331   : > { %v6783_v5 = vld [vmem:[#allocation3 + $0x1c] sm:$0xf]  ;;  %6682 = vst [vmem:[#allocation3 + $0x24] sm:$0xf] %v6681_v28  ;;  %vm6157_vm10 = vcmp.gt.f32.partialorder %v6125_v26, 0.0  ;;  %vm6155_vm11 = vcmp.gt.f32.partialorder %v6123_v31, 0.0  ;;  %v6193_v35 = vmul.f32 %v15985_v39, %v6123_v31  ;;  %v6126_v12 = vadd.f32 %v15971_v6, %v6088_v29 }
 0x332   : > { %6815 = vst [vmem:[#allocation5 + $0xb4] sm:$0xf] %v6783_v5  ;;  %v6407_v47 = vrot.slane %v6405_v9, 7  ;;  %v6086_v0 = vmul.f32 %v15944_v51, %v5980_v55  ;;  %v8444_v27 = vld [vmem:[#allocation3 + $0x1c] sm:$0xf]  ;;  %v6222_v1 = vsel %vm6152_vm8, %v6120_v14, %v6190_v10  ;;  %v6227_v62 = vsel %vm6157_vm10, %v6125_v26, %v6195_v21  ;;  %v16099_v9 = vpop.f32.mrf.mxu0 }
 0x333   : > { %v6691_v4 = vld [vmem:[#allocation3 + $0x38] sm:$0x1]  ;;  %v6001_v53 = vadd.f32 %v13487_v50, %v15921_v33  ;;  %v16086_v49 = vadd.f32 %v5992_v40, %v15908_v43  ;;  %8476 = vst [vmem:[#allocation5 + $0x3c] sm:$0xf] %v8444_v27  ;;  %v12485_v30 = vpack.c.bf16 %v6222_v1, %v6222_v1  ;;  %v12490_v37 = vpack.c.bf16 %v6227_v62, %v6227_v62  ;;  %v7611_v52 = vld [vmem:[#allocation3 + $0x10] sm:$0xf] }
 0x334   : > { %v6410_v7 = vor.u32 %v6408_v17, %v6407_v47  ;;  %v6412_v60 = vrot.slane %v6407_v47, 4  ;;  %v6225_v54 = vsel %vm6155_vm11, %v6123_v31, %v6193_v35  ;;  %vm6158_vm15 = vcmp.gt.f32.partialorder %v6126_v12, 0.0  ;;  %7643 = vst [vmem:[#allocation5 + $0x30] sm:$0xf] %v7611_v52  ;;  %v6781_v33 = vld [vmem:[#allocation3 + $0x10] sm:$0xf] }
 0x335   : > { %v6196_v29 = vmul.f32 %v15985_v39, %v6126_v12  ;;  %v6124_v14 = vadd.f32 %v15971_v6, %v6086_v0  ;;  %v6388_v26 = vshrl.u32 %v12485_v30, 16  ;;  %v6391_v55 = vshll.u32 %v12485_v30, 16  ;;  %6813 = vst [vmem:[#allocation5 + $0x6c] sm:$0xf] %v6781_v33  ;;  %v7616_v17 = vld [vmem:[#allocation3 + $0x30] sm:$0xf]  ;;  %v13491_v33 = vpop.f32.mrf.mxu0 }
 0x336   : > { %v6411_v43 = vsel %vm14610_vm14, %v6403_v13, %v6410_v7  ;;  %v6692_v50 = vsel %vm14540_vm3, %v6412_v60, %v6691_v4  ;;  %v6431_v31 = vshrl.u32 %v12490_v37, 16  ;;  %v6434_v40 = vshll.u32 %v12490_v37, 16  ;;  %7648 = vst [vmem:[#allocation5 + $0xe4] sm:$0xf] %v7616_v17  ;;  %v6701_v35 = vld [vmem:[#allocation3 + $0x48] sm:$0xf] }
 0x337   : > { %6690 = vst [vmem:[#allocation3 + $0x34] sm:$0xf] %v6411_v43  ;;  %6693 = vst [vmem:[#allocation3 + $0x38] sm:$0x1] %v6692_v50  ;;  %v12488_v38 = vpack.c.bf16 %v6225_v54, %v6225_v54  ;;  %v6228_v28 = vsel %vm6158_vm15, %v6126_v12, %v6196_v29  ;;  %v6390_v5 = vrot.slane %v6388_v26, 7  ;;  %vm6156_vm0 = vcmp.gt.f32.partialorder %v6124_v14, 0.0 }
 0x338   : > { %v12491_v10 = vpack.c.bf16 %v6228_v28, %v6228_v28  ;;  %v6194_v13 = vmul.f32 %v15985_v39, %v6124_v14  ;;  %v7614_v21 = vld [vmem:[#allocation3 + $0x24] sm:$0xf]  ;;  %v6433_v47 = vrot.slane %v6431_v31, 7  ;;  %v6091_v4 = vmul.f32 %v15944_v51, %v6001_v53  ;;  %v6694_v54 = vld [vmem:[#allocation3 + $0x3c] sm:$0xf] }
 0x339   : > { %v6414_v0 = vshrl.u32 %v12488_v38, 16  ;;  %v6417_v27 = vshll.u32 %v12488_v38, 16  ;;  %7646 = vst [vmem:[#allocation5 + $0x9c] sm:$0xf] %v7614_v21  ;;  %v6393_v1 = vor.u32 %v6391_v55, %v6390_v5  ;;  %v6395_v12 = vrot.slane %v6390_v5, 4  ;;  %v13975_v17 = vld [vmem:[#allocation11 + $0x160] sm:$0xff]  }
 0x33a   : > { %v6439_v62 = vshrl.u32 %v12491_v10, 16  ;;  %v6442_v7 = vshll.u32 %v12491_v10, 16  ;;  %v6784_v60 = vld [vmem:[#allocation3 + $0x24] sm:$0xf]  ;;  %v6436_v30 = vor.u32 %v6434_v40, %v6433_v47  ;;  %v6437_v37 = vrot.slane %v6433_v47, 4  ;;  %v13979_v5 = vld [vmem:[#allocation11 + $0x120] sm:$0xff]   ;;  %13215 = vmatprep.subr.bf16.mxu1 %v13975_v17 }
 0x33b   : > { %v16103_v52 = vrot.slane %v6414_v0, 7  ;;  %v6226_v29 = vsel %vm6156_vm0, %v6124_v14, %v6194_v13  ;;  %6816 = vst [vmem:[#allocation5 + $0xd8] sm:$0xf] %v6784_v60  ;;  %v6786_v43 = vld [vmem:[#allocation3 + $0x30] sm:$0xf]  ;;  %v6394_v53 = vsel %vm14610_vm14, %v6386_v45, %v6393_v1  ;;  %v6685_v50 = vsel %vm14540_vm3, %v6395_v12, %v6684_v46  ;;  %v6008_v1 = vpop.f32.mrf.mxu0  ;;  %13216 = vmatpush3.bf16.msra.mxu1 %v13979_v5 }
 0x33c   : > { %v6441_v26 = vrot.slane %v6439_v62, 7  ;;  %v12489_v55 = vpack.c.bf16 %v6226_v29, %v6226_v29  ;;  %v13927_v31 = vld [vmem:[#allocation5 + $0x8] ss:$36 sps:$4 sm:$0xff]   ;;  %6818 = vst [vmem:[#allocation5 + $0x120] sm:$0xf] %v6786_v43  ;;  %v6702_v14 = vsel %vm14597_vm13, %v6436_v30, %v6701_v35  ;;  %v6129_v45 = vadd.f32 %v15971_v6, %v6091_v4 }
 0x33d   : > { %v13929_v40 = vld [vmem:[#allocation5 + $0xc] ss:$36 sps:$4 sm:$0xff]   ;;  %6683 = vst [vmem:[#allocation3 + $0x28] sm:$0xf] %v6394_v53  ;;  %6686 = vst [vmem:[#allocation3 + $0x2c] sm:$0x1] %v6685_v50  ;;  %v6419_v38 = vor.u32 %v6417_v27, %v16103_v52  ;;  %v6089_v27 = vmul.f32 %v15944_v51, %v16086_v49 }
 0x33e   : > { %v6420_v36 = vrot.slane %v16103_v52, 4  ;;  %v6705_v28 = vld [vmem:[#allocation3 + $0x50] sm:$0x1]  ;;  %6703 = vst [vmem:[#allocation3 + $0x48] sm:$0xf] %v6702_v14  ;;  %v6444_v46 = vor.u32 %v6442_v7, %v6441_v26  ;;  %v6446_v10 = vrot.slane %v6441_v26, 4  ;;  %10940 = vmatprep.mubr.bf16.mxu0 %v13929_v40  ;;  %v6199_v35 = vmul.f32 %v15985_v39, %v6129_v45 }
 0x33f   : > { %v6422_v13 = vshrl.u32 %v12489_v55, 16  ;;  %v6425_v21 = vshll.u32 %v12489_v55, 16  ;;  %v7617_v47 = vld [vmem:[#allocation3 + $0x34] sm:$0xf]  ;;  %v6695_v0 = vsel %vm14597_vm13, %v6419_v38, %v6694_v54  ;;  %vm6161_vm1 = vcmp.gt.f32.partialorder %v6129_v45, 0.0  ;;  %10941 = vmatmul.mubr.bf16.vlgmr.msra.gmra.mxu0 %v13927_v31  ;;  %v13492_v55 = vpop.f32.mrf.mxu0 }
 0x340   : > { %7649 = vst [vmem:[#allocation5 + $0x108] sm:$0xf] %v7617_v47  ;;  %6696 = vst [vmem:[#allocation3 + $0x3c] sm:$0xf] %v6695_v0  ;;  %v6445_v4 = vsel %vm14610_vm14, %v6437_v37, %v6444_v46  ;;  %v6706_v12 = vsel %vm14540_vm3, %v6446_v10, %v6705_v28  ;;  %v6004_v7 = vadd.f32 %v16088_v3, %v15924_v41  ;;  %v6787_v60 = vld [vmem:[#allocation3 + $0x34] sm:$0xf] }
 0x341   : > { %v6424_v62 = vrot.slane %v6422_v13, 7  ;;  %6704 = vst [vmem:[#allocation3 + $0x4c] sm:$0xf] %v6445_v4  ;;  %6707 = vst [vmem:[#allocation3 + $0x50] sm:$0x1] %v6706_v12  ;;  %v6231_v30 = vsel %vm6161_vm1, %v6129_v45, %v6199_v35  ;;  %v6127_v52 = vadd.f32 %v15971_v6, %v6089_v27  ;;  %v5996_v54 = vadd.f32 %v16099_v9, %v15918_v23  ;;  %v13986_v45 = vld [vmem:[#allocation11 + $0x1f8] sm:$0xff]  }
 0x342   : > { %v6698_v49 = vld [vmem:[#allocation3 + $0x44] sm:$0x1]  ;;  %v6017_v37 = vadd.f32 %v13491_v33, %v15955_v18  ;;  %6819 = vst [vmem:[#allocation5 + $0x144] sm:$0xf] %v6787_v60  ;;  %v12494_v53 = vpack.c.bf16 %v6231_v30, %v6231_v30  ;;  %v6092_v41 = vmul.f32 %v15944_v51, %v6004_v7  ;;  %v16143_v33 = vadd.f32 %v16013_v58, %v15915_v57  ;;  %v13987_v57 = vld [vmem:[#allocation11 + $0x1b8] sm:$0xff]  }
 0x343   : > { %v6427_v29 = vor.u32 %v6425_v21, %v6424_v62  ;;  %v6429_v43 = vrot.slane %v6424_v62, 4  ;;  %vm6159_vm2 = vcmp.gt.f32.partialorder %v6127_v52, 0.0  ;;  %v6197_v3 = vmul.f32 %v15985_v39, %v6127_v52  ;;  %v6715_v58 = vld [vmem:[#allocation3 + $0x60] sm:$0xf]  ;;  %v6011_v21 = vpop.f32.mrf.mxu0  ;;  %13321 = vmatprep.subr.bf16.mxu0 %v13986_v45 }
 0x344   : > { %v6090_v50 = vmul.f32 %v15944_v51, %v5996_v54  ;;  %v6095_v26 = vmul.f32 %v15944_v51, %v6017_v37  ;;  %v6465_v18 = vshrl.u32 %v12494_v53, 16  ;;  %v7615_v9 = vld [vmem:[#allocation3 + $0x28] sm:$0xf]  ;;  %v6468_v40 = vshll.u32 %v12494_v53, 16  ;;  %13322 = vmatpush3.bf16.msra.mxu0 %v13987_v57  ;;  %v6708_v54 = vld [vmem:[#allocation3 + $0x54] sm:$0xf] }
 0x345   : > { %v6428_v31 = vsel %vm14610_vm14, %v6420_v36, %v6427_v29  ;;  %v6699_v23 = vsel %vm14540_vm3, %v6429_v43, %v6698_v49  ;;  %v6229_v14 = vsel %vm6159_vm2, %v6127_v52, %v6197_v3  ;;  %v6130_v38 = vadd.f32 %v15971_v6, %v6092_v41  ;;  %7647 = vst [vmem:[#allocation5 + $0xc0] sm:$0xf] %v7615_v9  ;;  %v6785_v10 = vld [vmem:[#allocation3 + $0x28] sm:$0xf]  ;;  %v13495_v41 = vpop.f32.mrf.mxu0 }
 0x346   : > { %6697 = vst [vmem:[#allocation3 + $0x40] sm:$0xf] %v6428_v31  ;;  %6700 = vst [vmem:[#allocation3 + $0x44] sm:$0x1] %v6699_v23  ;;  %v6128_v28 = vadd.f32 %v15971_v6, %v6090_v50  ;;  %v16147_v36 = vrot.slane %v6465_v18, 7  ;;  %v12492_v17 = vpack.c.bf16 %v6229_v14, %v6229_v14  ;;  %v6133_v5 = vadd.f32 %v15971_v6, %v6095_v26  ;;  %v13991_v18 = vld [vmem:[#allocation11 + $0x158] sm:$0xff]  }
 0x347   : > { %v6009_v46 = vadd.f32 %v6008_v1, %v15927_v15  ;;  %vm6162_vm5 = vcmp.gt.f32.partialorder %v6130_v38, 0.0  ;;  %v6200_v13 = vmul.f32 %v15985_v39, %v6130_v38  ;;  %v16154_v47 = vadd.f32 %v16024_v48, %v15952_v16  ;;  %6817 = vst [vmem:[#allocation5 + $0xfc] sm:$0xf] %v6785_v10  ;;  %v7618_v1 = vld [vmem:[#allocation3 + $0x3c] sm:$0xf]  ;;  %13217 = vmatprep.subr.bf16.mxu1 %v13991_v18 }
 0x348   : > { %vm6160_vm6 = vcmp.gt.f32.partialorder %v6128_v28, 0.0  ;;  %v6470_v0 = vor.u32 %v6468_v40, %v16147_v36  ;;  %v6471_v35 = vrot.slane %v16147_v36, 4  ;;  %v6448_v27 = vshrl.u32 %v12492_v17, 16  ;;  %7650 = vst [vmem:[#allocation5 + $0x12c] sm:$0xf] %v7618_v1 }
 0x349   : > { %v6451_v15 = vshll.u32 %v12492_v17, 16  ;;  %v6232_v4 = vsel %vm6162_vm5, %v6130_v38, %v6200_v13  ;;  %v6198_v12 = vmul.f32 %v15985_v39, %v6128_v28  ;;  %vm6165_vm7 = vcmp.gt.f32.partialorder %v6133_v5, 0.0  ;;  %v7620_v7 = vld [vmem:[#allocation3 + $0x48] sm:$0xf]  ;;  %v7621_v30 = vld [vmem:[#allocation3 + $0x4c] sm:$0xf] }
 0x34a   : > { %v6203_v62 = vmul.f32 %v15985_v39, %v6133_v5  ;;  %v6716_v16 = vsel %vm14597_vm13, %v6470_v0, %v6715_v58  ;;  %v16162_v48 = vrot.slane %v6448_v27, 7  ;;  %v12495_v60 = vpack.c.bf16 %v6232_v4, %v6232_v4  ;;  %7652 = vst [vmem:[#allocation5 + $0x174] sm:$0xf] %v7620_v7  ;;  %v6788_v52 = vld [vmem:[#allocation3 + $0x3c] sm:$0xf]  ;;  %v13995_v17 = vld [vmem:[#allocation11 + $0x118] sm:$0xff]   ;;  %v6024_v27 = vpop.f32.mrf.mxu0 }
 0x34b   : > { %v6093_v49 = vmul.f32 %v15944_v51, %v6009_v46  ;;  %6717 = vst [vmem:[#allocation3 + $0x60] sm:$0xf] %v6716_v16  ;;  %v6230_v37 = vsel %vm6160_vm6, %v6128_v28, %v6198_v12  ;;  %v6020_v43 = vadd.f32 %v13492_v55, %v15958_v61  ;;  %v6012_v53 = vadd.f32 %v6011_v21, %v15947_v2  ;;  %v6791_v1 = vld [vmem:[#allocation3 + $0x4c] sm:$0xf] }
 0x34c   : > { %v6235_v29 = vsel %vm6165_vm7, %v6133_v5, %v6203_v62  ;;  %7653 = vst [vmem:[#allocation5 + $0x198] sm:$0xf] %v7621_v30  ;;  %6820 = vst [vmem:[#allocation5 + $0x168] sm:$0xf] %v6788_v52  ;;  %v6453_v3 = vor.u32 %v6451_v15, %v16162_v48  ;;  %v6454_v50 = vrot.slane %v16162_v48, 4  ;;  %v6473_v26 = vshrl.u32 %v12495_v60, 16  ;;  %13218 = vmatpush3.bf16.msra.mxu1 %v13995_v17 }
 0x34d   : > { %v6476_v31 = vshll.u32 %v12495_v60, 16  ;;  %v7619_v23 = vld [vmem:[#allocation3 + $0x40] sm:$0xf]  ;;  %v12493_v9 = vpack.c.bf16 %v6230_v37, %v6230_v37  ;;  %v12498_v40 = vpack.c.bf16 %v6235_v29, %v6235_v29  ;;  %v6131_v14 = vadd.f32 %v15971_v6, %v6093_v49  ;;  %v6719_v5 = vld [vmem:[#allocation3 + $0x68] sm:$0x1] }
 0x34e   : > { %v6096_v38 = vmul.f32 %v15944_v51, %v6020_v43  ;;  %7651 = vst [vmem:[#allocation5 + $0x150] sm:$0xf] %v7619_v23  ;;  %v6789_v61 = vld [vmem:[#allocation3 + $0x40] sm:$0xf]  ;;  %v6709_v2 = vsel %vm14597_vm13, %v6453_v3, %v6708_v54  ;;  %v6475_v55 = vrot.slane %v6473_v26, 7  ;;  %v6094_v28 = vmul.f32 %v15944_v51, %v6012_v53  ;;  %v14002_v3 = vld [vmem:[#allocation11 + $0x1f0] sm:$0xff]  }
 0x34f   : > { %v6033_v45 = vadd.f32 %v13495_v41, %v15988_v44  ;;  %6821 = vst [vmem:[#allocation5 + $0x18c] sm:$0xf] %v6789_v61  ;;  %6710 = vst [vmem:[#allocation3 + $0x54] sm:$0xf] %v6709_v2  ;;  %v6456_v46 = vshrl.u32 %v12493_v9, 16  ;;  %v6459_v10 = vshll.u32 %v12493_v9, 16  ;;  %v6201_v0 = vmul.f32 %v15985_v39, %v6131_v14  ;;  %v13496_v41 = vpop.f32.mrf.mxu0  ;;  %13323 = vmatprep.subr.bf16.mxu0 %v14002_v3 }
 0x350   : > { %v6499_v57 = vshrl.u32 %v12498_v40, 16  ;;  %v6502_v58 = vshll.u32 %v12498_v40, 16  ;;  %v6478_v13 = vor.u32 %v6476_v31, %v6475_v55  ;;  %v6480_v21 = vrot.slane %v6475_v55, 4  ;;  %v6790_v15 = vld [vmem:[#allocation3 + $0x48] sm:$0xf] }
 0x351   : > { %vm6163_vm8 = vcmp.gt.f32.partialorder %v6131_v14, 0.0  ;;  %v6458_v4 = vrot.slane %v6456_v46, 7  ;;  %v6134_v12 = vadd.f32 %v15971_v6, %v6096_v38  ;;  %v6132_v62 = vadd.f32 %v15971_v6, %v6094_v28  ;;  %6822 = vst [vmem:[#allocation5 + $0x1b0] sm:$0xf] %v6790_v15  ;;  %6823 = vst [vmem:[#allocation5 + $0x1d4] sm:$0xf] %v6791_v1  ;;  %v6027_v15 = vpop.f32.mrf.mxu0 }
 0x352   : > { %v16177_v44 = vrot.slane %v6499_v57, 7  ;;  %v6479_v7 = vsel %vm14610_vm14, %v6471_v35, %v6478_v13  ;;  %v6720_v16 = vsel %vm14540_vm3, %v6480_v21, %v6719_v5  ;;  %v6712_v48 = vld [vmem:[#allocation3 + $0x5c] sm:$0x1]  ;;  %v6729_v60 = vld [vmem:[#allocation3 + $0x78] sm:$0xf]  ;;  %v6233_v49 = vsel %vm6163_vm8, %v6131_v14, %v6201_v0  ;;  %v14003_v26 = vld [vmem:[#allocation11 + $0x1b0] sm:$0xff]  }
 0x353   : > { %v6099_v30 = vmul.f32 %v15944_v51, %v6033_v45  ;;  %v7624_v52 = vld [vmem:[#allocation3 + $0x60] sm:$0xf]  ;;  %6718 = vst [vmem:[#allocation3 + $0x64] sm:$0xf] %v6479_v7  ;;  %6721 = vst [vmem:[#allocation3 + $0x68] sm:$0x1] %v6720_v16  ;;  %v6461_v54 = vor.u32 %v6459_v10, %v6458_v4  ;;  %v12496_v43 = vpack.c.bf16 %v6233_v49, %v6233_v49  ;;  %13324 = vmatpush3.bf16.msra.mxu0 %v14003_v26 }
 0x354   : > { %v6463_v37 = vrot.slane %v6458_v4, 4  ;;  %v6504_v29 = vor.u32 %v6502_v58, %v16177_v44  ;;  %v6505_v36 = vrot.slane %v16177_v44, 4  ;;  %7656 = vst [vmem:[#allocation5 + $0x204] sm:$0xf] %v7624_v52  ;;  %v6794_v35 = vld [vmem:[#allocation3 + $0x60] sm:$0xf]  ;;  %v6204_v53 = vmul.f32 %v15985_v39, %v6134_v12 }
 0x355   : > { %vm6166_vm10 = vcmp.gt.f32.partialorder %v6134_v12, 0.0  ;;  %vm6164_vm11 = vcmp.gt.f32.partialorder %v6132_v62, 0.0  ;;  %6826 = vst [vmem:[#allocation5 + $0x240] sm:$0xf] %v6794_v35  ;;  %v6462_v31 = vsel %vm14610_vm14, %v6454_v50, %v6461_v54  ;;  %v6202_v9 = vmul.f32 %v15985_v39, %v6132_v62  ;;  %v6722_v57 = vld [vmem:[#allocation3 + $0x6c] sm:$0xf] }
 0x356   : > { %v6713_v23 = vsel %vm14540_vm3, %v6463_v37, %v6712_v48  ;;  %v6730_v18 = vsel %vm14597_vm13, %v6504_v29, %v6729_v60  ;;  %6711 = vst [vmem:[#allocation3 + $0x58] sm:$0xf] %v6462_v31  ;;  %v6482_v40 = vshrl.u32 %v12496_v43, 16  ;;  %v6485_v14 = vshll.u32 %v12496_v43, 16  ;;  %v7622_v2 = vld [vmem:[#allocation3 + $0x54] sm:$0xf] }
 0x357   : > { %6714 = vst [vmem:[#allocation3 + $0x5c] sm:$0x1] %v6713_v23  ;;  %6731 = vst [vmem:[#allocation3 + $0x78] sm:$0xf] %v6730_v18  ;;  %v6236_v38 = vsel %vm6166_vm10, %v6134_v12, %v6204_v53  ;;  %v6137_v61 = vadd.f32 %v15971_v6, %v6099_v30  ;;  %v6234_v55 = vsel %vm6164_vm11, %v6132_v62, %v6202_v9  ;;  %v6792_v17 = vld [vmem:[#allocation3 + $0x54] sm:$0xf]  ;;  %v13499_v9 = vpop.f32.mrf.mxu0 }
 0x358   : > { %v12499_v50 = vpack.c.bf16 %v6236_v38, %v6236_v38  ;;  %v6025_v28 = vadd.f32 %v6024_v27, %v15976_v63  ;;  %v6036_v45 = vadd.f32 %v13496_v41, %v15991_v56  ;;  %7654 = vst [vmem:[#allocation5 + $0x1bc] sm:$0xf] %v7622_v2  ;;  %v6484_v5 = vrot.slane %v6482_v40, 7  ;;  %6824 = vst [vmem:[#allocation5 + $0x1f8] sm:$0xf] %v6792_v17  ;;  %v14007_v48 = vld [vmem:[#allocation11 + $0x150] sm:$0xff]  }
 0x359   : > { %v12497_v46 = vpack.c.bf16 %v6234_v55, %v6234_v55  ;;  %vm6169_vm15 = vcmp.gt.f32.partialorder %v6137_v61, 0.0  ;;  %v6207_v10 = vmul.f32 %v15985_v39, %v6137_v61  ;;  %v6733_v49 = vld [vmem:[#allocation3 + $0x80] sm:$0x1]  ;;  %v6028_v54 = vadd.f32 %v6027_v15, %v15979_v11  ;;  %v14011_v29 = vld [vmem:[#allocation11 + $0x110] sm:$0xff]   ;;  %v6726_v53 = vld [vmem:[#allocation3 + $0x74] sm:$0x1]  ;;  %13219 = vmatprep.subr.bf16.mxu1 %v14007_v48  ;;  %v6040_v15 = vpop.f32.mrf.mxu0 }
 0x35a   : > { %v6507_v58 = vshrl.u32 %v12499_v50, 16  ;;  %v6510_v13 = vshll.u32 %v12499_v50, 16  ;;  %v6097_v21 = vmul.f32 %v15944_v51, %v6025_v28  ;;  %v6100_v0 = vmul.f32 %v15944_v51, %v6036_v45  ;;  %v7625_v4 = vld [vmem:[#allocation3 + $0x64] sm:$0xf]  ;;  %v7341_v40 = vld [vmem:[#allocation3 + $0xc] sm:$0xe]  ;;  %13220 = vmatpush3.bf16.msra.mxu1 %v14011_v29 }
 0x35b   : > { %v6487_v63 = vor.u32 %v6485_v14, %v6484_v5  ;;  %v6488_v27 = vrot.slane %v6484_v5, 4  ;;  %v6490_v56 = vshrl.u32 %v12497_v46, 16  ;;  %v6493_v1 = vshll.u32 %v12497_v46, 16  ;;  %7657 = vst [vmem:[#allocation5 + $0x228] sm:$0xf] %v7625_v4 }
 0x35c   : > { %v6509_v12 = vrot.slane %v6507_v58, 7  ;;  %v6239_v62 = vsel %vm6169_vm15, %v6137_v61, %v6207_v10  ;;  %v6135_v7 = vadd.f32 %v15971_v6, %v6097_v21  ;;  %v6138_v16 = vadd.f32 %v15971_v6, %v6100_v0  ;;  %v6795_v37 = vld [vmem:[#allocation3 + $0x64] sm:$0xf]  ;;  %v6743_v44 = vld [vmem:[#allocation3 + $0x90] sm:$0xf] }
 0x35d   : > { %v6723_v60 = vsel %vm14597_vm13, %v6487_v63, %v6722_v57  ;;  %v6492_v30 = vrot.slane %v6490_v56, 7  ;;  %v12502_v52 = vpack.c.bf16 %v6239_v62, %v6239_v62  ;;  %v7623_v3 = vld [vmem:[#allocation3 + $0x58] sm:$0xf]  ;;  %6827 = vst [vmem:[#allocation5 + $0x264] sm:$0xf] %v6795_v37  ;;  %v6098_v17 = vmul.f32 %v15944_v51, %v6028_v54  ;;  %v14018_v37 = vld [vmem:[#allocation11 + $0x1e8] sm:$0xff]  }
 0x35e   : > { %6724 = vst [vmem:[#allocation3 + $0x6c] sm:$0xf] %v6723_v60  ;;  %v6512_v35 = vor.u32 %v6510_v13, %v6509_v12  ;;  %v6514_v43 = vrot.slane %v6509_v12, 4  ;;  %vm6167_vm0 = vcmp.gt.f32.partialorder %v6135_v7, 0.0  ;;  %v6205_v41 = vmul.f32 %v15985_v39, %v6135_v7  ;;  %7655 = vst [vmem:[#allocation5 + $0x1e0] sm:$0xf] %v7623_v3  ;;  %13325 = vmatprep.subr.bf16.mxu0 %v14018_v37 }
 0x35f   : > { %v6495_v26 = vor.u32 %v6493_v1, %v6492_v30  ;;  %v6497_v31 = vrot.slane %v6492_v30, 4  ;;  %v6533_v23 = vshrl.u32 %v12502_v52, 16  ;;  %v6536_v18 = vshll.u32 %v12502_v52, 16  ;;  %v6793_v61 = vld [vmem:[#allocation3 + $0x58] sm:$0xf]  ;;  %v14019_v3 = vld [vmem:[#allocation11 + $0x1a8] sm:$0xff]  }
 0x360   : > { %v6513_v11 = vsel %vm14610_vm14, %v6505_v36, %v6512_v35  ;;  %v6734_v14 = vsel %vm14540_vm3, %v6514_v43, %v6733_v49  ;;  %v6237_v38 = vsel %vm6167_vm0, %v6135_v7, %v6205_v41  ;;  %vm6170_vm1 = vcmp.gt.f32.partialorder %v6138_v16, 0.0  ;;  %v7342_v45 = vld [vmem:[#allocation3 + $0x10] sm:$0xf]  ;;  %6825 = vst [vmem:[#allocation5 + $0x21c] sm:$0xf] %v6793_v61  ;;  %13326 = vmatpush3.bf16.msra.mxu0 %v14019_v3 }
 0x361   : > { %6732 = vst [vmem:[#allocation3 + $0x7c] sm:$0xf] %v6513_v11  ;;  %6735 = vst [vmem:[#allocation3 + $0x80] sm:$0x1] %v6734_v14  ;;  %v6496_v2 = vsel %vm14610_vm14, %v6488_v27, %v6495_v26  ;;  %v6727_v50 = vsel %vm14540_vm3, %v6497_v31, %v6726_v53  ;;  %v16223_v55 = vrot.slane %v6533_v23, 7  ;;  %v12500_v28 = vpack.c.bf16 %v6237_v38, %v6237_v38 }
 0x362   : > { %6725 = vst [vmem:[#allocation3 + $0x70] sm:$0xf] %v6496_v2  ;;  %6728 = vst [vmem:[#allocation3 + $0x74] sm:$0x1] %v6727_v50  ;;  %v6208_v36 = vmul.f32 %v15985_v39, %v6138_v16  ;;  %v6049_v5 = vadd.f32 %v13499_v9, %v15999_v42  ;;  %v7343_v46 = vld [vmem:[#allocation3 + $0x14] sm:$0x1]  ;;  %v6136_v56 = vadd.f32 %v15971_v6, %v6098_v17 }
 0x363   : > { %v12177_v10 = vrot.slane %v7341_v40, 9  ;;  %v7628_v57 = vld [vmem:[#allocation3 + $0x78] sm:$0xf]  ;;  %v6538_v58 = vor.u32 %v6536_v18, %v16223_v55  ;;  %v6539_v13 = vrot.slane %v16223_v55, 4  ;;  %v6516_v21 = vshrl.u32 %v12500_v28, 16  ;;  %v14027_v55 = vld [vmem:[#allocation11 + $0x108] sm:$0xff]  }
 0x364   : > { %v6519_v0 = vshll.u32 %v12500_v28, 16  ;;  %7660 = vst [vmem:[#allocation5 + $0x294] sm:$0xf] %v7628_v57  ;;  %v6798_v63 = vld [vmem:[#allocation3 + $0x78] sm:$0xf]  ;;  %v6240_v27 = vsel %vm6170_vm1, %v6138_v16, %v6208_v36  ;;  %v7443_v1 = vrot.slane %v7342_v45, 5  ;;  %v6206_v6 = vmul.f32 %v15985_v39, %v6136_v56  ;;  %v13500_v39 = vpop.f32.mrf.mxu0 }
 0x365   : > { %v16235_v51 = vld [vmem:[%s17463_s5] ss:$0 sm:$0xff]  ;;  %6830 = vst [vmem:[#allocation5 + $0x2d0] sm:$0xf] %v6798_v63  ;;  %v6744_v4 = vsel %vm14597_vm13, %v6538_v58, %v6743_v44  ;;  %v16240_v12 = vrot.slane %v6516_v21, 7  ;;  %v12503_v62 = vpack.c.bf16 %v6240_v27, %v6240_v27  ;;  %v7446_v7 = vrot.slane %v7343_v46, 5 }
 0x366   : > { %v6103_v42 = vmul.f32 %v16235_v51, %v6049_v5  ;;  %v7626_v48 = vld [vmem:[#allocation3 + $0x6c] sm:$0xf]  ;;  %6745 = vst [vmem:[#allocation3 + $0x90] sm:$0xf] %v6744_v4  ;;  %v6736_v16 = vld [vmem:[#allocation3 + $0x84] sm:$0xf]  ;;  %v7444_v52 = vsel %vm14575_vm9, %v12177_v10, %v7443_v1  ;;  %v6041_v38 = vadd.f32 %v6040_v15, %v16002_v32  ;;  %v6052_v28 = vadd.f32 %v13500_v39, %v16005_v34 }
 0x367   : > { %vm6168_vm2 = vcmp.gt.f32.partialorder %v6136_v56, 0.0  ;;  %v16246_v60 = vld [vmem:[%s17464_s6] ss:$0 sm:$0xff]  ;;  %7658 = vst [vmem:[#allocation5 + $0x24c] sm:$0xf] %v7626_v48  ;;  %v6521_v29 = vor.u32 %v6519_v0, %v16240_v12  ;;  %v6522_v35 = vrot.slane %v16240_v12, 4 }
 0x368   : > { %v6141_v49 = vadd.f32 %v16246_v60, %v6103_v42  ;;  %v6796_v54 = vld [vmem:[#allocation3 + $0x6c] sm:$0xf]  ;;  %v6541_v43 = vshrl.u32 %v12503_v62, 16  ;;  %v6544_v53 = vshll.u32 %v12503_v62, 16  ;;  %7580 = vst [vmem:[#allocation5 + $0x50] sm:$0xf] %v7444_v52  ;;  %v6238_v26 = vsel %vm6168_vm2, %v6136_v56, %v6206_v6  ;;  %v6043_v52 = vpop.f32.mrf.mxu0 }
 0x369   : > { %v6845_v41 = vld [vmem:[#allocation3 + $0xc] sm:$0xf]  ;;  %6828 = vst [vmem:[#allocation5 + $0x288] sm:$0xf] %v6796_v54  ;;  %v16257_v31 = vld [vmem:[%s17465_s7] ss:$0 sm:$0xff]  ;;  %v6737_v40 = vsel %vm14597_vm13, %v6521_v29, %v6736_v16  ;;  %v12501_v14 = vpack.c.bf16 %v6238_v26, %v6238_v26  ;;  %v6101_v57 = vmul.f32 %v16235_v51, %v6041_v38  ;;  %v6104_v58 = vmul.f32 %v16235_v51, %v6052_v28 }
 0x36a   : > { %vm6173_vm5 = vcmp.gt.f32.partialorder %v6141_v49, 0.0  ;;  %v6211_v23 = vmul.f32 %v16257_v31, %v6141_v49  ;;  %v7445_v18 = vrot.slane %v7443_v1, 4  ;;  %v7629_v9 = vld [vmem:[#allocation3 + $0x7c] sm:$0xf]  ;;  %v6543_v11 = vrot.slane %v6541_v43, 7  ;;  %v14023_v15 = vld [vmem:[#allocation11 + $0x148] sm:$0xff]  }
 0x36b   : > { %v7627_v61 = vld [vmem:[#allocation3 + $0x70] sm:$0xf]  ;;  %7661 = vst [vmem:[#allocation5 + $0x2b8] sm:$0xf] %v7629_v9  ;;  %6738 = vst [vmem:[#allocation3 + $0x84] sm:$0xf] %v6737_v40  ;;  %v6142_v48 = vadd.f32 %v16246_v60, %v6104_v58  ;;  %13221 = vmatprep.subr.bf16.mxu1 %v14023_v15 }
 0x36c   : > { %v6747_v2 = vld [vmem:[#allocation3 + $0x98] sm:$0x1]  ;;  %v6243_v50 = vsel %vm6173_vm5, %v6141_v49, %v6211_v23  ;;  %v7447_v44 = vsel %vm14575_vm9, %v7445_v18, %v7446_v7  ;;  %v6915_v45 = vshrl.u32 %v6845_v41, 16  ;;  %7659 = vst [vmem:[#allocation5 + $0x270] sm:$0xf] %v7627_v61  ;;  %v6546_v17 = vor.u32 %v6544_v53, %v6543_v11  ;;  %13222 = vmatpush3.bf16.msra.mxu1 %v14027_v55 }
 0x36d   : > { %v6797_v36 = vld [vmem:[#allocation3 + $0x70] sm:$0xf]  ;;  %v6548_v5 = vrot.slane %v6543_v11, 4  ;;  %v6524_v46 = vshrl.u32 %v12501_v14, 16  ;;  %v6527_v10 = vshll.u32 %v12501_v14, 16  ;;  %v12506_v32 = vpack.c.bf16 %v6243_v50, %v6243_v50 }
 0x36e   : > { %7581 = vst [vmem:[#allocation5 + $0x74] sm:$0xf] %v7447_v44  ;;  %6829 = vst [vmem:[#allocation5 + $0x2ac] sm:$0xf] %v6797_v36  ;;  %v16268_v21 = vld [vmem:[#allocation3 + $0x10] sm:$0xf]  ;;  %v6547_v34 = vsel %vm14610_vm14, %v6539_v13, %v6546_v17  ;;  %v6139_v7 = vadd.f32 %v16246_v60, %v6101_v57 }
 0x36f   : > { %v6917_v0 = vrot.slane %v6915_v45, 4  ;;  %v6748_v63 = vsel %vm14540_vm3, %v6548_v5, %v6747_v2  ;;  %v6526_v27 = vrot.slane %v6524_v46, 7  ;;  %v6918_v56 = vshll.u32 %v6845_v41, 16  ;;  %v6799_v42 = vld [vmem:[#allocation3 + $0x7c] sm:$0xf]  ;;  %v16294_v45 = vpop.f32.mrf.mxu0 }
 0x370   : > { %6746 = vst [vmem:[#allocation3 + $0x94] sm:$0xf] %v6547_v34  ;;  %6749 = vst [vmem:[#allocation3 + $0x98] sm:$0x1] %v6748_v63  ;;  %v6740_v1 = vld [vmem:[#allocation3 + $0x8c] sm:$0x1]  ;;  %v6209_v43 = vmul.f32 %v16257_v31, %v6139_v7  ;;  %v6212_v41 = vmul.f32 %v16257_v31, %v6142_v48 }
 0x371   : > { %v6567_v4 = vshrl.u32 %v12506_v32, 16  ;;  %v6570_v62 = vshll.u32 %v12506_v32, 16  ;;  %6831 = vst [vmem:[#allocation5 + $0x2f4] sm:$0xf] %v6799_v42  ;;  %v6529_v16 = vor.u32 %v6527_v10, %v6526_v27  ;;  %v6531_v13 = vrot.slane %v6526_v27, 4  ;;  %v14034_v27 = vld [vmem:[#allocation11 + $0x1e0] sm:$0xff]  }
 0x372   : > { %v6920_v6 = vrot.slane %v6918_v56, 5  ;;  %v6924_v49 = vshll.u32 %v16268_v21, 16  ;;  %v7632_v54 = vld [vmem:[#allocation3 + $0x90] sm:$0xf]  ;;  %v6757_v29 = vld [vmem:[#allocation3 + $0xa8] sm:$0xf]  ;;  %13327 = vmatprep.subr.bf16.mxu0 %v14034_v27 }
 0x373   : > { %v16279_v37 = vrot.slane %v6567_v4, 7  ;;  %vm6171_vm6 = vcmp.gt.f32.partialorder %v6139_v7, 0.0  ;;  %vm6174_vm7 = vcmp.gt.f32.partialorder %v6142_v48, 0.0  ;;  %7664 = vst [vmem:[#allocation5 + $0x324] sm:$0xf] %v7632_v54  ;;  %v6530_v53 = vsel %vm14610_vm14, %v6522_v35, %v6529_v16  ;;  %v6056_v16 = vpop.f32.mrf.mxu0 }
 0x374   : > { %v6741_v39 = vsel %vm14540_vm3, %v6531_v13, %v6740_v1  ;;  %v6847_v3 = vld [vmem:[#allocation3 + $0x14] sm:$0x1]  ;;  %v6921_v26 = vor.u32 %v6920_v6, %v6917_v0  ;;  %v7630_v23 = vld [vmem:[#allocation3 + $0x84] sm:$0xf]  ;;  %6739 = vst [vmem:[#allocation3 + $0x88] sm:$0xf] %v6530_v53  ;;  %v6241_v12 = vsel %vm6171_vm6, %v6139_v7, %v6209_v43  ;;  %v6044_v35 = vadd.f32 %v6043_v52, %v16008_v8 }
 0x375   : > { %v6800_v18 = vld [vmem:[#allocation3 + $0x84] sm:$0xf]  ;;  %6742 = vst [vmem:[#allocation3 + $0x8c] sm:$0x1] %v6741_v39  ;;  %v6572_v9 = vor.u32 %v6570_v62, %v16279_v37  ;;  %v6573_v40 = vrot.slane %v16279_v37, 4  ;;  %v12504_v61 = vpack.c.bf16 %v6241_v12, %v6241_v12  ;;  %v6244_v2 = vsel %vm6174_vm7, %v6142_v48, %v6212_v41  ;;  %v14035_v13 = vld [vmem:[#allocation11 + $0x1a0] sm:$0xff]  }
 0x376   : > { %v13934_v11 = vld [vmem:[#allocation5 + $0x54] ss:$36 sps:$4 sm:$0xff]   ;;  %v7344_v14 = vld [vmem:[#allocation3 + $0x18] sm:$0xe]  ;;  %7662 = vst [vmem:[#allocation5 + $0x2dc] sm:$0xf] %v7630_v23  ;;  %v12507_v5 = vpack.c.bf16 %v6244_v2, %v6244_v2  ;;  %v6102_v55 = vmul.f32 %v16235_v51, %v6044_v35  ;;  %13328 = vmatpush3.bf16.msra.mxu0 %v14035_v13 }
 0x377   : > { %6832 = vst [vmem:[#allocation5 + $0x318] sm:$0xf] %v6800_v18  ;;  %v13932_v38 = vld [vmem:[#allocation5 + $0x50] ss:$36 sps:$4 sm:$0xff]   ;;  %v6922_v50 = vrot.slane %v6921_v26, 4  ;;  %v6926_v44 = vrot.slane %v6924_v49, 5  ;;  %v6758_v17 = vsel %vm14597_vm13, %v6572_v9, %v6757_v29  ;;  %10948 = vmatprep.mubr.bf16.mxu0 %v13934_v11 }
 0x378   : > { %v6848_v28 = vld [vmem:[#allocation3 + $0x18] sm:$0xf]  ;;  %v6802_v36 = vld [vmem:[#allocation3 + $0x90] sm:$0xf]  ;;  %v6928_v46 = vshrl.u32 %v16268_v21, 16  ;;  %v6934_v8 = vshll.u32 %v6847_v3, 16  ;;  %10949 = vmatmul.mubr.bf16.gmra.mxu0 %v13932_v38  ;;  %v6140_v12 = vadd.f32 %v16246_v60, %v6102_v55 }
 0x379   : > { %v7345_v10 = vld [vmem:[#allocation3 + $0x1c] sm:$0xf]  ;;  %v7346_v32 = vld [vmem:[#allocation3 + $0x20] sm:$0x1]  ;;  %6834 = vst [vmem:[#allocation5 + $0x360] sm:$0xf] %v6802_v36  ;;  %v6927_v15 = vsel %vm14591_vm12, %v6922_v50, %v6926_v44 }
 0x37a   : > { %6759 = vst [vmem:[#allocation3 + $0xa8] sm:$0xf] %v6758_v17  ;;  %v6550_v57 = vshrl.u32 %v12504_v61, 16  ;;  %v6553_v58 = vshll.u32 %v12504_v61, 16  ;;  %v12178_v34 = vrot.slane %v7344_v14, 9  ;;  %v6575_v56 = vshrl.u32 %v12507_v5, 16 }
 0x37b   : > { %v7633_v63 = vld [vmem:[#allocation3 + $0x94] sm:$0xf]  ;;  %v6578_v42 = vshll.u32 %v12507_v5, 16  ;;  %v6930_v1 = vrot.slane %v6928_v46, 4  ;;  %v6936_v4 = vrot.slane %v6934_v8, 5  ;;  %v7450_v7 = vrot.slane %v7345_v10, 5 }
 0x37c   : > { %7308 = vst [vmem:[#allocation5 + $0x4c] sm:$0xf] %v6927_v15  ;;  %7665 = vst [vmem:[#allocation5 + $0x348] sm:$0xf] %v7633_v63  ;;  %v16301_v21 = vrot.slane %v6550_v57, 7  ;;  %v7453_v48 = vrot.slane %v7346_v32, 5  ;;  %v6210_v8 = vmul.f32 %v16257_v31, %v6140_v12  ;;  %v6065_v15 = vadd.f32 %v16294_v45, %v16143_v33 }
 0x37d   : > { %v6750_v62 = vld [vmem:[#allocation3 + $0x9c] sm:$0xf]  ;;  %v6577_v6 = vrot.slane %v6575_v56, 7  ;;  %v6931_v49 = vor.u32 %v6930_v1, %v6926_v44  ;;  %v6939_v52 = vshrl.u32 %v6848_v28, 16  ;;  %v6942_v54 = vshll.u32 %v6848_v28, 16  ;;  %v14036_v43 = vld [vmem:[#allocation11 + $0x1d8] sm:$0xff]   ;;  %v13504_v28 = vpop.f32.mrf.mxu0 }
 0x37e   : > { %v6803_v29 = vld [vmem:[#allocation3 + $0x94] sm:$0xf]  ;;  %v6555_v53 = vor.u32 %v6553_v58, %v16301_v21  ;;  %v6556_v39 = vrot.slane %v16301_v21, 4  ;;  %v6761_v41 = vld [vmem:[#allocation3 + $0xb0] sm:$0x1]  ;;  %v7451_v3 = vsel %vm14575_vm9, %v12178_v34, %v7450_v7  ;;  %v7452_v26 = vrot.slane %v7450_v7, 4  ;;  %13329 = vmatprep.subr.bf16.mxu0 %v14036_v43 }
 0x37f   : > { %v7631_v23 = vld [vmem:[#allocation3 + $0x88] sm:$0xf]  ;;  %6835 = vst [vmem:[#allocation5 + $0x384] sm:$0xf] %v6803_v29  ;;  %v6580_v18 = vor.u32 %v6578_v42, %v6577_v6  ;;  %v6582_v9 = vrot.slane %v6577_v6, 4  ;;  %v6932_v11 = vrot.slane %v6931_v49, 4  ;;  %v6057_v34 = vadd.f32 %v6056_v16, %v16017_v20 }
 0x380   : > { %7582 = vst [vmem:[#allocation5 + $0x98] sm:$0xf] %v7451_v3  ;;  %v6849_v14 = vld [vmem:[#allocation3 + $0x1c] sm:$0xf]  ;;  %7663 = vst [vmem:[#allocation5 + $0x300] sm:$0xf] %v7631_v23  ;;  %v6751_v38 = vsel %vm14597_vm13, %v6555_v53, %v6750_v62  ;;  %v7454_v61 = vsel %vm14575_vm9, %v7452_v26, %v7453_v48  ;;  %v6068_v63 = vadd.f32 %v13504_v28, %v16154_v47 }
 0x381   : > { %v6801_v35 = vld [vmem:[#allocation3 + $0x88] sm:$0xf]  ;;  %v6850_v2 = vld [vmem:[#allocation3 + $0x20] sm:$0x1]  ;;  %v6941_v50 = vrot.slane %v6939_v52, 4  ;;  %v6944_v44 = vrot.slane %v6942_v54, 5  ;;  %v6581_v36 = vsel %vm14610_vm14, %v6573_v40, %v6580_v18  ;;  %v6762_v17 = vsel %vm14540_vm3, %v6582_v9, %v6761_v41  ;;  %v6059_v54 = vpop.f32.mrf.mxu0 }
 0x382   : > { %6833 = vst [vmem:[#allocation5 + $0x33c] sm:$0xf] %v6801_v35  ;;  %6752 = vst [vmem:[#allocation3 + $0x9c] sm:$0xf] %v6751_v38  ;;  %v6937_v5 = vsel %vm14591_vm12, %v6932_v11, %v6936_v4  ;;  %vm6172_vm8 = vcmp.gt.f32.partialorder %v6140_v12, 0.0  ;;  %v14040_v46 = vld [vmem:[#allocation11 + $0x140] sm:$0xff]   ;;  %v6107_v20 = vmul.f32 %v16235_v51, %v6065_v15  ;;  %v6105_v47 = vmul.f32 %v16235_v51, %v6057_v34 }
 0x383   : > { %7583 = vst [vmem:[#allocation5 + $0xbc] sm:$0xf] %v7454_v61  ;;  %6760 = vst [vmem:[#allocation3 + $0xac] sm:$0xf] %v6581_v36  ;;  %v6945_v10 = vor.u32 %v6944_v44, %v6941_v50  ;;  %v6948_v32 = vshll.u32 %v6849_v14, 16  ;;  %v6952_v37 = vshrl.u32 %v6849_v14, 16  ;;  %13223 = vmatprep.subr.bf16.mxu1 %v14040_v46  ;;  %v6242_v1 = vsel %vm6172_vm8, %v6140_v12, %v6210_v8 }
 0x384   : > { %6763 = vst [vmem:[#allocation3 + $0xb0] sm:$0x1] %v6762_v17  ;;  %7309 = vst [vmem:[#allocation5 + $0x70] sm:$0xf] %v6937_v5  ;;  %v7636_v57 = vld [vmem:[#allocation3 + $0xa8] sm:$0xf]  ;;  %v12505_v55 = vpack.c.bf16 %v6242_v1, %v6242_v1  ;;  %v6108_v49 = vmul.f32 %v16235_v51, %v6068_v63  ;;  %v6145_v53 = vadd.f32 %v16246_v60, %v6107_v20 }
 0x385   : > { %v14041_v58 = vld [vmem:[#allocation11 + $0x198] sm:$0xff]   ;;  %v6958_v40 = vshll.u32 %v6850_v2, 16  ;;  %v16326_v27 = vld [vmem:[#allocation3 + $0x24] sm:$0xe]  ;;  %7668 = vst [vmem:[#allocation5 + $0x3b4] sm:$0xf] %v7636_v57  ;;  %v6143_v41 = vadd.f32 %v16246_v60, %v6105_v47  ;;  %v6060_v28 = vadd.f32 %v6059_v54, %v16020_v59 }
 0x386   : > { %v6806_v56 = vld [vmem:[#allocation3 + $0xa8] sm:$0xf]  ;;  %v14045_v42 = vld [vmem:[#allocation11 + $0x100] sm:$0xff]   ;;  %v6946_v4 = vrot.slane %v6945_v10, 4  ;;  %v6950_v62 = vrot.slane %v6948_v32, 5  ;;  %v6954_v7 = vrot.slane %v6952_v37, 4  ;;  %13330 = vmatpush3.bf16.msra.mxu0 %v14041_v58  ;;  %v6146_v14 = vadd.f32 %v16246_v60, %v6108_v49 }
 0x387   : > { %6838 = vst [vmem:[#allocation5 + $0x3f0] sm:$0xf] %v6806_v56  ;;  %v14046_v48 = vld [vmem:[#allocation11 + $0x1d0] sm:$0xff]   ;;  %v6960_v33 = vrot.slane %v6958_v40, 5  ;;  %13224 = vmatpush3.bf16.msra.mxu1 %v14045_v42  ;;  %v14048_v16 = vld [vmem:[#allocation11 + $0x1c8] sm:$0xff]   ;;  %v12179_v52 = vrot.slane %v16326_v27, 9  ;;  %v6215_v50 = vmul.f32 %v16257_v31, %v6145_v53  ;;  %v6213_v44 = vmul.f32 %v16257_v31, %v6143_v41 }
 0x388   : > { %v14047_v45 = vld [vmem:[#allocation11 + $0x190] sm:$0xff]   ;;  %v6951_v13 = vsel %vm14591_vm12, %v6946_v4, %v6950_v62  ;;  %v6955_v6 = vor.u32 %v6954_v7, %v6950_v62  ;;  %13331 = vmatprep.subr.bf16.mxu0 %v14046_v48  ;;  %v6558_v29 = vshrl.u32 %v12505_v55, 16  ;;  %v6561_v43 = vshll.u32 %v12505_v55, 16  ;;  %v8445_v26 = vld [vmem:[#allocation3 + $0x24] sm:$0xf]  ;;  %v14056_v59 = vld [vmem:[#allocation11 + $0x1c0] sm:$0xff]  }
 0x389   : > { %7310 = vst [vmem:[#allocation5 + $0x94] sm:$0xf] %v6951_v13  ;;  %v7348_v3 = vld [vmem:[#allocation3 + $0x28] sm:$0xf]  ;;  %v13940_v9 = vld [vmem:[#allocation5 + $0x9c] ss:$36 sps:$4 sm:$0xff]   ;;  %v6216_v40 = vmul.f32 %v16257_v31, %v6146_v14  ;;  %v6106_v4 = vmul.f32 %v16235_v51, %v6060_v28 }
 0x38a   : > { %v8446_v23 = vld [vmem:[#allocation3 + $0x28] sm:$0xf]  ;;  %v13938_v18 = vld [vmem:[#allocation5 + $0x98] ss:$36 sps:$4 sm:$0xff]   ;;  %v6754_v11 = vld [vmem:[#allocation3 + $0xa4] sm:$0x1]  ;;  %13332 = vmatpush3.bf16.msra.mxu0 %v14047_v45  ;;  %10956 = vmatprep.mubr.bf16.mxu0 %v13940_v9 }
 0x38b   : > { %v6956_v12 = vrot.slane %v6955_v6, 4  ;;  %v16338_v35 = vld [vmem:[#allocation3 + $0x2c] sm:$0x1]  ;;  %8477 = vst [vmem:[#allocation5 + $0x60] sm:$0xf] %v8445_v26  ;;  %v6560_v2 = vrot.slane %v6558_v29, 7  ;;  %13333 = vmatprep.subr.bf16.mxu0 %v14048_v16  ;;  %10957 = vmatmul.mubr.bf16.gmra.mxu0 %v13938_v18  ;;  %v6144_v47 = vadd.f32 %v16246_v60, %v6106_v4 }
 0x38c   : > { %8478 = vst [vmem:[#allocation5 + $0x84] sm:$0xf] %v8446_v23  ;;  %v13935_v38 = vld [vmem:[#allocation5 + $0x48] ss:$36 sps:$4 sm:$0xff]   ;;  %vm6177_vm10 = vcmp.gt.f32.partialorder %v6145_v53, 0.0  ;;  %vm6175_vm11 = vcmp.gt.f32.partialorder %v6143_v41, 0.0 }
 0x38d   : > { %v13937_v61 = vld [vmem:[#allocation5 + $0x4c] ss:$36 sps:$4 sm:$0xff]   ;;  %v6961_v36 = vsel %vm14591_vm12, %v6956_v12, %v6960_v33  ;;  %vm6178_vm15 = vcmp.gt.f32.partialorder %v6146_v14, 0.0  ;;  %v7634_v17 = vld [vmem:[#allocation3 + $0x9c] sm:$0xf]  ;;  %v6563_v46 = vor.u32 %v6561_v43, %v6560_v2  ;;  %v6565_v8 = vrot.slane %v6560_v2, 4 }
 0x38e   : > { %v14049_v5 = vld [vmem:[#allocation11 + $0x188] sm:$0xff]   ;;  %10787 = vmatprep.mubr.bf16.mxu1 %v13937_v61  ;;  %7311 = vst [vmem:[#allocation5 + $0xb8] sm:$0xf] %v6961_v36  ;;  %v6247_v10 = vsel %vm6177_vm10, %v6145_v53, %v6215_v50  ;;  %v6245_v32 = vsel %vm6175_vm11, %v6143_v41, %v6213_v44  ;;  %7666 = vst [vmem:[#allocation5 + $0x36c] sm:$0xf] %v7634_v17  ;;  %v7457_v15 = vrot.slane %v7348_v3, 5 }
 0x38f   : > { %v7637_v37 = vld [vmem:[#allocation3 + $0xac] sm:$0xf]  ;;  %10788 = vmatmul.mubr.bf16.gmra.mxu1 %v13935_v38  ;;  %v12510_v57 = vpack.c.bf16 %v6247_v10, %v6247_v10  ;;  %v12508_v58 = vpack.c.bf16 %v6245_v32, %v6245_v32  ;;  %v6804_v34 = vld [vmem:[#allocation3 + $0x9c] sm:$0xf]  ;;  %13334 = vmatpush3.bf16.msra.mxu0 %v14049_v5  ;;  %v6564_v56 = vsel %vm14610_vm14, %v6556_v39, %v6563_v46  ;;  %v7460_v1 = vrot.slane %v16338_v35, 5  ;;  %v14061_v12 = vld [vmem:[#allocation11 + $0x238] sm:$0xff]  }
 0x390   : > { %7669 = vst [vmem:[#allocation5 + $0x3d8] sm:$0xf] %v7637_v37  ;;  %v14057_v63 = vld [vmem:[#allocation11 + $0x180] sm:$0xff]   ;;  %v6755_v42 = vsel %vm14540_vm3, %v6565_v8, %v6754_v11  ;;  %v6851_v62 = vld [vmem:[#allocation3 + $0x24] sm:$0xf]  ;;  %13335 = vmatprep.subr.bf16.mxu0 %v14056_v59  ;;  %v6248_v21 = vsel %vm6178_vm15, %v6146_v14, %v6216_v40  ;;  %v7458_v39 = vsel %vm14575_vm9, %v12179_v52, %v7457_v15  ;;  %v7459_v20 = vrot.slane %v7457_v15, 4 }
 0x391   : > { %6836 = vst [vmem:[#allocation5 + $0x3a8] sm:$0xf] %v6804_v34  ;;  %6753 = vst [vmem:[#allocation3 + $0xa0] sm:$0xf] %v6564_v56  ;;  %v6601_v7 = vshrl.u32 %v12510_v57, 16  ;;  %v6604_v48 = vshll.u32 %v12510_v57, 16  ;;  %v12511_v6 = vpack.c.bf16 %v6248_v21, %v6248_v21  ;;  %v6214_v52 = vmul.f32 %v16257_v31, %v6144_v47  ;;  %13505 = vmatprep.subr.bf16.mxu1 %v14061_v12 }
 0x392   : > { %6756 = vst [vmem:[#allocation3 + $0xa4] sm:$0x1] %v6755_v42  ;;  %v6584_v55 = vshrl.u32 %v12508_v58, 16  ;;  %v6587_v33 = vshll.u32 %v12508_v58, 16  ;;  %v6807_v51 = vld [vmem:[#allocation3 + $0xac] sm:$0xf]  ;;  %v7461_v27 = vsel %vm14575_vm9, %v7459_v20, %v7460_v1 }
 0x393   : > { %v6603_v45 = vrot.slane %v6601_v7, 7  ;;  %v6771_v16 = vld [vmem:[#allocation3 + $0xc0] sm:$0xf]  ;;  %7584 = vst [vmem:[#allocation5 + $0xe0] sm:$0xf] %v7458_v39  ;;  %v6963_v49 = vshrl.u32 %v6851_v62, 16  ;;  %13336 = vmatpush3.bf16.msra.mxu0 %v14057_v63 }
 0x394   : > { %v16360_v13 = vrot.slane %v6584_v55, 7  ;;  %6839 = vst [vmem:[#allocation5 + $0x414] sm:$0xf] %v6807_v51  ;;  %v6764_v54 = vld [vmem:[#allocation3 + $0xb4] sm:$0xf]  ;;  %vm6176_vm0 = vcmp.gt.f32.partialorder %v6144_v47, 0.0 }
 0x395   : > { %v6852_v29 = vld [vmem:[#allocation3 + $0x28] sm:$0xf]  ;;  %v6966_v43 = vshll.u32 %v6851_v62, 16  ;;  %v13943_v60 = vld [vmem:[#allocation5 + $0x94] ss:$36 sps:$4 sm:$0xff]   ;;  %v6606_v53 = vor.u32 %v6604_v48, %v6603_v45  ;;  %v6607_v23 = vrot.slane %v6603_v45, 4  ;;  %v6246_v11 = vsel %vm6176_vm0, %v6144_v47, %v6214_v52 }
 0x396   : > { %v6589_v41 = vor.u32 %v6587_v33, %v16360_v13  ;;  %7585 = vst [vmem:[#allocation5 + $0x104] sm:$0xf] %v7461_v27  ;;  %v6853_v3 = vld [vmem:[#allocation3 + $0x2c] sm:$0x1]  ;;  %v6609_v18 = vshrl.u32 %v12511_v6, 16  ;;  %v6612_v9 = vshll.u32 %v12511_v6, 16  ;;  %10795 = vmatprep.mubr.bf16.mxu1 %v13943_v60  ;;  %v12509_v38 = vpack.c.bf16 %v6246_v11, %v6246_v11 }
 0x397   : > { %v13941_v26 = vld [vmem:[#allocation5 + $0x90] ss:$36 sps:$4 sm:$0xff]   ;;  %v6772_v14 = vsel %vm14597_vm13, %v6606_v53, %v6771_v16  ;;  %v6965_v61 = vrot.slane %v6963_v49, 4  ;;  %v7350_v2 = vld [vmem:[#allocation3 + $0x30] sm:$0xe]  ;;  %v6968_v28 = vrot.slane %v6966_v43, 5 }
 0x398   : > { %v6765_v31 = vsel %vm14597_vm13, %v6589_v41, %v6764_v54  ;;  %v6775_v35 = vld [vmem:[#allocation3 + $0xc8] sm:$0x1]  ;;  %v7351_v50 = vld [vmem:[#allocation3 + $0x34] sm:$0xf]  ;;  %6773 = vst [vmem:[#allocation3 + $0xc0] sm:$0xf] %v6772_v14  ;;  %10796 = vmatmul.mubr.bf16.gmra.mxu1 %v13941_v26 }
 0x399   : > { %6766 = vst [vmem:[#allocation3 + $0xb4] sm:$0xf] %v6765_v31  ;;  %v6611_v44 = vrot.slane %v6609_v18, 7  ;;  %v6972_v36 = vshll.u32 %v6852_v29, 16  ;;  %v6976_v17 = vshrl.u32 %v6852_v29, 16  ;;  %v6590_v46 = vrot.slane %v16360_v13, 4 }
 0x39a   : > { %v7635_v5 = vld [vmem:[#allocation3 + $0xa0] sm:$0xf]  ;;  %v6592_v8 = vshrl.u32 %v12509_v38, 16  ;;  %v6595_v10 = vshll.u32 %v12509_v38, 16  ;;  %v6982_v22 = vshll.u32 %v6853_v3, 16  ;;  %v6969_v58 = vor.u32 %v6968_v28, %v6965_v61 }
 0x39b   : > { %v6854_v32 = vld [vmem:[#allocation3 + $0x30] sm:$0xf]  ;;  %7667 = vst [vmem:[#allocation5 + $0x390] sm:$0xf] %v7635_v5  ;;  %v6614_v37 = vor.u32 %v6612_v9, %v6611_v44  ;;  %v6616_v59 = vrot.slane %v6611_v44, 4  ;;  %v6974_v40 = vrot.slane %v6972_v36, 5 }
 0x39c   : > { %v6768_v57 = vld [vmem:[#allocation3 + $0xbc] sm:$0x1]  ;;  %v7352_v15 = vld [vmem:[#allocation3 + $0x38] sm:$0x1]  ;;  %v6594_v34 = vrot.slane %v6592_v8, 7  ;;  %v6978_v63 = vrot.slane %v6976_v17, 4 }
 0x39d   : > { %v12180_v56 = vrot.slane %v7350_v2, 9  ;;  %v7464_v42 = vrot.slane %v7351_v50, 5  ;;  %v6855_v1 = vld [vmem:[#allocation3 + $0x34] sm:$0xf]  ;;  %v6805_v4 = vld [vmem:[#allocation3 + $0xa0] sm:$0xf]  ;;  %v6615_v62 = vsel %vm14610_vm14, %v6607_v23, %v6614_v37  ;;  %v6776_v7 = vsel %vm14540_vm3, %v6616_v59, %v6775_v35 }
 0x39e   : > { %v13946_v48 = vld [vmem:[#allocation5 + $0xe4] ss:$36 sps:$4 sm:$0xff]   ;;  %v6970_v55 = vrot.slane %v6969_v58, 4  ;;  %v6984_v33 = vrot.slane %v6982_v22, 5  ;;  %v6856_v21 = vld [vmem:[#allocation3 + $0x38] sm:$0x1]  ;;  %v6597_v47 = vor.u32 %v6595_v10, %v6594_v34  ;;  %v6979_v45 = vor.u32 %v6978_v63, %v6974_v40 }
 0x39f   : > { %v7353_v39 = vld [vmem:[#allocation3 + $0x3c] sm:$0xe]  ;;  %6837 = vst [vmem:[#allocation5 + $0x3cc] sm:$0xf] %v6805_v4  ;;  %6774 = vst [vmem:[#allocation3 + $0xc4] sm:$0xf] %v6615_v62  ;;  %v7465_v16 = vsel %vm14575_vm9, %v12180_v56, %v7464_v42  ;;  %10964 = vmatprep.mubr.bf16.mxu0 %v13946_v48 }
 0x3a0   : > { %6777 = vst [vmem:[#allocation3 + $0xc8] sm:$0x1] %v6776_v7  ;;  %v13944_v20 = vld [vmem:[#allocation5 + $0xe0] ss:$36 sps:$4 sm:$0xff]   ;;  %v6599_v51 = vrot.slane %v6594_v34, 4  ;;  %v6975_v6 = vsel %vm14591_vm12, %v6970_v55, %v6974_v40  ;;  %v7466_v49 = vrot.slane %v7464_v42, 4  ;;  %v6598_v43 = vsel %vm14610_vm14, %v6590_v46, %v6597_v47 }
 0x3a1   : > { %v7354_v13 = vld [vmem:[#allocation3 + $0x40] sm:$0xf]  ;;  %v7467_v54 = vrot.slane %v7352_v15, 5  ;;  %7586 = vst [vmem:[#allocation5 + $0x128] sm:$0xf] %v7465_v16  ;;  %v6987_v27 = vshrl.u32 %v6854_v32, 16  ;;  %10965 = vmatmul.mubr.bf16.gmra.mxu0 %v13944_v20 }
 0x3a2   : > { %v7355_v52 = vld [vmem:[#allocation3 + $0x44] sm:$0x1]  ;;  %v6857_v29 = vld [vmem:[#allocation3 + $0x3c] sm:$0xf]  ;;  %v6769_v60 = vsel %vm14540_vm3, %v6599_v51, %v6768_v57  ;;  %v6980_v53 = vrot.slane %v6979_v45, 4  ;;  %v6990_v41 = vshll.u32 %v6854_v32, 16 }
 0x3a3   : > { %7312 = vst [vmem:[#allocation5 + $0xdc] sm:$0xf] %v6975_v6  ;;  %v6858_v3 = vld [vmem:[#allocation3 + $0x40] sm:$0xf]  ;;  %v7638_v26 = vld [vmem:[#allocation3 + $0xb4] sm:$0xf]  ;;  %v7468_v23 = vsel %vm14575_vm9, %v7466_v49, %v7467_v54 }
 0x3a4   : > { %6767 = vst [vmem:[#allocation3 + $0xb8] sm:$0xf] %v6598_v43  ;;  %6770 = vst [vmem:[#allocation3 + $0xbc] sm:$0x1] %v6769_v60  ;;  %v6989_v18 = vrot.slane %v6987_v27, 4  ;;  %v6996_v9 = vshll.u32 %v6855_v1, 16  ;;  %v6985_v12 = vsel %vm14591_vm12, %v6980_v53, %v6984_v33 }
 0x3a5   : > { %v7000_v11 = vshrl.u32 %v6855_v1, 16  ;;  %7670 = vst [vmem:[#allocation5 + $0x3fc] sm:$0xf] %v7638_v26  ;;  %v7640_v19 = vld [vmem:[#allocation3 + $0xc0] sm:$0xf]  ;;  %v6992_v14 = vrot.slane %v6990_v41, 5 }
 0x3a6   : > { %7587 = vst [vmem:[#allocation5 + $0x14c] sm:$0xf] %v7468_v23  ;;  %v7006_v31 = vshll.u32 %v6856_v21, 16  ;;  %v12181_v35 = vrot.slane %v7353_v39, 9  ;;  %7672 = vst [vmem:[#allocation5 + $0x444] sm:$0xf] %v7640_v19 }
 0x3a7   : > { %v6808_v38 = vld [vmem:[#allocation3 + $0xb4] sm:$0xf]  ;;  %7313 = vst [vmem:[#allocation5 + $0x100] sm:$0xf] %v6985_v12  ;;  %v6998_v61 = vrot.slane %v6996_v9, 5  ;;  %v7002_v2 = vrot.slane %v7000_v11, 4  ;;  %v6993_v28 = vor.u32 %v6992_v14, %v6989_v18 }
 0x3a8   : > { %v7471_v50 = vrot.slane %v7354_v13, 5  ;;  %v7474_v44 = vrot.slane %v7355_v52, 5  ;;  %6840 = vst [vmem:[#allocation5 + $0x438] sm:$0xf] %v6808_v38  ;;  %v7008_v36 = vrot.slane %v7006_v31, 5  ;;  %v7011_v5 = vshrl.u32 %v6857_v29, 16 }
 0x3a9   : > { %v6859_v17 = vld [vmem:[#allocation3 + $0x44] sm:$0x1]  ;;  %v7014_v46 = vshll.u32 %v6857_v29, 16  ;;  %v7003_v8 = vor.u32 %v7002_v2, %v6998_v61  ;;  %v7020_v32 = vshll.u32 %v6858_v3, 16  ;;  %v7356_v37 = vld [vmem:[#allocation3 + $0x48] sm:$0xe] }
 0x3aa   : > { %v7472_v10 = vsel %vm14575_vm9, %v12181_v35, %v7471_v50  ;;  %v7473_v22 = vrot.slane %v7471_v50, 4  ;;  %v7641_v59 = vld [vmem:[#allocation3 + $0xc4] sm:$0xf]  ;;  %v6994_v57 = vrot.slane %v6993_v28, 4  ;;  %v7013_v58 = vrot.slane %v7011_v5, 4 }
 0x3ab   : > { %7588 = vst [vmem:[#allocation5 + $0x170] sm:$0xf] %v7472_v10  ;;  %v7016_v40 = vrot.slane %v7014_v46, 5  ;;  %v7024_v15 = vshrl.u32 %v6858_v3, 16  ;;  %v7357_v34 = vld [vmem:[#allocation3 + $0x4c] sm:$0xf] }
 0x3ac   : > { %v7358_v63 = vld [vmem:[#allocation3 + $0x50] sm:$0x1]  ;;  %7673 = vst [vmem:[#allocation5 + $0x468] sm:$0xf] %v7641_v59  ;;  %v7004_v56 = vrot.slane %v7003_v8, 4  ;;  %v7475_v42 = vsel %vm14575_vm9, %v7473_v22, %v7474_v44  ;;  %v7022_v1 = vrot.slane %v7020_v32, 5  ;;  %v6999_v7 = vsel %vm14591_vm12, %v6994_v57, %v6998_v61 }
 0x3ad   : > { %v7030_v4 = vshll.u32 %v6859_v17, 16  ;;  %v6860_v62 = vld [vmem:[#allocation3 + $0x48] sm:$0xf]  ;;  %7589 = vst [vmem:[#allocation5 + $0x194] sm:$0xf] %v7475_v42  ;;  %v7017_v48 = vor.u32 %v7016_v40, %v7013_v58  ;;  %v7026_v55 = vrot.slane %v7024_v15, 4 }
 0x3ae   : > { %v6861_v33 = vld [vmem:[#allocation3 + $0x4c] sm:$0xf]  ;;  %v7639_v21 = vld [vmem:[#allocation3 + $0xb8] sm:$0xf]  ;;  %v13952_v39 = vld [vmem:[#allocation5 + $0x128] ss:$36 sps:$4 sm:$0xff]   ;;  %v7009_v47 = vsel %vm14591_vm12, %v7004_v56, %v7008_v36 }
 0x3af   : > { %v13954_v20 = vld [vmem:[#allocation5 + $0x12c] ss:$36 sps:$4 sm:$0xff]   ;;  %7314 = vst [vmem:[#allocation5 + $0x124] sm:$0xf] %v6999_v7  ;;  %v6862_v51 = vld [vmem:[#allocation3 + $0x50] sm:$0x1]  ;;  %v7027_v13 = vor.u32 %v7026_v55, %v7022_v1 }
 0x3b0   : > { %7671 = vst [vmem:[#allocation5 + $0x420] sm:$0xf] %v7639_v21  ;;  %v13950_v45 = vld [vmem:[#allocation5 + $0xdc] ss:$36 sps:$4 sm:$0xff]   ;;  %7315 = vst [vmem:[#allocation5 + $0x148] sm:$0xf] %v7009_v47  ;;  %10972 = vmatprep.mubr.bf16.mxu0 %v13954_v20 }
 0x3b1   : > { %v7018_v16 = vrot.slane %v7017_v48, 4  ;;  %v7032_v6 = vrot.slane %v7030_v4, 5  ;;  %v12182_v49 = vrot.slane %v7356_v37, 9  ;;  %v13948_v54 = vld [vmem:[#allocation5 + $0xd8] ss:$36 sps:$4 sm:$0xff]   ;;  %v7478_v27 = vrot.slane %v7357_v34, 5  ;;  %10803 = vmatprep.mubr.bf16.mxu1 %v13950_v45  ;;  %10973 = vmatmul.mubr.bf16.gmra.mxu0 %v13952_v39 }
 0x3b2   : > { %v7481_v52 = vrot.slane %v7358_v63, 5  ;;  %v7035_v29 = vshrl.u32 %v6860_v62, 16  ;;  %v7038_v43 = vshll.u32 %v6860_v62, 16  ;;  %v7359_v60 = vld [vmem:[#allocation3 + $0x54] sm:$0xe]  ;;  %v7028_v3 = vrot.slane %v7027_v13, 4  ;;  %10804 = vmatmul.mubr.bf16.gmra.mxu1 %v13948_v54 }
 0x3b3   : > { %v7360_v53 = vld [vmem:[#allocation3 + $0x58] sm:$0xf]  ;;  %v7023_v41 = vsel %vm14591_vm12, %v7018_v16, %v7022_v1  ;;  %v7044_v26 = vshll.u32 %v6861_v33, 16  ;;  %v7048_v23 = vshrl.u32 %v6861_v33, 16  ;;  %v7479_v9 = vsel %vm14575_vm9, %v12182_v49, %v7478_v27  ;;  %v7361_v14 = vld [vmem:[#allocation3 + $0x5c] sm:$0x1] }
 0x3b4   : > { %v6809_v18 = vld [vmem:[#allocation3 + $0xb8] sm:$0xf]  ;;  %7316 = vst [vmem:[#allocation5 + $0x16c] sm:$0xf] %v7023_v41  ;;  %v7480_v11 = vrot.slane %v7478_v27, 4  ;;  %v7037_v19 = vrot.slane %v7035_v29, 4  ;;  %v7033_v35 = vsel %vm14591_vm12, %v7028_v3, %v7032_v6 }
 0x3b5   : > { %v7040_v12 = vrot.slane %v7038_v43, 5  ;;  %v6863_v31 = vld [vmem:[#allocation3 + $0x54] sm:$0xf]  ;;  %6841 = vst [vmem:[#allocation5 + $0x45c] sm:$0xf] %v6809_v18  ;;  %v7046_v38 = vrot.slane %v7044_v26, 5 }
 0x3b6   : > { %7590 = vst [vmem:[#allocation5 + $0x1b8] sm:$0xf] %v7479_v9  ;;  %v7050_v61 = vrot.slane %v7048_v23, 4  ;;  %v7054_v2 = vshll.u32 %v6862_v51, 16  ;;  %v6864_v50 = vld [vmem:[#allocation3 + $0x58] sm:$0xf]  ;;  %v7482_v28 = vsel %vm14575_vm9, %v7480_v11, %v7481_v52 }
 0x3b7   : > { %v13960_v44 = vld [vmem:[#allocation5 + $0x174] ss:$36 sps:$4 sm:$0xff]   ;;  %7317 = vst [vmem:[#allocation5 + $0x190] sm:$0xf] %v7033_v35  ;;  %v7041_v36 = vor.u32 %v7040_v12, %v7037_v19  ;;  %v6865_v17 = vld [vmem:[#allocation3 + $0x5c] sm:$0x1] }
 0x3b8   : > { %v13958_v5 = vld [vmem:[#allocation5 + $0x170] ss:$36 sps:$4 sm:$0xff]   ;;  %7591 = vst [vmem:[#allocation5 + $0x1dc] sm:$0xf] %v7482_v28  ;;  %v7051_v46 = vor.u32 %v7050_v61, %v7046_v38  ;;  %v12183_v8 = vrot.slane %v7359_v60, 9  ;;  %v7485_v10 = vrot.slane %v7360_v53, 5  ;;  %10980 = vmatprep.mubr.bf16.mxu0 %v13960_v44 }
 0x3b9   : > { %v8447_v22 = vld [vmem:[#allocation3 + $0x30] sm:$0xf]  ;;  %v13957_v32 = vld [vmem:[#allocation5 + $0x124] ss:$36 sps:$4 sm:$0xff]   ;;  %v7042_v37 = vrot.slane %v7041_v36, 4  ;;  %v7056_v59 = vrot.slane %v7054_v2, 5  ;;  %10981 = vmatmul.mubr.bf16.gmra.mxu0 %v13958_v5 }
 0x3ba   : > { %v7488_v57 = vrot.slane %v7361_v14, 5  ;;  %v7362_v58 = vld [vmem:[#allocation3 + $0x60] sm:$0xe]  ;;  %8479 = vst [vmem:[#allocation5 + $0xa8] sm:$0xf] %v8447_v22  ;;  %v7052_v40 = vrot.slane %v7051_v46, 4  ;;  %v7486_v15 = vsel %vm14575_vm9, %v12183_v8, %v7485_v10  ;;  %10811 = vmatprep.mubr.bf16.mxu1 %v13957_v32 }
 0x3bb   : > { %v7487_v34 = vrot.slane %v7485_v10, 4  ;;  %v7059_v63 = vshrl.u32 %v6863_v31, 16  ;;  %v7363_v56 = vld [vmem:[#allocation3 + $0x64] sm:$0xf]  ;;  %v8448_v42 = vld [vmem:[#allocation3 + $0x34] sm:$0xf]  ;;  %v7047_v4 = vsel %vm14591_vm12, %v7042_v37, %v7046_v38 }
 0x3bc   : > { %v13955_v1 = vld [vmem:[#allocation5 + $0x120] ss:$36 sps:$4 sm:$0xff]   ;;  %7592 = vst [vmem:[#allocation5 + $0x200] sm:$0xf] %v7486_v15  ;;  %v7062_v62 = vshll.u32 %v6863_v31, 16  ;;  %v7068_v7 = vshll.u32 %v6864_v50, 16  ;;  %v7057_v33 = vsel %vm14591_vm12, %v7052_v40, %v7056_v59 }
 0x3bd   : > { %v7072_v48 = vshrl.u32 %v6864_v50, 16  ;;  %v6866_v55 = vld [vmem:[#allocation3 + $0x60] sm:$0xf]  ;;  %8480 = vst [vmem:[#allocation5 + $0xcc] sm:$0xf] %v8448_v42  ;;  %v7489_v21 = vsel %vm14575_vm9, %v7487_v34, %v7488_v57  ;;  %v7061_v39 = vrot.slane %v7059_v63, 4  ;;  %10812 = vmatmul.mubr.bf16.gmra.mxu1 %v13955_v1 }
 0x3be   : > { %7318 = vst [vmem:[#allocation5 + $0x1b4] sm:$0xf] %v7047_v4  ;;  %v7078_v20 = vshll.u32 %v6865_v17, 16  ;;  %v7364_v47 = vld [vmem:[#allocation3 + $0x68] sm:$0x1]  ;;  %v7064_v51 = vrot.slane %v7062_v62, 5 }
 0x3bf   : > { %7319 = vst [vmem:[#allocation5 + $0x1d8] sm:$0xf] %v7057_v33  ;;  %7593 = vst [vmem:[#allocation5 + $0x224] sm:$0xf] %v7489_v21  ;;  %v7070_v45 = vrot.slane %v7068_v7, 5  ;;  %v7074_v16 = vrot.slane %v7072_v48, 4 }
 0x3c0   : > { %v6867_v13 = vld [vmem:[#allocation3 + $0x64] sm:$0xf]  ;;  %v12184_v49 = vrot.slane %v7362_v58, 9  ;;  %v13968_v54 = vld [vmem:[#allocation5 + $0x1bc] ss:$36 sps:$4 sm:$0xff]   ;;  %v7065_v27 = vor.u32 %v7064_v51, %v7061_v39  ;;  %v7080_v29 = vrot.slane %v7078_v20, 5 }
 0x3c1   : > { %v13964_v6 = vld [vmem:[#allocation5 + $0x16c] ss:$36 sps:$4 sm:$0xff]   ;;  %v7075_v52 = vor.u32 %v7074_v16, %v7070_v45  ;;  %v7492_v43 = vrot.slane %v7363_v56, 5  ;;  %v7495_v60 = vrot.slane %v7364_v47, 5  ;;  %v7083_v41 = vshrl.u32 %v6866_v55, 16  ;;  %10988 = vmatprep.mubr.bf16.mxu0 %v13968_v54 }
 0x3c2   : > { %10819 = vmatprep.mubr.bf16.mxu1 %v13964_v6  ;;  %v6868_v53 = vld [vmem:[#allocation3 + $0x68] sm:$0x1]  ;;  %v7086_v3 = vshll.u32 %v6866_v55, 16  ;;  %v7092_v26 = vshll.u32 %v6867_v13, 16  ;;  %v13966_v23 = vld [vmem:[#allocation5 + $0x1b8] ss:$36 sps:$4 sm:$0xff]  }
 0x3c3   : > { %v7066_v18 = vrot.slane %v7065_v27, 4  ;;  %v7076_v9 = vrot.slane %v7075_v52, 4  ;;  %v7493_v11 = vsel %vm14575_vm9, %v12184_v49, %v7492_v43  ;;  %v7494_v19 = vrot.slane %v7492_v43, 4  ;;  %v7365_v12 = vld [vmem:[#allocation3 + $0x6c] sm:$0xe]  ;;  %10989 = vmatmul.mubr.bf16.gmra.mxu0 %v13966_v23 }
 0x3c4   : > { %v7366_v14 = vld [vmem:[#allocation3 + $0x70] sm:$0xf]  ;;  %7594 = vst [vmem:[#allocation5 + $0x248] sm:$0xf] %v7493_v11  ;;  %v7085_v31 = vrot.slane %v7083_v41, 4  ;;  %v7088_v35 = vrot.slane %v7086_v3, 5 }
 0x3c5   : > { %v7094_v38 = vrot.slane %v7092_v26, 5  ;;  %v7096_v61 = vshrl.u32 %v6867_v13, 16  ;;  %v6869_v2 = vld [vmem:[#allocation3 + $0x6c] sm:$0xf]  ;;  %v13962_v50 = vld [vmem:[#allocation5 + $0x168] ss:$36 sps:$4 sm:$0xff]   ;;  %v7071_v44 = vsel %vm14591_vm12, %v7066_v18, %v7070_v45  ;;  %v7081_v28 = vsel %vm14591_vm12, %v7076_v9, %v7080_v29 }
 0x3c6   : > { %v7496_v36 = vsel %vm14575_vm9, %v7494_v19, %v7495_v60  ;;  %v7102_v17 = vshll.u32 %v6868_v53, 16  ;;  %v7367_v5 = vld [vmem:[#allocation3 + $0x74] sm:$0x1]  ;;  %v13971_v46 = vld [vmem:[#allocation5 + $0x1b4] ss:$36 sps:$4 sm:$0xff]   ;;  %v7089_v8 = vor.u32 %v7088_v35, %v7085_v31  ;;  %10820 = vmatmul.mubr.bf16.gmra.mxu1 %v13962_v50  ;;  %v12185_v58 = vrot.slane %v7365_v12, 9 }
 0x3c7   : > { %7320 = vst [vmem:[#allocation5 + $0x1fc] sm:$0xf] %v7071_v44  ;;  %7321 = vst [vmem:[#allocation5 + $0x220] sm:$0xf] %v7081_v28  ;;  %v7098_v10 = vrot.slane %v7096_v61, 4  ;;  %10827 = vmatprep.mubr.bf16.mxu1 %v13971_v46  ;;  %v7499_v40 = vrot.slane %v7366_v14, 5 }
 0x3c8   : > { %7595 = vst [vmem:[#allocation5 + $0x26c] sm:$0xf] %v7496_v36  ;;  %v6870_v22 = vld [vmem:[#allocation3 + $0x70] sm:$0xf]  ;;  %v13974_v32 = vld [vmem:[#allocation5 + $0x204] ss:$36 sps:$4 sm:$0xff]  }
 0x3c9   : > { %v7104_v37 = vrot.slane %v7102_v17, 5  ;;  %v7090_v59 = vrot.slane %v7089_v8, 4  ;;  %v7099_v57 = vor.u32 %v7098_v10, %v7094_v38  ;;  %v7368_v15 = vld [vmem:[#allocation3 + $0x78] sm:$0xe]  ;;  %10996 = vmatprep.mubr.bf16.mxu0 %v13974_v32  ;;  %v7502_v34 = vrot.slane %v7367_v5, 5 }
 0x3ca   : > { %v6871_v63 = vld [vmem:[#allocation3 + $0x74] sm:$0x1]  ;;  %v7107_v56 = vshrl.u32 %v6869_v2, 16  ;;  %v7110_v42 = vshll.u32 %v6869_v2, 16  ;;  %v7116_v1 = vshll.u32 %v6870_v22, 16  ;;  %v7500_v7 = vsel %vm14575_vm9, %v12185_v58, %v7499_v40 }
 0x3cb   : > { %v7095_v4 = vsel %vm14591_vm12, %v7090_v59, %v7094_v38  ;;  %v7100_v62 = vrot.slane %v7099_v57, 4  ;;  %v7501_v48 = vrot.slane %v7499_v40, 4  ;;  %v7369_v55 = vld [vmem:[#allocation3 + $0x7c] sm:$0xf]  ;;  %v13969_v21 = vld [vmem:[#allocation5 + $0x1b0] ss:$36 sps:$4 sm:$0xff]  }
 0x3cc   : > { %v8449_v33 = vld [vmem:[#allocation3 + $0x3c] sm:$0xf]  ;;  %7322 = vst [vmem:[#allocation5 + $0x244] sm:$0xf] %v7095_v4  ;;  %7596 = vst [vmem:[#allocation5 + $0x290] sm:$0xf] %v7500_v7 }
 0x3cd   : > { %v7109_v39 = vrot.slane %v7107_v56, 4  ;;  %v7112_v20 = vrot.slane %v7110_v42, 5  ;;  %v7118_v47 = vrot.slane %v7116_v1, 5  ;;  %v7120_v51 = vshrl.u32 %v6870_v22, 16  ;;  %v7370_v45 = vld [vmem:[#allocation3 + $0x80] sm:$0x1] }
 0x3ce   : > { %v6872_v16 = vld [vmem:[#allocation3 + $0x78] sm:$0xf]  ;;  %v6873_v13 = vld [vmem:[#allocation3 + $0x7c] sm:$0xf]  ;;  %8481 = vst [vmem:[#allocation5 + $0xf0] sm:$0xf] %v8449_v33  ;;  %v7105_v49 = vsel %vm14591_vm12, %v7100_v62, %v7104_v37  ;;  %v7503_v54 = vsel %vm14575_vm9, %v7501_v48, %v7502_v34  ;;  %10828 = vmatmul.mubr.bf16.gmra.mxu1 %v13969_v21 }
 0x3cf   : > { %v13972_v6 = vld [vmem:[#allocation5 + $0x200] ss:$36 sps:$4 sm:$0xff]   ;;  %v7126_v27 = vshll.u32 %v6871_v63, 16  ;;  %v8450_v52 = vld [vmem:[#allocation3 + $0x40] sm:$0xf]  ;;  %v7113_v29 = vor.u32 %v7112_v20, %v7109_v39  ;;  %v7122_v43 = vrot.slane %v7120_v51, 4 }
 0x3d0   : > { %7323 = vst [vmem:[#allocation5 + $0x268] sm:$0xf] %v7105_v49  ;;  %7597 = vst [vmem:[#allocation5 + $0x2b4] sm:$0xf] %v7503_v54  ;;  %v12186_v60 = vrot.slane %v7368_v15, 9  ;;  %v7506_v53 = vrot.slane %v7369_v55, 5  ;;  %10997 = vmatmul.mubr.bf16.gmra.mxu0 %v13972_v6 }
 0x3d1   : > { %8482 = vst [vmem:[#allocation5 + $0x114] sm:$0xf] %v8450_v52  ;;  %v13978_v41 = vld [vmem:[#allocation5 + $0x1fc] ss:$36 sps:$4 sm:$0xff]   ;;  %v7128_v3 = vrot.slane %v7126_v27, 5  ;;  %v7114_v18 = vrot.slane %v7113_v29, 4  ;;  %v7123_v9 = vor.u32 %v7122_v43, %v7118_v47 }
 0x3d2   : > { %v6874_v26 = vld [vmem:[#allocation3 + $0x80] sm:$0x1]  ;;  %v13982_v23 = vld [vmem:[#allocation5 + $0x24c] ss:$36 sps:$4 sm:$0xff]   ;;  %v7507_v11 = vsel %vm14575_vm9, %v12186_v60, %v7506_v53  ;;  %v7508_v19 = vrot.slane %v7506_v53, 4  ;;  %10835 = vmatprep.mubr.bf16.mxu1 %v13978_v41  ;;  %v7509_v14 = vrot.slane %v7370_v45, 5 }
 0x3d3   : > { %v7371_v12 = vld [vmem:[#allocation3 + $0x84] sm:$0xe]  ;;  %7598 = vst [vmem:[#allocation5 + $0x2d8] sm:$0xf] %v7507_v11  ;;  %v7131_v31 = vshrl.u32 %v6872_v16, 16  ;;  %v7134_v35 = vshll.u32 %v6872_v16, 16  ;;  %11004 = vmatprep.mubr.bf16.mxu0 %v13982_v23  ;;  %v7119_v2 = vsel %vm14591_vm12, %v7114_v18, %v7118_v47 }
 0x3d4   : > { %v7140_v38 = vshll.u32 %v6873_v13, 16  ;;  %v7372_v61 = vld [vmem:[#allocation3 + $0x88] sm:$0xf]  ;;  %v7124_v50 = vrot.slane %v7123_v9, 4  ;;  %v7144_v44 = vshrl.u32 %v6873_v13, 16  ;;  %v7150_v28 = vshll.u32 %v6874_v26, 16 }
 0x3d5   : > { %v7373_v36 = vld [vmem:[#allocation3 + $0x8c] sm:$0x1]  ;;  %v6875_v17 = vld [vmem:[#allocation3 + $0x84] sm:$0xf]  ;;  %7324 = vst [vmem:[#allocation5 + $0x28c] sm:$0xf] %v7119_v2  ;;  %v7510_v5 = vsel %vm14575_vm9, %v7508_v19, %v7509_v14 }
 0x3d6   : > { %v7133_v46 = vrot.slane %v7131_v31, 4  ;;  %v7136_v8 = vrot.slane %v7134_v35, 5  ;;  %v7142_v10 = vrot.slane %v7140_v38, 5  ;;  %v6876_v22 = vld [vmem:[#allocation3 + $0x88] sm:$0xf]  ;;  %v7129_v37 = vsel %vm14591_vm12, %v7124_v50, %v7128_v3 }
 0x3d7   : > { %v13976_v32 = vld [vmem:[#allocation5 + $0x1f8] ss:$36 sps:$4 sm:$0xff]   ;;  %7599 = vst [vmem:[#allocation5 + $0x2fc] sm:$0xf] %v7510_v5  ;;  %v7146_v59 = vrot.slane %v7144_v44, 4  ;;  %v12187_v15 = vrot.slane %v7371_v12, 9 }
 0x3d8   : > { %v6877_v57 = vld [vmem:[#allocation3 + $0x8c] sm:$0x1]  ;;  %v13980_v58 = vld [vmem:[#allocation5 + $0x248] ss:$36 sps:$4 sm:$0xff]   ;;  %7325 = vst [vmem:[#allocation5 + $0x2b0] sm:$0xf] %v7129_v37  ;;  %v7137_v40 = vor.u32 %v7136_v8, %v7133_v46  ;;  %10836 = vmatmul.mubr.bf16.gmra.mxu1 %v13976_v32 }
 0x3d9   : > { %v7513_v34 = vrot.slane %v7372_v61, 5  ;;  %v13990_v63 = vld [vmem:[#allocation5 + $0x294] ss:$36 sps:$4 sm:$0xff]   ;;  %v7147_v56 = vor.u32 %v7146_v59, %v7142_v10  ;;  %v7152_v42 = vrot.slane %v7150_v28, 5  ;;  %v7516_v1 = vrot.slane %v7373_v36, 5  ;;  %11005 = vmatmul.mubr.bf16.gmra.mxu0 %v13980_v58 }
 0x3da   : > { %v13985_v4 = vld [vmem:[#allocation5 + $0x244] ss:$36 sps:$4 sm:$0xff]   ;;  %v7138_v62 = vrot.slane %v7137_v40, 4  ;;  %v7155_v55 = vshrl.u32 %v6875_v17, 16  ;;  %v7374_v33 = vld [vmem:[#allocation3 + $0x90] sm:$0xe]  ;;  %11012 = vmatprep.mubr.bf16.mxu0 %v13990_v63 }
 0x3db   : > { %v7514_v7 = vsel %vm14575_vm9, %v12187_v15, %v7513_v34  ;;  %v7515_v48 = vrot.slane %v7513_v34, 4  ;;  %v7148_v21 = vrot.slane %v7147_v56, 4  ;;  %v7158_v39 = vshll.u32 %v6875_v17, 16  ;;  %10843 = vmatprep.mubr.bf16.mxu1 %v13985_v4  ;;  %v7375_v6 = vld [vmem:[#allocation3 + $0x94] sm:$0xf] }
 0x3dc   : > { %7600 = vst [vmem:[#allocation5 + $0x320] sm:$0xf] %v7514_v7  ;;  %v7164_v20 = vshll.u32 %v6876_v22, 16  ;;  %v7168_v47 = vshrl.u32 %v6876_v22, 16  ;;  %v7143_v51 = vsel %vm14591_vm12, %v7138_v62, %v7142_v10  ;;  %v7157_v16 = vrot.slane %v7155_v55, 4 }
 0x3dd   : > { %v7517_v45 = vsel %vm14575_vm9, %v7515_v48, %v7516_v1  ;;  %v7174_v13 = vshll.u32 %v6877_v57, 16  ;;  %v6878_v49 = vld [vmem:[#allocation3 + $0x90] sm:$0xf]  ;;  %v7153_v54 = vsel %vm14591_vm12, %v7148_v21, %v7152_v42  ;;  %7326 = vst [vmem:[#allocation5 + $0x2d4] sm:$0xf] %v7143_v51  ;;  %v7160_v27 = vrot.slane %v7158_v39, 5  ;;  %v13001_v39 = vpop.f32.mrf.mxu1 }
 0x3de   : > { %7601 = vst [vmem:[#allocation5 + $0x344] sm:$0xf] %v7517_v45  ;;  %v7166_v52 = vrot.slane %v7164_v20, 5  ;;  %v7170_v29 = vrot.slane %v7168_v47, 4  ;;  %v7376_v43 = vld [vmem:[#allocation3 + $0x98] sm:$0x1] }
 0x3df   : > { %v13988_v60 = vld [vmem:[#allocation5 + $0x290] ss:$36 sps:$4 sm:$0xff]   ;;  %7327 = vst [vmem:[#allocation5 + $0x2f8] sm:$0xf] %v7153_v54  ;;  %v6879_v53 = vld [vmem:[#allocation3 + $0x94] sm:$0xf]  ;;  %v7161_v26 = vor.u32 %v7160_v27, %v7157_v16 }
 0x3e0   : > { %v13983_v41 = vld [vmem:[#allocation5 + $0x240] ss:$36 sps:$4 sm:$0xff]   ;;  %v7171_v23 = vor.u32 %v7170_v29, %v7166_v52  ;;  %v7176_v18 = vrot.slane %v7174_v13, 5  ;;  %v12188_v9 = vrot.slane %v7374_v33, 9  ;;  %v7520_v19 = vrot.slane %v7375_v6, 5 }
 0x3e1   : > { %v13998_v3 = vld [vmem:[#allocation5 + $0x2dc] ss:$36 sps:$4 sm:$0xff]   ;;  %v7523_v12 = vrot.slane %v7376_v43, 5  ;;  %v7179_v14 = vshrl.u32 %v6878_v49, 16  ;;  %v7182_v31 = vshll.u32 %v6878_v49, 16  ;;  %v7162_v2 = vrot.slane %v7161_v26, 4  ;;  %11013 = vmatmul.mubr.bf16.gmra.mxu0 %v13988_v60  ;;  %10844 = vmatmul.mubr.bf16.gmra.mxu1 %v13983_v41 }
 0x3e2   : > { %v6880_v11 = vld [vmem:[#allocation3 + $0x98] sm:$0x1]  ;;  %v7377_v35 = vld [vmem:[#allocation3 + $0x9c] sm:$0xe]  ;;  %v7378_v38 = vld [vmem:[#allocation3 + $0xa0] sm:$0xf]  ;;  %v7521_v5 = vsel %vm14575_vm9, %v12188_v9, %v7520_v19  ;;  %11020 = vmatprep.mubr.bf16.mxu0 %v13998_v3 }
 0x3e3   : > { %v8451_v61 = vld [vmem:[#allocation3 + $0x48] sm:$0xf]  ;;  %v7172_v50 = vrot.slane %v7171_v23, 4  ;;  %v7188_v44 = vshll.u32 %v6879_v53, 16  ;;  %v7192_v28 = vshrl.u32 %v6879_v53, 16  ;;  %v7522_v46 = vrot.slane %v7520_v19, 4 }
 0x3e4   : > { %v8452_v36 = vld [vmem:[#allocation3 + $0x4c] sm:$0xf]  ;;  %8483 = vst [vmem:[#allocation5 + $0x138] sm:$0xf] %v8451_v61  ;;  %v13994_v17 = vld [vmem:[#allocation5 + $0x28c] ss:$36 sps:$4 sm:$0xff]   ;;  %v7167_v22 = vsel %vm14591_vm12, %v7162_v2, %v7166_v52 }
 0x3e5   : > { %v7181_v8 = vrot.slane %v7179_v14, 4  ;;  %v7184_v10 = vrot.slane %v7182_v31, 5  ;;  %8484 = vst [vmem:[#allocation5 + $0x15c] sm:$0xf] %v8452_v36  ;;  %v7177_v32 = vsel %vm14591_vm12, %v7172_v50, %v7176_v18  ;;  %7602 = vst [vmem:[#allocation5 + $0x368] sm:$0xf] %v7521_v5  ;;  %10851 = vmatprep.mubr.bf16.mxu1 %v13994_v17  ;;  %v7524_v40 = vsel %vm14575_vm9, %v7522_v46, %v7523_v12  ;;  %v13002_v12 = vpop.f32.mrf.mxu1 }
 0x3e6   : > { %v7190_v37 = vrot.slane %v7188_v44, 5  ;;  %v7194_v59 = vrot.slane %v7192_v28, 4  ;;  %v7379_v57 = vld [vmem:[#allocation3 + $0xa4] sm:$0x1]  ;;  %v6881_v58 = vld [vmem:[#allocation3 + $0x9c] sm:$0xf] }
 0x3e7   : > { %7328 = vst [vmem:[#allocation5 + $0x31c] sm:$0xf] %v7167_v22  ;;  %7329 = vst [vmem:[#allocation5 + $0x340] sm:$0xf] %v7177_v32  ;;  %v7185_v15 = vor.u32 %v7184_v10, %v7181_v8  ;;  %v7198_v34 = vshll.u32 %v6880_v11, 16  ;;  %v12189_v56 = vrot.slane %v7377_v35, 9 }
 0x3e8   : > { %7603 = vst [vmem:[#allocation5 + $0x38c] sm:$0xf] %v7524_v40  ;;  %v7195_v63 = vor.u32 %v7194_v59, %v7190_v37  ;;  %v7527_v42 = vrot.slane %v7378_v38, 5  ;;  %v6882_v1 = vld [vmem:[#allocation3 + $0xa0] sm:$0xf]  ;;  %v7530_v55 = vrot.slane %v7379_v57, 5  ;;  %v16459_v38 = vadd.f32 %v13002_v12, %v13001_v39 }
 0x3e9   : > { %v7380_v4 = vld [vmem:[#allocation3 + $0xa8] sm:$0xe]  ;;  %v7381_v62 = vld [vmem:[#allocation3 + $0xac] sm:$0xf]  ;;  %v7186_v7 = vrot.slane %v7185_v15, 4  ;;  %v7200_v48 = vrot.slane %v7198_v34, 5 }
 0x3ea   : > { %v6883_v33 = vld [vmem:[#allocation3 + $0xa4] sm:$0x1]  ;;  %v7203_v21 = vshrl.u32 %v6881_v58, 16  ;;  %v13996_v20 = vld [vmem:[#allocation5 + $0x2d8] ss:$36 sps:$4 sm:$0xff]   ;;  %v7196_v47 = vrot.slane %v7195_v63, 4  ;;  %v7528_v51 = vsel %vm14575_vm9, %v12189_v56, %v7527_v42 }
 0x3eb   : > { %v7529_v45 = vrot.slane %v7527_v42, 4  ;;  %v7206_v16 = vshll.u32 %v6881_v58, 16  ;;  %v7382_v13 = vld [vmem:[#allocation3 + $0xb0] sm:$0x1]  ;;  %v13992_v6 = vld [vmem:[#allocation5 + $0x288] ss:$36 sps:$4 sm:$0xff]   ;;  %v7191_v49 = vsel %vm14591_vm12, %v7186_v7, %v7190_v37  ;;  %11021 = vmatmul.mubr.bf16.gmra.mxu0 %v13996_v20 }
 0x3ec   : > { %7604 = vst [vmem:[#allocation5 + $0x3b0] sm:$0xf] %v7528_v51  ;;  %v7205_v54 = vrot.slane %v7203_v21, 4  ;;  %v7212_v27 = vshll.u32 %v6882_v1, 16  ;;  %v7216_v52 = vshrl.u32 %v6882_v1, 16  ;;  %v7201_v41 = vsel %vm14591_vm12, %v7196_v47, %v7200_v48  ;;  %10852 = vmatmul.mubr.bf16.gmra.mxu1 %v13992_v6 }
 0x3ed   : > { %v6884_v29 = vld [vmem:[#allocation3 + $0xa8] sm:$0xf]  ;;  %v6885_v43 = vld [vmem:[#allocation3 + $0xac] sm:$0xf]  ;;  %v14006_v53 = vld [vmem:[#allocation5 + $0x324] ss:$36 sps:$4 sm:$0xff]   ;;  %v7531_v3 = vsel %vm14575_vm9, %v7529_v45, %v7530_v55 }
 0x3ee   : > { %v14001_v60 = vld [vmem:[#allocation5 + $0x2d4] ss:$36 sps:$4 sm:$0xff]   ;;  %7330 = vst [vmem:[#allocation5 + $0x364] sm:$0xf] %v7191_v49  ;;  %v7208_v26 = vrot.slane %v7206_v16, 5  ;;  %v7222_v23 = vshll.u32 %v6883_v33, 16  ;;  %11028 = vmatprep.mubr.bf16.mxu0 %v14006_v53 }
 0x3ef   : > { %7331 = vst [vmem:[#allocation5 + $0x388] sm:$0xf] %v7201_v41  ;;  %7605 = vst [vmem:[#allocation5 + $0x3d4] sm:$0xf] %v7531_v3  ;;  %v7214_v18 = vrot.slane %v7212_v27, 5  ;;  %v7218_v9 = vrot.slane %v7216_v52, 4  ;;  %10859 = vmatprep.mubr.bf16.mxu1 %v14001_v60 }
 0x3f0   : > { %v12190_v11 = vrot.slane %v7380_v4, 9  ;;  %v7534_v19 = vrot.slane %v7381_v62, 5  ;;  %v7209_v14 = vor.u32 %v7208_v26, %v7205_v54  ;;  %v7224_v31 = vrot.slane %v7222_v23, 5  ;;  %v6886_v35 = vld [vmem:[#allocation3 + $0xb0] sm:$0x1] }
 0x3f1   : > { %v7219_v61 = vor.u32 %v7218_v9, %v7214_v18  ;;  %v7537_v44 = vrot.slane %v7382_v13, 5  ;;  %v7383_v28 = vld [vmem:[#allocation3 + $0xb4] sm:$0xe]  ;;  %v7227_v17 = vshrl.u32 %v6884_v29, 16  ;;  %v7230_v5 = vshll.u32 %v6884_v29, 16 }
 0x3f2   : > { %v7535_v2 = vsel %vm14575_vm9, %v12190_v11, %v7534_v19  ;;  %v7536_v50 = vrot.slane %v7534_v19, 4  ;;  %v7210_v36 = vrot.slane %v7209_v14, 4  ;;  %v7236_v46 = vshll.u32 %v6885_v43, 16  ;;  %v7384_v8 = vld [vmem:[#allocation3 + $0xb8] sm:$0xf] }
 0x3f3   : > { %7606 = vst [vmem:[#allocation5 + $0x3f8] sm:$0xf] %v7535_v2  ;;  %v7220_v10 = vrot.slane %v7219_v61, 4  ;;  %v7240_v32 = vshrl.u32 %v6885_v43, 16  ;;  %v7246_v37 = vshll.u32 %v6886_v35, 16  ;;  %v7229_v15 = vrot.slane %v7227_v17, 4 }
 0x3f4   : > { %v7538_v22 = vsel %vm14575_vm9, %v7536_v50, %v7537_v44  ;;  %v7385_v59 = vld [vmem:[#allocation3 + $0xbc] sm:$0x1]  ;;  %v6887_v57 = vld [vmem:[#allocation3 + $0xb4] sm:$0xf]  ;;  %v7215_v40 = vsel %vm14591_vm12, %v7210_v36, %v7214_v18  ;;  %v7232_v34 = vrot.slane %v7230_v5, 5  ;;  %v7238_v63 = vrot.slane %v7236_v46, 5 }
 0x3f5   : > { %v14004_v58 = vld [vmem:[#allocation5 + $0x320] ss:$36 sps:$4 sm:$0xff]   ;;  %7607 = vst [vmem:[#allocation5 + $0x41c] sm:$0xf] %v7538_v22  ;;  %v13999_v42 = vld [vmem:[#allocation5 + $0x2d0] ss:$36 sps:$4 sm:$0xff]   ;;  %v7225_v1 = vsel %vm14591_vm12, %v7220_v10, %v7224_v31 }
 0x3f6   : > { %v6888_v56 = vld [vmem:[#allocation3 + $0xb8] sm:$0xf]  ;;  %7332 = vst [vmem:[#allocation5 + $0x3ac] sm:$0xf] %v7215_v40  ;;  %v7242_v4 = vrot.slane %v7240_v32, 4  ;;  %v7233_v55 = vor.u32 %v7232_v34, %v7229_v15  ;;  %v12191_v33 = vrot.slane %v7383_v28, 9  ;;  %11029 = vmatmul.mubr.bf16.gmra.mxu0 %v14004_v58  ;;  %10860 = vmatmul.mubr.bf16.gmra.mxu1 %v13999_v42 }
 0x3f7   : > { %v6889_v62 = vld [vmem:[#allocation3 + $0xbc] sm:$0x1]  ;;  %v8453_v7 = vld [vmem:[#allocation3 + $0x54] sm:$0xf]  ;;  %v14014_v48 = vld [vmem:[#allocation5 + $0x36c] ss:$36 sps:$4 sm:$0xff]  }
 0x3f8   : > { %7333 = vst [vmem:[#allocation5 + $0x3d0] sm:$0xf] %v7225_v1  ;;  %v7541_v21 = vrot.slane %v7384_v8, 5  ;;  %8485 = vst [vmem:[#allocation5 + $0x180] sm:$0xf] %v8453_v7  ;;  %v7243_v20 = vor.u32 %v7242_v4, %v7238_v63  ;;  %v7248_v47 = vrot.slane %v7246_v37, 5  ;;  %11036 = vmatprep.mubr.bf16.mxu0 %v14014_v48 }
 0x3f9   : > { %v14010_v39 = vld [vmem:[#allocation5 + $0x31c] ss:$36 sps:$4 sm:$0xff]   ;;  %v7544_v51 = vrot.slane %v7385_v59, 5  ;;  %v7234_v16 = vrot.slane %v7233_v55, 4  ;;  %v7251_v49 = vshrl.u32 %v6887_v57, 16  ;;  %v7254_v52 = vshll.u32 %v6887_v57, 16 }
 0x3fa   : > { %v8507_v45 = vld [vmem:[#allocation3 + $0x18] sm:$0xf]  ;;  %v7542_v13 = vsel %vm14575_vm9, %v12191_v33, %v7541_v21  ;;  %v7543_v6 = vrot.slane %v7541_v21, 4  ;;  %10867 = vmatprep.mubr.bf16.mxu1 %v14010_v39  ;;  %v7244_v27 = vrot.slane %v7243_v20, 4  ;;  %v7260_v29 = vshll.u32 %v6888_v56, 16 }
 0x3fb   : > { %v8454_v54 = vld [vmem:[#allocation3 + $0x58] sm:$0xf]  ;;  %7608 = vst [vmem:[#allocation5 + $0x440] sm:$0xf] %v7542_v13  ;;  %v7264_v43 = vshrl.u32 %v6888_v56, 16  ;;  %v7239_v60 = vsel %vm14591_vm12, %v7234_v16, %v7238_v63  ;;  %v7253_v41 = vrot.slane %v7251_v49, 4 }
 0x3fc   : > { %8486 = vst [vmem:[#allocation5 + $0x1a4] sm:$0xf] %v8454_v54  ;;  %v7545_v53 = vsel %vm14575_vm9, %v7543_v6, %v7544_v51  ;;  %v7270_v3 = vshll.u32 %v6889_v62, 16  ;;  %v8508_v26 = vld [vmem:[#allocation3 + $0x1c] sm:$0xf]  ;;  %v7249_v23 = vsel %vm14591_vm12, %v7244_v27, %v7248_v47  ;;  %v7256_v18 = vrot.slane %v7254_v52, 5 }
 0x3fd   : > { %7334 = vst [vmem:[#allocation5 + $0x3f4] sm:$0xf] %v7239_v60  ;;  %7609 = vst [vmem:[#allocation5 + $0x464] sm:$0xf] %v7545_v53  ;;  %v8509_v9 = vld [vmem:[#allocation3 + $0x20] sm:$0x1] }
 0x3fe   : > { %v7674_v11 = vld [vmem:[#allocation3 + $0xc] sm:$0xf]  ;;  %v14008_v19 = vld [vmem:[#allocation5 + $0x318] ss:$36 sps:$4 sm:$0xff]   ;;  %7335 = vst [vmem:[#allocation5 + $0x418] sm:$0xf] %v7249_v23  ;;  %v7257_v61 = vor.u32 %v7256_v18, %v7253_v41 }
 0x3ff   : > { %v7262_v12 = vrot.slane %v7260_v29, 5  ;;  %v7266_v14 = vrot.slane %v7264_v43, 4  ;;  %v8556_v31 = vshrl.u32 %v8507_v45, 16  ;;  %v14012_v35 = vld [vmem:[#allocation5 + $0x368] ss:$36 sps:$4 sm:$0xff]   ;;  %v7272_v2 = vrot.slane %v7270_v3, 5  ;;  %10868 = vmatmul.mubr.bf16.gmra.mxu1 %v14008_v19 }
 0x400   : > { %v8559_v50 = vshll.u32 %v8507_v45, 16  ;;  %v7675_v44 = vld [vmem:[#allocation3 + $0x10] sm:$0xf]  ;;  %v8565_v5 = vshll.u32 %v8508_v26, 16  ;;  %v8569_v46 = vshrl.u32 %v8508_v26, 16  ;;  %11037 = vmatmul.mubr.bf16.gmra.mxu0 %v14012_v35  ;;  %v7258_v10 = vrot.slane %v7257_v61, 4 }
 0x401   : > { %v14022_v28 = vld [vmem:[#allocation5 + $0x3b4] ss:$36 sps:$4 sm:$0xff]   ;;  %v7267_v36 = vor.u32 %v7266_v14, %v7262_v12  ;;  %v8558_v17 = vrot.slane %v8556_v31, 4  ;;  %v14017_v8 = vld [vmem:[#allocation5 + $0x364] ss:$36 sps:$4 sm:$0xff]   ;;  %v8575_v32 = vshll.u32 %v8509_v9, 16 }
 0x402   : > { %v8561_v22 = vrot.slane %v8559_v50, 5  ;;  %v7723_v37 = vshrl.u32 %v7674_v11, 16  ;;  %11044 = vmatprep.mubr.bf16.mxu0 %v14022_v28  ;;  %v8567_v57 = vrot.slane %v8565_v5, 5  ;;  %v8571_v58 = vrot.slane %v8569_v46, 4  ;;  %10875 = vmatprep.mubr.bf16.mxu1 %v14017_v8  ;;  %v7676_v63 = vld [vmem:[#allocation3 + $0x14] sm:$0x1] }
 0x403   : > { %v7268_v59 = vrot.slane %v7267_v36, 4  ;;  %v7726_v40 = vshll.u32 %v7674_v11, 16  ;;  %v7263_v15 = vsel %vm14591_vm12, %v7258_v10, %v7262_v12  ;;  %v8170_v42 = vld [vmem:[#allocation3 + $0xc] sm:$0xe]  ;;  %v8171_v1 = vld [vmem:[#allocation3 + $0x10] sm:$0xf] }
 0x404   : > { %v8562_v34 = vor.u32 %v8561_v22, %v8558_v17  ;;  %v7725_v56 = vrot.slane %v7723_v37, 4  ;;  %7336 = vst [vmem:[#allocation5 + $0x43c] sm:$0xf] %v7263_v15  ;;  %v8572_v62 = vor.u32 %v8571_v58, %v8567_v57  ;;  %v7732_v48 = vshll.u32 %v7675_v44, 16  ;;  %v8172_v55 = vld [vmem:[#allocation3 + $0x14] sm:$0x1] }
 0x405   : > { %v7273_v4 = vsel %vm14591_vm12, %v7268_v59, %v7272_v2  ;;  %v7728_v7 = vrot.slane %v7726_v40, 5  ;;  %v8577_v21 = vrot.slane %v8575_v32, 5  ;;  %v8510_v39 = vld [vmem:[#allocation3 + $0x24] sm:$0xf]  ;;  %v7736_v45 = vshrl.u32 %v7675_v44, 16 }
 0x406   : > { %7337 = vst [vmem:[#allocation5 + $0x460] sm:$0xf] %v7273_v4  ;;  %v8563_v33 = vrot.slane %v8562_v34, 4  ;;  %v8573_v20 = vrot.slane %v8572_v62, 4  ;;  %v7734_v51 = vrot.slane %v7732_v48, 5  ;;  %v12192_v54 = vrot.slane %v8170_v42, 9 }
 0x407   : > { %v7729_v47 = vor.u32 %v7728_v7, %v7725_v56  ;;  %v8511_v16 = vld [vmem:[#allocation3 + $0x28] sm:$0xf]  ;;  %v14015_v13 = vld [vmem:[#allocation5 + $0x360] ss:$36 sps:$4 sm:$0xff]   ;;  %v8268_v27 = vrot.slane %v8171_v1, 5  ;;  %v7738_v53 = vrot.slane %v7736_v45, 4 }
 0x408   : > { %v14020_v6 = vld [vmem:[#allocation5 + $0x3b0] ss:$36 sps:$4 sm:$0xff]   ;;  %v8568_v49 = vsel %vm14591_vm12, %v8563_v33, %v8567_v57  ;;  %v14030_v29 = vld [vmem:[#allocation5 + $0x3fc] ss:$36 sps:$4 sm:$0xff]   ;;  %v8578_v43 = vsel %vm14591_vm12, %v8573_v20, %v8577_v21  ;;  %v7742_v41 = vshll.u32 %v7676_v63, 16  ;;  %v8271_v18 = vrot.slane %v8172_v55, 5  ;;  %10876 = vmatmul.mubr.bf16.gmra.mxu1 %v14015_v13 }
 0x409   : > { %v8512_v52 = vld [vmem:[#allocation3 + $0x2c] sm:$0x1]  ;;  %8971 = vst [vmem:[#allocation5 + $0x1c] sm:$0xf] %v8568_v49  ;;  %v7730_v60 = vrot.slane %v7729_v47, 4  ;;  %11045 = vmatmul.mubr.bf16.gmra.mxu0 %v14020_v6  ;;  %v8269_v26 = vsel %vm14575_vm9, %v12192_v54, %v8268_v27  ;;  %v8270_v23 = vrot.slane %v8268_v27, 4  ;;  %v7739_v12 = vor.u32 %v7738_v53, %v7734_v51 }
 0x40a   : > { %v14026_v3 = vld [vmem:[#allocation5 + $0x3ac] ss:$36 sps:$4 sm:$0xff]   ;;  %8972 = vst [vmem:[#allocation5 + $0x40] sm:$0xf] %v8578_v43  ;;  %v8580_v9 = vshrl.u32 %v8510_v39, 16  ;;  %11052 = vmatprep.mubr.bf16.mxu0 %v14030_v29  ;;  %v8583_v14 = vshll.u32 %v8510_v39, 16 }
 0x40b   : > { %v7677_v11 = vld [vmem:[#allocation3 + $0x18] sm:$0xf]  ;;  %v7735_v19 = vsel %vm14591_vm12, %v7730_v60, %v7734_v51  ;;  %8410 = vst [vmem:[#allocation5 + $0x14] sm:$0xf] %v8269_v26  ;;  %v8589_v31 = vshll.u32 %v8511_v16, 16  ;;  %10883 = vmatprep.mubr.bf16.mxu1 %v14026_v3  ;;  %v8272_v2 = vsel %vm14575_vm9, %v8270_v23, %v8271_v18  ;;  %v8593_v44 = vshrl.u32 %v8511_v16, 16 }
 0x40c   : > { %v8455_v35 = vld [vmem:[#allocation3 + $0x60] sm:$0xf]  ;;  %v8456_v61 = vld [vmem:[#allocation3 + $0x64] sm:$0xf]  ;;  %8138 = vst [vmem:[#allocation5 + $0x10] sm:$0xf] %v7735_v19 }
 0x40d   : > { %v8582_v50 = vrot.slane %v8580_v9, 4  ;;  %v7678_v28 = vld [vmem:[#allocation3 + $0x1c] sm:$0xf]  ;;  %8487 = vst [vmem:[#allocation5 + $0x1c8] sm:$0xf] %v8455_v35  ;;  %v7740_v36 = vrot.slane %v7739_v12, 4 }
 0x40e   : > { %8488 = vst [vmem:[#allocation5 + $0x1ec] sm:$0xf] %v8456_v61  ;;  %v7744_v17 = vrot.slane %v7742_v41, 5  ;;  %8411 = vst [vmem:[#allocation5 + $0x38] sm:$0xf] %v8272_v2  ;;  %v8599_v5 = vshll.u32 %v8512_v52, 16 }
 0x40f   : > { %v8585_v46 = vrot.slane %v8583_v14, 5  ;;  %v8591_v8 = vrot.slane %v8589_v31, 5  ;;  %v8595_v10 = vrot.slane %v8593_v44, 4  ;;  %v7679_v22 = vld [vmem:[#allocation3 + $0x20] sm:$0x1]  ;;  %v7747_v57 = vshrl.u32 %v7677_v11, 16 }
 0x410   : > { %v8173_v32 = vld [vmem:[#allocation3 + $0x18] sm:$0xe]  ;;  %v8174_v37 = vld [vmem:[#allocation3 + $0x1c] sm:$0xf]  ;;  %v7745_v59 = vsel %vm14591_vm12, %v7740_v36, %v7744_v17  ;;  %v7750_v58 = vshll.u32 %v7677_v11, 16  ;;  %v7756_v40 = vshll.u32 %v7678_v28, 16 }
 0x411   : > { %v8175_v15 = vld [vmem:[#allocation3 + $0x20] sm:$0x1]  ;;  %v14028_v63 = vld [vmem:[#allocation5 + $0x3f8] ss:$36 sps:$4 sm:$0xff]   ;;  %8139 = vst [vmem:[#allocation5 + $0x34] sm:$0xf] %v7745_v59  ;;  %v8586_v56 = vor.u32 %v8585_v46, %v8582_v50  ;;  %v8596_v42 = vor.u32 %v8595_v10, %v8591_v8 }
 0x412   : > { %v14024_v34 = vld [vmem:[#allocation5 + $0x3a8] ss:$36 sps:$4 sm:$0xff]   ;;  %v7760_v1 = vshrl.u32 %v7678_v28, 16  ;;  %v8513_v4 = vld [vmem:[#allocation3 + $0x30] sm:$0xf]  ;;  %v8601_v7 = vrot.slane %v8599_v5, 5  ;;  %11053 = vmatmul.mubr.bf16.gmra.mxu0 %v14028_v63 }
 0x413   : > { %v14039_v62 = vld [vmem:[#allocation5 + $0x444] ss:$36 sps:$4 sm:$0xff]   ;;  %v7749_v48 = vrot.slane %v7747_v57, 4  ;;  %v8514_v55 = vld [vmem:[#allocation3 + $0x34] sm:$0xf]  ;;  %v8587_v21 = vrot.slane %v8586_v56, 4  ;;  %10884 = vmatmul.mubr.bf16.gmra.mxu1 %v14024_v34 }
 0x414   : > { %v14033_v33 = vld [vmem:[#allocation5 + $0x3f4] ss:$36 sps:$4 sm:$0xff]   ;;  %v8597_v39 = vrot.slane %v8596_v42, 4  ;;  %v7752_v20 = vrot.slane %v7750_v58, 5  ;;  %v7758_v47 = vrot.slane %v7756_v40, 5  ;;  %11060 = vmatprep.mubr.bf16.mxu0 %v14039_v62  ;;  %v7762_v51 = vrot.slane %v7760_v1, 4 }
 0x415   : > { %v7766_v45 = vshll.u32 %v7679_v22, 16  ;;  %v12193_v16 = vrot.slane %v8173_v32, 9  ;;  %v8275_v13 = vrot.slane %v8174_v37, 5  ;;  %10891 = vmatprep.mubr.bf16.mxu1 %v14033_v33  ;;  %v8592_v6 = vsel %vm14591_vm12, %v8587_v21, %v8591_v8  ;;  %v8515_v52 = vld [vmem:[#allocation3 + $0x38] sm:$0x1] }
 0x416   : > { %v8602_v49 = vsel %vm14591_vm12, %v8597_v39, %v8601_v7  ;;  %v7753_v54 = vor.u32 %v7752_v20, %v7749_v48  ;;  %v8278_v27 = vrot.slane %v8175_v15, 5  ;;  %8973 = vst [vmem:[#allocation5 + $0x64] sm:$0xf] %v8592_v6  ;;  %v7763_v29 = vor.u32 %v7762_v51, %v7758_v47  ;;  %v7680_v41 = vld [vmem:[#allocation3 + $0x24] sm:$0xf] }
 0x417   : > { %8974 = vst [vmem:[#allocation5 + $0x88] sm:$0xf] %v8602_v49  ;;  %v8276_v43 = vsel %vm14575_vm9, %v12193_v16, %v8275_v13  ;;  %v8277_v60 = vrot.slane %v8275_v13, 4  ;;  %v8604_v53 = vshrl.u32 %v8513_v4, 16  ;;  %v7681_v3 = vld [vmem:[#allocation3 + $0x28] sm:$0xf] }
 0x418   : > { %v14037_v26 = vld [vmem:[#allocation5 + $0x440] ss:$36 sps:$4 sm:$0xff]   ;;  %v7754_v23 = vrot.slane %v7753_v54, 4  ;;  %8412 = vst [vmem:[#allocation5 + $0x5c] sm:$0xf] %v8276_v43  ;;  %v8607_v18 = vshll.u32 %v8513_v4, 16 }
 0x419   : > { %v8613_v9 = vshll.u32 %v8514_v55, 16  ;;  %v8617_v11 = vshrl.u32 %v8514_v55, 16  ;;  %v8457_v19 = vld [vmem:[#allocation3 + $0x6c] sm:$0xf]  ;;  %v7764_v14 = vrot.slane %v7763_v29, 4  ;;  %v7768_v31 = vrot.slane %v7766_v45, 5  ;;  %v13004_v45 = vpop.f32.mrf.mxu1  ;;  %v13113_v29 = vpop.f32.mrf.mxu0 }
 0x41a   : > { %v14031_v12 = vld [vmem:[#allocation5 + $0x3f0] ss:$36 sps:$4 sm:$0xff]   ;;  %v8279_v35 = vsel %vm14575_vm9, %v8277_v60, %v8278_v27  ;;  %8489 = vst [vmem:[#allocation5 + $0x210] sm:$0xf] %v8457_v19  ;;  %v7759_v61 = vsel %vm14591_vm12, %v7754_v23, %v7758_v47  ;;  %v8606_v2 = vrot.slane %v8604_v53, 4  ;;  %v8609_v50 = vrot.slane %v8607_v18, 5  ;;  %11061 = vmatmul.mubr.bf16.gmra.mxu0 %v14037_v26 }
 0x41b   : > { %8413 = vst [vmem:[#allocation5 + $0x80] sm:$0xf] %v8279_v35  ;;  %v8615_v44 = vrot.slane %v8613_v9, 5  ;;  %v7682_v28 = vld [vmem:[#allocation3 + $0x2c] sm:$0x1]  ;;  %v7769_v5 = vsel %vm14591_vm12, %v7764_v14, %v7768_v31  ;;  %v8619_v46 = vrot.slane %v8617_v11, 4  ;;  %10892 = vmatmul.mubr.bf16.gmra.mxu1 %v14031_v12  ;;  %v13005_v35 = vpop.f32.mrf.mxu1 }
 0x41c   : > { %v8458_v36 = vld [vmem:[#allocation3 + $0x70] sm:$0xf]  ;;  %v14052_v17 = vld [vmem:[#allocation5 + $0x1c] ss:$36 sps:$4 sm:$0xff]   ;;  %8140 = vst [vmem:[#allocation5 + $0x58] sm:$0xf] %v7759_v61  ;;  %v8610_v59 = vor.u32 %v8609_v50, %v8606_v2  ;;  %v13114_v61 = vpop.f32.mrf.mxu0 }
 0x41d   : > { %v8623_v8 = vshll.u32 %v8515_v52, 16  ;;  %v7771_v10 = vshrl.u32 %v7680_v41, 16  ;;  %v8176_v22 = vld [vmem:[#allocation3 + $0x24] sm:$0xe]  ;;  %v8177_v32 = vld [vmem:[#allocation3 + $0x28] sm:$0xf]  ;;  %11262 = vmatprep.mubr.bf16.mxu0 %v14052_v17  ;;  %v8620_v15 = vor.u32 %v8619_v46, %v8615_v44 }
 0x41e   : > { %8490 = vst [vmem:[#allocation5 + $0x234] sm:$0xf] %v8458_v36  ;;  %v14044_v37 = vld [vmem:[#allocation5 + $0x43c] ss:$36 sps:$4 sm:$0xff]   ;;  %8141 = vst [vmem:[#allocation5 + $0x7c] sm:$0xf] %v7769_v5 }
 0x41f   : > { %v7774_v57 = vshll.u32 %v7680_v41, 16  ;;  %v7780_v58 = vshll.u32 %v7681_v3, 16  ;;  %v7784_v40 = vshrl.u32 %v7681_v3, 16  ;;  %v7773_v34 = vrot.slane %v7771_v10, 4  ;;  %v8178_v63 = vld [vmem:[#allocation3 + $0x2c] sm:$0x1]  ;;  %10899 = vmatprep.mubr.bf16.mxu1 %v14044_v37 }
 0x420   : > { %v8516_v56 = vld [vmem:[#allocation3 + $0x3c] sm:$0xf]  ;;  %v8611_v42 = vrot.slane %v8610_v59, 4  ;;  %v8625_v1 = vrot.slane %v8623_v8, 5  ;;  %v8621_v62 = vrot.slane %v8620_v15, 4  ;;  %v7790_v55 = vshll.u32 %v7682_v28, 16 }
 0x421   : > { %v7776_v4 = vrot.slane %v7774_v57, 5  ;;  %v7782_v7 = vrot.slane %v7780_v58, 5  ;;  %v7786_v48 = vrot.slane %v7784_v40, 4  ;;  %v12194_v39 = vrot.slane %v8176_v22, 9  ;;  %v8517_v47 = vld [vmem:[#allocation3 + $0x40] sm:$0xf] }
 0x422   : > { %v8616_v33 = vsel %vm14591_vm12, %v8611_v42, %v8615_v44  ;;  %v8282_v20 = vrot.slane %v8177_v32, 5  ;;  %v16507_v51 = vld [vmem:[#allocation3 + $0x44] sm:$0x1]  ;;  %v14042_v16 = vld [vmem:[#allocation5 + $0x438] ss:$36 sps:$4 sm:$0xff]   ;;  %v8626_v13 = vsel %vm14591_vm12, %v8621_v62, %v8625_v1  ;;  %v8285_v49 = vrot.slane %v8178_v63, 5  ;;  %v13116_v1 = vpop.f32.mrf.mxu0 }
 0x423   : > { %v7777_v21 = vor.u32 %v7776_v4, %v7773_v34  ;;  %8975 = vst [vmem:[#allocation5 + $0xac] sm:$0xf] %v8616_v33  ;;  %v7787_v6 = vor.u32 %v7786_v48, %v7782_v7  ;;  %v8628_v54 = vshrl.u32 %v8516_v56, 16  ;;  %v7683_v27 = vld [vmem:[#allocation3 + $0x30] sm:$0xf]  ;;  %v8631_v3 = vshll.u32 %v8516_v56, 16  ;;  %10900 = vmatmul.mubr.bf16.gmra.mxu1 %v14042_v16 }
 0x424   : > { %v7684_v52 = vld [vmem:[#allocation3 + $0x34] sm:$0xf]  ;;  %8976 = vst [vmem:[#allocation5 + $0xd0] sm:$0xf] %v8626_v13  ;;  %v8283_v53 = vsel %vm14575_vm9, %v12194_v39, %v8282_v20  ;;  %v8284_v41 = vrot.slane %v8282_v20, 4  ;;  %v7792_v18 = vrot.slane %v7790_v55, 5  ;;  %v16522_v15 = vadd.f32 %v13005_v35, %v13004_v45 }
 0x425   : > { %v14050_v43 = vld [vmem:[#allocation5 + $0x18] ss:$36 sps:$4 sm:$0xff]   ;;  %v7778_v60 = vrot.slane %v7777_v21, 4  ;;  %v14060_v26 = vld [vmem:[#allocation5 + $0x64] ss:$36 sps:$4 sm:$0xff]   ;;  %v7788_v23 = vrot.slane %v7787_v6, 4  ;;  %v13115_v55 = vadd.f32 %v13114_v61, %v13113_v29 }
 0x426   : > { %8414 = vst [vmem:[#allocation5 + $0xa4] sm:$0xf] %v8283_v53  ;;  %v14055_v9 = vld [vmem:[#allocation5 + $0x14] ss:$36 sps:$4 sm:$0xff]   ;;  %11263 = vmatmul.mubr.bf16.vlgmr.msra.gmra.mxu0 %v14050_v43  ;;  %v8286_v19 = vsel %vm14575_vm9, %v8284_v41, %v8285_v49  ;;  %v8630_v12 = vrot.slane %v8628_v54, 4  ;;  %v8633_v14 = vrot.slane %v8631_v3, 5  ;;  %v13117_v53 = vpop.f32.mrf.mxu0 }
 0x427   : > { %v7783_v11 = vsel %vm14591_vm12, %v7778_v60, %v7782_v7  ;;  %v8459_v31 = vld [vmem:[#allocation3 + $0x78] sm:$0xf]  ;;  %11270 = vmatprep.mubr.bf16.mxu0 %v14060_v26  ;;  %v7793_v2 = vsel %vm14591_vm12, %v7788_v23, %v7792_v18  ;;  %8415 = vst [vmem:[#allocation5 + $0xc8] sm:$0xf] %v8286_v19  ;;  %v8637_v50 = vshll.u32 %v8517_v47, 16  ;;  %v8641_v44 = vshrl.u32 %v8517_v47, 16  ;;  %11101 = vmatprep.mubr.bf16.mxu1 %v14055_v9 }
 0x428   : > { %8142 = vst [vmem:[#allocation5 + $0xa0] sm:$0xf] %v7783_v11  ;;  %v8647_v28 = vshll.u32 %v16507_v51, 16  ;;  %v7685_v36 = vld [vmem:[#allocation3 + $0x38] sm:$0x1]  ;;  %v8634_v46 = vor.u32 %v8633_v14, %v8630_v12  ;;  %v7795_v8 = vshrl.u32 %v7683_v27, 16  ;;  %v16532_v9 = vadd.f32 %v13115_v55, %v16459_v38 }
 0x429   : > { %v8179_v17 = vld [vmem:[#allocation3 + $0x30] sm:$0xe]  ;;  %v8460_v5 = vld [vmem:[#allocation3 + $0x7c] sm:$0xf]  ;;  %8491 = vst [vmem:[#allocation5 + $0x258] sm:$0xf] %v8459_v31 }
 0x42a   : > { %8143 = vst [vmem:[#allocation5 + $0xc4] sm:$0xf] %v7793_v2  ;;  %v7798_v10 = vshll.u32 %v7683_v27, 16  ;;  %v7804_v22 = vshll.u32 %v7684_v52, 16  ;;  %v8180_v32 = vld [vmem:[#allocation3 + $0x34] sm:$0xf] }
 0x42b   : > { %v16520_v37 = vld [vmem:[#allocation3 + $0x38] sm:$0x1]  ;;  %8492 = vst [vmem:[#allocation5 + $0x27c] sm:$0xf] %v8460_v5  ;;  %v8639_v59 = vrot.slane %v8637_v50, 5  ;;  %v8643_v57 = vrot.slane %v8641_v44, 4 }
 0x42c   : > { %v7808_v58 = vshrl.u32 %v7684_v52, 16  ;;  %v8519_v40 = vld [vmem:[#allocation3 + $0x48] sm:$0xf]  ;;  %v8635_v34 = vrot.slane %v8634_v46, 4  ;;  %v7797_v63 = vrot.slane %v7795_v8, 4  ;;  %v7800_v56 = vrot.slane %v7798_v10, 5 }
 0x42d   : > { %v7806_v42 = vrot.slane %v7804_v22, 5  ;;  %v14053_v4 = vld [vmem:[#allocation5 + $0x10] ss:$36 sps:$4 sm:$0xff]   ;;  %v8644_v62 = vor.u32 %v8643_v57, %v8639_v59  ;;  %v8649_v7 = vrot.slane %v8647_v28, 5  ;;  %v14058_v33 = vld [vmem:[#allocation5 + $0x60] ss:$36 sps:$4 sm:$0xff]  }
 0x42e   : > { %v7810_v48 = vrot.slane %v7808_v58, 4  ;;  %v14064_v21 = vld [vmem:[#allocation5 + $0x5c] ss:$36 sps:$4 sm:$0xff]   ;;  %v8640_v39 = vsel %vm14591_vm12, %v8635_v34, %v8639_v59  ;;  %v7801_v20 = vor.u32 %v7800_v56, %v7797_v63  ;;  %v7814_v47 = vshll.u32 %v7685_v36, 16  ;;  %v8520_v45 = vld [vmem:[#allocation3 + $0x4c] sm:$0xf]  ;;  %11271 = vmatmul.mubr.bf16.gmra.mxu0 %v14058_v33  ;;  %11102 = vmatmul.mubr.bf16.vlgmr.msra.gmra.mxu1 %v14053_v4 }
 0x42f   : > { %v12195_v51 = vrot.slane %v8179_v17, 9  ;;  %v14067_v16 = vld [vmem:[#allocation5 + $0xac] ss:$36 sps:$4 sm:$0xff]   ;;  %v8645_v13 = vrot.slane %v8644_v62, 4  ;;  %8977 = vst [vmem:[#allocation5 + $0xf4] sm:$0xf] %v8640_v39  ;;  %11109 = vmatprep.mubr.bf16.mxu1 %v14064_v21  ;;  %v13118_v36 = vadd.f32 %v13117_v53, %v13116_v1 }
 0x430   : > { %v14074_v6 = vld [vmem:[#allocation11 + $0x230] sm:$0xff]   ;;  %v7811_v49 = vor.u32 %v7810_v48, %v7806_v42  ;;  %v8289_v54 = vrot.slane %v8180_v32, 5  ;;  %v8292_v27 = vrot.slane %v16520_v37, 5  ;;  %v7802_v52 = vrot.slane %v7801_v20, 4  ;;  %11278 = vmatprep.mubr.bf16.mxu0 %v14067_v16  ;;  %v8521_v23 = vld [vmem:[#allocation3 + $0x50] sm:$0x1] }
 0x431   : > { %v7816_v29 = vrot.slane %v7814_v47, 5  ;;  %v8652_v43 = vshrl.u32 %v8519_v40, 16  ;;  %v8655_v60 = vshll.u32 %v8519_v40, 16  ;;  %v8650_v41 = vsel %vm14591_vm12, %v8645_v13, %v8649_v7  ;;  %v7686_v18 = vld [vmem:[#allocation3 + $0x3c] sm:$0xf]  ;;  %v14179_v11 = vld [vmem:[#allocation11 + $0x238] sm:$0xff]  }
 0x432   : > { %v7812_v3 = vrot.slane %v7811_v49, 4  ;;  %v8290_v26 = vsel %vm14575_vm9, %v12195_v51, %v8289_v54  ;;  %13506 = vmatpush3.bf16.msra.mxu1 %v14179_v11  ;;  %8978 = vst [vmem:[#allocation5 + $0x118] sm:$0xf] %v8650_v41  ;;  %v7807_v19 = vsel %vm14591_vm12, %v7802_v52, %v7806_v42  ;;  %v8291_v12 = vrot.slane %v8289_v54, 4  ;;  %v7687_v35 = vld [vmem:[#allocation3 + $0x40] sm:$0xf] }
 0x433   : > { %8416 = vst [vmem:[#allocation5 + $0xec] sm:$0xf] %v8290_v26  ;;  %v8654_v14 = vrot.slane %v8652_v43, 4  ;;  %v8657_v31 = vrot.slane %v8655_v60, 5  ;;  %v14087_v61 = vld [vmem:[#allocation11 + $0x228] sm:$0xff]   ;;  %13507 = vmatprep.subr.bf16.mxu1 %v14074_v6  ;;  %v8661_v38 = vshll.u32 %v8520_v45, 16  ;;  %v16546_v49 = vadd.f32 %v13118_v36, %v16522_v15 }
 0x434   : > { %v7817_v2 = vsel %vm14591_vm12, %v7812_v3, %v7816_v29  ;;  %8144 = vst [vmem:[#allocation5 + $0xe8] sm:$0xf] %v7807_v19  ;;  %v8665_v50 = vshrl.u32 %v8520_v45, 16  ;;  %v16538_v44 = vld [vmem:[#allocation3 + $0x44] sm:$0x1]  ;;  %v8293_v5 = vsel %vm14575_vm9, %v8291_v12, %v8292_v27  ;;  %v7819_v8 = vshrl.u32 %v7686_v18, 16 }
 0x435   : > { %v8182_v28 = vld [vmem:[#allocation3 + $0x3c] sm:$0xe]  ;;  %v14065_v17 = vld [vmem:[#allocation5 + $0xa8] ss:$36 sps:$4 sm:$0xff]   ;;  %8145 = vst [vmem:[#allocation5 + $0x10c] sm:$0xf] %v7817_v2  ;;  %v8658_v46 = vor.u32 %v8657_v31, %v8654_v14 }
 0x436   : > { %v7822_v10 = vshll.u32 %v7686_v18, 16  ;;  %v8183_v22 = vld [vmem:[#allocation3 + $0x40] sm:$0xf]  ;;  %v14062_v32 = vld [vmem:[#allocation5 + $0x58] ss:$36 sps:$4 sm:$0xff]   ;;  %v8663_v37 = vrot.slane %v8661_v38, 5  ;;  %13508 = vmatpush3.bf16.msra.mxu1 %v14074_v6  ;;  %11279 = vmatmul.mubr.bf16.gmra.mxu0 %v14065_v17 }
 0x437   : > { %8417 = vst [vmem:[#allocation5 + $0x110] sm:$0xf] %v8293_v5  ;;  %v8667_v59 = vrot.slane %v8665_v50, 4  ;;  %v8671_v57 = vshll.u32 %v8521_v23, 16  ;;  %v7828_v58 = vshll.u32 %v7687_v35, 16  ;;  %v8659_v34 = vrot.slane %v8658_v46, 4  ;;  %13509 = vmatprep.subr.bf16.mxu1 %v14087_v61  ;;  %11110 = vmatmul.mubr.bf16.gmra.mxu1 %v14062_v32 }
 0x438   : > { %v8461_v40 = vld [vmem:[#allocation3 + $0x84] sm:$0xf]  ;;  %v7821_v63 = vrot.slane %v7819_v8, 4  ;;  %v7824_v56 = vrot.slane %v7822_v10, 5  ;;  %v7832_v42 = vshrl.u32 %v7687_v35, 16  ;;  %v7838_v7 = vshll.u32 %v16538_v44, 16 }
 0x439   : > { %v8184_v1 = vld [vmem:[#allocation3 + $0x44] sm:$0x1]  ;;  %8493 = vst [vmem:[#allocation5 + $0x2a0] sm:$0xf] %v8461_v40  ;;  %v8668_v4 = vor.u32 %v8667_v59, %v8663_v37  ;;  %v7830_v62 = vrot.slane %v7828_v58, 5  ;;  %v12196_v48 = vrot.slane %v8182_v28, 9  ;;  %v8664_v39 = vsel %vm14591_vm12, %v8659_v34, %v8663_v37 }
 0x43a   : > { %v14100_v55 = vld [vmem:[#allocation11 + $0x220] sm:$0xff]   ;;  %v8462_v33 = vld [vmem:[#allocation3 + $0x88] sm:$0xf]  ;;  %v7825_v20 = vor.u32 %v7824_v56, %v7821_v63  ;;  %v7834_v47 = vrot.slane %v7832_v42, 4  ;;  %v8296_v51 = vrot.slane %v8183_v22, 5  ;;  %v8673_v6 = vrot.slane %v8671_v57, 5  ;;  %13510 = vmatpush3.bf16.msra.mxu1 %v14087_v61 }
 0x43b   : > { %v14070_v21 = vld [vmem:[#allocation5 + $0xa4] ss:$36 sps:$4 sm:$0xff]   ;;  %v8522_v45 = vld [vmem:[#allocation3 + $0x54] sm:$0xf]  ;;  %8494 = vst [vmem:[#allocation5 + $0x2c4] sm:$0xf] %v8462_v33  ;;  %13511 = vmatprep.subr.bf16.mxu1 %v14100_v55 }
 0x43c   : > { %v14073_v16 = vld [vmem:[#allocation5 + $0xf4] ss:$36 sps:$4 sm:$0xff]   ;;  %v8669_v13 = vrot.slane %v8668_v4, 4  ;;  %8979 = vst [vmem:[#allocation5 + $0x13c] sm:$0xf] %v8664_v39  ;;  %11117 = vmatprep.mubr.bf16.mxu1 %v14070_v21  ;;  %v7826_v54 = vrot.slane %v7825_v20, 4  ;;  %v7835_v27 = vor.u32 %v7834_v47, %v7830_v62  ;;  %v8297_v52 = vsel %vm14575_vm9, %v12196_v48, %v8296_v51 }
 0x43d   : > { %v8523_v29 = vld [vmem:[#allocation3 + $0x58] sm:$0xf]  ;;  %v7689_v43 = vld [vmem:[#allocation3 + $0x48] sm:$0xf]  ;;  %11286 = vmatprep.mubr.bf16.mxu0 %v14073_v16  ;;  %v8298_v53 = vrot.slane %v8296_v51, 4  ;;  %v8299_v41 = vrot.slane %v8184_v1, 5 }
 0x43e   : > { %v8674_v60 = vsel %vm14591_vm12, %v8669_v13, %v8673_v6  ;;  %8418 = vst [vmem:[#allocation5 + $0x134] sm:$0xf] %v8297_v52  ;;  %v8524_v3 = vld [vmem:[#allocation3 + $0x5c] sm:$0x1]  ;;  %v8676_v26 = vshrl.u32 %v8522_v45, 16  ;;  %v14113_v23 = vld [vmem:[#allocation11 + $0x218] sm:$0xff]   ;;  %v7831_v18 = vsel %vm14591_vm12, %v7826_v54, %v7830_v62  ;;  %13512 = vmatpush3.bf16.msra.mxu1 %v14100_v55 }
 0x43f   : > { %v7690_v15 = vld [vmem:[#allocation3 + $0x4c] sm:$0xf]  ;;  %8980 = vst [vmem:[#allocation5 + $0x160] sm:$0xf] %v8674_v60  ;;  %v7836_v11 = vrot.slane %v7835_v27, 4  ;;  %v7840_v19 = vrot.slane %v7838_v7, 5  ;;  %v8300_v14 = vsel %vm14575_vm9, %v8298_v53, %v8299_v41  ;;  %13513 = vmatprep.subr.bf16.mxu1 %v14113_v23 }
 0x440   : > { %v16554_v12 = vld [vmem:[#allocation3 + $0x50] sm:$0x1]  ;;  %8146 = vst [vmem:[#allocation5 + $0x130] sm:$0xf] %v7831_v18  ;;  %v8678_v31 = vrot.slane %v8676_v26, 4  ;;  %v8679_v35 = vshll.u32 %v8522_v45, 16 }
 0x441   : > { %v8685_v61 = vshll.u32 %v8523_v29, 16  ;;  %v8185_v2 = vld [vmem:[#allocation3 + $0x48] sm:$0xe]  ;;  %v8186_v38 = vld [vmem:[#allocation3 + $0x4c] sm:$0xf]  ;;  %v7841_v36 = vsel %vm14591_vm12, %v7836_v11, %v7840_v19  ;;  %v8689_v17 = vshrl.u32 %v8523_v29, 16 }
 0x442   : > { %v14126_v50 = vld [vmem:[#allocation11 + $0x210] sm:$0xff]   ;;  %v14068_v44 = vld [vmem:[#allocation5 + $0xa0] ss:$36 sps:$4 sm:$0xff]   ;;  %8419 = vst [vmem:[#allocation5 + $0x158] sm:$0xf] %v8300_v14  ;;  %v7843_v5 = vshrl.u32 %v7689_v43, 16  ;;  %13514 = vmatpush3.bf16.msra.mxu1 %v14113_v23 }
 0x443   : > { %v14071_v28 = vld [vmem:[#allocation5 + $0xf0] ss:$36 sps:$4 sm:$0xff]   ;;  %8147 = vst [vmem:[#allocation5 + $0x154] sm:$0xf] %v7841_v36  ;;  %v8681_v8 = vrot.slane %v8679_v35, 5  ;;  %v8687_v10 = vrot.slane %v8685_v61, 5  ;;  %11118 = vmatmul.mubr.bf16.gmra.mxu1 %v14068_v44  ;;  %13515 = vmatprep.subr.bf16.mxu1 %v14126_v50 }
 0x444   : > { %v14077_v46 = vld [vmem:[#allocation5 + $0xec] ss:$36 sps:$4 sm:$0xff]   ;;  %v7846_v22 = vshll.u32 %v7689_v43, 16  ;;  %v7852_v32 = vshll.u32 %v7690_v15, 16  ;;  %11287 = vmatmul.mubr.bf16.gmra.mxu0 %v14071_v28  ;;  %v8691_v37 = vrot.slane %v8689_v17, 4  ;;  %v8695_v59 = vshll.u32 %v8524_v3, 16 }
 0x445   : > { %v7845_v57 = vrot.slane %v7843_v5, 4  ;;  %v7856_v58 = vshrl.u32 %v7690_v15, 16  ;;  %v8682_v40 = vor.u32 %v8681_v8, %v8678_v31  ;;  %v7862_v56 = vshll.u32 %v16554_v12, 16  ;;  %v8187_v42 = vld [vmem:[#allocation3 + $0x50] sm:$0x1]  ;;  %11125 = vmatprep.mubr.bf16.mxu1 %v14077_v46  ;;  %v14139_v20 = vld [vmem:[#allocation11 + $0x208] sm:$0xff]  }
 0x446   : > { %v7848_v34 = vrot.slane %v7846_v22, 5  ;;  %v7854_v63 = vrot.slane %v7852_v32, 5  ;;  %v8692_v1 = vor.u32 %v8691_v37, %v8687_v10  ;;  %v12197_v62 = vrot.slane %v8185_v2, 9  ;;  %v8525_v48 = vld [vmem:[#allocation3 + $0x60] sm:$0xf]  ;;  %13516 = vmatpush3.bf16.msra.mxu1 %v14126_v50  ;;  %v14149_v14 = vld [vmem:[#allocation11 + $0x200] sm:$0xff]  }
 0x447   : > { %v7858_v4 = vrot.slane %v7856_v58, 4  ;;  %v8303_v7 = vrot.slane %v8186_v38, 5  ;;  %v14080_v55 = vld [vmem:[#allocation5 + $0x13c] ss:$36 sps:$4 sm:$0xff]   ;;  %v8683_v33 = vrot.slane %v8682_v40, 4  ;;  %v8697_v51 = vrot.slane %v8695_v59, 5  ;;  %13517 = vmatprep.subr.bf16.mxu1 %v14139_v20 }
 0x448   : > { %v7849_v21 = vor.u32 %v7848_v34, %v7845_v57  ;;  %v8526_v39 = vld [vmem:[#allocation3 + $0x64] sm:$0xf]  ;;  %v8693_v47 = vrot.slane %v8692_v1, 4  ;;  %v7692_v13 = vld [vmem:[#allocation3 + $0x54] sm:$0xf]  ;;  %11294 = vmatprep.mubr.bf16.mxu0 %v14080_v55  ;;  %v8306_v29 = vrot.slane %v8187_v42, 5 }
 0x449   : > { %v7859_v45 = vor.u32 %v7858_v4, %v7854_v63  ;;  %v8304_v16 = vsel %vm14575_vm9, %v12197_v62, %v8303_v7  ;;  %v8463_v6 = vld [vmem:[#allocation3 + $0x90] sm:$0xf]  ;;  %v8688_v54 = vsel %vm14591_vm12, %v8683_v33, %v8687_v10  ;;  %v8305_v52 = vrot.slane %v8303_v7, 4  ;;  %v8527_v43 = vld [vmem:[#allocation3 + $0x68] sm:$0x1] }
 0x44a   : > { %v7850_v27 = vrot.slane %v7849_v21, 4  ;;  %8420 = vst [vmem:[#allocation5 + $0x17c] sm:$0xf] %v8304_v16  ;;  %v7693_v60 = vld [vmem:[#allocation3 + $0x58] sm:$0xf]  ;;  %v8698_v3 = vsel %vm14591_vm12, %v8693_v47, %v8697_v51  ;;  %v7864_v15 = vrot.slane %v7862_v56, 5  ;;  %13518 = vmatpush3.bf16.msra.mxu1 %v14139_v20 }
 0x44b   : > { %v8464_v53 = vld [vmem:[#allocation3 + $0x94] sm:$0xf]  ;;  %8495 = vst [vmem:[#allocation5 + $0x2e8] sm:$0xf] %v8463_v6  ;;  %8981 = vst [vmem:[#allocation5 + $0x184] sm:$0xf] %v8688_v54  ;;  %v8307_v11 = vsel %vm14575_vm9, %v8305_v52, %v8306_v29  ;;  %13519 = vmatprep.subr.bf16.mxu1 %v14149_v14 }
 0x44c   : > { %v14078_v41 = vld [vmem:[#allocation5 + $0x138] ss:$36 sps:$4 sm:$0xff]   ;;  %v7860_v26 = vrot.slane %v7859_v45, 4  ;;  %8496 = vst [vmem:[#allocation5 + $0x30c] sm:$0xf] %v8464_v53  ;;  %v7855_v18 = vsel %vm14591_vm12, %v7850_v27, %v7854_v63  ;;  %v8700_v19 = vshrl.u32 %v8525_v48, 16 }
 0x44d   : > { %v14075_v23 = vld [vmem:[#allocation5 + $0xe8] ss:$36 sps:$4 sm:$0xff]   ;;  %8982 = vst [vmem:[#allocation5 + $0x1a8] sm:$0xf] %v8698_v3  ;;  %v8703_v12 = vshll.u32 %v8525_v48, 16  ;;  %11295 = vmatmul.mubr.bf16.gmra.mxu0 %v14078_v41  ;;  %v8709_v61 = vshll.u32 %v8526_v39, 16 }
 0x44e   : > { %v14083_v31 = vld [vmem:[#allocation5 + $0x134] ss:$36 sps:$4 sm:$0xff]   ;;  %v7865_v35 = vsel %vm14591_vm12, %v7860_v26, %v7864_v15  ;;  %8148 = vst [vmem:[#allocation5 + $0x178] sm:$0xf] %v7855_v18  ;;  %8421 = vst [vmem:[#allocation5 + $0x1a0] sm:$0xf] %v8307_v11  ;;  %11126 = vmatmul.mubr.bf16.gmra.mxu1 %v14075_v23 }
 0x44f   : > { %v8713_v2 = vshrl.u32 %v8526_v39, 16  ;;  %8149 = vst [vmem:[#allocation5 + $0x19c] sm:$0xf] %v7865_v35  ;;  %v8702_v38 = vrot.slane %v8700_v19, 4  ;;  %v8705_v50 = vrot.slane %v8703_v12, 5  ;;  %v7867_v28 = vshrl.u32 %v7692_v13, 16  ;;  %11133 = vmatprep.mubr.bf16.mxu1 %v14083_v31  ;;  %13520 = vmatpush3.bf16.msra.mxu1 %v14149_v14 }
 0x450   : > { %v7694_v44 = vld [vmem:[#allocation3 + $0x5c] sm:$0x1]  ;;  %v7870_v36 = vshll.u32 %v7692_v13, 16  ;;  %v8711_v17 = vrot.slane %v8709_v61, 5  ;;  %v8719_v46 = vshll.u32 %v8527_v43, 16  ;;  %v7876_v8 = vshll.u32 %v7693_v60, 16 }
 0x451   : > { %v8715_v5 = vrot.slane %v8713_v2, 4  ;;  %v8189_v10 = vld [vmem:[#allocation3 + $0x58] sm:$0xf]  ;;  %v8706_v22 = vor.u32 %v8705_v50, %v8702_v38  ;;  %v7869_v32 = vrot.slane %v7867_v28, 4  ;;  %v7880_v59 = vshrl.u32 %v7693_v60, 16 }
 0x452   : > { %v7872_v37 = vrot.slane %v7870_v36, 5  ;;  %v8188_v57 = vld [vmem:[#allocation3 + $0x54] sm:$0xe]  ;;  %v7878_v40 = vrot.slane %v7876_v8, 5  ;;  %v7886_v34 = vshll.u32 %v7694_v44, 16  ;;  %v8310_v62 = vrot.slane %v8189_v10, 5 }
 0x453   : > { %v8716_v58 = vor.u32 %v8715_v5, %v8711_v17  ;;  %v8190_v63 = vld [vmem:[#allocation3 + $0x5c] sm:$0x1]  ;;  %v8528_v56 = vld [vmem:[#allocation3 + $0x6c] sm:$0xf]  ;;  %v8707_v42 = vrot.slane %v8706_v22, 4  ;;  %v7882_v4 = vrot.slane %v7880_v59, 4 }
 0x454   : > { %v7873_v1 = vor.u32 %v7872_v37, %v7869_v32  ;;  %v8529_v7 = vld [vmem:[#allocation3 + $0x70] sm:$0xf]  ;;  %v14086_v48 = vld [vmem:[#allocation5 + $0x184] ss:$36 sps:$4 sm:$0xff]   ;;  %v8721_v33 = vrot.slane %v8719_v46, 5  ;;  %v12198_v21 = vrot.slane %v8188_v57, 9 }
 0x455   : > { %v8717_v55 = vrot.slane %v8716_v58, 4  ;;  %v7695_v39 = vld [vmem:[#allocation3 + $0x60] sm:$0xf]  ;;  %v14081_v20 = vld [vmem:[#allocation5 + $0x130] ss:$36 sps:$4 sm:$0xff]   ;;  %v8712_v51 = vsel %vm14591_vm12, %v8707_v42, %v8711_v17  ;;  %v7883_v16 = vor.u32 %v7882_v4, %v7878_v40  ;;  %11302 = vmatprep.mubr.bf16.mxu0 %v14086_v48  ;;  %v7888_v27 = vrot.slane %v7886_v34, 5 }
 0x456   : > { %v14084_v47 = vld [vmem:[#allocation5 + $0x180] ss:$36 sps:$4 sm:$0xff]   ;;  %v7874_v45 = vrot.slane %v7873_v1, 4  ;;  %v8530_v13 = vld [vmem:[#allocation3 + $0x74] sm:$0x1]  ;;  %v8311_v52 = vsel %vm14575_vm9, %v12198_v21, %v8310_v62  ;;  %v8312_v29 = vrot.slane %v8310_v62, 4  ;;  %11134 = vmatmul.mubr.bf16.gmra.mxu1 %v14081_v20 }
 0x457   : > { %v14090_v6 = vld [vmem:[#allocation5 + $0x17c] ss:$36 sps:$4 sm:$0xff]   ;;  %v8722_v54 = vsel %vm14591_vm12, %v8717_v55, %v8721_v33  ;;  %8983 = vst [vmem:[#allocation5 + $0x1cc] sm:$0xf] %v8712_v51  ;;  %v7696_v43 = vld [vmem:[#allocation3 + $0x64] sm:$0xf]  ;;  %11303 = vmatmul.mubr.bf16.gmra.mxu0 %v14084_v47 }
 0x458   : > { %8984 = vst [vmem:[#allocation5 + $0x1f0] sm:$0xf] %v8722_v54  ;;  %v7879_v60 = vsel %vm14591_vm12, %v7874_v45, %v7878_v40  ;;  %v7884_v53 = vrot.slane %v7883_v16, 4  ;;  %v8313_v41 = vrot.slane %v8190_v63, 5  ;;  %8422 = vst [vmem:[#allocation5 + $0x1c4] sm:$0xf] %v8311_v52  ;;  %11141 = vmatprep.mubr.bf16.mxu1 %v14090_v6 }
 0x459   : > { %v8724_v3 = vshrl.u32 %v8528_v56, 16  ;;  %v8465_v26 = vld [vmem:[#allocation3 + $0x9c] sm:$0xf]  ;;  %8150 = vst [vmem:[#allocation5 + $0x1c0] sm:$0xf] %v7879_v60  ;;  %v8727_v15 = vshll.u32 %v8528_v56, 16 }
 0x45a   : > { %v8733_v23 = vshll.u32 %v8529_v7, 16  ;;  %v8737_v18 = vshrl.u32 %v8529_v7, 16  ;;  %v8466_v11 = vld [vmem:[#allocation3 + $0xa0] sm:$0xf]  ;;  %8497 = vst [vmem:[#allocation5 + $0x330] sm:$0xf] %v8465_v26  ;;  %v7889_v19 = vsel %vm14591_vm12, %v7884_v53, %v7888_v27  ;;  %v8314_v12 = vsel %vm14575_vm9, %v8312_v29, %v8313_v41  ;;  %v13119_v53 = vpop.f32.mrf.mxu0 }
 0x45b   : > { %v8726_v14 = vrot.slane %v8724_v3, 4  ;;  %v7697_v31 = vld [vmem:[#allocation3 + $0x68] sm:$0x1]  ;;  %v7891_v35 = vshrl.u32 %v7695_v39, 16  ;;  %8498 = vst [vmem:[#allocation5 + $0x354] sm:$0xf] %v8466_v11 }
 0x45c   : > { %8151 = vst [vmem:[#allocation5 + $0x1e4] sm:$0xf] %v7889_v19  ;;  %8423 = vst [vmem:[#allocation5 + $0x1e8] sm:$0xf] %v8314_v12  ;;  %v8729_v61 = vrot.slane %v8727_v15, 5  ;;  %v8735_v2 = vrot.slane %v8733_v23, 5 }
 0x45d   : > { %v8739_v38 = vrot.slane %v8737_v18, 4  ;;  %v8743_v50 = vshll.u32 %v8530_v13, 16  ;;  %v8192_v44 = vld [vmem:[#allocation3 + $0x64] sm:$0xf]  ;;  %v7893_v28 = vrot.slane %v7891_v35, 4  ;;  %v7894_v36 = vshll.u32 %v7695_v39, 16 }
 0x45e   : > { %v7900_v17 = vshll.u32 %v7696_v43, 16  ;;  %v7904_v5 = vshrl.u32 %v7696_v43, 16  ;;  %v8191_v46 = vld [vmem:[#allocation3 + $0x60] sm:$0xe]  ;;  %v14088_v8 = vld [vmem:[#allocation5 + $0x178] ss:$36 sps:$4 sm:$0xff]   ;;  %v8730_v10 = vor.u32 %v8729_v61, %v8726_v14 }
 0x45f   : > { %v8740_v22 = vor.u32 %v8739_v38, %v8735_v2  ;;  %v7910_v32 = vshll.u32 %v7697_v31, 16  ;;  %v8193_v37 = vld [vmem:[#allocation3 + $0x68] sm:$0x1]  ;;  %v7896_v59 = vrot.slane %v7894_v36, 5  ;;  %v8317_v40 = vrot.slane %v8192_v44, 5  ;;  %11142 = vmatmul.mubr.bf16.gmra.mxu1 %v14088_v8 }
 0x460   : > { %v7902_v57 = vrot.slane %v7900_v17, 5  ;;  %v7906_v58 = vrot.slane %v7904_v5, 4  ;;  %v8531_v34 = vld [vmem:[#allocation3 + $0x78] sm:$0xf]  ;;  %v14093_v63 = vld [vmem:[#allocation5 + $0x1cc] ss:$36 sps:$4 sm:$0xff]   ;;  %v13120_v5 = vpop.f32.mrf.mxu0 }
 0x461   : > { %v8731_v56 = vrot.slane %v8730_v10, 4  ;;  %v12199_v42 = vrot.slane %v8191_v46, 9  ;;  %v8532_v1 = vld [vmem:[#allocation3 + $0x7c] sm:$0xf]  ;;  %v14091_v4 = vld [vmem:[#allocation5 + $0x1c8] ss:$36 sps:$4 sm:$0xff]   ;;  %v7897_v48 = vor.u32 %v7896_v59, %v7893_v28  ;;  %11310 = vmatprep.mubr.bf16.mxu0 %v14093_v63 }
 0x462   : > { %v8741_v62 = vrot.slane %v8740_v22, 4  ;;  %v8745_v7 = vrot.slane %v8743_v50, 5  ;;  %v7907_v55 = vor.u32 %v7906_v58, %v7902_v57  ;;  %v8319_v39 = vrot.slane %v8317_v40, 4  ;;  %v8533_v47 = vld [vmem:[#allocation3 + $0x80] sm:$0x1]  ;;  %11311 = vmatmul.mubr.bf16.gmra.mxu0 %v14091_v4 }
 0x463   : > { %v8736_v33 = vsel %vm14591_vm12, %v8731_v56, %v8735_v2  ;;  %v8318_v21 = vsel %vm14575_vm9, %v12199_v42, %v8317_v40  ;;  %v8320_v20 = vrot.slane %v8193_v37, 5  ;;  %v7698_v51 = vld [vmem:[#allocation3 + $0x6c] sm:$0xf]  ;;  %v14096_v45 = vld [vmem:[#allocation5 + $0x1c4] ss:$36 sps:$4 sm:$0xff]   ;;  %v7898_v13 = vrot.slane %v7897_v48, 4 }
 0x464   : > { %v8746_v16 = vsel %vm14591_vm12, %v8741_v62, %v8745_v7  ;;  %8985 = vst [vmem:[#allocation5 + $0x214] sm:$0xf] %v8736_v33  ;;  %v7912_v6 = vrot.slane %v7910_v32, 5  ;;  %8424 = vst [vmem:[#allocation5 + $0x20c] sm:$0xf] %v8318_v21  ;;  %v7908_v27 = vrot.slane %v7907_v55, 4  ;;  %11149 = vmatprep.mubr.bf16.mxu1 %v14096_v45  ;;  %v16602_v62 = vadd.f32 %v13120_v5, %v13119_v53 }
 0x465   : > { %v7699_v54 = vld [vmem:[#allocation3 + $0x70] sm:$0xf]  ;;  %8986 = vst [vmem:[#allocation5 + $0x238] sm:$0xf] %v8746_v16  ;;  %v8321_v52 = vsel %vm14575_vm9, %v8319_v39, %v8320_v20  ;;  %v8748_v29 = vshrl.u32 %v8531_v34, 16  ;;  %v8751_v43 = vshll.u32 %v8531_v34, 16  ;;  %v7903_v3 = vsel %vm14591_vm12, %v7898_v13, %v7902_v57  ;;  %v13122_v20 = vpop.f32.mrf.mxu0 }
 0x466   : > { %v16593_v60 = vld [vmem:[#allocation3 + $0x74] sm:$0x1]  ;;  %v8467_v41 = vld [vmem:[#allocation3 + $0xa8] sm:$0xf]  ;;  %8425 = vst [vmem:[#allocation5 + $0x230] sm:$0xf] %v8321_v52  ;;  %v7913_v11 = vsel %vm14591_vm12, %v7908_v27, %v7912_v6 }
 0x467   : > { %v8757_v26 = vshll.u32 %v8532_v1, 16  ;;  %v8761_v15 = vshrl.u32 %v8532_v1, 16  ;;  %v8194_v23 = vld [vmem:[#allocation3 + $0x6c] sm:$0xe]  ;;  %8499 = vst [vmem:[#allocation5 + $0x378] sm:$0xf] %v8467_v41 }
 0x468   : > { %v8468_v18 = vld [vmem:[#allocation3 + $0xac] sm:$0xf]  ;;  %8152 = vst [vmem:[#allocation5 + $0x208] sm:$0xf] %v7903_v3  ;;  %v8750_v19 = vrot.slane %v8748_v29, 4  ;;  %v8753_v12 = vrot.slane %v8751_v43, 5 }
 0x469   : > { %v7915_v14 = vshrl.u32 %v7698_v51, 16  ;;  %v8195_v31 = vld [vmem:[#allocation3 + $0x70] sm:$0xf]  ;;  %8500 = vst [vmem:[#allocation5 + $0x39c] sm:$0xf] %v8468_v18  ;;  %v8759_v61 = vrot.slane %v8757_v26, 5 }
 0x46a   : > { %v14094_v35 = vld [vmem:[#allocation5 + $0x1c0] ss:$36 sps:$4 sm:$0xff]   ;;  %8153 = vst [vmem:[#allocation5 + $0x22c] sm:$0xf] %v7913_v11  ;;  %v8763_v2 = vrot.slane %v8761_v15, 4  ;;  %v8767_v38 = vshll.u32 %v8533_v47, 16  ;;  %v8754_v44 = vor.u32 %v8753_v12, %v8750_v19  ;;  %v13123_v19 = vpop.f32.mrf.mxu0 }
 0x46b   : > { %v7918_v50 = vshll.u32 %v7698_v51, 16  ;;  %v7917_v28 = vrot.slane %v7915_v14, 4  ;;  %v7924_v36 = vshll.u32 %v7699_v54, 16  ;;  %v7928_v17 = vshrl.u32 %v7699_v54, 16  ;;  %v16599_v46 = vld [vmem:[#allocation3 + $0x28] sm:$0xf]  ;;  %11150 = vmatmul.mubr.bf16.gmra.mxu1 %v14094_v35 }
 0x46c   : > { %v8764_v8 = vor.u32 %v8763_v2, %v8759_v61  ;;  %v7934_v22 = vshll.u32 %v16593_v60, 16  ;;  %v8196_v32 = vld [vmem:[#allocation3 + $0x74] sm:$0x1]  ;;  %v12200_v37 = vrot.slane %v8194_v23, 9  ;;  %v8755_v59 = vrot.slane %v8754_v44, 4 }
 0x46d   : > { %v7920_v10 = vrot.slane %v7918_v50, 5  ;;  %v7926_v57 = vrot.slane %v7924_v36, 5  ;;  %v7930_v58 = vrot.slane %v7928_v17, 4  ;;  %v8324_v40 = vrot.slane %v8195_v31, 5  ;;  %v8534_v34 = vld [vmem:[#allocation3 + $0x84] sm:$0xf] }
 0x46e   : > { %v14099_v63 = vld [vmem:[#allocation5 + $0x214] ss:$36 sps:$4 sm:$0xff]   ;;  %v8765_v56 = vrot.slane %v8764_v8, 4  ;;  %v8769_v42 = vrot.slane %v8767_v38, 5  ;;  %v8535_v4 = vld [vmem:[#allocation3 + $0x88] sm:$0xf]  ;;  %v8760_v48 = vsel %vm14591_vm12, %v8755_v59, %v8759_v61 }
 0x46f   : > { %v7921_v1 = vor.u32 %v7920_v10, %v7917_v28  ;;  %v14097_v7 = vld [vmem:[#allocation5 + $0x210] ss:$36 sps:$4 sm:$0xff]   ;;  %v7931_v55 = vor.u32 %v7930_v58, %v7926_v57  ;;  %v8325_v33 = vsel %vm14575_vm9, %v12200_v37, %v8324_v40  ;;  %v7701_v39 = vld [vmem:[#allocation3 + $0x78] sm:$0xf]  ;;  %11318 = vmatprep.mubr.bf16.mxu0 %v14099_v63  ;;  %8987 = vst [vmem:[#allocation5 + $0x25c] sm:$0xf] %v8760_v48  ;;  %v16621_v58 = vpop.f32.mrf.mxu1  ;;  %v16625_v63 = vpop.f32.mrf.mxu0 }
 0x470   : > { %v8536_v21 = vld [vmem:[#allocation3 + $0x8c] sm:$0x1]  ;;  %v8770_v47 = vsel %vm14591_vm12, %v8765_v56, %v8769_v42  ;;  %v8326_v45 = vrot.slane %v8324_v40, 4  ;;  %v8327_v16 = vrot.slane %v8196_v32, 5  ;;  %8426 = vst [vmem:[#allocation5 + $0x254] sm:$0xf] %v8325_v33  ;;  %11319 = vmatmul.mubr.bf16.gmra.mxu0 %v14097_v7 }
 0x471   : > { %v7922_v51 = vrot.slane %v7921_v1, 4  ;;  %v7702_v13 = vld [vmem:[#allocation3 + $0x7c] sm:$0xf]  ;;  %v9108_v6 = vrot.slane %v16599_v46, 5  ;;  %v14103_v54 = vld [vmem:[#allocation5 + $0x20c] ss:$36 sps:$4 sm:$0xff]  }
 0x472   : > { %8988 = vst [vmem:[#allocation5 + $0x280] sm:$0xf] %v8770_v47  ;;  %v7932_v27 = vrot.slane %v7931_v55, 4  ;;  %v7936_v52 = vrot.slane %v7934_v22, 5  ;;  %v14101_v29 = vld [vmem:[#allocation5 + $0x208] ss:$36 sps:$4 sm:$0xff]   ;;  %v8328_v60 = vsel %vm14575_vm9, %v8326_v45, %v8327_v16  ;;  %11157 = vmatprep.mubr.bf16.mxu1 %v14103_v54 }
 0x473   : > { %v7927_v43 = vsel %vm14591_vm12, %v7922_v51, %v7926_v57  ;;  %v8772_v53 = vshrl.u32 %v8534_v34, 16  ;;  %v8775_v41 = vshll.u32 %v8534_v34, 16  ;;  %v7703_v3 = vld [vmem:[#allocation3 + $0x80] sm:$0x1]  ;;  %8427 = vst [vmem:[#allocation5 + $0x278] sm:$0xf] %v8328_v60  ;;  %11158 = vmatmul.mubr.bf16.gmra.mxu1 %v14101_v29  ;;  %v16623_v34 = vadd.f32 %v13123_v19, %v13122_v20  ;;  %v16627_v51 = vpop.f32.mrf.mxu1 }
 0x474   : > { %v7937_v26 = vsel %vm14591_vm12, %v7932_v27, %v7936_v52  ;;  %8154 = vst [vmem:[#allocation5 + $0x250] sm:$0xf] %v7927_v43  ;;  %v8781_v15 = vshll.u32 %v8535_v4, 16  ;;  %v8785_v23 = vshrl.u32 %v8535_v4, 16  ;;  %v8791_v18 = vshll.u32 %v8536_v21, 16 }
 0x475   : > { %v8197_v11 = vld [vmem:[#allocation3 + $0x78] sm:$0xe]  ;;  %v8469_v12 = vld [vmem:[#allocation3 + $0xb4] sm:$0xf]  ;;  %8155 = vst [vmem:[#allocation5 + $0x274] sm:$0xf] %v7937_v26 }
 0x476   : > { %v8774_v14 = vrot.slane %v8772_v53, 4  ;;  %v8777_v31 = vrot.slane %v8775_v41, 5  ;;  %v7939_v35 = vshrl.u32 %v7701_v39, 16  ;;  %v7942_v61 = vshll.u32 %v7701_v39, 16  ;;  %v8198_v2 = vld [vmem:[#allocation3 + $0x7c] sm:$0xf]  ;;  %v13010_v41 = vpop.f32.mrf.mxu1 }
 0x477   : > { %v8470_v38 = vld [vmem:[#allocation3 + $0xb8] sm:$0xf]  ;;  %8501 = vst [vmem:[#allocation5 + $0x3c0] sm:$0xf] %v8469_v12  ;;  %v16619_v50 = vrot.slane %v9108_v6, 4  ;;  %v8783_v44 = vrot.slane %v8781_v15, 5 }
 0x478   : > { %v8787_v28 = vrot.slane %v8785_v23, 4  ;;  %v7948_v36 = vshll.u32 %v7702_v13, 16  ;;  %v8199_v17 = vld [vmem:[#allocation3 + $0x80] sm:$0x1]  ;;  %8502 = vst [vmem:[#allocation5 + $0x3e4] sm:$0xf] %v8470_v38  ;;  %v8778_v5 = vor.u32 %v8777_v31, %v8774_v14 }
 0x479   : > { %v7941_v8 = vrot.slane %v7939_v35, 4  ;;  %v7944_v10 = vrot.slane %v7942_v61, 5  ;;  %v7952_v22 = vshrl.u32 %v7702_v13, 16  ;;  %v8537_v32 = vld [vmem:[#allocation3 + $0x90] sm:$0xf]  ;;  %v7958_v57 = vshll.u32 %v7703_v3, 16  ;;  %v13126_v3 = vpop.f32.mrf.mxu0  ;;  %v13011_v61 = vpop.f32.mrf.mxu1 }
 0x47a   : > { %v8788_v37 = vor.u32 %v8787_v28, %v8783_v44  ;;  %v7950_v59 = vrot.slane %v7948_v36, 5  ;;  %v8538_v40 = vld [vmem:[#allocation3 + $0x94] sm:$0xf]  ;;  %v8779_v42 = vrot.slane %v8778_v5, 4  ;;  %v8793_v1 = vrot.slane %v8791_v18, 5 }
 0x47b   : > { %v14106_v56 = vld [vmem:[#allocation5 + $0x25c] ss:$36 sps:$4 sm:$0xff]   ;;  %v7945_v4 = vor.u32 %v7944_v10, %v7941_v8  ;;  %v12201_v7 = vrot.slane %v8197_v11, 9  ;;  %v7954_v21 = vrot.slane %v7952_v22, 4  ;;  %v7960_v39 = vrot.slane %v7958_v57, 5 }
 0x47c   : > { %v8539_v48 = vld [vmem:[#allocation3 + $0x98] sm:$0x1]  ;;  %v14104_v55 = vld [vmem:[#allocation5 + $0x258] ss:$36 sps:$4 sm:$0xff]   ;;  %v8789_v33 = vrot.slane %v8788_v37, 4  ;;  %v8331_v47 = vrot.slane %v8198_v2, 5  ;;  %11326 = vmatprep.mubr.bf16.mxu0 %v14106_v56  ;;  %v8784_v20 = vsel %vm14591_vm12, %v8779_v42, %v8783_v44  ;;  %v13013_v56 = vpop.f32.mrf.mxu1 }
 0x47d   : > { %v7946_v45 = vrot.slane %v7945_v4, 4  ;;  %v8334_v16 = vrot.slane %v8199_v17, 5  ;;  %v8796_v13 = vshrl.u32 %v8537_v32, 16  ;;  %v7704_v54 = vld [vmem:[#allocation3 + $0x84] sm:$0xf]  ;;  %11327 = vmatmul.mubr.bf16.gmra.mxu0 %v14104_v55  ;;  %v7955_v29 = vor.u32 %v7954_v21, %v7950_v59 }
 0x47e   : > { %v14109_v27 = vld [vmem:[#allocation5 + $0x254] ss:$36 sps:$4 sm:$0xff]   ;;  %v8794_v52 = vsel %vm14591_vm12, %v8789_v33, %v8793_v1  ;;  %8989 = vst [vmem:[#allocation5 + $0x2a4] sm:$0xf] %v8784_v20  ;;  %v8332_v43 = vsel %vm14575_vm9, %v12201_v7, %v8331_v47  ;;  %v8333_v60 = vrot.slane %v8331_v47, 4  ;;  %v8799_v18 = vshll.u32 %v8537_v32, 16  ;;  %v13128_v32 = vpop.f32.mrf.mxu0 }
 0x47f   : > { %v7705_v53 = vld [vmem:[#allocation3 + $0x88] sm:$0xf]  ;;  %8990 = vst [vmem:[#allocation5 + $0x2c8] sm:$0xf] %v8794_v52  ;;  %v7951_v15 = vsel %vm14591_vm12, %v7946_v45, %v7950_v59  ;;  %8428 = vst [vmem:[#allocation5 + $0x29c] sm:$0xf] %v8332_v43  ;;  %11165 = vmatprep.mubr.bf16.mxu1 %v14109_v27  ;;  %v13014_v45 = vpop.f32.mrf.mxu1  ;;  %v13012_v27 = vadd.f32 %v13011_v61, %v13010_v41 }
 0x480   : > { %v14107_v26 = vld [vmem:[#allocation5 + $0x250] ss:$36 sps:$4 sm:$0xff]   ;;  %v8798_v23 = vrot.slane %v8796_v13, 4  ;;  %v8805_v11 = vshll.u32 %v8538_v40, 16  ;;  %v7956_v19 = vrot.slane %v7955_v29, 4  ;;  %v8335_v12 = vsel %vm14575_vm9, %v8333_v60, %v8334_v16  ;;  %v13129_v43 = vpop.f32.mrf.mxu0 }
 0x481   : > { %8156 = vst [vmem:[#allocation5 + $0x298] sm:$0xf] %v7951_v15  ;;  %v8809_v14 = vshrl.u32 %v8538_v40, 16  ;;  %v8815_v31 = vshll.u32 %v8539_v48, 16  ;;  %v7706_v35 = vld [vmem:[#allocation3 + $0x8c] sm:$0x1]  ;;  %11166 = vmatmul.mubr.bf16.gmra.mxu1 %v14107_v26  ;;  %v16644_v29 = vadd.f32 %v13126_v3, %v16625_v63  ;;  %v13016_v61 = vpop.f32.mrf.mxu1 }
 0x482   : > { %8429 = vst [vmem:[#allocation5 + $0x2c0] sm:$0xf] %v8335_v12  ;;  %v8801_v2 = vrot.slane %v8799_v18, 5  ;;  %v8807_v38 = vrot.slane %v8805_v11, 5  ;;  %v7963_v44 = vshrl.u32 %v7704_v54, 16  ;;  %v7966_v28 = vshll.u32 %v7704_v54, 16 }
 0x483   : > { %v8200_v36 = vld [vmem:[#allocation3 + $0x84] sm:$0xe]  ;;  %v7961_v17 = vsel %vm14591_vm12, %v7956_v19, %v7960_v39  ;;  %v8811_v5 = vrot.slane %v8809_v14, 4  ;;  %v8817_v8 = vrot.slane %v8815_v31, 5  ;;  %v7972_v10 = vshll.u32 %v7705_v53, 16 }
 0x484   : > { %v8201_v22 = vld [vmem:[#allocation3 + $0x88] sm:$0xf]  ;;  %8157 = vst [vmem:[#allocation5 + $0x2bc] sm:$0xf] %v7961_v17  ;;  %v8802_v37 = vor.u32 %v8801_v2, %v8798_v23  ;;  %v7965_v59 = vrot.slane %v7963_v44, 4  ;;  %v7968_v57 = vrot.slane %v7966_v28, 5  ;;  %v13009_v54 = vadd.f32 %v16627_v51, %v16621_v58 }
 0x485   : > { %v7976_v40 = vshrl.u32 %v7705_v53, 16  ;;  %v8471_v42 = vld [vmem:[#allocation3 + $0xc0] sm:$0xf]  ;;  %v8812_v1 = vor.u32 %v8811_v5, %v8807_v38  ;;  %v7974_v4 = vrot.slane %v7972_v10, 5  ;;  %v7982_v7 = vshll.u32 %v7706_v35, 16  ;;  %v16662_v5 = vpop.f32.mrf.mxu0 }
 0x486   : > { %v12202_v48 = vrot.slane %v8200_v36, 9  ;;  %v8472_v55 = vld [vmem:[#allocation3 + $0xc4] sm:$0xf]  ;;  %8503 = vst [vmem:[#allocation5 + $0x408] sm:$0xf] %v8471_v42  ;;  %v8803_v33 = vrot.slane %v8802_v37, 4  ;;  %v7969_v21 = vor.u32 %v7968_v57, %v7965_v59  ;;  %v16655_v12 = vadd.f32 %v16602_v62, %v13009_v54 }
 0x487   : > { %v7978_v39 = vrot.slane %v7976_v40, 4  ;;  %v8202_v47 = vld [vmem:[#allocation3 + $0x8c] sm:$0x1]  ;;  %v8338_v20 = vrot.slane %v8201_v22, 5  ;;  %8504 = vst [vmem:[#allocation5 + $0x42c] sm:$0xf] %v8472_v55  ;;  %v16658_v14 = vadd.f32 %v16623_v34, %v13012_v27  ;;  %v13015_v36 = vadd.f32 %v13014_v45, %v13013_v56  ;;  %v13017_v55 = vpop.f32.mrf.mxu1 }
 0x488   : > { %v14112_v16 = vld [vmem:[#allocation5 + $0x2a4] ss:$36 sps:$4 sm:$0xff]   ;;  %v8813_v13 = vrot.slane %v8812_v1, 4  ;;  %v8808_v53 = vsel %vm14591_vm12, %v8803_v33, %v8807_v38  ;;  %v7970_v26 = vrot.slane %v7969_v21, 4  ;;  %v7984_v23 = vrot.slane %v7982_v7, 5  ;;  %v16666_v1 = vpop.f32.mrf.mxu0 }
 0x489   : > { %v8540_v52 = vld [vmem:[#allocation3 + $0x9c] sm:$0xf]  ;;  %v7979_v15 = vor.u32 %v7978_v39, %v7974_v4  ;;  %11334 = vmatprep.mubr.bf16.mxu0 %v14112_v16  ;;  %8991 = vst [vmem:[#allocation5 + $0x2ec] sm:$0xf] %v8808_v53  ;;  %v8339_v58 = vsel %vm14575_vm9, %v12202_v48, %v8338_v20  ;;  %v8340_v51 = vrot.slane %v8338_v20, 4  ;;  %v8341_v41 = vrot.slane %v8202_v47, 5 }
 0x48a   : > { %v14110_v60 = vld [vmem:[#allocation5 + $0x2a0] ss:$36 sps:$4 sm:$0xff]   ;;  %v8818_v18 = vsel %vm14591_vm12, %v8813_v13, %v8817_v8  ;;  %v8541_v63 = vld [vmem:[#allocation3 + $0xa0] sm:$0xf]  ;;  %v8542_v3 = vld [vmem:[#allocation3 + $0xa4] sm:$0x1]  ;;  %v7975_v11 = vsel %vm14591_vm12, %v7970_v26, %v7974_v4  ;;  %v13130_v17 = vadd.f32 %v13129_v43, %v13128_v32  ;;  %v16668_v45 = vpop.f32.mrf.mxu0 }
 0x48b   : > { %11335 = vmatmul.mubr.bf16.gmra.mxu0 %v14110_v60  ;;  %8992 = vst [vmem:[#allocation5 + $0x310] sm:$0xf] %v8818_v18  ;;  %v7980_v19 = vrot.slane %v7979_v15, 4  ;;  %8430 = vst [vmem:[#allocation5 + $0x2e4] sm:$0xf] %v8339_v58  ;;  %v8342_v38 = vsel %vm14575_vm9, %v8340_v51, %v8341_v41  ;;  %v8820_v44 = vshrl.u32 %v8540_v52, 16  ;;  %v16671_v15 = vadd.f32 %v16644_v29, %v13015_v36 }
 0x48c   : > { %v7707_v31 = vld [vmem:[#allocation3 + $0x90] sm:$0xf]  ;;  %v7708_v35 = vld [vmem:[#allocation3 + $0x94] sm:$0xf]  ;;  %8158 = vst [vmem:[#allocation5 + $0x2e0] sm:$0xf] %v7975_v11 }
 0x48d   : > { %v14116_v2 = vld [vmem:[#allocation5 + $0x29c] ss:$36 sps:$4 sm:$0xff]   ;;  %v7985_v62 = vsel %vm14591_vm12, %v7980_v19, %v7984_v23  ;;  %8431 = vst [vmem:[#allocation5 + $0x308] sm:$0xf] %v8342_v38  ;;  %v8823_v34 = vshll.u32 %v8540_v52, 16  ;;  %v8829_v10 = vshll.u32 %v8541_v63, 16  ;;  %v13018_v23 = vadd.f32 %v13017_v55, %v13016_v61 }
 0x48e   : > { %v7709_v28 = vld [vmem:[#allocation3 + $0x98] sm:$0x1]  ;;  %v14114_v8 = vld [vmem:[#allocation5 + $0x298] ss:$36 sps:$4 sm:$0xff]   ;;  %v8833_v22 = vshrl.u32 %v8541_v63, 16  ;;  %11173 = vmatprep.mubr.bf16.mxu1 %v14116_v2  ;;  %v8822_v37 = vrot.slane %v8820_v44, 4 }
 0x48f   : > { %8159 = vst [vmem:[#allocation5 + $0x304] sm:$0xf] %v7985_v62  ;;  %v8839_v59 = vshll.u32 %v8542_v3, 16  ;;  %v7987_v57 = vshrl.u32 %v7707_v31, 16  ;;  %v7990_v40 = vshll.u32 %v7707_v31, 16  ;;  %11174 = vmatmul.mubr.bf16.gmra.mxu1 %v14114_v8  ;;  %v8825_v32 = vrot.slane %v8823_v34, 5 }
 0x490   : > { %v8203_v42 = vld [vmem:[#allocation3 + $0x90] sm:$0xe]  ;;  %v8831_v56 = vrot.slane %v8829_v10, 5  ;;  %v8835_v4 = vrot.slane %v8833_v22, 4  ;;  %v7996_v7 = vshll.u32 %v7708_v35, 16  ;;  %v8000_v47 = vshrl.u32 %v7708_v35, 16  ;;  %v16673_v35 = vpop.f32.mrf.mxu0 }
 0x491   : > { %v8204_v48 = vld [vmem:[#allocation3 + $0x94] sm:$0xf]  ;;  %v8841_v33 = vrot.slane %v8839_v59, 5  ;;  %v7989_v21 = vrot.slane %v7987_v57, 4  ;;  %v7992_v39 = vrot.slane %v7990_v40, 5  ;;  %v8826_v16 = vor.u32 %v8825_v32, %v8822_v37 }
 0x492   : > { %v8205_v20 = vld [vmem:[#allocation3 + $0x98] sm:$0x1]  ;;  %v8836_v13 = vor.u32 %v8835_v4, %v8831_v56  ;;  %v7998_v54 = vrot.slane %v7996_v7, 5  ;;  %v8006_v27 = vshll.u32 %v7709_v28, 16  ;;  %v8543_v52 = vld [vmem:[#allocation3 + $0xa8] sm:$0xf]  ;;  %v16679_v61 = vadd.f32 %v13130_v17, %v13018_v23  ;;  %v13137_v55 = vpop.f32.mrf.mxu0 }
 0x493   : > { %v14117_v43 = vld [vmem:[#allocation5 + $0x2e8] ss:$36 sps:$4 sm:$0xff]   ;;  %v7993_v53 = vor.u32 %v7992_v39, %v7989_v21  ;;  %v8002_v26 = vrot.slane %v8000_v47, 4  ;;  %v8827_v18 = vrot.slane %v8826_v16, 4  ;;  %v12203_v41 = vrot.slane %v8203_v42, 9 }
 0x494   : > { %v14119_v60 = vld [vmem:[#allocation5 + $0x2ec] ss:$36 sps:$4 sm:$0xff]   ;;  %v8837_v58 = vrot.slane %v8836_v13, 4  ;;  %v8008_v51 = vrot.slane %v8006_v27, 5  ;;  %v8345_v11 = vrot.slane %v8204_v48, 5  ;;  %v8348_v19 = vrot.slane %v8205_v20, 5 }
 0x495   : > { %11342 = vmatprep.mubr.bf16.mxu0 %v14119_v60  ;;  %v7994_v63 = vrot.slane %v7993_v53, 4  ;;  %v8003_v3 = vor.u32 %v8002_v26, %v7998_v54  ;;  %v8544_v31 = vld [vmem:[#allocation3 + $0xac] sm:$0xf]  ;;  %v14122_v2 = vld [vmem:[#allocation5 + $0x2e4] ss:$36 sps:$4 sm:$0xff]   ;;  %v8832_v38 = vsel %vm14591_vm12, %v8827_v18, %v8831_v56  ;;  %v8844_v28 = vshrl.u32 %v8543_v52, 16 }
 0x496   : > { %11343 = vmatmul.mubr.bf16.gmra.mxu0 %v14117_v43  ;;  %v8842_v29 = vsel %vm14591_vm12, %v8837_v58, %v8841_v33  ;;  %v8545_v44 = vld [vmem:[#allocation3 + $0xb0] sm:$0x1]  ;;  %v14120_v36 = vld [vmem:[#allocation5 + $0x2e0] ss:$36 sps:$4 sm:$0xff]   ;;  %8993 = vst [vmem:[#allocation5 + $0x334] sm:$0xf] %v8832_v38  ;;  %v8346_v34 = vsel %vm14575_vm9, %v12203_v41, %v8345_v11  ;;  %11181 = vmatprep.mubr.bf16.mxu1 %v14122_v2  ;;  %v13019_v33 = vpop.f32.mrf.mxu1  ;;  %v13138_v43 = vpop.f32.mrf.mxu0 }
 0x497   : > { %8994 = vst [vmem:[#allocation5 + $0x358] sm:$0xf] %v8842_v29  ;;  %v7999_v8 = vsel %vm14591_vm12, %v7994_v63, %v7998_v54  ;;  %v8004_v62 = vrot.slane %v8003_v3, 4  ;;  %v8347_v10 = vrot.slane %v8345_v11, 4  ;;  %v7710_v22 = vld [vmem:[#allocation3 + $0x9c] sm:$0xf]  ;;  %11182 = vmatmul.mubr.bf16.gmra.mxu1 %v14120_v36  ;;  %v13133_v4 = vadd.f32 %v16666_v1, %v16662_v5 }
 0x498   : > { %8160 = vst [vmem:[#allocation5 + $0x328] sm:$0xf] %v7999_v8  ;;  %8432 = vst [vmem:[#allocation5 + $0x32c] sm:$0xf] %v8346_v34  ;;  %v8846_v37 = vrot.slane %v8844_v28, 4  ;;  %v8847_v17 = vshll.u32 %v8543_v52, 16  ;;  %v13020_v18 = vpop.f32.mrf.mxu1  ;;  %v16691_v11 = vpop.f32.mrf.mxu0  ;;  %v13136_v29 = vadd.f32 %v16673_v35, %v16668_v45 }
 0x499   : > { %v8853_v59 = vshll.u32 %v8544_v31, 16  ;;  %v8857_v57 = vshrl.u32 %v8544_v31, 16  ;;  %v7711_v40 = vld [vmem:[#allocation3 + $0xa0] sm:$0xf]  ;;  %v8009_v42 = vsel %vm14591_vm12, %v8004_v62, %v8008_v51  ;;  %v8349_v32 = vsel %vm14575_vm9, %v8347_v10, %v8348_v19  ;;  %v7712_v7 = vld [vmem:[#allocation3 + $0xa4] sm:$0x1] }
 0x49a   : > { %v8863_v56 = vshll.u32 %v8545_v44, 16  ;;  %v8206_v48 = vld [vmem:[#allocation3 + $0x9c] sm:$0xe]  ;;  %8161 = vst [vmem:[#allocation5 + $0x34c] sm:$0xf] %v8009_v42  ;;  %v8849_v21 = vrot.slane %v8847_v17, 5  ;;  %v13021_v2 = vadd.f32 %v13020_v18, %v13019_v33  ;;  %v13022_v38 = vpop.f32.mrf.mxu1  ;;  %v16695_v10 = vpop.f32.mrf.mxu0 }
 0x49b   : > { %8433 = vst [vmem:[#allocation5 + $0x350] sm:$0xf] %v8349_v32  ;;  %v8855_v39 = vrot.slane %v8853_v59, 5  ;;  %v8859_v47 = vrot.slane %v8857_v57, 4  ;;  %v8011_v20 = vshrl.u32 %v7710_v22, 16  ;;  %v8014_v54 = vshll.u32 %v7710_v22, 16 }
 0x49c   : > { %v8474_v16 = vld [vmem:[#allocation3 + $0xd0] sm:$0xf]  ;;  %v8865_v13 = vrot.slane %v8863_v56, 5  ;;  %v8020_v27 = vshll.u32 %v7711_v40, 16  ;;  %v8024_v52 = vshrl.u32 %v7711_v40, 16  ;;  %v8850_v60 = vor.u32 %v8849_v21, %v8846_v37  ;;  %v13023_v40 = vpop.f32.mrf.mxu1  ;;  %v16707_v33 = vpop.f32.mrf.mxu0 }
 0x49d   : > { %8506 = vst [vmem:[#allocation5 + $0x474] sm:$0xf] %v8474_v16  ;;  %v8860_v53 = vor.u32 %v8859_v47, %v8855_v39  ;;  %v8013_v5 = vrot.slane %v8011_v20, 4  ;;  %v8030_v1 = vshll.u32 %v7712_v7, 16  ;;  %v8207_v26 = vld [vmem:[#allocation3 + $0xa0] sm:$0xf]  ;;  %v16701_v57 = vadd.f32 %v13133_v4, %v13021_v2 }
 0x49e   : > { %v8208_v23 = vld [vmem:[#allocation3 + $0xa4] sm:$0x1]  ;;  %v8016_v58 = vrot.slane %v8014_v54, 5  ;;  %v8022_v51 = vrot.slane %v8020_v27, 5  ;;  %v8026_v41 = vrot.slane %v8024_v52, 4  ;;  %v12204_v63 = vrot.slane %v8206_v48, 9  ;;  %v13025_v47 = vpop.f32.mrf.mxu1 }
 0x49f   : > { %v8546_v3 = vld [vmem:[#allocation3 + $0xb4] sm:$0xf]  ;;  %v8851_v19 = vrot.slane %v8850_v60, 4  ;;  %v8861_v31 = vrot.slane %v8860_v53, 4  ;;  %v8547_v44 = vld [vmem:[#allocation3 + $0xb8] sm:$0xf]  ;;  %v13024_v56 = vadd.f32 %v13023_v40, %v13022_v38  ;;  %v16705_v7 = vadd.f32 %v13138_v43, %v13137_v55  ;;  %v13144_v43 = vpop.f32.mrf.mxu0 }
 0x4a0   : > { %v14125_v28 = vld [vmem:[#allocation5 + $0x334] ss:$36 sps:$4 sm:$0xff]   ;;  %v8017_v36 = vor.u32 %v8016_v58, %v8013_v5  ;;  %v8027_v8 = vor.u32 %v8026_v41, %v8022_v51  ;;  %v8032_v62 = vrot.slane %v8030_v1, 5  ;;  %v8352_v34 = vrot.slane %v8207_v26, 5  ;;  %v8548_v45 = vld [vmem:[#allocation3 + $0xbc] sm:$0x1] }
 0x4a1   : > { %v14123_v22 = vld [vmem:[#allocation5 + $0x330] ss:$36 sps:$4 sm:$0xff]   ;;  %v8856_v37 = vsel %vm14591_vm12, %v8851_v19, %v8855_v39  ;;  %v8866_v17 = vsel %vm14591_vm12, %v8861_v31, %v8865_v13  ;;  %v8355_v59 = vrot.slane %v8208_v23, 5  ;;  %11350 = vmatprep.mubr.bf16.mxu0 %v14125_v28  ;;  %v14127_v21 = vld [vmem:[#allocation5 + $0x328] ss:$36 sps:$4 sm:$0xff]   ;;  %v8868_v20 = vshrl.u32 %v8546_v3, 16  ;;  %v13026_v23 = vpop.f32.mrf.mxu1 }
 0x4a2   : > { %v14129_v35 = vld [vmem:[#allocation5 + $0x32c] ss:$36 sps:$4 sm:$0xff]   ;;  %8995 = vst [vmem:[#allocation5 + $0x37c] sm:$0xf] %v8856_v37  ;;  %8996 = vst [vmem:[#allocation5 + $0x3a0] sm:$0xf] %v8866_v17  ;;  %v8353_v32 = vsel %vm14575_vm9, %v12204_v63, %v8352_v34  ;;  %11351 = vmatmul.mubr.bf16.gmra.mxu0 %v14123_v22  ;;  %v16711_v54 = vadd.f32 %v13136_v29, %v13024_v56  ;;  %v16717_v63 = vpop.f32.mrf.mxu0  ;;  %v13142_v40 = vadd.f32 %v16695_v10, %v16691_v11 }
 0x4a3   : > { %v8018_v42 = vrot.slane %v8017_v36, 4  ;;  %v7713_v48 = vld [vmem:[#allocation3 + $0xa8] sm:$0xf]  ;;  %v8028_v4 = vrot.slane %v8027_v8, 4  ;;  %v8354_v39 = vrot.slane %v8352_v34, 4  ;;  %v8871_v16 = vshll.u32 %v8546_v3, 16  ;;  %11189 = vmatprep.mubr.bf16.mxu1 %v14129_v35  ;;  %v13028_v29 = vpop.f32.mrf.mxu1 }
 0x4a4   : > { %8434 = vst [vmem:[#allocation5 + $0x374] sm:$0xf] %v8353_v32  ;;  %v8877_v27 = vshll.u32 %v8547_v44, 16  ;;  %v8881_v55 = vshrl.u32 %v8547_v44, 16  ;;  %v7714_v52 = vld [vmem:[#allocation3 + $0xac] sm:$0xf]  ;;  %11190 = vmatmul.mubr.bf16.gmra.mxu1 %v14127_v21  ;;  %v16719_v34 = vpop.f32.mrf.mxu0 }
 0x4a5   : > { %v8023_v13 = vsel %vm14591_vm12, %v8018_v42, %v8022_v51  ;;  %v8033_v60 = vsel %vm14591_vm12, %v8028_v4, %v8032_v62  ;;  %v8356_v53 = vsel %vm14575_vm9, %v8354_v39, %v8355_v59  ;;  %v8870_v5 = vrot.slane %v8868_v20, 4  ;;  %v7715_v26 = vld [vmem:[#allocation3 + $0xb0] sm:$0x1]  ;;  %v8209_v38 = vld [vmem:[#allocation3 + $0xa8] sm:$0xe] }
 0x4a6   : > { %8162 = vst [vmem:[#allocation5 + $0x370] sm:$0xf] %v8023_v13  ;;  %v8873_v1 = vrot.slane %v8871_v16, 5  ;;  %8163 = vst [vmem:[#allocation5 + $0x394] sm:$0xf] %v8033_v60  ;;  %v8879_v18 = vrot.slane %v8877_v27, 5  ;;  %v13027_v59 = vadd.f32 %v13026_v23, %v13025_v47  ;;  %v16723_v21 = vpop.f32.mrf.mxu0 }
 0x4a7   : > { %8435 = vst [vmem:[#allocation5 + $0x398] sm:$0xf] %v8356_v53  ;;  %v8883_v58 = vrot.slane %v8881_v55, 4  ;;  %v8887_v51 = vshll.u32 %v8548_v45, 16  ;;  %v8035_v41 = vshrl.u32 %v7713_v48, 16  ;;  %v8038_v19 = vshll.u32 %v7713_v48, 16  ;;  %v13029_v45 = vpop.f32.mrf.mxu1 }
 0x4a8   : > { %v8874_v3 = vor.u32 %v8873_v1, %v8870_v5  ;;  %v8044_v31 = vshll.u32 %v7714_v52, 16  ;;  %v8048_v2 = vshrl.u32 %v7714_v52, 16  ;;  %v8054_v8 = vshll.u32 %v7715_v26, 16  ;;  %v8210_v62 = vld [vmem:[#allocation3 + $0xac] sm:$0xf]  ;;  %v16734_v5 = vpop.f32.mrf.mxu0 }
 0x4a9   : > { %v8884_v44 = vor.u32 %v8883_v58, %v8879_v18  ;;  %v8889_v28 = vrot.slane %v8887_v51, 5  ;;  %v8037_v36 = vrot.slane %v8035_v41, 4  ;;  %v8040_v37 = vrot.slane %v8038_v19, 5  ;;  %v8211_v17 = vld [vmem:[#allocation3 + $0xb0] sm:$0x1]  ;;  %v16727_v27 = vpop.f32.mrf.mxu1 }
 0x4aa   : > { %v8875_v22 = vrot.slane %v8874_v3, 4  ;;  %v14132_v35 = vld [vmem:[#allocation5 + $0x37c] ss:$36 sps:$4 sm:$0xff]   ;;  %v8046_v32 = vrot.slane %v8044_v31, 5  ;;  %v8050_v56 = vrot.slane %v8048_v2, 4  ;;  %v8056_v48 = vrot.slane %v8054_v8, 5 }
 0x4ab   : > { %v8885_v42 = vrot.slane %v8884_v44, 4  ;;  %v14130_v4 = vld [vmem:[#allocation5 + $0x378] ss:$36 sps:$4 sm:$0xff]   ;;  %v8041_v20 = vor.u32 %v8040_v37, %v8037_v36  ;;  %v12205_v16 = vrot.slane %v8209_v38, 9  ;;  %v8359_v13 = vrot.slane %v8210_v62, 5  ;;  %11358 = vmatprep.mubr.bf16.mxu0 %v14132_v35  ;;  %v13032_v41 = vpop.f32.mrf.mxu1  ;;  %v16741_v38 = vpop.f32.mrf.mxu0 }
 0x4ac   : > { %v8880_v39 = vsel %vm14591_vm12, %v8875_v22, %v8879_v18  ;;  %v8549_v47 = vld [vmem:[#allocation3 + $0xc0] sm:$0xf]  ;;  %v8051_v10 = vor.u32 %v8050_v56, %v8046_v32  ;;  %v8362_v55 = vrot.slane %v8211_v17, 5  ;;  %v16732_v52 = vadd.f32 %v16705_v7, %v13027_v59  ;;  %v8550_v60 = vld [vmem:[#allocation3 + $0xc4] sm:$0xf]  ;;  %11359 = vmatmul.mubr.bf16.gmra.mxu0 %v14130_v4 }
 0x4ad   : > { %v8890_v11 = vsel %vm14591_vm12, %v8885_v42, %v8889_v28  ;;  %8997 = vst [vmem:[#allocation5 + $0x3c4] sm:$0xf] %v8880_v39  ;;  %v8551_v53 = vld [vmem:[#allocation3 + $0xc8] sm:$0x1]  ;;  %v8042_v26 = vrot.slane %v8041_v20, 4  ;;  %v8360_v23 = vsel %vm14575_vm9, %v12205_v16, %v8359_v13  ;;  %v13030_v18 = vadd.f32 %v13029_v45, %v13028_v29  ;;  %v16751_v59 = vpop.f32.mrf.mxu0 }
 0x4ae   : > { %v14135_v1 = vld [vmem:[#allocation5 + $0x374] ss:$36 sps:$4 sm:$0xff]   ;;  %8998 = vst [vmem:[#allocation5 + $0x3e8] sm:$0xf] %v8890_v11  ;;  %v16739_v58 = vadd.f32 %v13144_v43, %v16707_v33  ;;  %v7716_v51 = vld [vmem:[#allocation3 + $0xb4] sm:$0xf]  ;;  %v13034_v43 = vpop.f32.mrf.mxu1 }
 0x4af   : > { %v14133_v3 = vld [vmem:[#allocation5 + $0x370] ss:$36 sps:$4 sm:$0xff]   ;;  %v8052_v7 = vrot.slane %v8051_v10, 4  ;;  %v8361_v19 = vrot.slane %v8359_v13, 4  ;;  %8436 = vst [vmem:[#allocation5 + $0x3bc] sm:$0xf] %v8360_v23  ;;  %11197 = vmatprep.mubr.bf16.mxu1 %v14135_v1  ;;  %v8047_v44 = vsel %vm14591_vm12, %v8042_v26, %v8046_v32  ;;  %v16745_v28 = vadd.f32 %v13142_v40, %v13030_v18  ;;  %v16753_v13 = vpop.f32.mrf.mxu0 }
 0x4b0   : > { %v8892_v31 = vshrl.u32 %v8549_v47, 16  ;;  %v8895_v2 = vshll.u32 %v8549_v47, 16  ;;  %v8901_v29 = vshll.u32 %v8550_v60, 16  ;;  %v8905_v36 = vshrl.u32 %v8550_v60, 16  ;;  %v7717_v33 = vld [vmem:[#allocation3 + $0xb8] sm:$0xf]  ;;  %11198 = vmatmul.mubr.bf16.gmra.mxu1 %v14133_v3  ;;  %v13035_v56 = vpop.f32.mrf.mxu1 }
 0x4b1   : > { %v8057_v8 = vsel %vm14591_vm12, %v8052_v7, %v8056_v48  ;;  %8164 = vst [vmem:[#allocation5 + $0x3b8] sm:$0xf] %v8047_v44  ;;  %v8363_v62 = vsel %vm14575_vm9, %v8361_v19, %v8362_v55  ;;  %v7718_v17 = vld [vmem:[#allocation3 + $0xbc] sm:$0x1]  ;;  %v8911_v35 = vshll.u32 %v8551_v53, 16  ;;  %v8059_v42 = vshrl.u32 %v7716_v51, 16  ;;  %v16760_v7 = vpop.f32.mrf.mxu0 }
 0x4b2   : > { %v8894_v22 = vrot.slane %v8892_v31, 4  ;;  %v8897_v37 = vrot.slane %v8895_v2, 5  ;;  %8165 = vst [vmem:[#allocation5 + $0x3dc] sm:$0xf] %v8057_v8  ;;  %8437 = vst [vmem:[#allocation5 + $0x3e0] sm:$0xf] %v8363_v62  ;;  %v16755_v1 = vpop.f32.mrf.mxu1  ;;  %v13033_v53 = vadd.f32 %v13032_v41, %v16727_v27  ;;  %v13148_v18 = vadd.f32 %v16719_v34, %v16717_v63 }
 0x4b3   : > { %v8903_v40 = vrot.slane %v8901_v29, 5  ;;  %v8907_v45 = vrot.slane %v8905_v36, 4  ;;  %v8212_v32 = vld [vmem:[#allocation3 + $0xb4] sm:$0xe]  ;;  %v8062_v39 = vshll.u32 %v7716_v51, 16  ;;  %v8068_v48 = vshll.u32 %v7717_v33, 16 }
 0x4b4   : > { %v8898_v4 = vor.u32 %v8897_v37, %v8894_v22  ;;  %v8072_v20 = vshrl.u32 %v7717_v33, 16  ;;  %v8213_v16 = vld [vmem:[#allocation3 + $0xb8] sm:$0xf]  ;;  %v8913_v11 = vrot.slane %v8911_v35, 5  ;;  %v8061_v10 = vrot.slane %v8059_v42, 4  ;;  %v13038_v36 = vpop.f32.mrf.mxu1  ;;  %v16764_v22 = vpop.f32.mrf.mxu0 }
 0x4b5   : > { %v8908_v47 = vor.u32 %v8907_v45, %v8903_v40  ;;  %v8078_v55 = vshll.u32 %v7718_v17, 16  ;;  %v8214_v60 = vld [vmem:[#allocation3 + $0xbc] sm:$0x1]  ;;  %v13036_v51 = vadd.f32 %v13035_v56, %v13034_v43  ;;  %v7719_v3 = vld [vmem:[#allocation3 + $0xc0] sm:$0xf]  ;;  %v8064_v2 = vrot.slane %v8062_v39, 5 }
 0x4b6   : > { %v14138_v26 = vld [vmem:[#allocation5 + $0x3c4] ss:$36 sps:$4 sm:$0xff]   ;;  %v8899_v23 = vrot.slane %v8898_v4, 4  ;;  %v8070_v44 = vrot.slane %v8068_v48, 5  ;;  %v8074_v29 = vrot.slane %v8072_v20, 4  ;;  %v12206_v62 = vrot.slane %v8212_v32, 9  ;;  %v13040_v35 = vpop.f32.mrf.mxu1  ;;  %v16775_v48 = vpop.f32.mrf.mxu0 }
 0x4b7   : > { %v14136_v19 = vld [vmem:[#allocation5 + $0x3c0] ss:$36 sps:$4 sm:$0xff]   ;;  %v8909_v31 = vrot.slane %v8908_v47, 4  ;;  %11366 = vmatprep.mubr.bf16.mxu0 %v14138_v26  ;;  %v8080_v8 = vrot.slane %v8078_v55, 5  ;;  %v8366_v27 = vrot.slane %v8213_v16, 5  ;;  %v8065_v34 = vor.u32 %v8064_v2, %v8061_v10 }
 0x4b8   : > { %v8904_v33 = vsel %vm14591_vm12, %v8899_v23, %v8903_v40  ;;  %v7720_v41 = vld [vmem:[#allocation3 + $0xc4] sm:$0xf]  ;;  %11367 = vmatmul.mubr.bf16.gmra.mxu0 %v14136_v19  ;;  %v8075_v43 = vor.u32 %v8074_v29, %v8070_v44  ;;  %v8369_v37 = vrot.slane %v8214_v60, 5  ;;  %v7721_v17 = vld [vmem:[#allocation3 + $0xc8] sm:$0x1]  ;;  %v16771_v56 = vadd.f32 %v16739_v58, %v13033_v53  ;;  %v13041_v55 = vpop.f32.mrf.mxu1 }
 0x4b9   : > { %v8914_v63 = vsel %vm14591_vm12, %v8909_v31, %v8913_v11  ;;  %8999 = vst [vmem:[#allocation5 + $0x40c] sm:$0xf] %v8904_v33  ;;  %v8215_v45 = vld [vmem:[#allocation3 + $0xc0] sm:$0xe]  ;;  %v14142_v42 = vld [vmem:[#allocation5 + $0x3bc] ss:$36 sps:$4 sm:$0xff]   ;;  %v8367_v40 = vsel %vm14575_vm9, %v12206_v62, %v8366_v27  ;;  %v16773_v4 = vadd.f32 %v13148_v18, %v13036_v51  ;;  %v13151_v11 = vadd.f32 %v16734_v5, %v16723_v21  ;;  %v16781_v18 = vpop.f32.mrf.mxu0 }
 0x4ba   : > { %9000 = vst [vmem:[#allocation5 + $0x430] sm:$0xf] %v8914_v63  ;;  %v8368_v32 = vrot.slane %v8366_v27, 4  ;;  %v8216_v39 = vld [vmem:[#allocation3 + $0xc4] sm:$0xf]  ;;  %v8066_v16 = vrot.slane %v8065_v34, 4  ;;  %11205 = vmatprep.mubr.bf16.mxu1 %v14142_v42  ;;  %v13043_v31 = vpop.f32.mrf.mxu1 }
 0x4bb   : > { %v14140_v20 = vld [vmem:[#allocation5 + $0x3b8] ss:$36 sps:$4 sm:$0xff]   ;;  %v8076_v47 = vrot.slane %v8075_v43, 4  ;;  %8438 = vst [vmem:[#allocation5 + $0x404] sm:$0xf] %v8367_v40  ;;  %v8083_v10 = vshrl.u32 %v7719_v3, 16  ;;  %v16787_v27 = vpop.f32.mrf.mxu0  ;;  %v13042_v40 = vadd.f32 %v13041_v55, %v13040_v35 }
 0x4bc   : > { %v8370_v60 = vsel %vm14575_vm9, %v8368_v32, %v8369_v37  ;;  %v8086_v58 = vshll.u32 %v7719_v3, 16  ;;  %v8092_v26 = vshll.u32 %v7720_v41, 16  ;;  %v8096_v23 = vshrl.u32 %v7720_v41, 16  ;;  %v8217_v53 = vld [vmem:[#allocation3 + $0xc8] sm:$0x1]  ;;  %11206 = vmatmul.mubr.bf16.gmra.mxu1 %v14140_v20 }
 0x4bd   : > { %v8071_v51 = vsel %vm14591_vm12, %v8066_v16, %v8070_v44  ;;  %v8081_v19 = vsel %vm14591_vm12, %v8076_v47, %v8080_v8  ;;  %8439 = vst [vmem:[#allocation5 + $0x428] sm:$0xf] %v8370_v60  ;;  %v8085_v21 = vrot.slane %v8083_v10, 4  ;;  %v8102_v5 = vshll.u32 %v7721_v17, 16  ;;  %v593_v62 = vld [vmem:[#allocation3 + $0xcc] sm:$0x1]  ;;  %v13044_v8 = vpop.f32.mrf.mxu1  ;;  %v16792_v16 = vpop.f32.mrf.mxu0 }
 0x4be   : > { %8166 = vst [vmem:[#allocation5 + $0x400] sm:$0xf] %v8071_v51  ;;  %8167 = vst [vmem:[#allocation5 + $0x424] sm:$0xf] %v8081_v19  ;;  %v8088_v2 = vrot.slane %v8086_v58, 5  ;;  %v8094_v3 = vrot.slane %v8092_v26, 5  ;;  %v13039_v44 = vadd.f32 %v13038_v36, %v16755_v1  ;;  %v13154_v17 = vadd.f32 %v16751_v59, %v16741_v38 }
 0x4bf   : > { %v8098_v29 = vrot.slane %v8096_v23, 4  ;;  %v12207_v33 = vrot.slane %v8215_v45, 9  ;;  %v8104_v41 = vrot.slane %v8102_v5, 5  ;;  %v8373_v63 = vrot.slane %v8216_v39, 5  ;;  %v647_v43 = vld [vmem:[#allocation3 + $0xd4] sm:$0x1]  ;;  %v13046_v60 = vpop.f32.mrf.mxu1  ;;  %v16804_v23 = vpop.f32.mrf.mxu0 }
 0x4c0   : > { %v8376_v34 = vrot.slane %v8217_v53, 5  ;;  %v8089_v37 = vor.u32 %v8088_v2, %v8085_v21  ;;  %v8553_v32 = vld [vmem:[#allocation3 + $0xd0] sm:$0xf]  ;;  %v9003_v20 = vld [vmem:[#allocation3 + $0x18] sm:$0xe]  ;;  %v16796_v10 = vadd.f32 %v13151_v11, %v13039_v44  ;;  %v13157_v1 = vadd.f32 %v16760_v7, %v16753_v13 }
 0x4c1   : > { %v8099_v42 = vor.u32 %v8098_v29, %v8094_v3  ;;  %v14145_v45 = vld [vmem:[#allocation5 + $0x40c] ss:$36 sps:$4 sm:$0xff]   ;;  %v8374_v47 = vsel %vm14575_vm9, %v12207_v33, %v8373_v63  ;;  %v8375_v39 = vrot.slane %v8373_v63, 4  ;;  %v9004_v36 = vld [vmem:[#allocation3 + $0x1c] sm:$0xf]  ;;  %v16800_v35 = vadd.f32 %v13154_v17, %v13042_v40  ;;  %v13047_v19 = vpop.f32.mrf.mxu1 }
 0x4c2   : > { %v9006_v58 = vld [vmem:[#allocation3 + $0x24] sm:$0xe]  ;;  %v8090_v38 = vrot.slane %v8089_v37, 4  ;;  %8440 = vst [vmem:[#allocation5 + $0x44c] sm:$0xf] %v8374_v47  ;;  %v594_v55 = vsel %vm14540_vm3, 0, %v593_v62  ;;  %11374 = vmatprep.mubr.bf16.mxu0 %v14145_v45  ;;  %v16814_v62 = vpop.f32.mrf.mxu0  ;;  %v13048_v40 = vadd.f32 %v13047_v19, %v13046_v60  ;;  %v13163_v60 = vadd.f32 %v16787_v27, %v16781_v18 }
 0x4c3   : > { %v14143_v26 = vld [vmem:[#allocation5 + $0x408] ss:$36 sps:$4 sm:$0xff]   ;;  %v8100_v59 = vrot.slane %v8099_v42, 4  ;;  %v8377_v11 = vsel %vm14575_vm9, %v8375_v39, %v8376_v34  ;;  %595 = vst [vmem:[#allocation3 + $0xcc] sm:$0x1] %v594_v55  ;;  %v648_v13 = vsel %vm14545_vm4, 0, %v647_v43  ;;  %v13045_v34 = vadd.f32 %v13044_v8, %v13043_v31  ;;  %v13049_v44 = vpop.f32.mrf.mxu1 }
 0x4c4   : > { %v8925_v7 = vshll.u32 %v8553_v32, 16  ;;  %v8929_v53 = vshrl.u32 %v8553_v32, 16  ;;  %v9005_v51 = vld [vmem:[#allocation3 + $0x20] sm:$0x1]  ;;  %11375 = vmatmul.mubr.bf16.gmra.mxu0 %v14143_v26  ;;  %v8095_v21 = vsel %vm14591_vm12, %v8090_v38, %v8094_v3  ;;  %8441 = vst [vmem:[#allocation5 + $0x470] sm:$0xf] %v8377_v11  ;;  %v13160_v3 = vadd.f32 %v16775_v48, %v16764_v22 }
 0x4c5   : > { %v8105_v24 = vsel %vm14591_vm12, %v8100_v59, %v8104_v41  ;;  %649 = vst [vmem:[#allocation3 + $0xd4] sm:$0x1] %v648_v13  ;;  %v12208_v5 = vrot.slane %v9003_v20, 9  ;;  %v9101_v2 = vrot.slane %v9004_v36, 5  ;;  %v9008_v29 = vld [vmem:[#allocation3 + $0x2c] sm:$0x1]  ;;  %v16822_v20 = vpop.f32.mrf.mxu0  ;;  %v16825_v31 = vadd.f32 %v13157_v1, %v13045_v34  ;;  %v13050_v48 = vpop.f32.mrf.mxu1 }
 0x4c6   : > { %v9009_v33 = vld [vmem:[#allocation3 + $0x30] sm:$0xe]  ;;  %8168 = vst [vmem:[#allocation5 + $0x448] sm:$0xf] %v8095_v21  ;;  %8169 = vst [vmem:[#allocation5 + $0x46c] sm:$0xf] %v8105_v24  ;;  %v16829_v26 = vadd.f32 %v13160_v3, %v13048_v40  ;;  %v13051_v19 = vadd.f32 %v13050_v48, %v13049_v44  ;;  %v13166_v46 = vadd.f32 %v16804_v23, %v16792_v16 }
 0x4c7   : > { %v16816_v25 = vrot.slane %v8925_v7, 5  ;;  %v8931_v63 = vrot.slane %v8929_v53, 4  ;;  %v9010_v43 = vld [vmem:[#allocation3 + $0x34] sm:$0xf]  ;;  %v14148_v41 = vld [vmem:[#allocation5 + $0x404] ss:$36 sps:$4 sm:$0xff]   ;;  %v9102_v37 = vsel %vm14575_vm9, %v12208_v5, %v9101_v2  ;;  %v16833_v59 = vpop.f32.mrf.mxu0  ;;  %v13052_v13 = vpop.f32.mrf.mxu1 }
 0x4c8   : > { %v9103_v42 = vrot.slane %v9101_v2, 4  ;;  %v9104_v17 = vrot.slane %v9005_v51, 5  ;;  %v9011_v32 = vld [vmem:[#allocation3 + $0x38] sm:$0x1]  ;;  %9243 = vst [vmem:[#allocation5 + $0x20] sm:$0xf] %v9102_v37  ;;  %11213 = vmatprep.mubr.bf16.mxu1 %v14148_v41 }
 0x4c9   : > { %v14146_v45 = vld [vmem:[#allocation5 + $0x400] ss:$36 sps:$4 sm:$0xff]   ;;  %v8932_v47 = vor.u32 %v8931_v63, %v16816_v25  ;;  %v12209_v8 = vrot.slane %v9006_v58, 9  ;;  %v9111_v22 = vrot.slane %v9008_v29, 5  ;;  %v12210_v38 = vrot.slane %v9009_v33, 9  ;;  %v13171_v5 = vpop.f32.mrf.mxu0  ;;  %v13053_v34 = vpop.f32.mrf.mxu1 }
 0x4ca   : > { %v9012_v39 = vld [vmem:[#allocation3 + $0x3c] sm:$0xe]  ;;  %v9105_v36 = vsel %vm14575_vm9, %v9103_v42, %v9104_v17  ;;  %11214 = vmatmul.mubr.bf16.gmra.mxu1 %v14146_v45  ;;  %v9115_v11 = vrot.slane %v9010_v43, 5  ;;  %v9013_v7 = vld [vmem:[#allocation3 + $0x40] sm:$0xf]  ;;  %v9118_v51 = vrot.slane %v9011_v32, 5  ;;  %v16848_v43 = vadd.f32 %v13163_v60, %v13051_v19 }
 0x4cb   : > { %v16835_v55 = vrot.slane %v8932_v47, 4  ;;  %9244 = vst [vmem:[#allocation5 + $0x44] sm:$0xf] %v9105_v36  ;;  %v9109_v1 = vsel %vm14575_vm9, %v12209_v8, %v9108_v6  ;;  %v9112_v58 = vsel %vm14575_vm9, %v16619_v50, %v9111_v22  ;;  %v9014_v18 = vld [vmem:[#allocation3 + $0x44] sm:$0x1]  ;;  %v12211_v21 = vrot.slane %v9012_v39, 9  ;;  %v13173_v23 = vpop.f32.mrf.mxu0  ;;  %v13055_v32 = vpop.f32.mrf.mxu1 }
 0x4cc   : > { %v8473_v27 = vld [vmem:[#allocation3 + $0xcc] sm:$0xf]  ;;  %9245 = vst [vmem:[#allocation5 + $0x68] sm:$0xf] %v9109_v1  ;;  %9246 = vst [vmem:[#allocation5 + $0x8c] sm:$0xf] %v9112_v58  ;;  %v9116_v33 = vsel %vm14575_vm9, %v12210_v38, %v9115_v11  ;;  %v13054_v44 = vadd.f32 %v13053_v34, %v13052_v13  ;;  %v13169_v13 = vadd.f32 %v16822_v20, %v16814_v62 }
 0x4cd   : > { %v8552_v53 = vld [vmem:[#allocation3 + $0xcc] sm:$0xf]  ;;  %v9015_v24 = vld [vmem:[#allocation3 + $0x48] sm:$0xe]  ;;  %8505 = vst [vmem:[#allocation5 + $0x450] sm:$0xf] %v8473_v27  ;;  %v13174_v38 = vpop.f32.mrf.mxu0  ;;  %v13056_v27 = vpop.f32.mrf.mxu1 }
 0x4ce   : > { %v9016_v6 = vld [vmem:[#allocation3 + $0x4c] sm:$0xf]  ;;  %v8554_v2 = vld [vmem:[#allocation3 + $0xd4] sm:$0x1]  ;;  %v8916_v50 = vshrl.u32 %v8552_v53, 16  ;;  %v8919_v29 = vshll.u32 %v8552_v53, 16  ;;  %v16854_v39 = vadd.f32 %v13166_v46, %v13054_v44 }
 0x4cf   : > { %v9117_v63 = vrot.slane %v9115_v11, 4  ;;  %v8935_v3 = vshll.u32 %v8554_v2, 16  ;;  %9247 = vst [vmem:[#allocation5 + $0xb0] sm:$0xf] %v9116_v33  ;;  %v9122_v41 = vrot.slane %v9013_v7, 5  ;;  %v9125_v45 = vrot.slane %v9014_v18, 5 }
 0x4d0   : > { %v9017_v16 = vld [vmem:[#allocation3 + $0x50] sm:$0x1]  ;;  %v14152_v37 = vld [vmem:[#allocation5 + $0x44c] ss:$36 sps:$4 sm:$0xff]   ;;  %v8918_v42 = vrot.slane %v8916_v50, 4  ;;  %v8921_v17 = vrot.slane %v8919_v29, 5  ;;  %v13057_v2 = vadd.f32 %v13056_v27, %v13055_v32  ;;  %v13176_v29 = vpop.f32.mrf.mxu0 }
 0x4d1   : > { %v9119_v40 = vsel %vm14575_vm9, %v9117_v63, %v9118_v51  ;;  %v9018_v47 = vld [vmem:[#allocation3 + $0x54] sm:$0xe]  ;;  %v9019_v8 = vld [vmem:[#allocation3 + $0x58] sm:$0xf]  ;;  %v16852_v22 = vld [vmem:[#allocation3 + $0x5c] sm:$0x1]  ;;  %v9123_v36 = vsel %vm14575_vm9, %v12211_v21, %v9122_v41  ;;  %11221 = vmatprep.mubr.bf16.mxu1 %v14152_v37 }
 0x4d2   : > { %v8937_v48 = vrot.slane %v8935_v3, 5  ;;  %9248 = vst [vmem:[#allocation5 + $0xd4] sm:$0xf] %v9119_v40  ;;  %v9124_v60 = vrot.slane %v9122_v41, 4  ;;  %v9021_v1 = vld [vmem:[#allocation3 + $0x60] sm:$0xe]  ;;  %v8922_v11 = vor.u32 %v8921_v17, %v8918_v42  ;;  %v13177_v44 = vpop.f32.mrf.mxu0  ;;  %v13175_v17 = vadd.f32 %v13174_v38, %v13173_v23 }
 0x4d3   : > { %v14150_v58 = vld [vmem:[#allocation5 + $0x448] ss:$36 sps:$4 sm:$0xff]   ;;  %9249 = vst [vmem:[#allocation5 + $0xf8] sm:$0xf] %v9123_v36  ;;  %v12212_v7 = vrot.slane %v9015_v24, 9  ;;  %v9129_v18 = vrot.slane %v9016_v6, 5  ;;  %v13058_v24 = vpop.f32.mrf.mxu1  ;;  %v13172_v6 = vadd.f32 %v13171_v5, %v16833_v59 }
 0x4d4   : > { %v9022_v53 = vld [vmem:[#allocation3 + $0x64] sm:$0xf]  ;;  %v8938_v51 = vsel %vm14591_vm12, %v16835_v55, %v8937_v48  ;;  %v14156_v19 = vld [vmem:[#allocation5 + $0x20] ss:$36 sps:$4 sm:$0xff]   ;;  %v9126_v46 = vsel %vm14575_vm9, %v9124_v60, %v9125_v45  ;;  %v9132_v21 = vrot.slane %v9017_v16, 5  ;;  %11222 = vmatmul.mubr.bf16.gmra.mxu1 %v14150_v58  ;;  %v8923_v33 = vrot.slane %v8922_v11, 4  ;;  %v13179_v36 = vpop.f32.mrf.mxu0 }
 0x4d5   : > { %v9023_v50 = vld [vmem:[#allocation3 + $0x68] sm:$0x1]  ;;  %9002 = vst [vmem:[#allocation5 + $0x478] sm:$0xf] %v8938_v51  ;;  %9250 = vst [vmem:[#allocation5 + $0x11c] sm:$0xf] %v9126_v46  ;;  %v9130_v62 = vsel %vm14575_vm9, %v12212_v7, %v9129_v18  ;;  %13521 = vmatprep.mubr.bf16.mxu1 %v14156_v19  ;;  %v16868_v55 = vadd.f32 %v13169_v13, %v13057_v2  ;;  %v13059_v5 = vpop.f32.mrf.mxu1  ;;  %v16880_v11 = vadd.f32 %v13177_v44, %v13176_v29 }
 0x4d6   : > { %v9131_v20 = vrot.slane %v9129_v18, 4  ;;  %9251 = vst [vmem:[#allocation5 + $0x140] sm:$0xf] %v9130_v62  ;;  %v12213_v63 = vrot.slane %v9018_v47, 9  ;;  %v9136_v34 = vrot.slane %v9019_v8, 5  ;;  %v9139_v3 = vrot.slane %v16852_v22, 5  ;;  %v13180_v27 = vpop.f32.mrf.mxu0 }
 0x4d7   : > { %v9024_v41 = vld [vmem:[#allocation3 + $0x6c] sm:$0xe]  ;;  %v9025_v16 = vld [vmem:[#allocation3 + $0x70] sm:$0xf]  ;;  %v16871_v37 = vld [vmem:[#allocation3 + $0x74] sm:$0x1]  ;;  %v8928_v42 = vsel %vm14591_vm12, %v8923_v33, %v16816_v25  ;;  %v13060_v47 = vadd.f32 %v13059_v5, %v13058_v24  ;;  %v13061_v25 = vpop.f32.mrf.mxu1  ;;  %v16889_v2 = vadd.f32 %v13180_v27, %v13179_v36 }
 0x4d8   : > { %v9133_v59 = vsel %vm14575_vm9, %v9131_v20, %v9132_v21  ;;  %v12214_v40 = vrot.slane %v9021_v1, 9  ;;  %v9027_v32 = vld [vmem:[#allocation3 + $0x78] sm:$0xe]  ;;  %v9028_v45 = vld [vmem:[#allocation3 + $0x7c] sm:$0xf]  ;;  %v9137_v8 = vsel %vm14575_vm9, %v12213_v63, %v9136_v34  ;;  %v9138_v22 = vrot.slane %v9136_v34, 4  ;;  %v13182_v20 = vpop.f32.mrf.mxu0 }
 0x4d9   : > { %9001 = vst [vmem:[#allocation5 + $0x454] sm:$0xf] %v8928_v42  ;;  %9252 = vst [vmem:[#allocation5 + $0x164] sm:$0xf] %v9133_v59  ;;  %v9143_v48 = vrot.slane %v9022_v53, 5  ;;  %v9146_v58 = vrot.slane %v9023_v50, 5  ;;  %v16882_v1 = vadd.f32 %v13172_v6, %v13060_v47  ;;  %v13062_v51 = vpop.f32.mrf.mxu1 }
 0x4da   : > { %v9029_v60 = vld [vmem:[#allocation3 + $0x80] sm:$0x1]  ;;  %v9030_v0 = vld [vmem:[#allocation3 + $0x84] sm:$0xe]  ;;  %9253 = vst [vmem:[#allocation5 + $0x188] sm:$0xf] %v9137_v8  ;;  %v9140_v13 = vsel %vm14575_vm9, %v9138_v22, %v9139_v3  ;;  %v13063_v29 = vadd.f32 %v13062_v51, %v13061_v25  ;;  %v13183_v59 = vpop.f32.mrf.mxu0 }
 0x4db   : > { %v9031_v23 = vld [vmem:[#allocation3 + $0x88] sm:$0xf]  ;;  %v14157_v38 = vld [vmem:[#allocation5 + $0x68] ss:$36 sps:$4 sm:$0xff]   ;;  %v9144_v7 = vsel %vm14575_vm9, %v12214_v40, %v9143_v48  ;;  %v9145_v18 = vrot.slane %v9143_v48, 4  ;;  %v12215_v19 = vrot.slane %v9024_v41, 9  ;;  %v13064_v63 = vpop.f32.mrf.mxu1  ;;  %v16901_v48 = vadd.f32 %v13183_v59, %v13182_v20 }
 0x4dc   : > { %v14158_v53 = vld [vmem:[#allocation5 + $0xb0] ss:$36 sps:$4 sm:$0xff]   ;;  %9254 = vst [vmem:[#allocation5 + $0x1ac] sm:$0xf] %v9140_v13  ;;  %9255 = vst [vmem:[#allocation5 + $0x1d0] sm:$0xf] %v9144_v7  ;;  %13522 = vmatmul.mubr.bf16.vlgmr.msra.gmra.mxu1 %v14157_v38  ;;  %v13185_v25 = vpop.f32.mrf.mxu0 }
 0x4dd   : > { %v9150_v46 = vrot.slane %v9025_v16, 5  ;;  %v9153_v21 = vrot.slane %v16871_v37, 5  ;;  %v9147_v50 = vsel %vm14575_vm9, %v9145_v18, %v9146_v58  ;;  %v12216_v33 = vrot.slane %v9027_v32, 9  ;;  %v9032_v24 = vld [vmem:[#allocation3 + $0x8c] sm:$0x1]  ;;  %13525 = vmatprep.mubr.bf16.mxu1 %v14158_v53  ;;  %v13065_v8 = vpop.f32.mrf.mxu1 }
 0x4de   : > { %v9157_v62 = vrot.slane %v9028_v45, 5  ;;  %v9033_v6 = vld [vmem:[#allocation3 + $0x90] sm:$0xe]  ;;  %9256 = vst [vmem:[#allocation5 + $0x1f4] sm:$0xf] %v9147_v50  ;;  %v9160_v44 = vrot.slane %v9029_v60, 5  ;;  %v16895_v16 = vadd.f32 %v13175_v17, %v13063_v29  ;;  %v13066_v60 = vadd.f32 %v13065_v8, %v13064_v63 }
 0x4df   : > { %v9151_v34 = vsel %vm14575_vm9, %v12215_v19, %v9150_v46  ;;  %v9152_v3 = vrot.slane %v9150_v46, 4  ;;  %v12217_v41 = vrot.slane %v9030_v0, 9  ;;  %v9164_v5 = vrot.slane %v9031_v23, 5  ;;  %v9034_v40 = vld [vmem:[#allocation3 + $0x94] sm:$0xf]  ;;  %v13067_v38 = vpop.f32.mrf.mxu1  ;;  %v13186_v46 = vpop.f32.mrf.mxu0 }
 0x4e0   : > { %9257 = vst [vmem:[#allocation5 + $0x218] sm:$0xf] %v9151_v34  ;;  %v9158_v37 = vsel %vm14575_vm9, %v12216_v33, %v9157_v62  ;;  %v9159_v42 = vrot.slane %v9157_v62, 4  ;;  %v9035_v32 = vld [vmem:[#allocation3 + $0x98] sm:$0x1]  ;;  %v9167_v7 = vrot.slane %v9032_v24, 5  ;;  %v16908_v19 = vadd.f32 %v16880_v11, %v13066_v60 }
 0x4e1   : > { %v14153_v45 = vld [vmem:[#allocation5 + $0x450] ss:$36 sps:$4 sm:$0xff]   ;;  %v9154_v22 = vsel %vm14575_vm9, %v9152_v3, %v9153_v21  ;;  %9259 = vst [vmem:[#allocation5 + $0x260] sm:$0xf] %v9158_v37  ;;  %v9036_v17 = vld [vmem:[#allocation3 + $0x9c] sm:$0xe]  ;;  %v9165_v58 = vsel %vm14575_vm9, %v12217_v41, %v9164_v5  ;;  %v13068_v29 = vpop.f32.mrf.mxu1  ;;  %v16912_v62 = vadd.f32 %v13186_v46, %v13185_v25  ;;  %v13188_v11 = vpop.f32.mrf.mxu0 }
 0x4e2   : > { %v14155_v47 = vld [vmem:[#allocation5 + $0x454] ss:$36 sps:$4 sm:$0xff]   ;;  %v9037_v36 = vld [vmem:[#allocation3 + $0xa0] sm:$0xf]  ;;  %9258 = vst [vmem:[#allocation5 + $0x23c] sm:$0xf] %v9154_v22  ;;  %v9161_v0 = vsel %vm14575_vm9, %v9159_v42, %v9160_v44  ;;  %v13069_v34 = vadd.f32 %v13068_v29, %v13067_v38 }
 0x4e3   : > { %v9039_v23 = vld [vmem:[#allocation3 + $0xa8] sm:$0xe]  ;;  %11382 = vmatprep.mubr.bf16.mxu0 %v14155_v47  ;;  %9260 = vst [vmem:[#allocation5 + $0x284] sm:$0xf] %v9161_v0  ;;  %v9166_v13 = vrot.slane %v9164_v5, 4  ;;  %v12218_v18 = vrot.slane %v9033_v6, 9  ;;  %v13070_v42 = vpop.f32.mrf.mxu1  ;;  %v13189_v8 = vpop.f32.mrf.mxu0 }
 0x4e4   : > { %9261 = vst [vmem:[#allocation5 + $0x2a8] sm:$0xf] %v9165_v58  ;;  %v9171_v27 = vrot.slane %v9034_v40, 5  ;;  %v9038_v53 = vld [vmem:[#allocation3 + $0xa4] sm:$0x1]  ;;  %11383 = vmatmul.mubr.bf16.gmra.mxu0 %v14153_v45  ;;  %v9174_v21 = vrot.slane %v9035_v32, 5  ;;  %v16919_v47 = vadd.f32 %v16889_v2, %v13069_v34  ;;  %v13190_v25 = vadd.f32 %v13189_v8, %v13188_v11 }
 0x4e5   : > { %v9040_v51 = vld [vmem:[#allocation3 + $0xac] sm:$0xf]  ;;  %v14159_v50 = vld [vmem:[#allocation5 + $0xf8] ss:$36 sps:$4 sm:$0xff]   ;;  %v9168_v33 = vsel %vm14575_vm9, %v9166_v13, %v9167_v7  ;;  %v14160_v63 = vld [vmem:[#allocation5 + $0x140] ss:$36 sps:$4 sm:$0xff]   ;;  %v13071_v0 = vpop.f32.mrf.mxu1  ;;  %v13191_v2 = vpop.f32.mrf.mxu0 }
 0x4e6   : > { %v9172_v20 = vsel %vm14575_vm9, %v12218_v18, %v9171_v27  ;;  %v9173_v24 = vrot.slane %v9171_v27, 4  ;;  %v9041_v6 = vld [vmem:[#allocation3 + $0xb0] sm:$0x1]  ;;  %9262 = vst [vmem:[#allocation5 + $0x2cc] sm:$0xf] %v9168_v33  ;;  %v12219_v3 = vrot.slane %v9036_v17, 9  ;;  %13526 = vmatmul.mubr.bf16.gmra.mxu1 %v14159_v50  ;;  %v13072_v7 = vadd.f32 %v13071_v0, %v13070_v42 }
 0x4e7   : > { %9263 = vst [vmem:[#allocation5 + $0x2f0] sm:$0xf] %v9172_v20  ;;  %v9178_v44 = vrot.slane %v9037_v36, 5  ;;  %v9042_v41 = vld [vmem:[#allocation3 + $0xb4] sm:$0xe]  ;;  %v12220_v5 = vrot.slane %v9039_v23, 9  ;;  %13529 = vmatprep.mubr.bf16.mxu1 %v14160_v63 }
 0x4e8   : > { %v9043_v37 = vld [vmem:[#allocation3 + $0xb8] sm:$0xf]  ;;  %v9175_v59 = vsel %vm14575_vm9, %v9173_v24, %v9174_v21  ;;  %v9185_v40 = vrot.slane %v9040_v51, 5  ;;  %v9044_v32 = vld [vmem:[#allocation3 + $0xbc] sm:$0x1]  ;;  %v9181_v36 = vrot.slane %v9038_v53, 5  ;;  %v13073_v51 = vpop.f32.mrf.mxu1  ;;  %v16930_v20 = vadd.f32 %v16901_v48, %v13072_v7  ;;  %v13192_v24 = vpop.f32.mrf.mxu0 }
 0x4e9   : > { %v9045_v45 = vld [vmem:[#allocation3 + $0xc0] sm:$0xe]  ;;  %9264 = vst [vmem:[#allocation5 + $0x314] sm:$0xf] %v9175_v59  ;;  %v9179_v22 = vsel %vm14575_vm9, %v12219_v3, %v9178_v44  ;;  %v9180_v17 = vrot.slane %v9178_v44, 4  ;;  %v9188_v38 = vrot.slane %v9041_v6, 5  ;;  %v13193_v3 = vadd.f32 %v13192_v24, %v13191_v2 }
 0x4ea   : > { %v9046_v60 = vld [vmem:[#allocation3 + $0xc4] sm:$0xf]  ;;  %9265 = vst [vmem:[#allocation5 + $0x338] sm:$0xf] %v9179_v22  ;;  %v9186_v58 = vsel %vm14575_vm9, %v12220_v5, %v9185_v40  ;;  %v9187_v23 = vrot.slane %v9185_v40, 4  ;;  %v12221_v46 = vrot.slane %v9042_v41, 9  ;;  %v13074_v11 = vpop.f32.mrf.mxu1  ;;  %v13194_v5 = vpop.f32.mrf.mxu0 }
 0x4eb   : > { %v9047_v13 = vld [vmem:[#allocation3 + $0xc8] sm:$0x1]  ;;  %v9182_v18 = vsel %vm14575_vm9, %v9180_v17, %v9181_v36  ;;  %9267 = vst [vmem:[#allocation5 + $0x380] sm:$0xf] %v9186_v58  ;;  %v9048_v27 = vld [vmem:[#allocation3 + $0xcc] sm:$0xe] }
 0x4ec   : > { %9266 = vst [vmem:[#allocation5 + $0x35c] sm:$0xf] %v9182_v18  ;;  %v9189_v53 = vsel %vm14575_vm9, %v9187_v23, %v9188_v38  ;;  %v9192_v21 = vrot.slane %v9043_v37, 5  ;;  %v9049_v50 = vld [vmem:[#allocation3 + $0xd0] sm:$0xf]  ;;  %v9195_v6 = vrot.slane %v9044_v32, 5  ;;  %v13075_v37 = vadd.f32 %v13074_v11, %v13073_v51  ;;  %v13076_v32 = vpop.f32.mrf.mxu1  ;;  %v13195_v36 = vpop.f32.mrf.mxu0 }
 0x4ed   : > { %v9050_v29 = vld [vmem:[#allocation3 + $0xd4] sm:$0x1]  ;;  %v14161_v33 = vld [vmem:[#allocation5 + $0x188] ss:$36 sps:$4 sm:$0xff]   ;;  %9268 = vst [vmem:[#allocation5 + $0x3a4] sm:$0xf] %v9189_v53  ;;  %v13196_v23 = vadd.f32 %v13195_v36, %v13194_v5 }
 0x4ee   : > { %v12222_v63 = vrot.slane %v9045_v45, 9  ;;  %v9199_v34 = vrot.slane %v9046_v60, 5  ;;  %v9193_v44 = vsel %vm14575_vm9, %v12221_v46, %v9192_v21  ;;  %v9202_v42 = vrot.slane %v9047_v13, 5  ;;  %v14162_v41 = vld [vmem:[#allocation5 + $0x1d0] ss:$36 sps:$4 sm:$0xff]   ;;  %13530 = vmatmul.mubr.bf16.gmra.mxu1 %v14161_v33  ;;  %v13077_v58 = vpop.f32.mrf.mxu1  ;;  %v13197_v2 = vpop.f32.mrf.mxu0 }
 0x4ef   : > { %v12223_v59 = vrot.slane %v9048_v27, 9  ;;  %v9194_v40 = vrot.slane %v9192_v21, 4  ;;  %9269 = vst [vmem:[#allocation5 + $0x3c8] sm:$0xf] %v9193_v44  ;;  %v9206_v45 = vrot.slane %v9049_v50, 5  ;;  %v9209_v22 = vrot.slane %v9050_v29, 5  ;;  %13533 = vmatprep.mubr.bf16.mxu1 %v14162_v41 }
 0x4f0   : > { %v9200_v48 = vsel %vm14575_vm9, %v12222_v63, %v9199_v34  ;;  %v9201_v8 = vrot.slane %v9199_v34, 4  ;;  %v16937_v17 = vadd.f32 %v16912_v62, %v13075_v37  ;;  %v13078_v7 = vadd.f32 %v13077_v58, %v13076_v32  ;;  %v13079_v62 = vpop.f32.mrf.mxu1  ;;  %v13198_v51 = vpop.f32.mrf.mxu0  ;;  %v14163_v53 = vld [vmem:[#allocation5 + $0x218] ss:$36 sps:$4 sm:$0xff]   ;;  %v14164_v50 = vld [vmem:[#allocation5 + $0x260] ss:$36 sps:$4 sm:$0xff]  }
 0x4f1   : > { %9271 = vst [vmem:[#allocation5 + $0x410] sm:$0xf] %v9200_v48  ;;  %v9196_v60 = vsel %vm14575_vm9, %v9194_v40, %v9195_v6  ;;  %v9207_v38 = vsel %vm14575_vm9, %v12223_v59, %v9206_v45  ;;  %v9208_v13 = vrot.slane %v9206_v45, 4  ;;  %v13199_v21 = vadd.f32 %v13198_v51, %v13197_v2  ;;  %v14165_v41 = vld [vmem:[#allocation5 + $0x2a8] ss:$36 sps:$4 sm:$0xff]  }
 0x4f2   : > { %v9203_v0 = vsel %vm14575_vm9, %v9201_v8, %v9202_v42  ;;  %9270 = vst [vmem:[#allocation5 + $0x3ec] sm:$0xf] %v9196_v60  ;;  %9273 = vst [vmem:[#allocation5 + $0x458] sm:$0xf] %v9207_v38  ;;  %v16947_v27 = vadd.f32 %v13190_v25, %v13078_v7  ;;  %v13080_v46 = vpop.f32.mrf.mxu1  ;;  %v13200_v33 = vpop.f32.mrf.mxu0  ;;  %v14166_v40 = vld [vmem:[#allocation5 + $0x2f0] ss:$36 sps:$4 sm:$0xff]  }
 0x4f3   : > { %9272 = vst [vmem:[#allocation5 + $0x434] sm:$0xf] %v9203_v0  ;;  %v9210_v18 = vsel %vm14575_vm9, %v9208_v13, %v9209_v22  ;;  %v13081_v29 = vadd.f32 %v13080_v46, %v13079_v62  ;;  %v14167_v13 = vld [vmem:[#allocation5 + $0x338] ss:$36 sps:$4 sm:$0xff]  }
 0x4f4   : > { %9274 = vst [vmem:[#allocation5 + $0x47c] sm:$0xf] %v9210_v18  ;;  %v13082_v24 = vpop.f32.mrf.mxu1  ;;  %v13201_v63 = vpop.f32.mrf.mxu0  ;;  %v14168_v62 = vld [vmem:[#allocation5 + $0x380] ss:$36 sps:$4 sm:$0xff]  }
 0x4f5   : > { %v16949_v6 = vadd.f32 %v13193_v3, %v13081_v29  ;;  %v13202_v11 = vadd.f32 %v13201_v63, %v13200_v33 }
 0x4f6   : > { %13534 = vmatmul.mubr.bf16.gmra.mxu1 %v14163_v53  ;;  %v13083_v34 = vpop.f32.mrf.mxu1  ;;  %v13203_v44 = vpop.f32.mrf.mxu0 }
 0x4f7   : > { %13537 = vmatprep.mubr.bf16.mxu1 %v14164_v50  ;;  %v13084_v30 = vadd.f32 %v13083_v34, %v13082_v24 }
 0x4f8   : > { %v13085_v25 = vpop.f32.mrf.mxu1  ;;  %v13204_v59 = vpop.f32.mrf.mxu0 }
 0x4f9   : > { %v16951_v42 = vadd.f32 %v13196_v23, %v13084_v30  ;;  %v13205_v5 = vadd.f32 %v13204_v59, %v13203_v44  ;;  %v14169_v30 = vld [vmem:[#allocation5 + $0x3c8] ss:$36 sps:$4 sm:$0xff]  }
 0x4fa   : > { %v13086_v37 = vpop.f32.mrf.mxu1  ;;  %v13206_v8 = vpop.f32.mrf.mxu0 }
 0x4fb   : > { %v13087_v48 = vadd.f32 %v13086_v37, %v13085_v25  ;;  %v14170_v25 = vld [vmem:[#allocation5 + $0x410] ss:$36 sps:$4 sm:$0xff]  }
 0x4fc   : > { %v13088_v32 = vpop.f32.mrf.mxu1  ;;  %v13207_v45 = vpop.f32.mrf.mxu0 }
 0x4fd   : > { %v16953_v3 = vadd.f32 %v13199_v21, %v13087_v48  ;;  %v13208_v36 = vadd.f32 %v13207_v45, %v13206_v8  ;;  %v14171_v45 = vld [vmem:[#allocation5 + $0x458] ss:$36 sps:$4 sm:$0xff]  }
 0x4fe   : > { %13538 = vmatmul.mubr.bf16.gmra.mxu1 %v14165_v41  ;;  %v13089_v22 = vpop.f32.mrf.mxu1  ;;  %v13337_v0 = vpop.f32.mrf.mxu0 }
 0x4ff   : > { %13541 = vmatprep.mubr.bf16.mxu1 %v14166_v40  ;;  %v13090_v60 = vadd.f32 %v13089_v22, %v13088_v32 }
 0x500   : > { %v13091_v58 = vpop.f32.mrf.mxu1  ;;  %v13338_v38 = vpop.f32.mrf.mxu0 }
 0x501   : > { %v16955_v23 = vadd.f32 %v13202_v11, %v13090_v60  ;;  %v16957_v2 = vadd.f32 %v13338_v38, %v13337_v0 }
 0x502   : > { %v13092_v7 = vpop.f32.mrf.mxu1  ;;  %v13340_v51 = vpop.f32.mrf.mxu0 }
 0x503   : > { %v13093_v18 = vadd.f32 %v13092_v7, %v13091_v58 }
 0x504   : > { %v13094_v53 = vpop.f32.mrf.mxu1  ;;  %v13341_v21 = vpop.f32.mrf.mxu0 }
 0x505   : > { %v16959_v46 = vadd.f32 %v13205_v5, %v13093_v18  ;;  %v13342_v29 = vadd.f32 %v13341_v21, %v13340_v51 }
 0x506   : > { %13542 = vmatmul.mubr.bf16.gmra.mxu1 %v14167_v13  ;;  %v13095_v50 = vpop.f32.mrf.mxu1  ;;  %v16961_v24 = vpop.f32.mrf.mxu0 }
 0x507   : > { %13545 = vmatprep.mubr.bf16.mxu1 %v14168_v62  ;;  %17595 = vst [vmem:[#allocation25_spill] sm:$0xff] %v16959_v46  ;;  %v13096_v33 = vadd.f32 %v13095_v50, %v13094_v53 }
 0x508   : > { %v13225_v63 = vpop.f32.mrf.mxu1  ;;  %v16965_v11 = vpop.f32.mrf.mxu0 }
 0x509   : > { %v16963_v34 = vadd.f32 %v13208_v36, %v13096_v33 }
 0x50a   : > { %v13226_v44 = vpop.f32.mrf.mxu1  ;;  %v16967_v41 = vpop.f32.mrf.mxu0 }
 0x50b   : > { %17596 = vst [vmem:[#allocation39_spill] sm:$0xff] %v16963_v34  ;;  %v13227_v59 = vadd.f32 %v13226_v44, %v13225_v63 }
 0x50c   : > { %v13228_v37 = vpop.f32.mrf.mxu1  ;;  %v16970_v40 = vpop.f32.mrf.mxu0 }
 0x50d   : > { %v11104_v5 = vadd.f32 %v13227_v59, %v16532_v9 }
 0x50e   : > { %13546 = vmatmul.mubr.bf16.gmra.mxu1 %v14169_v30  ;;  %v13229_v48 = vpop.f32.mrf.mxu1  ;;  %v16972_v32 = vpop.f32.mrf.mxu0 }
 0x50f   : > { %13549 = vmatprep.mubr.bf16.mxu1 %v14170_v25  ;;  %v13230_v8 = vadd.f32 %v13229_v48, %v13228_v37 }
 0x510   : > { %v13231_v22 = vpop.f32.mrf.mxu1  ;;  %v16975_v60 = vpop.f32.mrf.mxu0 }
 0x511   : > { %v11107_v36 = vadd.f32 %v13230_v8, %v16546_v49 }
 0x512   : > { %v13232_v0 = vpop.f32.mrf.mxu1  ;;  %v16977_v38 = vpop.f32.mrf.mxu0 }
 0x513   : > { %v13233_v58 = vadd.f32 %v13232_v0, %v13231_v22 }
 0x514   : > { %v13234_v13 = vpop.f32.mrf.mxu1  ;;  %v16982_v7 = vpop.f32.mrf.mxu0 }
 0x515   : > { %v16980_v9 = vadd.f32 %v13233_v58, %v16655_v12 }
 0x516   : > { %13550 = vmatmul.mubr.bf16.gmra.mxu1 %v14171_v45  ;;  %v13235_v62 = vpop.f32.mrf.mxu1  ;;  %v16984_v51 = vpop.f32.mrf.mxu0 }
 0x517   : > { %v13236_v18 = vadd.f32 %v13235_v62, %v13234_v13 }
 0x518   : > { %v13237_v53 = vpop.f32.mrf.mxu1  ;;  %v16989_v21 = vpop.f32.mrf.mxu0 }
 0x519   : > { %v16987_v49 = vadd.f32 %v13236_v18, %v16658_v14 }
 0x51a   : > { %v13238_v50 = vpop.f32.mrf.mxu1  ;;  %v16991_v63 = vpop.f32.mrf.mxu0 }
 0x51b   : > { %v13239_v33 = vadd.f32 %v13238_v50, %v13237_v53 }
 0x51c   : > { %v13240_v30 = vpop.f32.mrf.mxu1  ;;  %v16996_v44 = vpop.f32.mrf.mxu0 }
 0x51d   : > { %v16994_v12 = vadd.f32 %v13239_v33, %v16671_v15 }
 0x51e   : > { %v13241_v25 = vpop.f32.mrf.mxu1  ;;  %v16998_v37 = vpop.f32.mrf.mxu0 }
 0x51f   : > { %v13242_v59 = vadd.f32 %v13241_v25, %v13240_v30  ;;  %v17020_v30 = vadd.f32 %v13342_v29, %v11107_v36 }
 0x520   : > { %v13243_v48 = vpop.f32.mrf.mxu1  ;;  %v17003_v8 = vpop.f32.mrf.mxu0 }
 0x521   : > { %v17001_v14 = vadd.f32 %v13242_v59, %v16679_v61  ;;  %v17015_v61 = vadd.f32 %v16957_v2, %v11104_v5 }
 0x522   : > { %v13244_v45 = vpop.f32.mrf.mxu1  ;;  %v17005_v0 = vpop.f32.mrf.mxu0 }
 0x523   : > { %v13245_v22 = vadd.f32 %v13244_v45, %v13243_v48 }
 0x524   : > { %v13246_v58 = vpop.f32.mrf.mxu1  ;;  %v17010_v13 = vpop.f32.mrf.mxu0 }
 0x525   : > { %v17008_v15 = vadd.f32 %v13245_v22, %v16701_v57 }
 0x526   : > { %v13247_v62 = vpop.f32.mrf.mxu1  ;;  %v17012_v50 = vpop.f32.mrf.mxu0 }
 0x527   : > { %v13248_v18 = vadd.f32 %v13247_v62, %v13246_v58 }
 0x528   : > { %v13249_v53 = vpop.f32.mrf.mxu1  ;;  %v17022_v59 = vpop.f32.mrf.mxu0 }
 0x529   : > { %v17018_v33 = vadd.f32 %v13248_v18, %v16711_v54 }
 0x52a   : > { %v13250_v25 = vpop.f32.mrf.mxu1  ;;  %v17027_v22 = vpop.f32.mrf.mxu0 }
 0x52b   : > { %v13251_v57 = vadd.f32 %v13250_v25, %v13249_v53 }
 0x52c   : > { %v13252_v48 = vpop.f32.mrf.mxu1  ;;  %v17032_v54 = vpop.f32.mrf.mxu0 }
 0x52d   : > { %v17025_v45 = vadd.f32 %v13251_v57, %v16732_v52 }
 0x52e   : > { %v13253_v58 = vpop.f32.mrf.mxu1  ;;  %v17037_v53 = vpop.f32.mrf.mxu0 }
 0x52f   : > { %v13254_v62 = vadd.f32 %v13253_v58, %v13252_v48  ;;  %17598 = vst [vmem:[#allocation26_spill] sm:$0xff] %v17037_v53 }
 0x530   : > { %v13255_v34 = vpop.f32.mrf.mxu1  ;;  %v17042_v48 = vpop.f32.mrf.mxu0 }
 0x531   : > { %v17030_v2 = vadd.f32 %v13254_v62, %v16745_v28  ;;  %17599 = vst [vmem:[#allocation27_spill] sm:$0xff] %v17042_v48 }
 0x532   : > { %v13256_v29 = vpop.f32.mrf.mxu1 }
 0x533   : > { %17597 = vst [vmem:[#allocation40_spill] sm:$0xff] %v17030_v2  ;;  %v13257_v5 = vadd.f32 %v13256_v29, %v13255_v34  ;;  %v17047_v34 = vpop.f32.mrf.mxu0 }
 0x534   : > { %v13258_v36 = vpop.f32.mrf.mxu1  ;;  %17601 = vst [vmem:[#allocation42_spill] sm:$0xff] %v17047_v34 }
 0x535   : > { %v17035_v18 = vadd.f32 %v13257_v5, %v16771_v56  ;;  %v17049_v53 = vpop.f32.mrf.mxu0 }
 0x536   : > { %v13259_v52 = vpop.f32.mrf.mxu1  ;;  %17602 = vst [vmem:[#allocation43_spill] sm:$0xff] %v17049_v53 }
 0x537   : > { %v13260_v25 = vadd.f32 %v13259_v52, %v13258_v36  ;;  %v17054_v48 = vpop.f32.mrf.mxu0 }
 0x538   : > { %v13261_v57 = vpop.f32.mrf.mxu1 }
 0x539   : > { %v17040_v46 = vadd.f32 %v13260_v25, %v16773_v4 }
 0x53a   : > { %v13262_v28 = vpop.f32.mrf.mxu1 }
 0x53b   : > { %v13263_v58 = vadd.f32 %v13262_v28, %v13261_v57 }
 0x53c   : > { %v13264_v62 = vpop.f32.mrf.mxu1 }
 0x53d   : > { %v17045_v2 = vadd.f32 %v13263_v58, %v16796_v10  ;;  %v17059_v58 = vpop.f32.mrf.mxu0 }
 0x53e   : > { %v13265_v56 = vpop.f32.mrf.mxu1 }
 0x53f   : > { %17600 = vst [vmem:[#allocation28_spill] sm:$0xff] %v17045_v2  ;;  %v13266_v29 = vadd.f32 %v13265_v56, %v13264_v62  ;;  %v17064_v34 = vpop.f32.mrf.mxu0 }
 0x540   : > { %v13267_v5 = vpop.f32.mrf.mxu1 }
 0x541   : > { %v17052_v36 = vadd.f32 %v13266_v29, %v16800_v35 }
 0x542   : > { %v13268_v4 = vpop.f32.mrf.mxu1 }
 0x543   : > { %17603 = vst [vmem:[#allocation45_spill] sm:$0xff] %v17052_v36  ;;  %v13269_v52 = vadd.f32 %v13268_v4, %v13267_v5  ;;  %v17069_v36 = vpop.f32.mrf.mxu0 }
 0x544   : > { %v13270_v25 = vpop.f32.mrf.mxu1 }
 0x545   : > { %v17057_v57 = vadd.f32 %v13269_v52, %v16825_v31 }
 0x546   : > { %v13271_v10 = vpop.f32.mrf.mxu1 }
 0x547   : > { %v13272_v28 = vadd.f32 %v13271_v10, %v13270_v25  ;;  %v17074_v25 = vpop.f32.mrf.mxu0 }
 0x548   : > { %v13273_v56 = vpop.f32.mrf.mxu1 }
 0x549   : > { %v17062_v62 = vadd.f32 %v13272_v28, %v16829_v26  ;;  %v17076_v28 = vpop.f32.mrf.mxu0 }
 0x54a   : > { %v13274_v53 = vpop.f32.mrf.mxu1  ;;  %17607 = vst [vmem:[#allocation29_spill] sm:$0xff] %v17076_v28 }
 0x54b   : > { %17604 = vst [vmem:[#allocation46_spill] sm:$0xff] %v17062_v62  ;;  %v13275_v35 = vadd.f32 %v13274_v53, %v13273_v56  ;;  %v17081_v56 = vpop.f32.mrf.mxu0 }
 0x54c   : > { %v13276_v29 = vpop.f32.mrf.mxu1  ;;  %17608 = vst [vmem:[#allocation30_spill] sm:$0xff] %v17081_v56 }
 0x54d   : > { %v17067_v5 = vadd.f32 %v13275_v35, %v16848_v43 }
 0x54e   : > { %v13277_v4 = vpop.f32.mrf.mxu1 }
 0x54f   : > { %17605 = vst [vmem:[#allocation48_spill] sm:$0xff] %v17067_v5  ;;  %v13278_v31 = vadd.f32 %v13277_v4, %v13276_v29  ;;  %v17086_v4 = vpop.f32.mrf.mxu0 }
 0x550   : > { %v13279_v26 = vpop.f32.mrf.mxu1  ;;  %17610 = vst [vmem:[#allocation32_spill] sm:$0xff] %v17086_v4 }
 0x551   : > { %v17072_v52 = vadd.f32 %v13278_v31, %v16854_v39 }
 0x552   : > { %v13280_v10 = vpop.f32.mrf.mxu1 }
 0x553   : > { %17606 = vst [vmem:[#allocation50_spill] sm:$0xff] %v17072_v52  ;;  %v13281_v62 = vadd.f32 %v13280_v10, %v13279_v26  ;;  %v17091_v26 = vpop.f32.mrf.mxu0 }
 0x554   : > { %v13282_v2 = vpop.f32.mrf.mxu1 }
 0x555   : > { %v17079_v53 = vadd.f32 %v13281_v62, %v16868_v55 }
 0x556   : > { %v13283_v43 = vpop.f32.mrf.mxu1 }
 0x557   : > { %v13284_v35 = vadd.f32 %v13283_v43, %v13282_v2  ;;  %v17096_v2 = vpop.f32.mrf.mxu0 }
 0x558   : > { %v13285_v39 = vpop.f32.mrf.mxu1 }
 0x559   : > { %v17084_v29 = vadd.f32 %v13284_v35, %v16882_v1  ;;  %v17098_v35 = vpop.f32.mrf.mxu0 }
 0x55a   : > { %v13286_v31 = vpop.f32.mrf.mxu1 }
 0x55b   : > { %17609 = vst [vmem:[#allocation31_spill] sm:$0xff] %v17084_v29  ;;  %v13287_v52 = vadd.f32 %v13286_v31, %v13285_v39 }
 0x55c   : > { %v13288_v5 = vpop.f32.mrf.mxu1 }
 0x55d   : > { %v17089_v28 = vadd.f32 %v13287_v52, %v16895_v16  ;;  %v17103_v52 = vpop.f32.mrf.mxu0 }
 0x55e   : > { %v13289_v55 = vpop.f32.mrf.mxu1 }
 0x55f   : > { %17611 = vst [vmem:[#allocation51_spill] sm:$0xff] %v17089_v28  ;;  %v13290_v62 = vadd.f32 %v13289_v55, %v13288_v5 }
 0x561   : > { %v17094_v10 = vadd.f32 %v13290_v62, %v16908_v19  ;;  %v17108_v19 = vpop.f32.mrf.mxu0 }
 0x563   : > { %17612 = vst [vmem:[#allocation52_spill] sm:$0xff] %v17094_v10  ;;  %v17110_v28 = vpop.f32.mrf.mxu0 }
 0x564   : > { %v13291_v1 = vpop.f32.mrf.mxu1 }
 0x566   : > { %v13292_v43 = vpop.f32.mrf.mxu1 }
 0x567   : > { %v13293_v29 = vadd.f32 %v13292_v43, %v13291_v1  ;;  %v17115_v43 = vpop.f32.mrf.mxu0 }
 0x568   : > { %v13294_v4 = vpop.f32.mrf.mxu1 }
 0x569   : > { %v17101_v39 = vadd.f32 %v13293_v29, %v16919_v47 }
 0x56a   : > { %v13295_v16 = vpop.f32.mrf.mxu1 }
 0x56b   : > { %17613 = vst [vmem:[#allocation33_spill] sm:$0xff] %v17101_v39  ;;  %v13296_v31 = vadd.f32 %v13295_v16, %v13294_v4  ;;  %v17120_v16 = vpop.f32.mrf.mxu0 }
 0x56c   : > { %17617 = vst [vmem:[#allocation37_spill] sm:$0xff] %v17120_v16 }
 0x56d   : > { %v17106_v5 = vadd.f32 %v13296_v31, %v16930_v20 }
 0x56f   : > { %17614 = vst [vmem:[#allocation34_spill] sm:$0xff] %v17106_v5 }
 0x570   : > { %v13297_v55 = vpop.f32.mrf.mxu1 }
 0x572   : > { %v13298_v62 = vpop.f32.mrf.mxu1 }
 0x573   : > { %v13299_v10 = vadd.f32 %v13298_v62, %v13297_v55  ;;  %v17122_v55 = vpop.f32.mrf.mxu0 }
 0x574   : > { %v13300_v56 = vpop.f32.mrf.mxu1 }
 0x575   : > { %v17113_v1 = vadd.f32 %v13299_v10, %v16937_v17 }
 0x576   : > { %v13301_v47 = vpop.f32.mrf.mxu1 }
 0x577   : > { %17615 = vst [vmem:[#allocation35_spill] sm:$0xff] %v17113_v1  ;;  %v13302_v29 = vadd.f32 %v13301_v47, %v13300_v56  ;;  %v17127_v1 = vpop.f32.mrf.mxu0 }
 0x579   : > { %v17118_v4 = vadd.f32 %v13302_v29, %v16947_v27  ;;  %v17132_v47 = vpop.f32.mrf.mxu0 }
 0x57b   : > { %17616 = vst [vmem:[#allocation23_spill] sm:$0xff] %v17118_v4 }
 0x57c   : > { %v13303_v20 = vpop.f32.mrf.mxu1 }
 0x57e   : > { %v13304_v31 = vpop.f32.mrf.mxu1 }
 0x57f   : > { %v13305_v5 = vadd.f32 %v13304_v31, %v13303_v20  ;;  %v17134_v20 = vpop.f32.mrf.mxu0 }
 0x580   : > { %v13306_v39 = vpop.f32.mrf.mxu1 }
 0x581   : > { %v17125_v62 = vadd.f32 %v13305_v5, %v16949_v6 }
 0x582   : > { %v13307_v17 = vpop.f32.mrf.mxu1 }
 0x583   : > { %17618 = vst [vmem:[#allocation41_spill] sm:$0xff] %v17125_v62  ;;  %v13308_v10 = vadd.f32 %v13307_v17, %v13306_v39  ;;  %v17141_v39 = vpop.f32.mrf.mxu0 }
 0x585   : > { %v17130_v56 = vadd.f32 %v13308_v10, %v16951_v42 }
 0x587   : > { %17619 = vst [vmem:[#allocation44_spill] sm:$0xff] %v17130_v56  ;;  %v13357_v56 = vadd.f32 %v16989_v21, %v16984_v51 }
 0x58a   : > { %v13309_v27 = vpop.f32.mrf.mxu1 }
 0x58c   : > { %v13310_v29 = vpop.f32.mrf.mxu1 }
 0x58d   : > { %v13311_v4 = vadd.f32 %v13310_v29, %v13309_v27  ;;  %v13345_v27 = vadd.f32 %v16965_v11, %v16961_v24  ;;  %v17152_v29 = vpop.f32.mrf.mxu0  ;;  %v17169_v24 = vld [vmem:[%s17467_s9] ss:$0 sm:$0xff] }
 0x58e   : > { %v13312_v16 = vpop.f32.mrf.mxu1 }
 0x58f   : > { %v17137_v31 = vadd.f32 %v13311_v4, %v16953_v3  ;;  %v11273_v4 = vadd.f32 %v13345_v27, %v16980_v9 }
 0x590   : > { %v13313_v6 = vpop.f32.mrf.mxu1 }
 0x591   : > { %17620 = vst [vmem:[#allocation47_spill] sm:$0xff] %v17137_v31  ;;  %v13314_v5 = vadd.f32 %v13313_v6, %v13312_v16  ;;  %v17160_v16 = vld [vmem:[%s17466_s8] ss:$0 sm:$0xff]  ;;  %v13348_v6 = vadd.f32 %v16970_v40, %v16967_v41 }
 0x592   : > { %v11630_v41 = vld [vmem:[%s14529_s29 + $0x10] sm:$0xff] }
 0x593   : > { %v17144_v42 = vadd.f32 %v13314_v5, %v16955_v23  ;;  %v17164_v5 = vpop.f32.mrf.mxu0  ;;  %v11276_v31 = vadd.f32 %v13348_v6, %v16987_v49  ;;  %v11289_v49 = vadd.f32 %v13357_v56, %v17008_v15 }
 0x594   : > { %v17139_v62 = vpop.f32.mrf.mxu1 }
 0x595   : > { %17621 = vst [vmem:[#allocation49_spill] sm:$0xff] %v17144_v42 }
 0x596   : > { %v17146_v17 = vpop.f32.mrf.mxu1 }
 0x598   : > { %v17148_v10 = vpop.f32.mrf.mxu1 }
 0x599   : > { %17622 = vst [vmem:[#allocation24_spill] sm:$0xff] %v17148_v10 }
 0x59a   : > { %v17154_v3 = vpop.f32.mrf.mxu1 }
 0x59b   : > { %17623 = vst [vmem:[#allocation22_spill] sm:$0xff] %v17154_v3  ;;  %v17177_v3 = vpop.f32.mrf.mxu0 }
 0x59c   : > { %v13523_v23 = vpop.f32.mrf.mxu1  ;;  %17624 = vst [vmem:[#allocation53_spill] sm:$0xff] %v17177_v3 }
 0x59d   : > { %v11434_v42 = vadd.f32 %v13523_v23, %v11273_v4 }
 0x59e   : > { %v11425_v11 = vpop.f32.mrf.mxu1 }
 0x59f   : > { %v11560_v9 = vmul.f32 %v17160_v16, %v11434_v42  ;;  %v11426_v27 = vadd.f32 %v11425_v11, %v17015_v61  ;;  %v13351_v42 = vadd.f32 %v16975_v60, %v16972_v32  ;;  %v11628_v61 = vld [vmem:[%s14529_s29] sm:$0xff]  ;;  %v17192_v32 = vpop.f32.mrf.mxu0 }
 0x5a0   : > { %v13524_v40 = vpop.f32.mrf.mxu1 }
 0x5a1   : > { %v11598_v4 = vadd.f32 %v17169_v24, %v11560_v9  ;;  %v11558_v23 = vmul.f32 %v17160_v16, %v11426_v27  ;;  %v11437_v10 = vadd.f32 %v13524_v40, %v11276_v31  ;;  %v13360_v9 = vadd.f32 %v16996_v44, %v16991_v63  ;;  %v11631_v27 = vld [vmem:[%s14529_s29 + $0x18] sm:$0xff] }
 0x5a2   : > { %v11428_v11 = vpop.f32.mrf.mxu1  ;;  %v11281_v40 = vadd.f32 %v13351_v42, %v16994_v12  ;;  %v13354_v44 = vadd.f32 %v16982_v7, %v16977_v38  ;;  %v11629_v12 = vld [vmem:[%s14529_s29 + $0x8] sm:$0xff]  ;;  %v17212_v7 = vpop.f32.mrf.mxu0 }
 0x5a3   : > { %v11662_v6 = vadd.f32 %v11630_v41, %v11598_v4  ;;  %v11596_v51 = vadd.f32 %v17169_v24, %v11558_v23  ;;  %v11561_v21 = vmul.f32 %v17160_v16, %v11437_v10  ;;  %v11429_v3 = vadd.f32 %v11428_v11, %v17020_v30 }
 0x5a4   : > { %v11292_v10 = vadd.f32 %v13360_v9, %v17018_v33  ;;  %v11284_v38 = vadd.f32 %v13354_v44, %v17001_v14  ;;  %v11632_v9 = vld [vmem:[%s14529_s29 + $0x20] sm:$0xff] }
 0x5a5   : > { %11694 = vst [vmem:[%s17196_s24 + $0x10] sm:$0xff] %v11662_v6  ;;  %v11660_v60 = vadd.f32 %v11628_v61, %v11596_v51  ;;  %v11599_v15 = vadd.f32 %v17169_v24, %v11561_v21  ;;  %v11559_v30 = vmul.f32 %v17160_v16, %v11429_v3  ;;  %v13369_v3 = vadd.f32 %v17022_v59, %v17012_v50  ;;  %v11634_v61 = vld [vmem:[%s14529_s29 + $0x30] sm:$0xff] }
 0x5a6   : > { %v13527_v31 = vpop.f32.mrf.mxu1  ;;  %v13363_v21 = vadd.f32 %v17003_v8, %v16998_v37  ;;  %v17228_v8 = vpop.f32.mrf.mxu0 }
 0x5a7   : > { %v11450_v63 = vadd.f32 %v13527_v31, %v11289_v49  ;;  %11692 = vst [vmem:[%s17196_s24] sm:$0xff] %v11660_v60  ;;  %v11663_v41 = vadd.f32 %v11631_v27, %v11599_v15  ;;  %v11597_v4 = vadd.f32 %v17169_v24, %v11559_v30  ;;  %v11305_v59 = vadd.f32 %v13369_v3, %v17035_v18  ;;  %v11635_v15 = vld [vmem:[%s14529_s29 + $0x38] sm:$0xff]  ;;  %v11638_v3 = vld [vmem:[%s14529_s29 + $0x50] sm:$0xff] }
 0x5a8   : > { %v11441_v56 = vpop.f32.mrf.mxu1  ;;  %v13372_v60 = vadd.f32 %v17032_v54, %v17027_v22  ;;  %v11297_v37 = vadd.f32 %v13363_v21, %v17025_v45 }
 0x5a9   : > { %v11564_v23 = vmul.f32 %v17160_v16, %v11450_v63  ;;  %v11442_v42 = vadd.f32 %v11441_v56, %v11281_v40  ;;  %11695 = vst [vmem:[%s17196_s24 + $0x18] sm:$0xff] %v11663_v41  ;;  %v11661_v33 = vadd.f32 %v11629_v12, %v11597_v4  ;;  %v13366_v56 = vadd.f32 %v17010_v13, %v17005_v0  ;;  %v17244_v13 = vpop.f32.mrf.mxu0 }
 0x5aa   : > { %v13528_v11 = vpop.f32.mrf.mxu1  ;;  %v11308_v54 = vadd.f32 %v13372_v60, %v17040_v46 }
 0x5ab   : > { %v11602_v49 = vadd.f32 %v17169_v24, %v11564_v23  ;;  %v11562_v6 = vmul.f32 %v17160_v16, %v11442_v42  ;;  %v11453_v51 = vadd.f32 %v13528_v11, %v11292_v10  ;;  %11693 = vst [vmem:[%s17196_s24 + $0x8] sm:$0xff] %v11661_v33  ;;  %v11633_v10 = vld [vmem:[%s14529_s29 + $0x28] sm:$0xff]  ;;  %v13381_v42 = vadd.f32 %v17059_v58, %v17054_v48  ;;  %v17625_v11 = vld [vmem:[#allocation40_spill] sm:$0xff] }
 0x5ac   : > { %v11444_v50 = vpop.f32.mrf.mxu1  ;;  %v11300_v0 = vadd.f32 %v13366_v56, %v17625_v11  ;;  %v17630_v56 = vld [vmem:[#allocation43_spill] sm:$0xff]  ;;  %v17632_v11 = vld [vmem:[#allocation45_spill] sm:$0xff] }
 0x5ad   : > { %v11666_v14 = vadd.f32 %v11634_v61, %v11602_v49  ;;  %v11600_v27 = vadd.f32 %v17169_v24, %v11562_v6  ;;  %v11565_v31 = vmul.f32 %v17160_v16, %v11453_v51  ;;  %v11445_v40 = vadd.f32 %v11444_v50, %v11284_v38  ;;  %v17626_v6 = vld [vmem:[#allocation26_spill] sm:$0xff]  ;;  %v17627_v51 = vld [vmem:[#allocation27_spill] sm:$0xff] }
 0x5ae   : > { %v13531_v30 = vpop.f32.mrf.mxu1  ;;  %v13375_v21 = vadd.f32 %v17627_v51, %v17626_v6  ;;  %v11321_v58 = vadd.f32 %v13381_v42, %v17057_v57  ;;  %v13393_v42 = vadd.f32 %v17096_v2, %v17091_v26  ;;  %v17633_v51 = vld [vmem:[#allocation29_spill] sm:$0xff] }
 0x5af   : > { %11698 = vst [vmem:[%s17196_s24 + $0x30] sm:$0xff] %v11666_v14  ;;  %v11664_v18 = vadd.f32 %v11632_v9, %v11600_v27  ;;  %v11603_v63 = vadd.f32 %v17169_v24, %v11565_v31  ;;  %v11563_v44 = vmul.f32 %v17160_v16, %v11445_v40  ;;  %v11466_v12 = vadd.f32 %v13531_v30, %v11305_v59  ;;  %v11636_v9 = vld [vmem:[%s14529_s29 + $0x40] sm:$0xff]  ;;  %v11639_v40 = vld [vmem:[%s14529_s29 + $0x58] sm:$0xff] }
 0x5b0   : > { %v11457_v22 = vpop.f32.mrf.mxu1  ;;  %v13384_v31 = vadd.f32 %v17069_v36, %v17064_v34  ;;  %v17631_v36 = vld [vmem:[#allocation46_spill] sm:$0xff]  ;;  %v11337_v2 = vadd.f32 %v13393_v42, %v17079_v53 }
 0x5b1   : > { %11696 = vst [vmem:[%s17196_s24 + $0x20] sm:$0xff] %v11664_v18  ;;  %v11667_v45 = vadd.f32 %v11635_v15, %v11603_v63  ;;  %v11601_v41 = vadd.f32 %v17169_v24, %v11563_v44  ;;  %v11568_v4 = vmul.f32 %v17160_v16, %v11466_v12  ;;  %v11458_v23 = vadd.f32 %v11457_v22, %v11297_v37  ;;  %v17628_v15 = vld [vmem:[#allocation28_spill] sm:$0xff]  ;;  %v17260_v37 = vpop.f32.mrf.mxu0  ;;  %v17629_v12 = vld [vmem:[#allocation42_spill] sm:$0xff]  ;;  %v11637_v22 = vld [vmem:[%s14529_s29 + $0x48] sm:$0xff] }
 0x5b2   : > { %v13532_v61 = vpop.f32.mrf.mxu1  ;;  %v11313_v30 = vadd.f32 %v13375_v21, %v17628_v15  ;;  %v13387_v21 = vadd.f32 %v17633_v51, %v17074_v25 }
 0x5b3   : > { %11699 = vst [vmem:[%s17196_s24 + $0x38] sm:$0xff] %v11667_v45  ;;  %v11665_v46 = vadd.f32 %v11633_v10, %v11601_v41  ;;  %v11606_v38 = vadd.f32 %v17169_v24, %v11568_v4  ;;  %v11566_v33 = vmul.f32 %v17160_v16, %v11458_v23  ;;  %v11469_v49 = vadd.f32 %v13532_v61, %v11308_v54 }
 0x5b4   : > { %v11460_v48 = vpop.f32.mrf.mxu1  ;;  %v13378_v10 = vadd.f32 %v17630_v56, %v17629_v12  ;;  %v11324_v54 = vadd.f32 %v13384_v31, %v17631_v36  ;;  %v11641_v12 = vld [vmem:[%s14529_s29 + $0x68] sm:$0xff] }
 0x5b5   : > { %11697 = vst [vmem:[%s17196_s24 + $0x28] sm:$0xff] %v11665_v46  ;;  %v11670_v50 = vadd.f32 %v11638_v3, %v11606_v38  ;;  %v11604_v59 = vadd.f32 %v17169_v24, %v11566_v33  ;;  %v11569_v14 = vmul.f32 %v17160_v16, %v11469_v49  ;;  %v11461_v27 = vadd.f32 %v11460_v48, %v11300_v0  ;;  %v11642_v3 = vld [vmem:[%s14529_s29 + $0x70] sm:$0xff]  ;;  %v17276_v46 = vpop.f32.mrf.mxu0 }
 0x5b6   : > { %v13535_v60 = vpop.f32.mrf.mxu1  ;;  %v11316_v0 = vadd.f32 %v13378_v10, %v17632_v11 }
 0x5b7   : > { %11702 = vst [vmem:[%s17196_s24 + $0x50] sm:$0xff] %v11670_v50  ;;  %v11668_v57 = vadd.f32 %v11636_v9, %v11604_v59  ;;  %v11607_v18 = vadd.f32 %v17169_v24, %v11569_v14  ;;  %v11567_v63 = vmul.f32 %v17160_v16, %v11461_v27  ;;  %v11482_v44 = vadd.f32 %v13535_v60, %v11321_v58  ;;  %v11640_v9 = vld [vmem:[%s14529_s29 + $0x60] sm:$0xff]  ;;  %v11643_v27 = vld [vmem:[%s14529_s29 + $0x78] sm:$0xff]  ;;  %v17292_v60 = vpop.f32.mrf.mxu0 }
 0x5b8   : > { %v11473_v34 = vpop.f32.mrf.mxu1  ;;  %v13396_v14 = vadd.f32 %v17103_v52, %v17098_v35  ;;  %v17637_v52 = vld [vmem:[#allocation31_spill] sm:$0xff] }
 0x5b9   : > { %11700 = vst [vmem:[%s17196_s24 + $0x40] sm:$0xff] %v11668_v57  ;;  %v11671_v45 = vadd.f32 %v11639_v40, %v11607_v18  ;;  %v11605_v41 = vadd.f32 %v17169_v24, %v11567_v63  ;;  %v11572_v4 = vmul.f32 %v17160_v16, %v11482_v44  ;;  %v11474_v23 = vadd.f32 %v11473_v34, %v11313_v30  ;;  %v17634_v40 = vld [vmem:[#allocation48_spill] sm:$0xff]  ;;  %v17635_v18 = vld [vmem:[#allocation30_spill] sm:$0xff]  ;;  %v17308_v42 = vpop.f32.mrf.mxu0 }
 0x5ba   : > { %v13536_v61 = vpop.f32.mrf.mxu1  ;;  %v11329_v25 = vadd.f32 %v13387_v21, %v17634_v40  ;;  %v17636_v63 = vld [vmem:[#allocation32_spill] sm:$0xff]  ;;  %v11340_v56 = vadd.f32 %v13396_v14, %v17637_v52 }
 0x5bb   : > { %11703 = vst [vmem:[%s17196_s24 + $0x58] sm:$0xff] %v11671_v45  ;;  %v11669_v38 = vadd.f32 %v11637_v22, %v11605_v41  ;;  %v11610_v33 = vadd.f32 %v17169_v24, %v11572_v4  ;;  %v11570_v49 = vmul.f32 %v17160_v16, %v11474_v23  ;;  %v11485_v6 = vadd.f32 %v13536_v61, %v11324_v54  ;;  %v11646_v45 = vld [vmem:[%s14529_s29 + $0x90] sm:$0xff]  ;;  %v17638_v4 = vld [vmem:[#allocation50_spill] sm:$0xff] }
 0x5bc   : > { %v11476_v26 = vpop.f32.mrf.mxu1  ;;  %v13390_v44 = vadd.f32 %v17636_v63, %v17635_v18  ;;  %v13405_v54 = vadd.f32 %v17127_v1, %v17122_v55  ;;  %v17639_v55 = vld [vmem:[#allocation33_spill] sm:$0xff] }
 0x5bd   : > { %11701 = vst [vmem:[%s17196_s24 + $0x48] sm:$0xff] %v11669_v38  ;;  %v11674_v48 = vadd.f32 %v11642_v3, %v11610_v33  ;;  %v11608_v58 = vadd.f32 %v17169_v24, %v11570_v49  ;;  %v11573_v50 = vmul.f32 %v17160_v16, %v11485_v6  ;;  %v11477_v59 = vadd.f32 %v11476_v26, %v11316_v0  ;;  %v11644_v33 = vld [vmem:[%s14529_s29 + $0x80] sm:$0xff]  ;;  %v13427_v6 = vpop.f32.mrf.mxu0 }
 0x5be   : > { %v13539_v31 = vpop.f32.mrf.mxu1  ;;  %v11332_v23 = vadd.f32 %v13390_v44, %v17638_v4  ;;  %v13399_v38 = vadd.f32 %v17110_v28, %v17108_v19  ;;  %v11353_v49 = vadd.f32 %v13405_v54, %v17639_v55  ;;  %v17640_v28 = vld [vmem:[#allocation51_spill] sm:$0xff]  ;;  %v13417_v44 = vadd.f32 %v17212_v7, %v17192_v32  ;;  %v11648_v32 = vld [vmem:[%s14529_s29 + $0xa0] sm:$0xff] }
 0x5bf   : > { %11706 = vst [vmem:[%s17196_s24 + $0x70] sm:$0xff] %v11674_v48  ;;  %v11672_v53 = vadd.f32 %v11640_v9, %v11608_v58  ;;  %v11611_v15 = vadd.f32 %v17169_v24, %v11573_v50  ;;  %v11571_v30 = vmul.f32 %v17160_v16, %v11477_v59  ;;  %v11498_v57 = vadd.f32 %v13539_v31, %v11337_v2  ;;  %v11647_v48 = vld [vmem:[%s14529_s29 + $0x98] sm:$0xff] }
 0x5c0   : > { %v11489_v35 = vpop.f32.mrf.mxu1  ;;  %v13408_v2 = vadd.f32 %v17134_v20, %v17132_v47  ;;  %v11345_v19 = vadd.f32 %v13399_v38, %v17640_v28  ;;  %v17641_v31 = vld [vmem:[#allocation37_spill] sm:$0xff]  ;;  %v13428_v20 = vpop.f32.mrf.mxu0  ;;  %v13317_v54 = vadd.f32 %v17146_v17, %v17139_v62  ;;  %v17646_v38 = vld [vmem:[#allocation35_spill] sm:$0xff] }
 0x5c1   : > { %11704 = vst [vmem:[%s17196_s24 + $0x60] sm:$0xff] %v11672_v53  ;;  %v11675_v10 = vadd.f32 %v11643_v27, %v11611_v15  ;;  %v11609_v22 = vadd.f32 %v17169_v24, %v11571_v30  ;;  %v11576_v34 = vmul.f32 %v17160_v16, %v11498_v57  ;;  %v11490_v36 = vadd.f32 %v11489_v35, %v11329_v25  ;;  %v11645_v25 = vld [vmem:[%s14529_s29 + $0x88] sm:$0xff]  ;;  %v17642_v15 = vld [vmem:[#allocation34_spill] sm:$0xff]  ;;  %v11651_v62 = vld [vmem:[%s14529_s29 + $0xb8] sm:$0xff] }
 0x5c2   : > { %v13540_v41 = vpop.f32.mrf.mxu1  ;;  %v13402_v40 = vadd.f32 %v17641_v31, %v17115_v43  ;;  %v11356_v47 = vadd.f32 %v13408_v2, %v17642_v15  ;;  %v17643_v43 = vld [vmem:[#allocation52_spill] sm:$0xff]  ;;  %v13430_v4 = vpop.f32.mrf.mxu0  ;;  %v17649_v2 = vld [vmem:[#allocation22_spill] sm:$0xff] }
 0x5c3   : > { %11707 = vst [vmem:[%s17196_s24 + $0x78] sm:$0xff] %v11675_v10  ;;  %v11673_v3 = vadd.f32 %v11641_v12, %v11609_v22  ;;  %v11614_v61 = vadd.f32 %v17169_v24, %v11576_v34  ;;  %v11574_v11 = vmul.f32 %v17160_v16, %v11490_v36  ;;  %v11501_v0 = vadd.f32 %v13540_v41, %v11340_v56  ;;  %v11650_v12 = vld [vmem:[%s14529_s29 + $0xb0] sm:$0xff] }
 0x5c4   : > { %v11492_v1 = vpop.f32.mrf.mxu1  ;;  %v11348_v52 = vadd.f32 %v13402_v40, %v17643_v43  ;;  %v13411_v36 = vadd.f32 %v17152_v29, %v17141_v39  ;;  %v13420_v29 = vadd.f32 %v17244_v13, %v17228_v8  ;;  %v11649_v13 = vld [vmem:[%s14529_s29 + $0xa8] sm:$0xff]  ;;  %v11654_v31 = vld [vmem:[%s14529_s29 + $0xd0] sm:$0xff] }
 0x5c5   : > { %11705 = vst [vmem:[%s17196_s24 + $0x68] sm:$0xff] %v11673_v3  ;;  %v11678_v51 = vadd.f32 %v11646_v45, %v11614_v61  ;;  %v11612_v21 = vadd.f32 %v17169_v24, %v11574_v11  ;;  %v11577_v9 = vmul.f32 %v17160_v16, %v11501_v0  ;;  %v11493_v26 = vadd.f32 %v11492_v1, %v11332_v23  ;;  %v17644_v45 = vld [vmem:[#allocation41_spill] sm:$0xff] }
 0x5c6   : > { %v13543_v58 = vpop.f32.mrf.mxu1  ;;  %v11369_v41 = vadd.f32 %v13417_v44, %v17644_v45  ;;  %v17645_v0 = vld [vmem:[#allocation53_spill] sm:$0xff]  ;;  %v11652_v44 = vld [vmem:[%s14529_s29 + $0xc0] sm:$0xff]  ;;  %v13426_v45 = vadd.f32 %v17308_v42, %v17292_v60 }
 0x5c7   : > { %11710 = vst [vmem:[%s17196_s24 + $0x90] sm:$0xff] %v11678_v51  ;;  %v11676_v50 = vadd.f32 %v11644_v33, %v11612_v21  ;;  %v11615_v59 = vadd.f32 %v17169_v24, %v11577_v9  ;;  %v11575_v14 = vmul.f32 %v17160_v16, %v11493_v26  ;;  %v11514_v27 = vadd.f32 %v13543_v58, %v11353_v49  ;;  %v17647_v21 = vld [vmem:[#allocation25_spill] sm:$0xff]  ;;  %v17648_v26 = vld [vmem:[#allocation24_spill] sm:$0xff] }
 0x5c8   : > { %v11505_v53 = vpop.f32.mrf.mxu1  ;;  %v13414_v39 = vadd.f32 %v17645_v0, %v17164_v5  ;;  %v11361_v33 = vadd.f32 %v13411_v36, %v17646_v38  ;;  %v11224_v9 = vadd.f32 %v13317_v54, %v17647_v21  ;;  %v13429_v5 = vadd.f32 %v13428_v20, %v13427_v6  ;;  %v17650_v58 = vld [vmem:[#allocation44_spill] sm:$0xff]  ;;  %v17651_v6 = vld [vmem:[#allocation23_spill] sm:$0xff] }
 0x5c9   : > { %11708 = vst [vmem:[%s17196_s24 + $0x80] sm:$0xff] %v11676_v50  ;;  %v11679_v30 = vadd.f32 %v11647_v48, %v11615_v59  ;;  %v11613_v57 = vadd.f32 %v17169_v24, %v11575_v14  ;;  %v11580_v18 = vmul.f32 %v17160_v16, %v11514_v27  ;;  %v11506_v63 = vadd.f32 %v11505_v53, %v11345_v19  ;;  %v13431_v19 = vpop.f32.mrf.mxu0  ;;  %v17653_v36 = vld [vmem:[#allocation47_spill] sm:$0xff] }
 0x5ca   : > { %v13544_v35 = vpop.f32.mrf.mxu1  ;;  %v13320_v8 = vadd.f32 %v17649_v2, %v17648_v26  ;;  %v11372_v28 = vadd.f32 %v13420_v29, %v17650_v58 }
 0x5cb   : > { %11711 = vst [vmem:[%s17196_s24 + $0x98] sm:$0xff] %v11679_v30  ;;  %v11677_v56 = vadd.f32 %v11645_v25, %v11613_v57  ;;  %v11618_v10 = vadd.f32 %v17169_v24, %v11580_v18  ;;  %v11578_v22 = vmul.f32 %v17160_v16, %v11506_v63  ;;  %v11517_v34 = vadd.f32 %v13544_v35, %v11356_v47  ;;  %v17652_v57 = vld [vmem:[#allocation39_spill] sm:$0xff] }
 0x5cc   : > { %v11508_v7 = vpop.f32.mrf.mxu1  ;;  %v11364_v25 = vadd.f32 %v13414_v39, %v17651_v6  ;;  %v13423_v30 = vadd.f32 %v17276_v46, %v17260_v37  ;;  %v11227_v18 = vadd.f32 %v13320_v8, %v17652_v57  ;;  %v13432_v63 = vadd.f32 %v13431_v19, %v13430_v4  ;;  %v11658_v39 = vld [vmem:[%s14529_s29 + $0xf0] sm:$0xff] }
 0x5cd   : > { %11709 = vst [vmem:[%s17196_s24 + $0x88] sm:$0xff] %v11677_v56  ;;  %v11682_v23 = vadd.f32 %v11650_v12, %v11618_v10  ;;  %v11616_v3 = vadd.f32 %v17169_v24, %v11578_v22  ;;  %v11581_v61 = vmul.f32 %v17160_v16, %v11517_v34  ;;  %v11509_v11 = vadd.f32 %v11508_v7, %v11348_v52  ;;  %v11655_v22 = vld [vmem:[%s14529_s29 + $0xd8] sm:$0xff] }
 0x5ce   : > { %v13547_v17 = vpop.f32.mrf.mxu1  ;;  %v11385_v35 = vadd.f32 %v13429_v5, %v11224_v9  ;;  %v11377_v37 = vadd.f32 %v13423_v30, %v17653_v36  ;;  %v11659_v5 = vld [vmem:[%s14529_s29 + $0xf8] sm:$0xff] }
 0x5cf   : > { %11714 = vst [vmem:[%s17196_s24 + $0xb0] sm:$0xff] %v11682_v23  ;;  %v11680_v1 = vadd.f32 %v11648_v32, %v11616_v3  ;;  %v11619_v55 = vadd.f32 %v17169_v24, %v11581_v61  ;;  %v11579_v49 = vmul.f32 %v17160_v16, %v11509_v11  ;;  %v11530_v51 = vadd.f32 %v13547_v17, %v11369_v41  ;;  %v11653_v41 = vld [vmem:[%s14529_s29 + $0xc8] sm:$0xff] }
 0x5d0   : > { %v11521_v48 = vpop.f32.mrf.mxu1  ;;  %v11388_v23 = vadd.f32 %v13432_v63, %v11227_v18 }
 0x5d1   : > { %11712 = vst [vmem:[%s17196_s24 + $0xa0] sm:$0xff] %v11680_v1  ;;  %v11683_v50 = vadd.f32 %v11651_v62, %v11619_v55  ;;  %v11617_v59 = vadd.f32 %v17169_v24, %v11579_v49  ;;  %v11584_v14 = vmul.f32 %v17160_v16, %v11530_v51  ;;  %v11522_v27 = vadd.f32 %v11521_v48, %v11361_v33  ;;  %v17654_v62 = vld [vmem:[#allocation49_spill] sm:$0xff]  ;;  %v11656_v1 = vld [vmem:[%s14529_s29 + $0xe0] sm:$0xff] }
 0x5d2   : > { %v13548_v40 = vpop.f32.mrf.mxu1  ;;  %v11380_v17 = vadd.f32 %v13426_v45, %v17654_v62 }
 0x5d3   : > { %11715 = vst [vmem:[%s17196_s24 + $0xb8] sm:$0xff] %v11683_v50  ;;  %v11681_v53 = vadd.f32 %v11649_v13, %v11617_v59  ;;  %v11622_v15 = vadd.f32 %v17169_v24, %v11584_v14  ;;  %v11582_v47 = vmul.f32 %v17160_v16, %v11522_v27  ;;  %v11533_v20 = vadd.f32 %v13548_v40, %v11372_v28  ;;  %v11657_v13 = vld [vmem:[%s14529_s29 + $0xe8] sm:$0xff]  ;;  %s14338_s29 = smov [#allocation12]  }
 0x5d4   : > { %v11524_v12 = vpop.f32.mrf.mxu1  ;;  %s14264_s28 = sshll.u32 %s14338_s29, 4  ;;  %s14265_s28 = int_to_ptr.vmem [resolvable:$false] %s14264_s28 }
 0x5d5   : > { %11713 = vst [vmem:[%s17196_s24 + $0xa8] sm:$0xff] %v11681_v53  ;;  %v11686_v43 = vadd.f32 %v11654_v31, %v11622_v15  ;;  %v11620_v52 = vadd.f32 %v17169_v24, %v11582_v47  ;;  %v11585_v56 = vmul.f32 %v17160_v16, %v11533_v20  ;;  %v11525_v10 = vadd.f32 %v11524_v12, %v11364_v25  ;;  %s14266_s12 = scalar_lea.vmem %s14265_s28, 8192  ;;  %p14267_p6 = scmp.lt.s32.totalorder %s17413_s25, %s14265_s28 }
 0x5d6   : > { %v13551_v34 = vpop.f32.mrf.mxu1  ;;  %p14268_p12 = scmp.lt.s32.totalorder %s14266_s12, %s14260_s2 }
 0x5d7   : > { %11718 = vst [vmem:[%s17196_s24 + $0xd0] sm:$0xff] %v11686_v43  ;;  %v11684_v46 = vadd.f32 %v11652_v44, %v11620_v52  ;;  %v11623_v54 = vadd.f32 %v17169_v24, %v11585_v56  ;;  %v11583_v32 = vmul.f32 %v17160_v16, %v11525_v10  ;;  %v11546_v7 = vadd.f32 %v13551_v34, %v11385_v35 }
 0x5d8   : > { %v11537_v4 = vpop.f32.mrf.mxu1  ;;  %p14269_p7 = por %p14268_p12, %p14267_p6 }
 0x5d9   : > { %11716 = vst [vmem:[%s17196_s24 + $0xc0] sm:$0xff] %v11684_v46  ;;  %v11687_v3 = vadd.f32 %v11655_v22, %v11623_v54  ;;  %v11621_v61 = vadd.f32 %v17169_v24, %v11583_v32  ;;  %v11588_v11 = vmul.f32 %v17160_v16, %v11546_v7  ;;  %v11538_v0 = vadd.f32 %v11537_v4, %v11377_v37 }
 0x5da   : > { %v13552_v29 = vpop.f32.mrf.mxu1  ;;  %p14270_p9 = pnand %p14269_p7, %p14263_p2 }
 0x5db   : > { %11719 = vst [vmem:[%s17196_s24 + $0xd8] sm:$0xff] %v11687_v3  ;;  %v11685_v60 = vadd.f32 %v11653_v41, %v11621_v61  ;;  %v11626_v42 = vadd.f32 %v17169_v24, %v11588_v11  ;;  %v11586_v38 = vmul.f32 %v17160_v16, %v11538_v0  ;;  %v11549_v33 = vadd.f32 %v13552_v29, %v11388_v23 }
 0x5dc   : > { %v11540_v55 = vpop.f32.mrf.mxu1 }
 0x5dd   : > { %11717 = vst [vmem:[%s17196_s24 + $0xc8] sm:$0xff] %v11685_v60  ;;  %v11690_v49 = vadd.f32 %v11658_v39, %v11626_v42  ;;  %v11624_v51 = vadd.f32 %v17169_v24, %v11586_v38  ;;  %v11589_v21 = vmul.f32 %v17160_v16, %v11549_v33  ;;  %v11541_v9 = vadd.f32 %v11540_v55, %v11380_v17 }
 0x5df   : > { %11722 = vst [vmem:[%s17196_s24 + $0xf0] sm:$0xff] %v11690_v49  ;;  %v11688_v26 = vadd.f32 %v11656_v1, %v11624_v51  ;;  %v11627_v2 = vadd.f32 %v17169_v24, %v11589_v21  ;;  %v11587_v8 = vmul.f32 %v17160_v16, %v11541_v9 }
 0x5e1   : > { %11720 = vst [vmem:[%s17196_s24 + $0xe0] sm:$0xff] %v11688_v26  ;;  %v11691_v48 = vadd.f32 %v11659_v5, %v11627_v2  ;;  %v11625_v58 = vadd.f32 %v17169_v24, %v11587_v8 }
 0x5e3   : > { %11723 = vst [vmem:[%s17196_s24 + $0xf8] sm:$0xff] %v11691_v48  ;;  %v11689_v28 = vadd.f32 %v11657_v13, %v11625_v58 }
 0x5e5   : > { %11721 = vst [vmem:[%s17196_s24 + $0xe8] sm:$0xff] %v11689_v28 }
 0x5e6   : > { %14273 = shalt.err (!%p14270_p9)
}
 0x5e7   : > { %s14274_s1 = scalar_lea.hbm %s17411_s26, 4096  ;;  %s14278_s18 = scalar_lea.hbm %s17468_s10, 8192 }
 0x5e8   : > { %p14275_p13 = scmp.ne.s32.totalorder %s17411_s26, %s14274_s1  ;;  %p14279_p4 = scmp.lt.s32.totalorder %s17411_s26, %s17468_s10 }
 0x5e9   : > { %p14280_p8 = scmp.lt.s32.totalorder %s14278_s18, %s14274_s1 }
 0x5ea   : > { %p14276_p5 = pnand %p14275_p13, %p17655_p10 }
 0x5eb   : > { %p14281_p3 = por %p14280_p8, %p14279_p4 }
 0x5ec   : > { %p14277_p0 = pneg %p14276_p5 }
 0x5ee   : > { %p14282_p11 = pnand %p14281_p3, %p14277_p0 }
 0x5f0   : > { %14285 = shalt.err (!%p14282_p11)
}
 0x5f1   : > { %s14339_s22 = smov 128   ;;  %s14340_s11 = smov 8  }
 0x5f2   : > { %13563 = dma.vmem_to_hbm [thread:$0]  (%p17655_p10), %s17413_s25, 4096, %s17411_s26, %s11725_s17, %s14339_s22, %s14339_s22, %s14340_s11  }
 0x5f3 PF: > { %s11753_s2 = sand.u32 1, %s14316_s13   ;;  %p17656_p1 = scmp.ne.s32.totalorder %s17486_s20, 0 }
 0x5f4   : > { %p17657_p2 = scmp.ge.s32.totalorder %s14328_s16, 2  ;;  %s11754_s29 = scalar_lea.sflag [#allocation8], %s11753_s2 }
 0x5f6   : > { %p13577_p6 = pnand %p17657_p2, %p17656_p1 }
 0x5f8   : > { %p13578_p12 = pneg %p13577_p6 }
 0x5fa   : > { %14311 = dma.done.wait (%p13578_p12), %s11754_s29, 4096  }
 0x5fb   : > { %14313 = vsyncadd (%p13578_p12), %s11754_s29, 4294963200  ;;  %s17658_s28 = sld [smem:[#allocation16_spill]]  ;;  %p24_p7 = scmp.ge.s32.totalorder %s14468_s23, 4  }
 0x5fc   : > { %s17659_s15 = sld [smem:[#allocation17_spill]]  ;;  %s17660_s13 = smov %s14320_s14 }
 0x5fd   : > { %s17662_s16 = smov %s14468_s23  ;;  %26 = sbr.rel (!%p24_p7) target bundleno = 9 (0x9), region = 119 }
 0x601   : > { %s17661_s14 = smov %s17658_s28 }
 0x602   :  { %11759 = vsyncpa [#allocation7], 1 }
 0x603   :  { %11761 = vsyncpa [#allocation7 + $0x1], 1 }
 0x604   :  { %11762 = vsyncpa [#allocation10], 1 }
 0x605   :  { %11763 = vsyncpa [#allocation8], 1 }
 0x606   :  { %11765 = vsyncpa [#allocation8 + $0x1], 1 }

</bundles_post_ra>
